<compile_context>
chip_gen: v7x
topology: tpu7x:2x2x1
jax: 0.10.0
libtpu: 0.0.40
codegen_flags: <defaults>
</compile_context>

<pallas_src>
import jax
import jax.numpy as jnp
from jax.experimental import pallas as pl
from jax.experimental.pallas import tpu as pltpu

BN_EPS = 1e-5
VMEM_LIMIT_BYTES = 24 * 1024 * 1024


def _pad128(d):
    return ((d + 127) // 128) * 128


# --------------------------------------------------------------------------
# Fully fused kernel: 3x [ h = tanh(h @ W + b) * scale + shift ]
#   refs = (x_ref, w1_ref, v1_ref, w2_ref, v2_ref, w3_ref, v3_ref, o_ref)
#   w*: (K, N) bf16 resident in VMEM; v*: (3, N) f32 = [bias; scale; shift]
# --------------------------------------------------------------------------
def fused_mlp_kernel(*refs):
    o_ref = refs[-1]
    n_layers = (len(refs) - 2) // 2

    h = refs[0][...]                                   # (B, K0) bf16
    for i in range(n_layers):
        w_ref = refs[1 + 2 * i]
        v_ref = refs[2 + 2 * i]
        v = v_ref[...]                                 # (3, N) f32
        # bf16 x bf16 matmul on the MXU, f32 accumulation.
        acc = jnp.dot(h, w_ref[...], preferred_element_type=jnp.float32)
        acc = jnp.tanh(acc + v[0:1, :])                # bias + EUP tanh (f32)
        acc = acc * v[1:2, :] + v[2:3, :]              # folded BatchNorm affine
        if i < n_layers - 1:
            h = acc.astype(jnp.bfloat16)               # MXU input for next layer
        else:
            h = acc
        # Dropout(p=0.01): eval mode -> identity.
    o_ref[...] = h.astype(o_ref.dtype)


def fused_mlp(x, packed):
    """x: (B, K0) bf16 (padded to 128 lanes). packed: list of {'w','v'}."""
    B = x.shape[0]
    n_out = packed[-1]["w"].shape[1]
    args = [x]
    for p in packed:
        args.extend((p["w"], p["v"]))
    vmem = pl.BlockSpec(memory_space=pltpu.MemorySpace.VMEM)
    return pl.pallas_call(
        fused_mlp_kernel,
        out_shape=jax.ShapeDtypeStruct((B, n_out), jnp.float32),
        in_specs=[vmem] * len(args),
        out_specs=vmem,
        compiler_params=pltpu.CompilerParams(
            vmem_limit_bytes=VMEM_LIMIT_BYTES,
        ),
    )(*args)


# --------------------------------------------------------------------------
# Parameter init (PyTorch layout) + one-time packing for the kernel
# --------------------------------------------------------------------------
def init_mlp_params(key, hidden_dim=(1000, 2048, 512)):
    """Deterministic synthetic init matching the module's parameter shapes."""
    dims_in = [hidden_dim[0]] + list(hidden_dim[:-1])   # [1000, 1000, 2048]
    dims_out = [hidden_dim[0]] + list(hidden_dim[1:])   # [1000, 2048,  512]
    params = []
    for din, dout in zip(dims_in, dims_out):
        key, k1, k2, k3, k4, k5, k6 = jax.random.split(key, 7)
        bound = 1.0 / float(din) ** 0.5
        params.append(dict(
            # PyTorch Linear stores W as (out, in).
            w=jax.random.uniform(k1, (dout, din), jnp.float32, -bound, bound),
            b=jax.random.uniform(k2, (dout,), jnp.float32, -bound, bound),
            gamma=jax.random.uniform(k3, (dout,), jnp.float32, 0.5, 1.5),
            beta=jax.random.uniform(k4, (dout,), jnp.float32, -0.5, 0.5),
            mean=jax.random.uniform(k5, (dout,), jnp.float32, -0.1, 0.1),
            var=jax.random.uniform(k6, (dout,), jnp.float32, 0.5, 1.5),
        ))
    return params


def pack_params(params):
    """One-time packing (OUTSIDE the jitted forward):
       * transpose W to (K, N), zero-pad feature dims to multiples of 128,
         cast to bf16,
       * fold BN into scale/shift and pack [bias; scale; shift] into a single
         (3, N) f32 array per layer."""
    packed = []
    for p in params:
        dout, din = p["w"].shape
        kp, npad = _pad128(din), _pad128(dout)

        w = jnp.zeros((kp, npad), jnp.float32).at[:din, :dout].set(p["w"].T)
        w = w.astype(jnp.bfloat16)

        scale = p["gamma"] * jax.lax.rsqrt(p["var"] + BN_EPS)
        shift = p["beta"] - p["mean"] * scale
        v = jnp.zeros((3, npad), jnp.float32)
        v = v.at[0, :dout].set(p["b"])
        v = v.at[1, :dout].set(scale)
        v = v.at[2, :dout].set(shift)

        packed.append(dict(w=w, v=v))
    return packed


@jax.jit
def mlp_forward(x, packed):
    k0 = packed[0]["w"].shape[0]
    if x.shape[1] < k0:                          # pad 1000 -> 1024 input features
        x = jnp.pad(x, ((0, 0), (0, k0 - x.shape[1])))
    return fused_mlp(x.astype(jnp.bfloat16), packed)


def mlp_reference(x, params):
    """Pure-JAX reference of the same eval-mode forward, using the same bf16
    weight/activation quantization and f32 accumulation as the kernel."""
    for p in params:
        w = p["w"].T.astype(jnp.bfloat16)
        h = jnp.dot(x.astype(jnp.bfloat16), w,
                    preferred_element_type=jnp.float32) + p["b"]
        h = jnp.tanh(h)
        scale = p["gamma"] * jax.lax.rsqrt(p["var"] + BN_EPS)
        x = h * scale + (p["beta"] - p["mean"] * scale)
    return x


if __name__ == "__main__":
    key = jax.random.PRNGKey(0)
    kx, kp = jax.random.split(key)

    batch = 8
    hidden_dim = (1000, 2048, 512)
    x = jax.random.normal(kx, (batch, hidden_dim[0]), jnp.float32)

    params = init_mlp_params(kp, hidden_dim)
    packed = pack_params(params)

    out = mlp_forward(x, packed)
    out = jax.block_until_ready(out)

    ref = mlp_reference(x, params)
    assert out.shape == (batch, hidden_dim[-1]), out.shape
    assert jnp.allclose(out, ref, rtol=1e-2, atol=1e-2), float(
        jnp.max(jnp.abs(out - ref)))

    print("KERNEL_OK")
</pallas_src>

<mosaic_0001>
module attributes {stable_mosaic.version = 11 : i64} {
  func.func @fused_mlp_kernel(%arg0: memref<8x1024xbf16, #tpu.memory_space<vmem>>, %arg1: memref<1024x1024xbf16, #tpu.memory_space<vmem>>, %arg2: memref<3x1024xf32, #tpu.memory_space<vmem>>, %arg3: memref<1024x2048xbf16, #tpu.memory_space<vmem>>, %arg4: memref<3x2048xf32, #tpu.memory_space<vmem>>, %arg5: memref<2048x512xbf16, #tpu.memory_space<vmem>>, %arg6: memref<3x512xf32, #tpu.memory_space<vmem>>, %arg7: memref<8x512xf32, #tpu.memory_space<vmem>>) attributes {dimension_semantics = [], scalar_prefetch = 0 : i64, scratch_operands = 0 : i64, tpu.core_type = #tpu.core_type<tc>} {
    %c0 = arith.constant 0 : index
    %c0_0 = arith.constant 0 : index
    %0 = vector.load %arg0[%c0, %c0_0] : memref<8x1024xbf16, #tpu.memory_space<vmem>>, vector<8x1024xbf16>
    %c0_1 = arith.constant 0 : index
    %c0_2 = arith.constant 0 : index
    %1 = vector.load %arg2[%c0_1, %c0_2] : memref<3x1024xf32, #tpu.memory_space<vmem>>, vector<3x1024xf32>
    %c0_3 = arith.constant 0 : index
    %c0_4 = arith.constant 0 : index
    %2 = vector.load %arg1[%c0_3, %c0_4] : memref<1024x1024xbf16, #tpu.memory_space<vmem>>, vector<1024x1024xbf16>
    %cst = arith.constant dense<0.000000e+00> : vector<8x1024xf32>
    %3 = tpu.matmul %0, %2, %cst {dimension_numbers = #tpu.dot_dimension_numbers<[1], [0], [0], [1], [0, 0, 1, 1], [], []>} : vector<8x1024xbf16>, vector<1024x1024xbf16>, vector<8x1024xf32> -> vector<8x1024xf32>
    %4 = vector.extract_strided_slice %1 {offsets = [0, 0], sizes = [1, 1024], strides = [1, 1]} : vector<3x1024xf32> to vector<1x1024xf32>
    %5 = vector.broadcast %4 : vector<1x1024xf32> to vector<8x1024xf32>
    %6 = arith.addf %3, %5 : vector<8x1024xf32>
    %7 = math.tanh %6 : vector<8x1024xf32>
    %8 = vector.extract_strided_slice %1 {offsets = [1, 0], sizes = [1, 1024], strides = [1, 1]} : vector<3x1024xf32> to vector<1x1024xf32>
    %9 = vector.broadcast %8 : vector<1x1024xf32> to vector<8x1024xf32>
    %10 = arith.mulf %7, %9 : vector<8x1024xf32>
    %11 = vector.extract_strided_slice %1 {offsets = [2, 0], sizes = [1, 1024], strides = [1, 1]} : vector<3x1024xf32> to vector<1x1024xf32>
    %12 = vector.broadcast %11 : vector<1x1024xf32> to vector<8x1024xf32>
    %13 = arith.addf %10, %12 : vector<8x1024xf32>
    %14 = arith.truncf %13 : vector<8x1024xf32> to vector<8x1024xbf16>
    %c0_5 = arith.constant 0 : index
    %c0_6 = arith.constant 0 : index
    %15 = vector.load %arg4[%c0_5, %c0_6] : memref<3x2048xf32, #tpu.memory_space<vmem>>, vector<3x2048xf32>
    %c0_7 = arith.constant 0 : index
    %c0_8 = arith.constant 0 : index
    %16 = vector.load %arg3[%c0_7, %c0_8] : memref<1024x2048xbf16, #tpu.memory_space<vmem>>, vector<1024x2048xbf16>
    %cst_9 = arith.constant dense<0.000000e+00> : vector<8x2048xf32>
    %17 = tpu.matmul %14, %16, %cst_9 {dimension_numbers = #tpu.dot_dimension_numbers<[1], [0], [0], [1], [0, 0, 1, 1], [], []>} : vector<8x1024xbf16>, vector<1024x2048xbf16>, vector<8x2048xf32> -> vector<8x2048xf32>
    %18 = vector.extract_strided_slice %15 {offsets = [0, 0], sizes = [1, 2048], strides = [1, 1]} : vector<3x2048xf32> to vector<1x2048xf32>
    %19 = vector.broadcast %18 : vector<1x2048xf32> to vector<8x2048xf32>
    %20 = arith.addf %17, %19 : vector<8x2048xf32>
    %21 = math.tanh %20 : vector<8x2048xf32>
    %22 = vector.extract_strided_slice %15 {offsets = [1, 0], sizes = [1, 2048], strides = [1, 1]} : vector<3x2048xf32> to vector<1x2048xf32>
    %23 = vector.broadcast %22 : vector<1x2048xf32> to vector<8x2048xf32>
    %24 = arith.mulf %21, %23 : vector<8x2048xf32>
    %25 = vector.extract_strided_slice %15 {offsets = [2, 0], sizes = [1, 2048], strides = [1, 1]} : vector<3x2048xf32> to vector<1x2048xf32>
    %26 = vector.broadcast %25 : vector<1x2048xf32> to vector<8x2048xf32>
    %27 = arith.addf %24, %26 : vector<8x2048xf32>
    %28 = arith.truncf %27 : vector<8x2048xf32> to vector<8x2048xbf16>
    %c0_10 = arith.constant 0 : index
    %c0_11 = arith.constant 0 : index
    %29 = vector.load %arg6[%c0_10, %c0_11] : memref<3x512xf32, #tpu.memory_space<vmem>>, vector<3x512xf32>
    %c0_12 = arith.constant 0 : index
    %c0_13 = arith.constant 0 : index
    %30 = vector.load %arg5[%c0_12, %c0_13] : memref<2048x512xbf16, #tpu.memory_space<vmem>>, vector<2048x512xbf16>
    %cst_14 = arith.constant dense<0.000000e+00> : vector<8x512xf32>
    %31 = tpu.matmul %28, %30, %cst_14 {dimension_numbers = #tpu.dot_dimension_numbers<[1], [0], [0], [1], [0, 0, 1, 1], [], []>} : vector<8x2048xbf16>, vector<2048x512xbf16>, vector<8x512xf32> -> vector<8x512xf32>
    %32 = vector.extract_strided_slice %29 {offsets = [0, 0], sizes = [1, 512], strides = [1, 1]} : vector<3x512xf32> to vector<1x512xf32>
    %33 = vector.broadcast %32 : vector<1x512xf32> to vector<8x512xf32>
    %34 = arith.addf %31, %33 : vector<8x512xf32>
    %35 = math.tanh %34 : vector<8x512xf32>
    %36 = vector.extract_strided_slice %29 {offsets = [1, 0], sizes = [1, 512], strides = [1, 1]} : vector<3x512xf32> to vector<1x512xf32>
    %37 = vector.broadcast %36 : vector<1x512xf32> to vector<8x512xf32>
    %38 = arith.mulf %35, %37 : vector<8x512xf32>
    %39 = vector.extract_strided_slice %29 {offsets = [2, 0], sizes = [1, 512], strides = [1, 1]} : vector<3x512xf32> to vector<1x512xf32>
    %40 = vector.broadcast %39 : vector<1x512xf32> to vector<8x512xf32>
    %41 = arith.addf %38, %40 : vector<8x512xf32>
    %c0_15 = arith.constant 0 : index
    %c0_16 = arith.constant 0 : index
    %42 = vector.load %arg7[%c0_15, %c0_16] : memref<8x512xf32, #tpu.memory_space<vmem>>, vector<8x512xf32>
    tpu.vector_store %arg7[%c0_15, %c0_16], %41 {strides = array<i32>} : memref<8x512xf32, #tpu.memory_space<vmem>>, vector<8x512xf32>,
    return
  }
}

</mosaic_0001>

<bundles_post_ra>
// kernel: mlp_forward.1
= control target key start
LH: loop header
LB: loop body
LE: loop exit
PB: predicated region body
PF: predicated region fallthrough
CT: control target
= control target key end

     0   :  { %12 = vsyncpa [#allocation3], 0  ;;  %s19910_s0 = inlined_call_operand.vmem [shape: bf16[8,1024], index: 0, kind: input, shape index: {}]   ;;  %s19911_s1 = inlined_call_operand.hbm [shape: bf16[1024,1024], index: 1, kind: input, shape index: {}]   ;;  %s19912_s2 = inlined_call_operand.hbm [shape: f32[3,1024], index: 2, kind: input, shape index: {}]   ;;  %s19913_s3 = inlined_call_operand.hbm [shape: bf16[1024,2048], index: 3, kind: input, shape index: {}]   ;;  %s19914_s4 = inlined_call_operand.hbm [shape: f32[3,2048], index: 4, kind: input, shape index: {}]   ;;  %s19915_s5 = inlined_call_operand.hbm [shape: bf16[2048,512], index: 5, kind: input, shape index: {}]   ;;  %s19916_s6 = inlined_call_operand.hbm [shape: f32[3,512], index: 6, kind: input, shape index: {}]   ;;  %s19917_s7 = inlined_call_operand.hbm [shape: f32[8,512], index: 7, kind: output, shape index: {}]  }
   0x1   :  { %13 = vsyncpa [#allocation6], 0 }
   0x2   :  { %14 = vsyncpa [#allocation9], 0 }
   0x3   :  { %15 = vsyncpa [#allocation12], 0 }
   0x4   :  { %16 = vsyncpa [#allocation4], 0  ;;  %s19261_s24 = smov [#allocation5]   ;;  %s19262_s26 = smov [#allocation8]  }
   0x5   :  { %s37_s25 = sshll.u32 %s19261_s24, 4  ;;  %s59_s27 = sshll.u32 %s19262_s26, 4  ;;  %s38_s25 = int_to_ptr.vmem [resolvable:$true] %s37_s25  ;;  %s60_s27 = int_to_ptr.vmem [resolvable:$true] %s59_s27 }
   0x6   :  { %s19097_s30 = scalar_lea.hbm %s19912_s2, 512 }
   0x7   :  { %p19098_p0 = scmp.ne.s32.totalorder %s19912_s2, %s19097_s30  ;;  %p19101_p1 = scmp.lt.u32.totalorder %s19097_s30, %s19912_s2 }
   0x9   :  { %p19103_p2 = pnand %p19101_p1, %p19098_p0 }
   0xb   :  { %19106 = shalt.err (!%p19103_p2)
}
   0xc   :  { %s19107_s12 = scalar_lea.vmem %s38_s25, 512  ;;  %p19112_p4 = scmp.lt.s32.totalorder %s38_s25, %s38_s25 }
   0xd   :  { %p19108_p3 = scmp.ne.s32.totalorder %s38_s25, %s19107_s12  ;;  %p19113_p5 = scmp.lt.s32.totalorder %s19107_s12, %s19107_s12 }
   0xf   :  { %p19114_p6 = por %p19113_p5, %p19112_p4 }
  0x11   :  { %p19115_p7 = pnand %p19114_p6, %p19108_p3 }
  0x13   :  { %19118 = shalt.err (!%p19115_p7)
}
  0x14   :  { %40 = dma.hbm_to_vmem [thread:$0]  %s19912_s2, 512, %s38_s25, [#allocation6]  }
  0x15   :  { %s19119_s17 = scalar_lea.hbm %s19914_s4, 1024 }
  0x16   :  { %p19120_p8 = scmp.ne.s32.totalorder %s19914_s4, %s19119_s17  ;;  %p19123_p9 = scmp.lt.u32.totalorder %s19119_s17, %s19914_s4 }
  0x18   :  { %p19125_p10 = pnand %p19123_p9, %p19120_p8 }
  0x1a   :  { %19128 = shalt.err (!%p19125_p10)
}
  0x1b   :  { %s19129_s22 = scalar_lea.vmem %s60_s27, 1024  ;;  %p19134_p12 = scmp.lt.s32.totalorder %s60_s27, %s60_s27 }
  0x1c   :  { %p19130_p11 = scmp.ne.s32.totalorder %s60_s27, %s19129_s22  ;;  %p19135_p13 = scmp.lt.s32.totalorder %s19129_s22, %s19129_s22 }
  0x1e   :  { %p19136_p0 = por %p19135_p13, %p19134_p12 }
  0x20   :  { %p19137_p1 = pnand %p19136_p0, %p19130_p11 }
  0x22   :  { %19140 = shalt.err (!%p19137_p1)
}
  0x23   :  { %62 = dma.hbm_to_vmem [thread:$0]  %s19914_s4, 1024, %s60_s27, [#allocation9]  }
  0x24   :  { %s19263_s24 = smov [#allocation2]   ;;  %s19141_s29 = scalar_lea.hbm %s19911_s1, 65536 }
  0x25   :  { %s24_s25 = sshll.u32 %s19263_s24, 4  ;;  %p19142_p2 = scmp.ne.s32.totalorder %s19911_s1, %s19141_s29  ;;  %s25_s25 = int_to_ptr.vmem [resolvable:$true] %s24_s25 }
  0x26   :  { %p19145_p3 = scmp.lt.u32.totalorder %s19141_s29, %s19911_s1 }
  0x28   :  { %p19147_p4 = pnand %p19145_p3, %p19142_p2 }
  0x2a   :  { %19150 = shalt.err (!%p19147_p4)
}
  0x2b   :  { %s19151_s11 = scalar_lea.vmem %s25_s25, 65536  ;;  %p19156_p6 = scmp.lt.s32.totalorder %s25_s25, %s25_s25 }
  0x2c   :  { %p19152_p5 = scmp.ne.s32.totalorder %s25_s25, %s19151_s11  ;;  %p19157_p7 = scmp.lt.s32.totalorder %s19151_s11, %s19151_s11 }
  0x2e   :  { %p19158_p8 = por %p19157_p7, %p19156_p6 }
  0x30   :  { %p19159_p9 = pnand %p19158_p8, %p19152_p5 }
  0x32   :  { %19162 = shalt.err (!%p19159_p9)
}
  0x33   :  { %s19264_s4 = smov 512   ;;  %s19265_s27 = smov 32  }
  0x34   :  { %30 = dma.hbm_to_vmem [thread:$0]  %s19911_s1, 65536, %s25_s25, [#allocation3], %s19264_s4, %s19264_s4, %s19265_s27  }
  0x35   :  { %s19266_s14 = smov [#allocation7]   ;;  %s19163_s18 = scalar_lea.hbm %s19913_s3, 131072 }
  0x36   :  { %s46_s15 = sshll.u32 %s19266_s14, 4  ;;  %p19164_p10 = scmp.ne.s32.totalorder %s19913_s3, %s19163_s18  ;;  %s47_s15 = int_to_ptr.vmem [resolvable:$true] %s46_s15 }
  0x37   :  { %p19167_p11 = scmp.lt.u32.totalorder %s19163_s18, %s19913_s3 }
  0x39   :  { %p19169_p12 = pnand %p19167_p11, %p19164_p10 }
  0x3b   :  { %19172 = shalt.err (!%p19169_p12)
}
  0x3c   :  { %s19173_s2 = scalar_lea.vmem %s47_s15, 131072  ;;  %p19178_p0 = scmp.lt.s32.totalorder %s47_s15, %s47_s15 }
  0x3d   :  { %p19174_p13 = scmp.ne.s32.totalorder %s47_s15, %s19173_s2  ;;  %p19179_p1 = scmp.lt.s32.totalorder %s19173_s2, %s19173_s2 }
  0x3f   :  { %p19180_p2 = por %p19179_p1, %p19178_p0 }
  0x41   :  { %p19181_p3 = pnand %p19180_p2, %p19174_p13 }
  0x43   :  { %19184 = shalt.err (!%p19181_p3)
}
  0x44   :  { %s19267_s1 = smov 1024   ;;  %s19268_s23 = smov 64  }
  0x45   :  { %52 = dma.hbm_to_vmem [thread:$0]  %s19913_s3, 131072, %s47_s15, [#allocation6], %s19267_s1, %s19267_s1, %s19268_s23  }
  0x46   :  { %s19269_s26 = smov [#allocation10]   ;;  %s19185_s8 = scalar_lea.hbm %s19915_s5, 65536 }
  0x47   :  { %s68_s28 = sshll.u32 %s19269_s26, 4  ;;  %p19186_p4 = scmp.ne.s32.totalorder %s19915_s5, %s19185_s8  ;;  %s69_s28 = int_to_ptr.vmem [resolvable:$true] %s68_s28 }
  0x48   :  { %p19189_p5 = scmp.lt.u32.totalorder %s19185_s8, %s19915_s5 }
  0x4a   :  { %p19191_p6 = pnand %p19189_p5, %p19186_p4 }
  0x4c   :  { %19194 = shalt.err (!%p19191_p6)
}
  0x4d   :  { %s19195_s27 = scalar_lea.vmem %s69_s28, 65536  ;;  %p19200_p8 = scmp.lt.s32.totalorder %s69_s28, %s69_s28 }
  0x4e   :  { %p19196_p7 = scmp.ne.s32.totalorder %s69_s28, %s19195_s27  ;;  %p19201_p9 = scmp.lt.s32.totalorder %s19195_s27, %s19195_s27 }
  0x50   :  { %p19202_p10 = por %p19201_p9, %p19200_p8 }
  0x52   :  { %p19203_p11 = pnand %p19202_p10, %p19196_p7 }
  0x54   :  { %19206 = shalt.err (!%p19203_p11)
}
  0x55   :  { %s19270_s3 = smov 256   ;;  %s19271_s12 = smov 16  }
  0x56   :  { %74 = dma.hbm_to_vmem [thread:$0]  %s19915_s5, 65536, %s69_s28, [#allocation9], %s19270_s3, %s19270_s3, %s19271_s12  }
  0x57   :  { %s19272_s15 = smov [#allocation11]   ;;  %s19207_s19 = scalar_lea.hbm %s19916_s6, 256 }
  0x58   :  { %s81_s16 = sshll.u32 %s19272_s15, 4  ;;  %p19208_p12 = scmp.ne.s32.totalorder %s19916_s6, %s19207_s19  ;;  %s82_s16 = int_to_ptr.vmem [resolvable:$true] %s81_s16 }
  0x59   :  { %p19211_p13 = scmp.lt.u32.totalorder %s19207_s19, %s19916_s6 }
  0x5b   :  { %p19213_p0 = pnand %p19211_p13, %p19208_p12 }
  0x5d   :  { %19216 = shalt.err (!%p19213_p0)
}
  0x5e   :  { %s19217_s1 = scalar_lea.vmem %s82_s16, 256  ;;  %p19222_p2 = scmp.lt.s32.totalorder %s82_s16, %s82_s16 }
  0x5f   :  { %p19218_p1 = scmp.ne.s32.totalorder %s82_s16, %s19217_s1  ;;  %p19223_p3 = scmp.lt.s32.totalorder %s19217_s1, %s19217_s1 }
  0x61   :  { %p19224_p4 = por %p19223_p3, %p19222_p2 }
  0x63   :  { %p19225_p5 = pnand %p19224_p4, %p19218_p1 }
  0x65   :  { %19228 = shalt.err (!%p19225_p5)
}
  0x66   :  { %84 = dma.hbm_to_vmem [thread:$0]  %s19916_s6, 256, %s82_s16, [#allocation12]  }
  0x67   :  { %19251 = dma.done.wait [#allocation3], 65536  }
  0x68   :  { %19252 = vsyncadd [#allocation3], 4294901760 }
  0x69   :  { %19253 = dma.done.wait [#allocation6], 131584  }
  0x6a   :  { %19254 = vsyncadd [#allocation6], 4294835712 }
  0x6b   :  { %19255 = dma.done.wait [#allocation9], 66560  }
  0x6c   :  { %19256 = vsyncadd [#allocation9], 4294900736 }
  0x6d   :  { %19257 = dma.done.wait [#allocation12], 256  }
  0x6e   :  { %19258 = vsyncadd [#allocation12], 4294967040  ;;  %v111_v0 = vld [vmem:[#allocation2] sm:$0xff]  ;;  %v112_v2 = vld [vmem:[#allocation2 + $0x8] sm:$0xff] }
  0x6f   :  { %v115_v1 = vld [vmem:[#allocation2 + $0x20] sm:$0xff]  ;;  %v116_v4 = vld [vmem:[#allocation2 + $0x28] sm:$0xff] }
  0x70   :  { %v15970_v3 = vcombine.high %v111_v0, %v115_v1  ;;  %v15969_v5 = vcombine.low %v111_v0, %v115_v1  ;;  %v119_v6 = vld [vmem:[#allocation2 + $0x40] sm:$0xff]  ;;  %v15972_v8 = vcombine.high %v112_v2, %v116_v4  ;;  %v15971_v9 = vcombine.low %v112_v2, %v116_v4  ;;  %v120_v11 = vld [vmem:[#allocation2 + $0x48] sm:$0xff] }
  0x71   :  { %v123_v7 = vld [vmem:[#allocation2 + $0x60] sm:$0xff]  ;;  %v124_v12 = vld [vmem:[#allocation2 + $0x68] sm:$0xff] }
  0x72   :  { %v15978_v10 = vcombine.high %v119_v6, %v123_v7  ;;  %v127_v13 = vld [vmem:[#allocation2 + $0x80] sm:$0xff]  ;;  %3287 = vmatprep.subr.bf16.mxu0 %v15970_v3  ;;  %v15980_v14 = vcombine.high %v120_v11, %v124_v12  ;;  %v128_v16 = vld [vmem:[#allocation2 + $0x88] sm:$0xff]  ;;  %3451 = vmatprep.subr.bf16.mxu1 %v15972_v8  ;;  %v15977_v18 = vcombine.low %v119_v6, %v123_v7 }
  0x73   :  { %v131_v15 = vld [vmem:[#allocation2 + $0xa0] sm:$0xff]  ;;  %v132_v17 = vld [vmem:[#allocation2 + $0xa8] sm:$0xff]  ;;  %3288 = vmatpush1.bf16.msra.mxu0 %v15969_v5  ;;  %3452 = vmatpush1.bf16.msra.mxu1 %v15971_v9  ;;  %v15979_v19 = vcombine.low %v120_v11, %v124_v12 }
  0x74   :  { %3289 = vmatprep.subr.bf16.mxu0 %v15978_v10  ;;  %v15986_v20 = vcombine.high %v127_v13, %v131_v15  ;;  %3453 = vmatprep.subr.bf16.mxu1 %v15980_v14  ;;  %v15988_v21 = vcombine.high %v128_v16, %v132_v17  ;;  %v135_v22 = vld [vmem:[#allocation2 + $0xc0] sm:$0xff]  ;;  %v136_v24 = vld [vmem:[#allocation2 + $0xc8] sm:$0xff]  ;;  %v15985_v26 = vcombine.low %v127_v13, %v131_v15 }
  0x75   :  { %v139_v23 = vld [vmem:[#allocation2 + $0xe0] sm:$0xff]  ;;  %v140_v25 = vld [vmem:[#allocation2 + $0xe8] sm:$0xff]  ;;  %v15987_v27 = vcombine.low %v128_v16, %v132_v17 }
  0x76   :  { %v15994_v28 = vcombine.high %v135_v22, %v139_v23  ;;  %v15996_v29 = vcombine.high %v136_v24, %v140_v25  ;;  %v143_v30 = vld [vmem:[#allocation2 + $0x100] sm:$0xff]  ;;  %v144_v32 = vld [vmem:[#allocation2 + $0x108] sm:$0xff]  ;;  %v15993_v34 = vcombine.low %v135_v22, %v139_v23  ;;  %v15995_v35 = vcombine.low %v136_v24, %v140_v25 }
  0x77   :  { %3290 = vmatpush1.bf16.msra.mxu0 %v15977_v18  ;;  %3454 = vmatpush1.bf16.msra.mxu1 %v15979_v19  ;;  %v147_v31 = vld [vmem:[#allocation2 + $0x120] sm:$0xff]  ;;  %v148_v33 = vld [vmem:[#allocation2 + $0x128] sm:$0xff] }
  0x78   :  { %3291 = vmatprep.subr.bf16.mxu0 %v15986_v20  ;;  %3455 = vmatprep.subr.bf16.mxu1 %v15988_v21  ;;  %v16002_v36 = vcombine.high %v143_v30, %v147_v31  ;;  %v16004_v37 = vcombine.high %v144_v32, %v148_v33  ;;  %v151_v38 = vld [vmem:[#allocation2 + $0x140] sm:$0xff]  ;;  %v152_v40 = vld [vmem:[#allocation2 + $0x148] sm:$0xff]  ;;  %v16001_v42 = vcombine.low %v143_v30, %v147_v31 }
  0x79   :  { %v155_v39 = vld [vmem:[#allocation2 + $0x160] sm:$0xff]  ;;  %v156_v41 = vld [vmem:[#allocation2 + $0x168] sm:$0xff]  ;;  %v16003_v43 = vcombine.low %v144_v32, %v148_v33 }
  0x7a   :  { %v16010_v44 = vcombine.high %v151_v38, %v155_v39  ;;  %v16012_v45 = vcombine.high %v152_v40, %v156_v41  ;;  %v159_v46 = vld [vmem:[#allocation2 + $0x180] sm:$0xff]  ;;  %v160_v48 = vld [vmem:[#allocation2 + $0x188] sm:$0xff]  ;;  %v16009_v50 = vcombine.low %v151_v38, %v155_v39  ;;  %v16011_v51 = vcombine.low %v152_v40, %v156_v41 }
  0x7b   :  { %3292 = vmatpush1.bf16.msra.mxu0 %v15985_v26  ;;  %3456 = vmatpush1.bf16.msra.mxu1 %v15987_v27  ;;  %v163_v47 = vld [vmem:[#allocation2 + $0x1a0] sm:$0xff]  ;;  %v164_v49 = vld [vmem:[#allocation2 + $0x1a8] sm:$0xff] }
  0x7c   :  { %3293 = vmatprep.subr.bf16.mxu0 %v15994_v28  ;;  %3457 = vmatprep.subr.bf16.mxu1 %v15996_v29  ;;  %v16018_v52 = vcombine.high %v159_v46, %v163_v47  ;;  %v19389_v53 = vld [vmem:[%s19910_s0] sm:$0xff]  ;;  %v16020_v54 = vcombine.high %v160_v48, %v164_v49  ;;  %v168_v58 = vld [vmem:[#allocation2 + $0x1c8] sm:$0xff]  ;;  %v16017_v60 = vcombine.low %v159_v46, %v163_v47 }
  0x7d   :  { %v167_v55 = vld [vmem:[#allocation2 + $0x1c0] sm:$0xff]  ;;  %v19393_v57 = vcombine.high %v19389_v53, %v19389_v53  ;;  %v172_v59 = vld [vmem:[#allocation2 + $0x1e8] sm:$0xff]  ;;  %v16019_v61 = vcombine.low %v160_v48, %v164_v49 }
  0x7e   :  { %v171_v56 = vld [vmem:[#allocation2 + $0x1e0] sm:$0xff]  ;;  %v16028_v63 = vcombine.high %v168_v58, %v172_v59  ;;  %v176_v2 = vld [vmem:[#allocation2 + $0x208] sm:$0xff]  ;;  %v16027_v5 = vcombine.low %v168_v58, %v172_v59 }
  0x7f   :  { %3294 = vmatpush1.bf16.msra.mxu0 %v15993_v34  ;;  %3458 = vmatpush1.bf16.msra.mxu1 %v15995_v35  ;;  %v16026_v62 = vcombine.high %v167_v55, %v171_v56  ;;  %v175_v0 = vld [vmem:[#allocation2 + $0x200] sm:$0xff]  ;;  %v180_v3 = vld [vmem:[#allocation2 + $0x228] sm:$0xff]  ;;  %v16025_v4 = vcombine.low %v167_v55, %v171_v56 }
  0x80   :  { %3295 = vmatprep.subr.bf16.mxu0 %v16002_v36  ;;  %3459 = vmatprep.subr.bf16.mxu1 %v16004_v37  ;;  %v179_v1 = vld [vmem:[#allocation2 + $0x220] sm:$0xff]  ;;  %v16036_v7 = vcombine.high %v176_v2, %v180_v3  ;;  %v184_v10 = vld [vmem:[#allocation2 + $0x248] sm:$0xff]  ;;  %v16035_v13 = vcombine.low %v176_v2, %v180_v3 }
  0x81   :  { %3319 = vmatprep.mubr.bf16.mxu0 %v19393_v57  ;;  %3483 = vmatprep.mubr.bf16.mxu1 %v19393_v57  ;;  %v16034_v6 = vcombine.high %v175_v0, %v179_v1  ;;  %v183_v8 = vld [vmem:[#allocation2 + $0x240] sm:$0xff]  ;;  %v188_v11 = vld [vmem:[#allocation2 + $0x268] sm:$0xff]  ;;  %v16033_v12 = vcombine.low %v175_v0, %v179_v1 }
  0x82   :  { %v187_v9 = vld [vmem:[#allocation2 + $0x260] sm:$0xff]  ;;  %v16044_v15 = vcombine.high %v184_v10, %v188_v11  ;;  %v192_v18 = vld [vmem:[#allocation2 + $0x288] sm:$0xff]  ;;  %v16043_v21 = vcombine.low %v184_v10, %v188_v11 }
  0x83   :  { %3296 = vmatpush1.bf16.msra.mxu0 %v16001_v42  ;;  %3460 = vmatpush1.bf16.msra.mxu1 %v16003_v43  ;;  %v16042_v14 = vcombine.high %v183_v8, %v187_v9  ;;  %v191_v16 = vld [vmem:[#allocation2 + $0x280] sm:$0xff]  ;;  %v196_v19 = vld [vmem:[#allocation2 + $0x2a8] sm:$0xff]  ;;  %v16041_v20 = vcombine.low %v183_v8, %v187_v9 }
  0x84   :  { %3297 = vmatprep.subr.bf16.mxu0 %v16010_v44  ;;  %3461 = vmatprep.subr.bf16.mxu1 %v16012_v45  ;;  %v195_v17 = vld [vmem:[#allocation2 + $0x2a0] sm:$0xff]  ;;  %v16052_v23 = vcombine.high %v192_v18, %v196_v19  ;;  %v200_v26 = vld [vmem:[#allocation2 + $0x2c8] sm:$0xff]  ;;  %v16051_v29 = vcombine.low %v192_v18, %v196_v19 }
  0x85   :  { %v16050_v22 = vcombine.high %v191_v16, %v195_v17  ;;  %v199_v24 = vld [vmem:[#allocation2 + $0x2c0] sm:$0xff]  ;;  %v204_v27 = vld [vmem:[#allocation2 + $0x2e8] sm:$0xff]  ;;  %v16049_v28 = vcombine.low %v191_v16, %v195_v17 }
  0x86   :  { %v203_v25 = vld [vmem:[#allocation2 + $0x2e0] sm:$0xff]  ;;  %v16060_v31 = vcombine.high %v200_v26, %v204_v27  ;;  %v208_v34 = vld [vmem:[#allocation2 + $0x308] sm:$0xff]  ;;  %v16059_v37 = vcombine.low %v200_v26, %v204_v27 }
  0x87   :  { %3298 = vmatpush1.bf16.msra.mxu0 %v16009_v50  ;;  %3462 = vmatpush1.bf16.msra.mxu1 %v16011_v51  ;;  %v16058_v30 = vcombine.high %v199_v24, %v203_v25  ;;  %v207_v32 = vld [vmem:[#allocation2 + $0x300] sm:$0xff]  ;;  %v212_v35 = vld [vmem:[#allocation2 + $0x328] sm:$0xff]  ;;  %v16057_v36 = vcombine.low %v199_v24, %v203_v25 }
  0x88   :  { %3299 = vmatprep.subr.bf16.mxu0 %v16018_v52  ;;  %3463 = vmatprep.subr.bf16.mxu1 %v16020_v54  ;;  %v211_v33 = vld [vmem:[#allocation2 + $0x320] sm:$0xff]  ;;  %v16068_v39 = vcombine.high %v208_v34, %v212_v35  ;;  %v216_v42 = vld [vmem:[#allocation2 + $0x348] sm:$0xff]  ;;  %v16067_v45 = vcombine.low %v208_v34, %v212_v35 }
  0x89   :  { %v16066_v38 = vcombine.high %v207_v32, %v211_v33  ;;  %v215_v40 = vld [vmem:[#allocation2 + $0x340] sm:$0xff]  ;;  %v220_v43 = vld [vmem:[#allocation2 + $0x368] sm:$0xff]  ;;  %v16065_v44 = vcombine.low %v207_v32, %v211_v33 }
  0x8a   :  { %v219_v41 = vld [vmem:[#allocation2 + $0x360] sm:$0xff]  ;;  %v16076_v47 = vcombine.high %v216_v42, %v220_v43  ;;  %v224_v50 = vld [vmem:[#allocation2 + $0x388] sm:$0xff]  ;;  %v16075_v54 = vcombine.low %v216_v42, %v220_v43 }
  0x8b   :  { %3300 = vmatpush1.bf16.msra.mxu0 %v16017_v60  ;;  %3464 = vmatpush1.bf16.msra.mxu1 %v16019_v61  ;;  %v16074_v46 = vcombine.high %v215_v40, %v219_v41  ;;  %v223_v48 = vld [vmem:[#allocation2 + $0x380] sm:$0xff]  ;;  %v228_v51 = vld [vmem:[#allocation2 + $0x3a8] sm:$0xff]  ;;  %v16073_v52 = vcombine.low %v215_v40, %v219_v41 }
  0x8c   :  { %3301 = vmatprep.subr.bf16.mxu0 %v16026_v62  ;;  %3465 = vmatprep.subr.bf16.mxu1 %v16028_v63  ;;  %v227_v49 = vld [vmem:[#allocation2 + $0x3a0] sm:$0xff]  ;;  %v16084_v56 = vcombine.high %v224_v50, %v228_v51  ;;  %v232_v60 = vld [vmem:[#allocation2 + $0x3c8] sm:$0xff]  ;;  %v16083_v63 = vcombine.low %v224_v50, %v228_v51 }
  0x8d   :  { %v16082_v55 = vcombine.high %v223_v48, %v227_v49  ;;  %v231_v58 = vld [vmem:[#allocation2 + $0x3c0] sm:$0xff]  ;;  %v236_v61 = vld [vmem:[#allocation2 + $0x3e8] sm:$0xff]  ;;  %v16081_v62 = vcombine.low %v223_v48, %v227_v49 }
  0x8e   :  { %v235_v59 = vld [vmem:[#allocation2 + $0x3e0] sm:$0xff]  ;;  %v16092_v1 = vcombine.high %v232_v60, %v236_v61 }
  0x8f   :  { %3302 = vmatpush1.bf16.msra.mxu0 %v16025_v4  ;;  %3466 = vmatpush1.bf16.msra.mxu1 %v16027_v5  ;;  %v16090_v0 = vcombine.high %v231_v58, %v235_v59  ;;  %v239_v2 = vld [vmem:[#allocation2 + $0x400] sm:$0xff]  ;;  %v240_v4 = vld [vmem:[#allocation2 + $0x408] sm:$0xff] }
  0x90   :  { %3303 = vmatprep.subr.bf16.mxu0 %v16034_v6  ;;  %3467 = vmatprep.subr.bf16.mxu1 %v16036_v7  ;;  %v243_v3 = vld [vmem:[#allocation2 + $0x420] sm:$0xff]  ;;  %v244_v5 = vld [vmem:[#allocation2 + $0x428] sm:$0xff]  ;;  %v16089_v6 = vcombine.low %v231_v58, %v235_v59  ;;  %v16091_v7 = vcombine.low %v232_v60, %v236_v61 }
  0x91   :  { %v16098_v8 = vcombine.high %v239_v2, %v243_v3  ;;  %v16100_v9 = vcombine.high %v240_v4, %v244_v5  ;;  %v247_v10 = vld [vmem:[#allocation2 + $0x440] sm:$0xff]  ;;  %v16097_v16 = vcombine.low %v239_v2, %v243_v3  ;;  %v16099_v17 = vcombine.low %v240_v4, %v244_v5 }
  0x92   :  { %v251_v11 = vld [vmem:[#allocation2 + $0x460] sm:$0xff] }
  0x93   :  { %3304 = vmatpush1.bf16.msra.mxu0 %v16033_v12  ;;  %3468 = vmatpush1.bf16.msra.mxu1 %v16035_v13  ;;  %v19399_v12 = vcombine.low %v19389_v53, %v19389_v53  ;;  %v248_v13 = vld [vmem:[#allocation2 + $0x448] sm:$0xff]  ;;  %v16106_v18 = vcombine.high %v247_v10, %v251_v11  ;;  %v255_v19 = vld [vmem:[#allocation2 + $0x480] sm:$0xff]  ;;  %v16105_v24 = vcombine.low %v247_v10, %v251_v11 }
  0x94   :  { %3305 = vmatprep.subr.bf16.mxu0 %v16042_v14  ;;  %3469 = vmatprep.subr.bf16.mxu1 %v16044_v15  ;;  %v252_v14 = vld [vmem:[#allocation2 + $0x468] sm:$0xff]  ;;  %v263_v27 = vld [vmem:[#allocation2 + $0x4c0] sm:$0xff] }
  0x95   :  { %v19404_v15 = vld [vmem:[%s19910_s0 + $0x8] sm:$0xff]  ;;  %v16107_v25 = vcombine.low %v248_v13, %v252_v14  ;;  %v271_v35 = vld [vmem:[#allocation2 + $0x500] sm:$0xff] }
  0x96   :  { %v260_v53 = vld [vmem:[#allocation2 + $0x4a8] sm:$0xff]  ;;  %v279_v43 = vld [vmem:[#allocation2 + $0x540] sm:$0xff] }
  0x97   :  { %3306 = vmatpush1.bf16.msra.mxu0 %v16041_v20  ;;  %3470 = vmatpush1.bf16.msra.mxu1 %v16043_v21  ;;  %v259_v20 = vld [vmem:[#allocation2 + $0x4a0] sm:$0xff]  ;;  %v16108_v21 = vcombine.high %v248_v13, %v252_v14 }
  0x98   :  { %3307 = vmatprep.subr.bf16.mxu0 %v16050_v22  ;;  %3471 = vmatprep.subr.bf16.mxu1 %v16052_v23  ;;  %v256_v22 = vld [vmem:[#allocation2 + $0x488] sm:$0xff]  ;;  %v19408_v23 = vcombine.high %v19404_v15, %v19404_v15  ;;  %v16114_v26 = vcombine.high %v255_v19, %v259_v20  ;;  %v16113_v32 = vcombine.low %v255_v19, %v259_v20  ;;  %v287_v51 = vld [vmem:[#allocation2 + $0x580] sm:$0xff] }
  0x99   :  { %v16115_v33 = vcombine.low %v256_v22, %v260_v53  ;;  %v295_v61 = vld [vmem:[#allocation2 + $0x5c0] sm:$0xff]  ;;  %v316_v19 = vld [vmem:[#allocation2 + $0x668] sm:$0xff] }
  0x9a   :  { %v303_v5 = vld [vmem:[#allocation2 + $0x600] sm:$0xff] }
  0x9b   :  { %3308 = vmatpush1.bf16.msra.mxu0 %v16049_v28  ;;  %3472 = vmatpush1.bf16.msra.mxu1 %v16051_v29  ;;  %v267_v28 = vld [vmem:[#allocation2 + $0x4e0] sm:$0xff]  ;;  %v264_v29 = vld [vmem:[#allocation2 + $0x4c8] sm:$0xff] }
  0x9c   :  { %3309 = vmatprep.subr.bf16.mxu0 %v16058_v30  ;;  %3473 = vmatprep.subr.bf16.mxu1 %v16060_v31  ;;  %v16116_v30 = vcombine.high %v256_v22, %v260_v53  ;;  %v268_v31 = vld [vmem:[#allocation2 + $0x4e8] sm:$0xff]  ;;  %v16122_v34 = vcombine.high %v263_v27, %v267_v28  ;;  %v16121_v40 = vcombine.low %v263_v27, %v267_v28  ;;  %v311_v14 = vld [vmem:[#allocation2 + $0x640] sm:$0xff] }
  0x9d   :  { %v16123_v41 = vcombine.low %v264_v29, %v268_v31  ;;  %v319_v53 = vld [vmem:[#allocation2 + $0x680] sm:$0xff]  ;;  %v324_v27 = vld [vmem:[#allocation2 + $0x6a8] sm:$0xff] }
  0x9f   :  { %3310 = vmatpush1.bf16.msra.mxu0 %v16057_v36  ;;  %3474 = vmatpush1.bf16.msra.mxu1 %v16059_v37  ;;  %v275_v36 = vld [vmem:[#allocation2 + $0x520] sm:$0xff]  ;;  %v272_v37 = vld [vmem:[#allocation2 + $0x508] sm:$0xff] }
  0xa0   :  { %3311 = vmatprep.subr.bf16.mxu0 %v16066_v38  ;;  %3475 = vmatprep.subr.bf16.mxu1 %v16068_v39  ;;  %v16124_v38 = vcombine.high %v264_v29, %v268_v31  ;;  %v276_v39 = vld [vmem:[#allocation2 + $0x528] sm:$0xff]  ;;  %v16130_v42 = vcombine.high %v271_v35, %v275_v36  ;;  %v16129_v48 = vcombine.low %v271_v35, %v275_v36  ;;  %v327_v31 = vld [vmem:[#allocation2 + $0x6c0] sm:$0xff] }
  0xa1   :  { %v16131_v49 = vcombine.low %v272_v37, %v276_v39  ;;  %v332_v35 = vld [vmem:[#allocation2 + $0x6e8] sm:$0xff] }
  0xa3   :  { %3312 = vmatpush1.bf16.msra.mxu0 %v16065_v44  ;;  %3476 = vmatpush1.bf16.msra.mxu1 %v16067_v45  ;;  %v283_v44 = vld [vmem:[#allocation2 + $0x560] sm:$0xff]  ;;  %v280_v45 = vld [vmem:[#allocation2 + $0x548] sm:$0xff] }
  0xa4   :  { %3313 = vmatprep.subr.bf16.mxu0 %v16074_v46  ;;  %3477 = vmatprep.subr.bf16.mxu1 %v16076_v47  ;;  %v16132_v46 = vcombine.high %v272_v37, %v276_v39  ;;  %v284_v47 = vld [vmem:[#allocation2 + $0x568] sm:$0xff]  ;;  %v16138_v50 = vcombine.high %v279_v43, %v283_v44  ;;  %v16137_v58 = vcombine.low %v279_v43, %v283_v44  ;;  %v335_v39 = vld [vmem:[#allocation2 + $0x700] sm:$0xff] }
  0xa5   :  { %v16139_v59 = vcombine.low %v280_v45, %v284_v47  ;;  %v340_v43 = vld [vmem:[#allocation2 + $0x728] sm:$0xff] }
  0xa7   :  { %3314 = vmatpush1.bf16.msra.mxu0 %v16073_v52  ;;  %3478 = vmatpush1.bf16.msra.mxu1 %v16075_v54  ;;  %v291_v52 = vld [vmem:[#allocation2 + $0x5a0] sm:$0xff]  ;;  %v288_v54 = vld [vmem:[#allocation2 + $0x588] sm:$0xff] }
  0xa8   :  { %3315 = vmatprep.subr.bf16.mxu0 %v16082_v55  ;;  %3479 = vmatprep.subr.bf16.mxu1 %v16084_v56  ;;  %v16140_v55 = vcombine.high %v280_v45, %v284_v47  ;;  %v292_v56 = vld [vmem:[#allocation2 + $0x5a8] sm:$0xff]  ;;  %v16146_v60 = vcombine.high %v287_v51, %v291_v52  ;;  %v16145_v2 = vcombine.low %v287_v51, %v291_v52  ;;  %v343_v47 = vld [vmem:[#allocation2 + $0x740] sm:$0xff] }
  0xa9   :  { %v16147_v3 = vcombine.low %v288_v54, %v292_v56  ;;  %v348_v51 = vld [vmem:[#allocation2 + $0x768] sm:$0xff] }
  0xab   :  { %3316 = vmatpush1.bf16.msra.mxu0 %v16081_v62  ;;  %3480 = vmatpush1.bf16.msra.mxu1 %v16083_v63  ;;  %v299_v62 = vld [vmem:[#allocation2 + $0x5e0] sm:$0xff]  ;;  %v296_v63 = vld [vmem:[#allocation2 + $0x5c8] sm:$0xff] }
  0xac   :  { %3317 = vmatprep.subr.bf16.mxu0 %v16090_v0  ;;  %3481 = vmatprep.subr.bf16.mxu1 %v16092_v1  ;;  %v16148_v0 = vcombine.high %v288_v54, %v292_v56  ;;  %v300_v1 = vld [vmem:[#allocation2 + $0x5e8] sm:$0xff]  ;;  %v16154_v4 = vcombine.high %v295_v61, %v299_v62  ;;  %v16153_v10 = vcombine.low %v295_v61, %v299_v62  ;;  %v351_v56 = vld [vmem:[#allocation2 + $0x780] sm:$0xff] }
  0xad   :  { %v16155_v11 = vcombine.low %v296_v63, %v300_v1  ;;  %v356_v61 = vld [vmem:[#allocation2 + $0x7a8] sm:$0xff] }
  0xaf   :  { %3318 = vmatpush1.bf16.msra.mxu0 %v16089_v6  ;;  %3482 = vmatpush1.bf16.msra.mxu1 %v16091_v7  ;;  %v307_v6 = vld [vmem:[#allocation2 + $0x620] sm:$0xff]  ;;  %v304_v7 = vld [vmem:[#allocation2 + $0x608] sm:$0xff] }
  0xb0   :  { %3328 = vmatprep.subr.bf16.mxu0 %v16098_v8  ;;  %3492 = vmatprep.subr.bf16.mxu1 %v16100_v9  ;;  %v16156_v8 = vcombine.high %v296_v63, %v300_v1  ;;  %v308_v9 = vld [vmem:[#allocation2 + $0x628] sm:$0xff]  ;;  %v16162_v13 = vcombine.high %v303_v5, %v307_v6  ;;  %v16161_v20 = vcombine.low %v303_v5, %v307_v6  ;;  %v359_v1 = vld [vmem:[#allocation2 + $0x7c0] sm:$0xff] }
  0xb1   :  { %v364_v5 = vld [vmem:[#allocation2 + $0x7e8] sm:$0xff] }
  0xb2   :  { %3320 = vmatmul.mubr.bf16.vlgmr.msra.gmra.mrb[0].mxu0 %v19399_v12  ;;  %3484 = vmatmul.mubr.bf16.vlgmr.msra.gmra.mrb[0].mxu1 %v19399_v12 }
  0xb3   :  { %3329 = vmatpush1.bf16.msra.mxu0 %v16097_v16  ;;  %3493 = vmatpush1.bf16.msra.mxu1 %v16099_v17  ;;  %v315_v16 = vld [vmem:[#allocation2 + $0x660] sm:$0xff]  ;;  %v312_v17 = vld [vmem:[#allocation2 + $0x648] sm:$0xff] }
  0xb4   :  { %3330 = vmatprep.subr.bf16.mxu0 %v16106_v18  ;;  %3494 = vmatprep.subr.bf16.mxu1 %v16108_v21  ;;  %v16164_v18 = vcombine.high %v304_v7, %v308_v9  ;;  %v16163_v21 = vcombine.low %v304_v7, %v308_v9  ;;  %v16170_v22 = vcombine.high %v311_v14, %v315_v16  ;;  %v367_v9 = vld [vmem:[#allocation2 + $0x800] sm:$0xff] }
  0xb5   :  { %3360 = vmatprep.mubr.bf16.mxu0 %v19408_v23  ;;  %3524 = vmatprep.mubr.bf16.mxu1 %v19408_v23  ;;  %v16169_v28 = vcombine.low %v311_v14, %v315_v16  ;;  %v16171_v29 = vcombine.low %v312_v17, %v316_v19  ;;  %v372_v14 = vld [vmem:[#allocation2 + $0x828] sm:$0xff] }
  0xb7   :  { %3331 = vmatpush1.bf16.msra.mxu0 %v16105_v24  ;;  %3495 = vmatpush1.bf16.msra.mxu1 %v16107_v25  ;;  %v323_v24 = vld [vmem:[#allocation2 + $0x6a0] sm:$0xff]  ;;  %v320_v25 = vld [vmem:[#allocation2 + $0x688] sm:$0xff] }
  0xb8   :  { %3332 = vmatprep.subr.bf16.mxu0 %v16114_v26  ;;  %3496 = vmatprep.subr.bf16.mxu1 %v16116_v30  ;;  %v16172_v26 = vcombine.high %v312_v17, %v316_v19  ;;  %v16178_v30 = vcombine.high %v319_v53, %v323_v24  ;;  %v16177_v36 = vcombine.low %v319_v53, %v323_v24  ;;  %v375_v17 = vld [vmem:[#allocation2 + $0x840] sm:$0xff]  ;;  %v19417_v24 = vld [vmem:[%s19910_s0 + $0x10] sm:$0xff] }
  0xb9   :  { %v16179_v37 = vcombine.low %v320_v25, %v324_v27 }
  0xbb   :  { %3333 = vmatpush1.bf16.msra.mxu0 %v16113_v32  ;;  %3497 = vmatpush1.bf16.msra.mxu1 %v16115_v33  ;;  %v331_v32 = vld [vmem:[#allocation2 + $0x6e0] sm:$0xff]  ;;  %v328_v33 = vld [vmem:[#allocation2 + $0x6c8] sm:$0xff] }
  0xbc   :  { %3334 = vmatprep.subr.bf16.mxu0 %v16122_v34  ;;  %3498 = vmatprep.subr.bf16.mxu1 %v16124_v38  ;;  %v16180_v34 = vcombine.high %v320_v25, %v324_v27  ;;  %v16186_v38 = vcombine.high %v327_v31, %v331_v32  ;;  %v16185_v44 = vcombine.low %v327_v31, %v331_v32  ;;  %v384_v31 = vld [vmem:[#allocation2 + $0x888] sm:$0xff] }
  0xbd   :  { %v16187_v45 = vcombine.low %v328_v33, %v332_v35  ;;  %v19421_v25 = vcombine.low %v19404_v15, %v19404_v15 }
  0xbf   :  { %3335 = vmatpush1.bf16.msra.mxu0 %v16121_v40  ;;  %3499 = vmatpush1.bf16.msra.mxu1 %v16123_v41  ;;  %v339_v40 = vld [vmem:[#allocation2 + $0x720] sm:$0xff]  ;;  %v336_v41 = vld [vmem:[#allocation2 + $0x708] sm:$0xff] }
  0xc0   :  { %3336 = vmatprep.subr.bf16.mxu0 %v16130_v42  ;;  %3500 = vmatprep.subr.bf16.mxu1 %v16132_v46  ;;  %v16188_v42 = vcombine.high %v328_v33, %v332_v35  ;;  %v16194_v46 = vcombine.high %v335_v39, %v339_v40  ;;  %v16193_v52 = vcombine.low %v335_v39, %v339_v40  ;;  %v388_v33 = vld [vmem:[#allocation2 + $0x8a8] sm:$0xff] }
  0xc1   :  { %v16195_v54 = vcombine.low %v336_v41, %v340_v43  ;;  %v392_v39 = vld [vmem:[#allocation2 + $0x8c8] sm:$0xff]  ;;  %v16244_v40 = vcombine.high %v384_v31, %v388_v33 }
  0xc3   :  { %3337 = vmatpush1.bf16.msra.mxu0 %v16129_v48  ;;  %3501 = vmatpush1.bf16.msra.mxu1 %v16131_v49  ;;  %v347_v48 = vld [vmem:[#allocation2 + $0x760] sm:$0xff]  ;;  %v344_v49 = vld [vmem:[#allocation2 + $0x748] sm:$0xff] }
  0xc4   :  { %3338 = vmatprep.subr.bf16.mxu0 %v16138_v50  ;;  %3502 = vmatprep.subr.bf16.mxu1 %v16140_v55  ;;  %v16196_v50 = vcombine.high %v336_v41, %v340_v43  ;;  %v16202_v55 = vcombine.high %v343_v47, %v347_v48  ;;  %v16201_v62 = vcombine.low %v343_v47, %v347_v48  ;;  %v396_v41 = vld [vmem:[#allocation2 + $0x8e8] sm:$0xff] }
  0xc5   :  { %v16203_v63 = vcombine.low %v344_v49, %v348_v51  ;;  %v16243_v43 = vcombine.low %v384_v31, %v388_v33  ;;  %v400_v47 = vld [vmem:[#allocation2 + $0x908] sm:$0xff]  ;;  %v16252_v48 = vcombine.high %v392_v39, %v396_v41 }
  0xc6   :  { %v444_v31 = vld [vmem:[#allocation2 + $0xa68] sm:$0xff] }
  0xc7   :  { %3339 = vmatpush1.bf16.msra.mxu0 %v16137_v58  ;;  %3503 = vmatpush1.bf16.msra.mxu1 %v16139_v59  ;;  %v355_v58 = vld [vmem:[#allocation2 + $0x7a0] sm:$0xff]  ;;  %v352_v59 = vld [vmem:[#allocation2 + $0x788] sm:$0xff] }
  0xc8   :  { %3340 = vmatprep.subr.bf16.mxu0 %v16146_v60  ;;  %3504 = vmatprep.subr.bf16.mxu1 %v16148_v0  ;;  %v16204_v60 = vcombine.high %v344_v49, %v348_v51  ;;  %v16210_v0 = vcombine.high %v351_v56, %v355_v58  ;;  %v16209_v6 = vcombine.low %v351_v56, %v355_v58  ;;  %v404_v49 = vld [vmem:[#allocation2 + $0x928] sm:$0xff] }
  0xc9   :  { %v16211_v7 = vcombine.low %v352_v59, %v356_v61  ;;  %v16251_v51 = vcombine.low %v392_v39, %v396_v41  ;;  %v408_v56 = vld [vmem:[#allocation2 + $0x948] sm:$0xff]  ;;  %v16260_v58 = vcombine.high %v400_v47, %v404_v49 }
  0xca   :  { %v452_v39 = vld [vmem:[#allocation2 + $0xaa8] sm:$0xff] }
  0xcb   :  { %3341 = vmatpush1.bf16.msra.mxu0 %v16145_v2  ;;  %3505 = vmatpush1.bf16.msra.mxu1 %v16147_v3  ;;  %v363_v2 = vld [vmem:[#allocation2 + $0x7e0] sm:$0xff]  ;;  %v360_v3 = vld [vmem:[#allocation2 + $0x7c8] sm:$0xff] }
  0xcc   :  { %3342 = vmatprep.subr.bf16.mxu0 %v16154_v4  ;;  %3506 = vmatprep.subr.bf16.mxu1 %v16156_v8  ;;  %v16212_v4 = vcombine.high %v352_v59, %v356_v61  ;;  %v16218_v8 = vcombine.high %v359_v1, %v363_v2  ;;  %v16217_v16 = vcombine.low %v359_v1, %v363_v2  ;;  %v412_v59 = vld [vmem:[#allocation2 + $0x968] sm:$0xff] }
  0xcd   :  { %v16259_v61 = vcombine.low %v400_v47, %v404_v49  ;;  %v416_v1 = vld [vmem:[#allocation2 + $0x988] sm:$0xff]  ;;  %v16268_v2 = vcombine.high %v408_v56, %v412_v59 }
  0xce   :  { %v460_v47 = vld [vmem:[#allocation2 + $0xae8] sm:$0xff] }
  0xcf   :  { %3343 = vmatpush1.bf16.msra.mxu0 %v16153_v10  ;;  %3507 = vmatpush1.bf16.msra.mxu1 %v16155_v11  ;;  %v371_v10 = vld [vmem:[#allocation2 + $0x820] sm:$0xff]  ;;  %v368_v11 = vld [vmem:[#allocation2 + $0x808] sm:$0xff] }
  0xd0   :  { %3344 = vmatprep.subr.bf16.mxu0 %v16162_v13  ;;  %3508 = vmatprep.subr.bf16.mxu1 %v16164_v18  ;;  %v16220_v13 = vcombine.high %v360_v3, %v364_v5  ;;  %v16219_v18 = vcombine.low %v360_v3, %v364_v5  ;;  %v16226_v19 = vcombine.high %v367_v9, %v371_v10  ;;  %v420_v3 = vld [vmem:[#allocation2 + $0x9a8] sm:$0xff] }
  0xd1   :  { %v16228_v53 = vcombine.high %v368_v11, %v372_v14  ;;  %v16227_v27 = vcombine.low %v368_v11, %v372_v14  ;;  %v16267_v5 = vcombine.low %v408_v56, %v412_v59  ;;  %v428_v11 = vld [vmem:[#allocation2 + $0x9e8] sm:$0xff]  ;;  %v16275_v14 = vcombine.low %v416_v1, %v420_v3 }
  0xd2   :  { %v468_v56 = vld [vmem:[#allocation2 + $0xb28] sm:$0xff] }
  0xd3   :  { %3345 = vmatpush1.bf16.msra.mxu0 %v16161_v20  ;;  %3509 = vmatpush1.bf16.msra.mxu1 %v16163_v21  ;;  %v379_v20 = vld [vmem:[#allocation2 + $0x860] sm:$0xff]  ;;  %v376_v21 = vld [vmem:[#allocation2 + $0x848] sm:$0xff] }
  0xd4   :  { %3346 = vmatprep.subr.bf16.mxu0 %v16170_v22  ;;  %3510 = vmatprep.subr.bf16.mxu1 %v16172_v26  ;;  %v380_v22 = vld [vmem:[#allocation2 + $0x868] sm:$0xff]  ;;  %v16225_v26 = vcombine.low %v367_v9, %v371_v10  ;;  %v16233_v15 = vcombine.low %v375_v17, %v379_v20  ;;  %v16276_v10 = vcombine.high %v416_v1, %v420_v3 }
  0xd5   :  { %v16236_v32 = vcombine.high %v376_v21, %v380_v22  ;;  %v16235_v35 = vcombine.low %v376_v21, %v380_v22  ;;  %v424_v9 = vld [vmem:[#allocation2 + $0x9c8] sm:$0xff] }
  0xd6   :  { %v436_v21 = vld [vmem:[#allocation2 + $0xa28] sm:$0xff] }
  0xd7   :  { %3347 = vmatpush1.bf16.msra.mxu0 %v16169_v28  ;;  %3511 = vmatpush1.bf16.msra.mxu1 %v16171_v29  ;;  %v16234_v28 = vcombine.high %v375_v17, %v379_v20  ;;  %v383_v29 = vld [vmem:[#allocation2 + $0x880] sm:$0xff]  ;;  %v16284_v20 = vcombine.high %v424_v9, %v428_v11  ;;  %v476_v1 = vld [vmem:[#allocation2 + $0xb68] sm:$0xff] }
  0xd8   :  { %3348 = vmatprep.subr.bf16.mxu0 %v16178_v30  ;;  %3512 = vmatprep.subr.bf16.mxu1 %v16180_v34  ;;  %v387_v30 = vld [vmem:[#allocation2 + $0x8a0] sm:$0xff]  ;;  %v19425_v34 = vcombine.high %v19417_v24, %v19417_v24 }
  0xd9   :  { %v431_v17 = vld [vmem:[#allocation2 + $0xa00] sm:$0xff] }
  0xdb   :  { %3349 = vmatpush1.bf16.msra.mxu0 %v16177_v36  ;;  %3513 = vmatpush1.bf16.msra.mxu1 %v16179_v37  ;;  %v16242_v36 = vcombine.high %v383_v29, %v387_v30  ;;  %v391_v37 = vld [vmem:[#allocation2 + $0x8c0] sm:$0xff] }
  0xdc   :  { %3350 = vmatprep.subr.bf16.mxu0 %v16186_v38  ;;  %3514 = vmatprep.subr.bf16.mxu1 %v16188_v42  ;;  %v395_v38 = vld [vmem:[#allocation2 + $0x8e0] sm:$0xff]  ;;  %v16241_v42 = vcombine.low %v383_v29, %v387_v30  ;;  %v440_v29 = vld [vmem:[#allocation2 + $0xa48] sm:$0xff] }
  0xdd   :  { %v16299_v41 = vcombine.low %v440_v29, %v444_v31 }
  0xdf   :  { %3351 = vmatpush1.bf16.msra.mxu0 %v16185_v44  ;;  %3515 = vmatpush1.bf16.msra.mxu1 %v16187_v45  ;;  %v16250_v44 = vcombine.high %v391_v37, %v395_v38  ;;  %v399_v45 = vld [vmem:[#allocation2 + $0x900] sm:$0xff] }
  0xe0   :  { %3352 = vmatprep.subr.bf16.mxu0 %v16194_v46  ;;  %3516 = vmatprep.subr.bf16.mxu1 %v16196_v50  ;;  %v403_v46 = vld [vmem:[#allocation2 + $0x920] sm:$0xff]  ;;  %v16249_v50 = vcombine.low %v391_v37, %v395_v38  ;;  %v448_v37 = vld [vmem:[#allocation2 + $0xa88] sm:$0xff]  ;;  %v16300_v38 = vcombine.high %v440_v29, %v444_v31 }
  0xe1   :  { %v16307_v49 = vcombine.low %v448_v37, %v452_v39  ;;  %v500_v29 = vld [vmem:[#allocation2 + $0xc28] sm:$0xff]  ;;  %v503_v31 = vld [vmem:[#allocation2 + $0xc40] sm:$0xff] }
  0xe3   :  { %3353 = vmatpush1.bf16.msra.mxu0 %v16193_v52  ;;  %3517 = vmatpush1.bf16.msra.mxu1 %v16195_v54  ;;  %v16258_v52 = vcombine.high %v399_v45, %v403_v46  ;;  %v407_v54 = vld [vmem:[#allocation2 + $0x940] sm:$0xff] }
  0xe4   :  { %3354 = vmatprep.subr.bf16.mxu0 %v16202_v55  ;;  %3518 = vmatprep.subr.bf16.mxu1 %v16204_v60  ;;  %v411_v55 = vld [vmem:[#allocation2 + $0x960] sm:$0xff]  ;;  %v16257_v60 = vcombine.low %v399_v45, %v403_v46  ;;  %v456_v45 = vld [vmem:[#allocation2 + $0xac8] sm:$0xff]  ;;  %v16308_v46 = vcombine.high %v448_v37, %v452_v39  ;;  %v19438_v39 = vcombine.low %v19417_v24, %v19417_v24 }
  0xe5   :  { %v16315_v59 = vcombine.low %v456_v45, %v460_v47 }
  0xe7   :  { %3355 = vmatpush1.bf16.msra.mxu0 %v16201_v62  ;;  %3519 = vmatpush1.bf16.msra.mxu1 %v16203_v63  ;;  %v16266_v62 = vcombine.high %v407_v54, %v411_v55  ;;  %v415_v63 = vld [vmem:[#allocation2 + $0x980] sm:$0xff] }
  0xe8   :  { %3356 = vmatprep.subr.bf16.mxu0 %v16210_v0  ;;  %3520 = vmatprep.subr.bf16.mxu1 %v16212_v4  ;;  %v419_v0 = vld [vmem:[#allocation2 + $0x9a0] sm:$0xff]  ;;  %v16265_v4 = vcombine.low %v407_v54, %v411_v55  ;;  %v464_v54 = vld [vmem:[#allocation2 + $0xb08] sm:$0xff]  ;;  %v16316_v55 = vcombine.high %v456_v45, %v460_v47 }
  0xe9   :  { %v16323_v3 = vcombine.low %v464_v54, %v468_v56  ;;  %v512_v45 = vld [vmem:[#allocation2 + $0xc88] sm:$0xff] }
  0xea   :  { %v516_v47 = vld [vmem:[#allocation2 + $0xca8] sm:$0xff] }
  0xeb   :  { %3357 = vmatpush1.bf16.msra.mxu0 %v16209_v6  ;;  %3521 = vmatpush1.bf16.msra.mxu1 %v16211_v7  ;;  %v16274_v6 = vcombine.high %v415_v63, %v419_v0  ;;  %v423_v7 = vld [vmem:[#allocation2 + $0x9c0] sm:$0xff] }
  0xec   :  { %3358 = vmatprep.subr.bf16.mxu0 %v16218_v8  ;;  %3522 = vmatprep.subr.bf16.mxu1 %v16220_v13  ;;  %v427_v8 = vld [vmem:[#allocation2 + $0x9e0] sm:$0xff]  ;;  %v16273_v13 = vcombine.low %v415_v63, %v419_v0  ;;  %v472_v63 = vld [vmem:[#allocation2 + $0xb48] sm:$0xff]  ;;  %v16324_v0 = vcombine.high %v464_v54, %v468_v56 }
  0xed   :  { %v16281_v22 = vcombine.low %v423_v7, %v427_v8  ;;  %v520_v54 = vld [vmem:[#allocation2 + $0xcc8] sm:$0xff] }
  0xee   :  { %v524_v56 = vld [vmem:[#allocation2 + $0xce8] sm:$0xff] }
  0xef   :  { %3359 = vmatpush1.bf16.msra.mxu0 %v16217_v16  ;;  %3523 = vmatpush1.bf16.msra.mxu1 %v16219_v18  ;;  %v16282_v16 = vcombine.high %v423_v7, %v427_v8  ;;  %v435_v18 = vld [vmem:[#allocation2 + $0xa20] sm:$0xff]  ;;  %v480_v7 = vld [vmem:[#allocation2 + $0xb88] sm:$0xff]  ;;  %v16332_v8 = vcombine.high %v472_v63, %v476_v1 }
  0xf0   :  { %3369 = vmatprep.subr.bf16.mxu0 %v16226_v19  ;;  %3533 = vmatprep.subr.bf16.mxu1 %v16228_v53  ;;  %v432_v19 = vld [vmem:[#allocation2 + $0xa08] sm:$0xff]  ;;  %v16283_v53 = vcombine.low %v424_v9, %v428_v11  ;;  %v16331_v11 = vcombine.low %v472_v63, %v476_v1 }
  0xf1   :  { %v16292_v30 = vcombine.high %v432_v19, %v436_v21  ;;  %v16291_v33 = vcombine.low %v432_v19, %v436_v21  ;;  %v484_v9 = vld [vmem:[#allocation2 + $0xba8] sm:$0xff] }
  0xf2   :  { %3361 = vmatmul.mubr.bf16.vlgmr.msra.gmra.mrb[0].mxu0 %v19421_v25  ;;  %3525 = vmatmul.mubr.bf16.vlgmr.msra.gmra.mrb[0].mxu1 %v19421_v25  ;;  %v492_v19 = vld [vmem:[#allocation2 + $0xbe8] sm:$0xff]  ;;  %v16339_v21 = vcombine.low %v480_v7, %v484_v9 }
  0xf3   :  { %3370 = vmatpush1.bf16.msra.mxu0 %v16225_v26  ;;  %3534 = vmatpush1.bf16.msra.mxu1 %v16227_v27  ;;  %v16290_v26 = vcombine.high %v431_v17, %v435_v18  ;;  %v439_v27 = vld [vmem:[#allocation2 + $0xa40] sm:$0xff]  ;;  %v528_v63 = vld [vmem:[#allocation2 + $0xd08] sm:$0xff] }
  0xf4   :  { %3371 = vmatprep.subr.bf16.mxu0 %v16234_v28  ;;  %3535 = vmatprep.subr.bf16.mxu1 %v16236_v32  ;;  %v443_v28 = vld [vmem:[#allocation2 + $0xa60] sm:$0xff]  ;;  %v16289_v32 = vcombine.low %v431_v17, %v435_v18  ;;  %v488_v17 = vld [vmem:[#allocation2 + $0xbc8] sm:$0xff]  ;;  %v16340_v18 = vcombine.high %v480_v7, %v484_v9 }
  0xf5   :  { %3401 = vmatprep.mubr.bf16.mxu0 %v19425_v34  ;;  %3565 = vmatprep.mubr.bf16.mxu1 %v19425_v34  ;;  %v532_v1 = vld [vmem:[#allocation2 + $0xd28] sm:$0xff] }
  0xf6   :  { %v536_v7 = vld [vmem:[#allocation2 + $0xd48] sm:$0xff] }
  0xf7   :  { %3372 = vmatpush1.bf16.msra.mxu0 %v16233_v15  ;;  %3536 = vmatpush1.bf16.msra.mxu1 %v16235_v35  ;;  %v16298_v15 = vcombine.high %v439_v27, %v443_v28  ;;  %v447_v35 = vld [vmem:[#allocation2 + $0xa80] sm:$0xff]  ;;  %v540_v9 = vld [vmem:[#allocation2 + $0xd68] sm:$0xff] }
  0xf8   :  { %3373 = vmatprep.subr.bf16.mxu0 %v16242_v36  ;;  %3537 = vmatprep.subr.bf16.mxu1 %v16244_v40  ;;  %v451_v36 = vld [vmem:[#allocation2 + $0xaa0] sm:$0xff]  ;;  %v16297_v40 = vcombine.low %v439_v27, %v443_v28  ;;  %v496_v27 = vld [vmem:[#allocation2 + $0xc08] sm:$0xff]  ;;  %v16348_v28 = vcombine.high %v488_v17, %v492_v19 }
  0xf9   :  { %v16356_v37 = vcombine.high %v496_v27, %v500_v29 }
  0xfb   :  { %3374 = vmatpush1.bf16.msra.mxu0 %v16241_v42  ;;  %3538 = vmatpush1.bf16.msra.mxu1 %v16243_v43  ;;  %v16306_v42 = vcombine.high %v447_v35, %v451_v36  ;;  %v455_v43 = vld [vmem:[#allocation2 + $0xac0] sm:$0xff] }
  0xfc   :  { %3375 = vmatprep.subr.bf16.mxu0 %v16250_v44  ;;  %3539 = vmatprep.subr.bf16.mxu1 %v16252_v48  ;;  %v459_v44 = vld [vmem:[#allocation2 + $0xae0] sm:$0xff]  ;;  %v16305_v48 = vcombine.low %v447_v35, %v451_v36  ;;  %v504_v35 = vld [vmem:[#allocation2 + $0xc48] sm:$0xff] }
  0xfd   :  { %v508_v36 = vld [vmem:[#allocation2 + $0xc68] sm:$0xff] }
  0xff   :  { %3376 = vmatpush1.bf16.msra.mxu0 %v16249_v50  ;;  %3540 = vmatpush1.bf16.msra.mxu1 %v16251_v51  ;;  %v16314_v50 = vcombine.high %v455_v43, %v459_v44  ;;  %v463_v51 = vld [vmem:[#allocation2 + $0xb00] sm:$0xff] }
 0x100   :  { %3377 = vmatprep.subr.bf16.mxu0 %v16258_v52  ;;  %3541 = vmatprep.subr.bf16.mxu1 %v16260_v58  ;;  %v467_v52 = vld [vmem:[#allocation2 + $0xb20] sm:$0xff]  ;;  %v16313_v58 = vcombine.low %v455_v43, %v459_v44 }
 0x101   :  { %v511_v43 = vld [vmem:[#allocation2 + $0xc80] sm:$0xff] }
 0x102   :  { %v515_v44 = vld [vmem:[#allocation2 + $0xca0] sm:$0xff] }
 0x103   :  { %3378 = vmatpush1.bf16.msra.mxu0 %v16257_v60  ;;  %3542 = vmatpush1.bf16.msra.mxu1 %v16259_v61  ;;  %v16322_v60 = vcombine.high %v463_v51, %v467_v52  ;;  %v471_v61 = vld [vmem:[#allocation2 + $0xb40] sm:$0xff] }
 0x104   :  { %3379 = vmatprep.subr.bf16.mxu0 %v16266_v62  ;;  %3543 = vmatprep.subr.bf16.mxu1 %v16268_v2  ;;  %v475_v62 = vld [vmem:[#allocation2 + $0xb60] sm:$0xff]  ;;  %v16321_v2 = vcombine.low %v463_v51, %v467_v52 }
 0x105   :  { %v519_v51 = vld [vmem:[#allocation2 + $0xcc0] sm:$0xff] }
 0x106   :  { %v523_v52 = vld [vmem:[#allocation2 + $0xce0] sm:$0xff] }
 0x107   :  { %3380 = vmatpush1.bf16.msra.mxu0 %v16265_v4  ;;  %3544 = vmatpush1.bf16.msra.mxu1 %v16267_v5  ;;  %v16330_v4 = vcombine.high %v471_v61, %v475_v62  ;;  %v479_v5 = vld [vmem:[#allocation2 + $0xb80] sm:$0xff] }
 0x108   :  { %3381 = vmatprep.subr.bf16.mxu0 %v16274_v6  ;;  %3545 = vmatprep.subr.bf16.mxu1 %v16276_v10  ;;  %v483_v6 = vld [vmem:[#allocation2 + $0xba0] sm:$0xff]  ;;  %v16329_v10 = vcombine.low %v471_v61, %v475_v62 }
 0x109   :  { %v527_v61 = vld [vmem:[#allocation2 + $0xd00] sm:$0xff] }
 0x10a   :  { %v531_v62 = vld [vmem:[#allocation2 + $0xd20] sm:$0xff] }
 0x10b   :  { %3382 = vmatpush1.bf16.msra.mxu0 %v16273_v13  ;;  %3546 = vmatpush1.bf16.msra.mxu1 %v16275_v14  ;;  %v16338_v13 = vcombine.high %v479_v5, %v483_v6  ;;  %v487_v14 = vld [vmem:[#allocation2 + $0xbc0] sm:$0xff] }
 0x10c   :  { %3383 = vmatprep.subr.bf16.mxu0 %v16282_v16  ;;  %3547 = vmatprep.subr.bf16.mxu1 %v16284_v20  ;;  %v491_v16 = vld [vmem:[#allocation2 + $0xbe0] sm:$0xff]  ;;  %v16337_v20 = vcombine.low %v479_v5, %v483_v6 }
 0x10d   :  { %v535_v5 = vld [vmem:[#allocation2 + $0xd40] sm:$0xff] }
 0x10e   :  { %v539_v6 = vld [vmem:[#allocation2 + $0xd60] sm:$0xff] }
 0x10f   :  { %3384 = vmatpush1.bf16.msra.mxu0 %v16281_v22  ;;  %3548 = vmatpush1.bf16.msra.mxu1 %v16283_v53  ;;  %v16346_v22 = vcombine.high %v487_v14, %v491_v16  ;;  %v495_v53 = vld [vmem:[#allocation2 + $0xc00] sm:$0xff] }
 0x110   :  { %3385 = vmatprep.subr.bf16.mxu0 %v16290_v26  ;;  %3549 = vmatprep.subr.bf16.mxu1 %v16292_v30  ;;  %v499_v26 = vld [vmem:[#allocation2 + $0xc20] sm:$0xff]  ;;  %v16345_v30 = vcombine.low %v487_v14, %v491_v16 }
 0x111   :  { %v543_v14 = vld [vmem:[#allocation2 + $0xd80] sm:$0xff] }
 0x112   :  { %v547_v16 = vld [vmem:[#allocation2 + $0xda0] sm:$0xff] }
 0x113   :  { %3386 = vmatpush1.bf16.msra.mxu0 %v16289_v32  ;;  %3550 = vmatpush1.bf16.msra.mxu1 %v16291_v33  ;;  %v16347_v32 = vcombine.low %v488_v17, %v492_v19  ;;  %v16354_v33 = vcombine.high %v495_v53, %v499_v26  ;;  %v544_v17 = vld [vmem:[#allocation2 + $0xd88] sm:$0xff] }
 0x114   :  { %3387 = vmatprep.subr.bf16.mxu0 %v16298_v15  ;;  %3551 = vmatprep.subr.bf16.mxu1 %v16300_v38  ;;  %v507_v15 = vld [vmem:[#allocation2 + $0xc60] sm:$0xff]  ;;  %v19434_v38 = vld [vmem:[%s19910_s0 + $0x18] sm:$0xff]  ;;  %v548_v19 = vld [vmem:[#allocation2 + $0xda8] sm:$0xff]  ;;  %s19273_s0 = smov [#allocation13]  }
 0x115   :  { %v16361_v24 = vcombine.low %v503_v31, %v507_v15  ;;  %s15949_s9 = sshll.u32 %s19273_s0, 4  ;;  %s15950_s9 = int_to_ptr.vmem [resolvable:$true] %s15949_s9 }
 0x116   :  { %s19229_s10 = scalar_lea.vmem %s15950_s9, 512  ;;  %p19234_p7 = scmp.lt.s32.totalorder %s15950_s9, %s15950_s9 }
 0x117   :  { %3388 = vmatpush1.bf16.msra.mxu0 %v16297_v40  ;;  %3552 = vmatpush1.bf16.msra.mxu1 %v16299_v41  ;;  %v16353_v40 = vcombine.low %v495_v53, %v499_v26  ;;  %v16355_v41 = vcombine.low %v496_v27, %v500_v29  ;;  %v551_v53 = vld [vmem:[#allocation2 + $0xdc0] sm:$0xff]  ;;  %v552_v27 = vld [vmem:[#allocation2 + $0xdc8] sm:$0xff]  ;;  %p19230_p6 = scmp.ne.s32.totalorder %s15950_s9, %s19229_s10  ;;  %p19235_p8 = scmp.lt.s32.totalorder %s19229_s10, %s19229_s10 }
 0x118   :  { %3389 = vmatprep.subr.bf16.mxu0 %v16306_v42  ;;  %3553 = vmatprep.subr.bf16.mxu1 %v16308_v46  ;;  %v16362_v42 = vcombine.high %v503_v31, %v507_v15  ;;  %v16364_v46 = vcombine.high %v504_v35, %v508_v36  ;;  %v555_v26 = vld [vmem:[#allocation2 + $0xde0] sm:$0xff]  ;;  %v556_v29 = vld [vmem:[#allocation2 + $0xde8] sm:$0xff]  ;;  %v16403_v31 = vcombine.low %v544_v17, %v548_v19 }
 0x119   :  { %v563_v15 = vld [vmem:[#allocation2 + $0xe20] sm:$0xff]  ;;  %p19236_p9 = por %p19235_p8, %p19234_p7 }
 0x11b   :  { %3390 = vmatpush1.bf16.msra.mxu0 %v16305_v48  ;;  %3554 = vmatpush1.bf16.msra.mxu1 %v16307_v49  ;;  %v19442_v48 = vcombine.high %v19434_v38, %v19434_v38  ;;  %v16363_v49 = vcombine.low %v504_v35, %v508_v36  ;;  %v560_v35 = vld [vmem:[#allocation2 + $0xe08] sm:$0xff]  ;;  %v16412_v36 = vcombine.high %v552_v27, %v556_v29  ;;  %p19237_p10 = pnand %p19236_p9, %p19230_p6 }
 0x11c   :  { %3391 = vmatprep.subr.bf16.mxu0 %v16314_v50  ;;  %3555 = vmatprep.subr.bf16.mxu1 %v16316_v55  ;;  %v16370_v50 = vcombine.high %v511_v43, %v515_v44  ;;  %v16372_v55 = vcombine.high %v512_v45, %v516_v47 }
 0x11f   :  { %3392 = vmatpush1.bf16.msra.mxu0 %v16313_v58  ;;  %3556 = vmatpush1.bf16.msra.mxu1 %v16315_v59  ;;  %v16369_v58 = vcombine.low %v511_v43, %v515_v44  ;;  %v16371_v59 = vcombine.low %v512_v45, %v516_v47  ;;  %v567_v43 = vld [vmem:[#allocation2 + $0xe40] sm:$0xff]  ;;  %v568_v45 = vld [vmem:[#allocation2 + $0xe48] sm:$0xff] }
 0x120   :  { %3393 = vmatprep.subr.bf16.mxu0 %v16322_v60  ;;  %3557 = vmatprep.subr.bf16.mxu1 %v16324_v0  ;;  %v16378_v60 = vcombine.high %v519_v51, %v523_v52  ;;  %v16380_v0 = vcombine.high %v520_v54, %v524_v56  ;;  %v571_v44 = vld [vmem:[#allocation2 + $0xe60] sm:$0xff]  ;;  %v572_v47 = vld [vmem:[#allocation2 + $0xe68] sm:$0xff] }
 0x123   :  { %3394 = vmatpush1.bf16.msra.mxu0 %v16321_v2  ;;  %3558 = vmatpush1.bf16.msra.mxu1 %v16323_v3  ;;  %v16377_v2 = vcombine.low %v519_v51, %v523_v52  ;;  %v16379_v3 = vcombine.low %v520_v54, %v524_v56  ;;  %v575_v51 = vld [vmem:[#allocation2 + $0xe80] sm:$0xff]  ;;  %v576_v54 = vld [vmem:[#allocation2 + $0xe88] sm:$0xff] }
 0x124   :  { %3395 = vmatprep.subr.bf16.mxu0 %v16330_v4  ;;  %3559 = vmatprep.subr.bf16.mxu1 %v16332_v8  ;;  %v16386_v4 = vcombine.high %v527_v61, %v531_v62  ;;  %v16388_v8 = vcombine.high %v528_v63, %v532_v1  ;;  %v579_v52 = vld [vmem:[#allocation2 + $0xea0] sm:$0xff]  ;;  %v580_v56 = vld [vmem:[#allocation2 + $0xea8] sm:$0xff] }
 0x127   :  { %3396 = vmatpush1.bf16.msra.mxu0 %v16329_v10  ;;  %3560 = vmatpush1.bf16.msra.mxu1 %v16331_v11  ;;  %v16385_v10 = vcombine.low %v527_v61, %v531_v62  ;;  %v16387_v11 = vcombine.low %v528_v63, %v532_v1  ;;  %v583_v61 = vld [vmem:[#allocation2 + $0xec0] sm:$0xff]  ;;  %v584_v63 = vld [vmem:[#allocation2 + $0xec8] sm:$0xff] }
 0x128   :  { %3397 = vmatprep.subr.bf16.mxu0 %v16338_v13  ;;  %3561 = vmatprep.subr.bf16.mxu1 %v16340_v18  ;;  %v16394_v13 = vcombine.high %v535_v5, %v539_v6  ;;  %v16396_v18 = vcombine.high %v536_v7, %v540_v9  ;;  %v587_v62 = vld [vmem:[#allocation2 + $0xee0] sm:$0xff]  ;;  %v588_v1 = vld [vmem:[#allocation2 + $0xee8] sm:$0xff] }
 0x12b   :  { %3398 = vmatpush1.bf16.msra.mxu0 %v16337_v20  ;;  %3562 = vmatpush1.bf16.msra.mxu1 %v16339_v21  ;;  %v16393_v20 = vcombine.low %v535_v5, %v539_v6  ;;  %v16395_v21 = vcombine.low %v536_v7, %v540_v9  ;;  %v591_v5 = vld [vmem:[#allocation2 + $0xf00] sm:$0xff]  ;;  %v592_v7 = vld [vmem:[#allocation2 + $0xf08] sm:$0xff] }
 0x12c   :  { %3399 = vmatprep.subr.bf16.mxu0 %v16346_v22  ;;  %3563 = vmatprep.subr.bf16.mxu1 %v16348_v28  ;;  %v16402_v22 = vcombine.high %v543_v14, %v547_v16  ;;  %v16404_v28 = vcombine.high %v544_v17, %v548_v19  ;;  %v595_v6 = vld [vmem:[#allocation2 + $0xf20] sm:$0xff]  ;;  %v596_v9 = vld [vmem:[#allocation2 + $0xf28] sm:$0xff] }
 0x12d   :  { %v600_v17 = vld [vmem:[#allocation2 + $0xf48] sm:$0xff] }
 0x12e   :  { %v604_v19 = vld [vmem:[#allocation2 + $0xf68] sm:$0xff] }
 0x12f   :  { %3400 = vmatpush1.bf16.msra.mxu0 %v16345_v30  ;;  %3564 = vmatpush1.bf16.msra.mxu1 %v16347_v32  ;;  %v16401_v30 = vcombine.low %v543_v14, %v547_v16  ;;  %v16410_v32 = vcombine.high %v551_v53, %v555_v26  ;;  %v599_v14 = vld [vmem:[#allocation2 + $0xf40] sm:$0xff] }
 0x130   :  { %3410 = vmatprep.subr.bf16.mxu0 %v16354_v33  ;;  %3574 = vmatprep.subr.bf16.mxu1 %v16356_v37  ;;  %v559_v33 = vld [vmem:[#allocation2 + $0xe00] sm:$0xff]  ;;  %v564_v37 = vld [vmem:[#allocation2 + $0xe28] sm:$0xff] }
 0x131   :  { %v603_v16 = vld [vmem:[#allocation2 + $0xf60] sm:$0xff] }
 0x132   :  { %3402 = vmatmul.mubr.bf16.vlgmr.msra.gmra.mrb[0].mxu0 %v19438_v39  ;;  %3566 = vmatmul.mubr.bf16.vlgmr.msra.gmra.mrb[0].mxu1 %v19438_v39 }
 0x133   :  { %3411 = vmatpush1.bf16.msra.mxu0 %v16353_v40  ;;  %3575 = vmatpush1.bf16.msra.mxu1 %v16355_v41  ;;  %v16409_v40 = vcombine.low %v551_v53, %v555_v26  ;;  %v16411_v41 = vcombine.low %v552_v27, %v556_v29  ;;  %v607_v53 = vld [vmem:[#allocation2 + $0xf80] sm:$0xff]  ;;  %v608_v27 = vld [vmem:[#allocation2 + $0xf88] sm:$0xff] }
 0x134   :  { %3412 = vmatprep.subr.bf16.mxu0 %v16362_v42  ;;  %3576 = vmatprep.subr.bf16.mxu1 %v16364_v46  ;;  %v16418_v42 = vcombine.high %v559_v33, %v563_v15  ;;  %v16420_v46 = vcombine.high %v560_v35, %v564_v37  ;;  %v611_v26 = vld [vmem:[#allocation2 + $0xfa0] sm:$0xff]  ;;  %v612_v29 = vld [vmem:[#allocation2 + $0xfa8] sm:$0xff] }
 0x135   :  { %3442 = vmatprep.mubr.bf16.mxu0 %v19442_v48  ;;  %3606 = vmatprep.mubr.bf16.mxu1 %v19442_v48 }
 0x137   :  { %3413 = vmatpush1.bf16.msra.mxu0 %v16361_v24  ;;  %3577 = vmatpush1.bf16.msra.mxu1 %v16363_v49  ;;  %v16417_v24 = vcombine.low %v559_v33, %v563_v15  ;;  %v16419_v49 = vcombine.low %v560_v35, %v564_v37  ;;  %v615_v33 = vld [vmem:[#allocation2 + $0xfc0] sm:$0xff]  ;;  %v616_v35 = vld [vmem:[#allocation2 + $0xfc8] sm:$0xff] }
 0x138   :  { %3414 = vmatprep.subr.bf16.mxu0 %v16370_v50  ;;  %3578 = vmatprep.subr.bf16.mxu1 %v16372_v55  ;;  %v16426_v50 = vcombine.high %v567_v43, %v571_v44  ;;  %v16428_v55 = vcombine.high %v568_v45, %v572_v47  ;;  %v619_v15 = vld [vmem:[#allocation2 + $0xfe0] sm:$0xff]  ;;  %v620_v37 = vld [vmem:[#allocation2 + $0xfe8] sm:$0xff] }
 0x13b   :  { %3415 = vmatpush1.bf16.msra.mxu0 %v16369_v58  ;;  %3579 = vmatpush1.bf16.msra.mxu1 %v16371_v59  ;;  %v16425_v58 = vcombine.low %v567_v43, %v571_v44  ;;  %v16427_v59 = vcombine.low %v568_v45, %v572_v47  ;;  %v113_v43 = vld [vmem:[#allocation2 + $0x10] sm:$0xff]  ;;  %v114_v45 = vld [vmem:[#allocation2 + $0x18] sm:$0xff] }
 0x13c   :  { %3416 = vmatprep.subr.bf16.mxu0 %v16378_v60  ;;  %3580 = vmatprep.subr.bf16.mxu1 %v16380_v0  ;;  %v16434_v60 = vcombine.high %v575_v51, %v579_v52  ;;  %v16436_v0 = vcombine.high %v576_v54, %v580_v56  ;;  %v117_v44 = vld [vmem:[#allocation2 + $0x30] sm:$0xff]  ;;  %v118_v47 = vld [vmem:[#allocation2 + $0x38] sm:$0xff] }
 0x13f   :  { %3417 = vmatpush1.bf16.msra.mxu0 %v16377_v2  ;;  %3581 = vmatpush1.bf16.msra.mxu1 %v16379_v3  ;;  %v16433_v2 = vcombine.low %v575_v51, %v579_v52  ;;  %v16435_v3 = vcombine.low %v576_v54, %v580_v56  ;;  %v121_v51 = vld [vmem:[#allocation2 + $0x50] sm:$0xff]  ;;  %v122_v54 = vld [vmem:[#allocation2 + $0x58] sm:$0xff] }
 0x140   :  { %3418 = vmatprep.subr.bf16.mxu0 %v16386_v4  ;;  %3582 = vmatprep.subr.bf16.mxu1 %v16388_v8  ;;  %v16442_v4 = vcombine.high %v583_v61, %v587_v62  ;;  %v16444_v8 = vcombine.high %v584_v63, %v588_v1  ;;  %v125_v52 = vld [vmem:[#allocation2 + $0x70] sm:$0xff]  ;;  %v126_v56 = vld [vmem:[#allocation2 + $0x78] sm:$0xff] }
 0x143   :  { %3419 = vmatpush1.bf16.msra.mxu0 %v16385_v10  ;;  %3583 = vmatpush1.bf16.msra.mxu1 %v16387_v11  ;;  %v16441_v10 = vcombine.low %v583_v61, %v587_v62  ;;  %v16443_v11 = vcombine.low %v584_v63, %v588_v1  ;;  %v15982_v61 = vcombine.high %v121_v51, %v125_v52  ;;  %v129_v62 = vld [vmem:[#allocation2 + $0x90] sm:$0xff] }
 0x144   :  { %3420 = vmatprep.subr.bf16.mxu0 %v16394_v13  ;;  %3584 = vmatprep.subr.bf16.mxu1 %v16396_v18  ;;  %v16450_v13 = vcombine.high %v591_v5, %v595_v6  ;;  %v16452_v18 = vcombine.high %v592_v7, %v596_v9  ;;  %v133_v63 = vld [vmem:[#allocation2 + $0xb0] sm:$0xff]  ;;  %v15984_v1 = vcombine.high %v122_v54, %v126_v56 }
 0x147   :  { %3421 = vmatpush1.bf16.msra.mxu0 %v16393_v20  ;;  %3585 = vmatpush1.bf16.msra.mxu1 %v16395_v21  ;;  %v16449_v20 = vcombine.low %v591_v5, %v595_v6  ;;  %v16451_v21 = vcombine.low %v592_v7, %v596_v9  ;;  %v137_v5 = vld [vmem:[#allocation2 + $0xd0] sm:$0xff]  ;;  %v138_v7 = vld [vmem:[#allocation2 + $0xd8] sm:$0xff] }
 0x148   :  { %3422 = vmatprep.subr.bf16.mxu0 %v16402_v22  ;;  %3586 = vmatprep.subr.bf16.mxu1 %v16404_v28  ;;  %v16458_v22 = vcombine.high %v599_v14, %v603_v16  ;;  %v16460_v28 = vcombine.high %v600_v17, %v604_v19  ;;  %v141_v6 = vld [vmem:[#allocation2 + $0xf0] sm:$0xff]  ;;  %v142_v9 = vld [vmem:[#allocation2 + $0xf8] sm:$0xff] }
 0x14b   :  { %3423 = vmatpush1.bf16.msra.mxu0 %v16401_v30  ;;  %3587 = vmatpush1.bf16.msra.mxu1 %v16403_v31  ;;  %v16457_v30 = vcombine.low %v599_v14, %v603_v16  ;;  %v16459_v31 = vcombine.low %v600_v17, %v604_v19  ;;  %v145_v14 = vld [vmem:[#allocation2 + $0x110] sm:$0xff]  ;;  %v146_v17 = vld [vmem:[#allocation2 + $0x118] sm:$0xff] }
 0x14c   :  { %3424 = vmatprep.subr.bf16.mxu0 %v16410_v32  ;;  %3588 = vmatprep.subr.bf16.mxu1 %v16412_v36  ;;  %v16466_v32 = vcombine.high %v607_v53, %v611_v26  ;;  %v16468_v36 = vcombine.high %v608_v27, %v612_v29  ;;  %v149_v16 = vld [vmem:[#allocation2 + $0x130] sm:$0xff]  ;;  %v150_v19 = vld [vmem:[#allocation2 + $0x138] sm:$0xff] }
 0x14f   :  { %3425 = vmatpush1.bf16.msra.mxu0 %v16409_v40  ;;  %3589 = vmatpush1.bf16.msra.mxu1 %v16411_v41  ;;  %v16465_v40 = vcombine.low %v607_v53, %v611_v26  ;;  %v16467_v41 = vcombine.low %v608_v27, %v612_v29  ;;  %v153_v53 = vld [vmem:[#allocation2 + $0x150] sm:$0xff]  ;;  %v154_v26 = vld [vmem:[#allocation2 + $0x158] sm:$0xff]  ;;  %v16008_v27 = vcombine.high %v146_v17, %v150_v19 }
 0x150   :  { %3426 = vmatprep.subr.bf16.mxu0 %v16418_v42  ;;  %3590 = vmatprep.subr.bf16.mxu1 %v16420_v46  ;;  %v16474_v42 = vcombine.high %v615_v33, %v619_v15  ;;  %v16476_v46 = vcombine.high %v616_v35, %v620_v37  ;;  %v16005_v29 = vcombine.low %v145_v14, %v149_v16 }
 0x153   :  { %3427 = vmatpush1.bf16.msra.mxu0 %v16417_v24  ;;  %3591 = vmatpush1.bf16.msra.mxu1 %v16419_v49  ;;  %v16473_v24 = vcombine.low %v615_v33, %v619_v15  ;;  %v16475_v49 = vcombine.low %v616_v35, %v620_v37  ;;  %v165_v33 = vld [vmem:[#allocation2 + $0x1b0] sm:$0xff]  ;;  %v162_v15 = vld [vmem:[#allocation2 + $0x198] sm:$0xff] }
 0x154   :  { %3428 = vmatprep.subr.bf16.mxu0 %v16426_v50  ;;  %3592 = vmatprep.subr.bf16.mxu1 %v16428_v55  ;;  %v15974_v50 = vcombine.high %v113_v43, %v117_v44  ;;  %v15976_v55 = vcombine.high %v114_v45, %v118_v47 }
 0x157   :  { %3429 = vmatpush1.bf16.msra.mxu0 %v16425_v58  ;;  %3593 = vmatpush1.bf16.msra.mxu1 %v16427_v59  ;;  %v19450_v58 = vcombine.low %v19434_v38, %v19434_v38  ;;  %v15973_v59 = vcombine.low %v113_v43, %v117_v44  ;;  %v15983_v38 = vcombine.low %v122_v54, %v126_v56  ;;  %v173_v43 = vld [vmem:[#allocation2 + $0x1f0] sm:$0xff]  ;;  %v170_v44 = vld [vmem:[#allocation2 + $0x1d8] sm:$0xff] }
 0x158   :  { %3430 = vmatprep.subr.bf16.mxu0 %v16434_v60  ;;  %3594 = vmatprep.subr.bf16.mxu1 %v16436_v0  ;;  %v15975_v60 = vcombine.low %v114_v45, %v118_v47  ;;  %v130_v0 = vld [vmem:[#allocation2 + $0x98] sm:$0xff] }
 0x15b   :  { %3431 = vmatpush1.bf16.msra.mxu0 %v16433_v2  ;;  %3595 = vmatpush1.bf16.msra.mxu1 %v16435_v3  ;;  %v134_v2 = vld [vmem:[#allocation2 + $0xb8] sm:$0xff]  ;;  %v15981_v3 = vcombine.low %v121_v51, %v125_v52  ;;  %v181_v51 = vld [vmem:[#allocation2 + $0x230] sm:$0xff] }
 0x15c   :  { %3432 = vmatprep.subr.bf16.mxu0 %v16442_v4  ;;  %3596 = vmatprep.subr.bf16.mxu1 %v16444_v8  ;;  %v15990_v4 = vcombine.high %v129_v62, %v133_v63  ;;  %v15992_v8 = vcombine.high %v130_v0, %v134_v2  ;;  %v178_v52 = vld [vmem:[#allocation2 + $0x218] sm:$0xff] }
 0x15f   :  { %3433 = vmatpush1.bf16.msra.mxu0 %v16441_v10  ;;  %3597 = vmatpush1.bf16.msra.mxu1 %v16443_v11  ;;  %v15989_v10 = vcombine.low %v129_v62, %v133_v63  ;;  %v15991_v11 = vcombine.low %v130_v0, %v134_v2  ;;  %v189_v62 = vld [vmem:[#allocation2 + $0x270] sm:$0xff]  ;;  %v186_v63 = vld [vmem:[#allocation2 + $0x258] sm:$0xff] }
 0x160   :  { %3434 = vmatprep.subr.bf16.mxu0 %v16450_v13  ;;  %3598 = vmatprep.subr.bf16.mxu1 %v16452_v18  ;;  %v15998_v13 = vcombine.high %v137_v5, %v141_v6  ;;  %v16000_v18 = vcombine.high %v138_v7, %v142_v9 }
 0x163   :  { %3435 = vmatpush1.bf16.msra.mxu0 %v16449_v20  ;;  %3599 = vmatpush1.bf16.msra.mxu1 %v16451_v21  ;;  %v15997_v20 = vcombine.low %v137_v5, %v141_v6  ;;  %v15999_v21 = vcombine.low %v138_v7, %v142_v9  ;;  %v197_v5 = vld [vmem:[#allocation2 + $0x2b0] sm:$0xff]  ;;  %v194_v6 = vld [vmem:[#allocation2 + $0x298] sm:$0xff] }
 0x164   :  { %3436 = vmatprep.subr.bf16.mxu0 %v16458_v22  ;;  %3600 = vmatprep.subr.bf16.mxu1 %v16460_v28  ;;  %v16006_v22 = vcombine.high %v145_v14, %v149_v16  ;;  %v158_v28 = vld [vmem:[#allocation2 + $0x178] sm:$0xff]  ;;  %v205_v14 = vld [vmem:[#allocation2 + $0x2f0] sm:$0xff] }
 0x165   :  { %v16016_v35 = vcombine.high %v154_v26, %v158_v28  ;;  %v202_v16 = vld [vmem:[#allocation2 + $0x2d8] sm:$0xff] }
 0x167   :  { %3437 = vmatpush1.bf16.msra.mxu0 %v16457_v30  ;;  %3601 = vmatpush1.bf16.msra.mxu1 %v16459_v31  ;;  %v16007_v30 = vcombine.low %v146_v17, %v150_v19 }
 0x168   :  { %3438 = vmatprep.subr.bf16.mxu0 %v16466_v32  ;;  %3602 = vmatprep.subr.bf16.mxu1 %v16468_v36  ;;  %v161_v32 = vld [vmem:[#allocation2 + $0x190] sm:$0xff]  ;;  %v166_v36 = vld [vmem:[#allocation2 + $0x1b8] sm:$0xff] }
 0x169   :  { %v16024_v45 = vcombine.high %v162_v15, %v166_v36  ;;  %v16021_v47 = vcombine.low %v161_v32, %v165_v33 }
 0x16b   :  { %3439 = vmatpush1.bf16.msra.mxu0 %v16465_v40  ;;  %3603 = vmatpush1.bf16.msra.mxu1 %v16467_v41  ;;  %v16015_v40 = vcombine.low %v154_v26, %v158_v28  ;;  %v16022_v41 = vcombine.high %v161_v32, %v165_v33  ;;  %v221_v32 = vld [vmem:[#allocation2 + $0x370] sm:$0xff]  ;;  %v218_v33 = vld [vmem:[#allocation2 + $0x358] sm:$0xff] }
 0x16c   :  { %3440 = vmatprep.subr.bf16.mxu0 %v16474_v42  ;;  %3604 = vmatprep.subr.bf16.mxu1 %v16476_v46  ;;  %v169_v42 = vld [vmem:[#allocation2 + $0x1d0] sm:$0xff]  ;;  %v174_v46 = vld [vmem:[#allocation2 + $0x1f8] sm:$0xff] }
 0x16d   :  { %v16032_v54 = vcombine.high %v170_v44, %v174_v46  ;;  %v16029_v56 = vcombine.low %v169_v42, %v173_v43 }
 0x16f   :  { %3441 = vmatpush1.bf16.msra.mxu0 %v16473_v24  ;;  %3605 = vmatpush1.bf16.msra.mxu1 %v16475_v49  ;;  %v16023_v24 = vcombine.low %v162_v15, %v166_v36  ;;  %v16030_v49 = vcombine.high %v169_v42, %v173_v43  ;;  %v229_v42 = vld [vmem:[#allocation2 + $0x3b0] sm:$0xff]  ;;  %v226_v43 = vld [vmem:[#allocation2 + $0x398] sm:$0xff] }
 0x170   :  { %3615 = vmatprep.subr.bf16.mxu0 %v15974_v50  ;;  %3779 = vmatprep.subr.bf16.mxu1 %v15976_v55  ;;  %v177_v50 = vld [vmem:[#allocation2 + $0x210] sm:$0xff]  ;;  %v182_v55 = vld [vmem:[#allocation2 + $0x238] sm:$0xff] }
 0x171   :  { %v16040_v0 = vcombine.high %v178_v52, %v182_v55  ;;  %v16037_v2 = vcombine.low %v177_v50, %v181_v51 }
 0x172   :  { %3443 = vmatmul.mubr.bf16.vlgmr.msra.gmra.mrb[0].mxu0 %v19450_v58  ;;  %3607 = vmatmul.mubr.bf16.vlgmr.msra.gmra.mrb[0].mxu1 %v19450_v58 }
 0x173   :  { %3616 = vmatpush1.bf16.msra.mxu0 %v15973_v59  ;;  %3780 = vmatpush1.bf16.msra.mxu1 %v15975_v60  ;;  %v16031_v59 = vcombine.low %v170_v44, %v174_v46  ;;  %v16038_v60 = vcombine.high %v177_v50, %v181_v51  ;;  %v237_v50 = vld [vmem:[#allocation2 + $0x3f0] sm:$0xff]  ;;  %v234_v51 = vld [vmem:[#allocation2 + $0x3d8] sm:$0xff] }
 0x174   :  { %3617 = vmatprep.subr.bf16.mxu0 %v15982_v61  ;;  %3781 = vmatprep.subr.bf16.mxu1 %v15984_v1  ;;  %v185_v61 = vld [vmem:[#allocation2 + $0x250] sm:$0xff]  ;;  %v190_v1 = vld [vmem:[#allocation2 + $0x278] sm:$0xff] }
 0x175   :  { %3647 = vmatprep.mubr.bf16.mxu0 %v19393_v57  ;;  %3811 = vmatprep.mubr.bf16.mxu1 %v19393_v57  ;;  %v157_v57 = vld [vmem:[#allocation2 + $0x170] sm:$0xff]  ;;  %v16048_v7 = vcombine.high %v186_v63, %v190_v1  ;;  %v16045_v9 = vcombine.low %v185_v61, %v189_v62 }
 0x176   :  { %v16014_v31 = vcombine.high %v153_v53, %v157_v57  ;;  %v16013_v37 = vcombine.low %v153_v53, %v157_v57  ;;  %v213_v53 = vld [vmem:[#allocation2 + $0x330] sm:$0xff]  ;;  %v210_v57 = vld [vmem:[#allocation2 + $0x318] sm:$0xff] }
 0x177   :  { %3618 = vmatpush1.bf16.msra.mxu0 %v15981_v3  ;;  %3782 = vmatpush1.bf16.msra.mxu1 %v15983_v38  ;;  %v16039_v3 = vcombine.low %v178_v52, %v182_v55  ;;  %v16046_v38 = vcombine.high %v185_v61, %v189_v62  ;;  %v245_v61 = vld [vmem:[#allocation2 + $0x430] sm:$0xff]  ;;  %v242_v62 = vld [vmem:[#allocation2 + $0x418] sm:$0xff] }
 0x178   :  { %3619 = vmatprep.subr.bf16.mxu0 %v15990_v4  ;;  %3783 = vmatprep.subr.bf16.mxu1 %v15992_v8  ;;  %v193_v4 = vld [vmem:[#allocation2 + $0x290] sm:$0xff]  ;;  %v198_v8 = vld [vmem:[#allocation2 + $0x2b8] sm:$0xff] }
 0x179   :  { %v16056_v17 = vcombine.high %v194_v6, %v198_v8  ;;  %v16053_v19 = vcombine.low %v193_v4, %v197_v5 }
 0x17b   :  { %3620 = vmatpush1.bf16.msra.mxu0 %v15989_v10  ;;  %3784 = vmatpush1.bf16.msra.mxu1 %v15991_v11  ;;  %v16047_v10 = vcombine.low %v186_v63, %v190_v1  ;;  %v16054_v11 = vcombine.high %v193_v4, %v197_v5  ;;  %v253_v4 = vld [vmem:[#allocation2 + $0x470] sm:$0xff]  ;;  %v250_v5 = vld [vmem:[#allocation2 + $0x458] sm:$0xff] }
 0x17c   :  { %3621 = vmatprep.subr.bf16.mxu0 %v15998_v13  ;;  %3785 = vmatprep.subr.bf16.mxu1 %v16000_v18  ;;  %v201_v13 = vld [vmem:[#allocation2 + $0x2d0] sm:$0xff]  ;;  %v206_v18 = vld [vmem:[#allocation2 + $0x2f8] sm:$0xff] }
 0x17d   :  { %v16064_v26 = vcombine.high %v202_v16, %v206_v18  ;;  %v16061_v28 = vcombine.low %v201_v13, %v205_v14 }
 0x17f   :  { %3622 = vmatpush1.bf16.msra.mxu0 %v15997_v20  ;;  %3786 = vmatpush1.bf16.msra.mxu1 %v15999_v21  ;;  %v16055_v20 = vcombine.low %v194_v6, %v198_v8  ;;  %v16062_v21 = vcombine.high %v201_v13, %v205_v14  ;;  %v257_v13 = vld [vmem:[#allocation2 + $0x490] sm:$0xff] }
 0x180   :  { %3623 = vmatprep.subr.bf16.mxu0 %v16006_v22  ;;  %3787 = vmatprep.subr.bf16.mxu1 %v16008_v27  ;;  %v209_v22 = vld [vmem:[#allocation2 + $0x310] sm:$0xff]  ;;  %v214_v27 = vld [vmem:[#allocation2 + $0x338] sm:$0xff] }
 0x181   :  { %v16072_v15 = vcombine.high %v210_v57, %v214_v27  ;;  %v16069_v36 = vcombine.low %v209_v22, %v213_v53  ;;  %v261_v14 = vld [vmem:[#allocation2 + $0x4b0] sm:$0xff] }
 0x183   :  { %3624 = vmatpush1.bf16.msra.mxu0 %v16005_v29  ;;  %3788 = vmatpush1.bf16.msra.mxu1 %v16007_v30  ;;  %v16063_v29 = vcombine.low %v202_v16, %v206_v18  ;;  %v16070_v30 = vcombine.high %v209_v22, %v213_v53  ;;  %v258_v16 = vld [vmem:[#allocation2 + $0x498] sm:$0xff]  ;;  %v265_v22 = vld [vmem:[#allocation2 + $0x4d0] sm:$0xff] }
 0x184   :  { %3625 = vmatprep.subr.bf16.mxu0 %v16014_v31  ;;  %3789 = vmatprep.subr.bf16.mxu1 %v16016_v35  ;;  %v217_v31 = vld [vmem:[#allocation2 + $0x350] sm:$0xff]  ;;  %v222_v35 = vld [vmem:[#allocation2 + $0x378] sm:$0xff] }
 0x185   :  { %v16080_v44 = vcombine.high %v218_v33, %v222_v35  ;;  %v16077_v46 = vcombine.low %v217_v31, %v221_v32  ;;  %v269_v53 = vld [vmem:[#allocation2 + $0x4f0] sm:$0xff] }
 0x187   :  { %3626 = vmatpush1.bf16.msra.mxu0 %v16013_v37  ;;  %3790 = vmatpush1.bf16.msra.mxu1 %v16015_v40  ;;  %v16071_v37 = vcombine.low %v210_v57, %v214_v27  ;;  %v16078_v40 = vcombine.high %v217_v31, %v221_v32  ;;  %v266_v57 = vld [vmem:[#allocation2 + $0x4d8] sm:$0xff]  ;;  %v16117_v27 = vcombine.low %v257_v13, %v261_v14  ;;  %v277_v31 = vld [vmem:[#allocation2 + $0x530] sm:$0xff] }
 0x188   :  { %3627 = vmatprep.subr.bf16.mxu0 %v16022_v41  ;;  %3791 = vmatprep.subr.bf16.mxu1 %v16024_v45  ;;  %v225_v41 = vld [vmem:[#allocation2 + $0x390] sm:$0xff]  ;;  %v230_v45 = vld [vmem:[#allocation2 + $0x3b8] sm:$0xff] }
 0x189   :  { %v16088_v52 = vcombine.high %v226_v43, %v230_v45  ;;  %v16085_v55 = vcombine.low %v225_v41, %v229_v42  ;;  %v274_v32 = vld [vmem:[#allocation2 + $0x518] sm:$0xff] }
 0x18b   :  { %3628 = vmatpush1.bf16.msra.mxu0 %v16021_v47  ;;  %3792 = vmatpush1.bf16.msra.mxu1 %v16023_v24  ;;  %v16079_v47 = vcombine.low %v218_v33, %v222_v35  ;;  %v16086_v24 = vcombine.high %v225_v41, %v229_v42  ;;  %v278_v33 = vld [vmem:[#allocation2 + $0x538] sm:$0xff] }
 0x18c   :  { %3629 = vmatprep.subr.bf16.mxu0 %v16030_v49  ;;  %3793 = vmatprep.subr.bf16.mxu1 %v16032_v54  ;;  %v233_v49 = vld [vmem:[#allocation2 + $0x3d0] sm:$0xff]  ;;  %v238_v54 = vld [vmem:[#allocation2 + $0x3f8] sm:$0xff] }
 0x18d   :  { %v16096_v63 = vcombine.high %v234_v51, %v238_v54  ;;  %v16093_v1 = vcombine.low %v233_v49, %v237_v50  ;;  %v282_v41 = vld [vmem:[#allocation2 + $0x558] sm:$0xff] }
 0x18e   :  { %v286_v42 = vld [vmem:[#allocation2 + $0x578] sm:$0xff] }
 0x18f   :  { %3630 = vmatpush1.bf16.msra.mxu0 %v16029_v56  ;;  %3794 = vmatpush1.bf16.msra.mxu1 %v16031_v59  ;;  %v16087_v56 = vcombine.low %v226_v43, %v230_v45  ;;  %v16094_v59 = vcombine.high %v233_v49, %v237_v50  ;;  %v290_v49 = vld [vmem:[#allocation2 + $0x598] sm:$0xff] }
 0x190   :  { %3631 = vmatprep.subr.bf16.mxu0 %v16038_v60  ;;  %3795 = vmatprep.subr.bf16.mxu1 %v16040_v0  ;;  %v241_v60 = vld [vmem:[#allocation2 + $0x410] sm:$0xff]  ;;  %v246_v0 = vld [vmem:[#allocation2 + $0x438] sm:$0xff] }
 0x191   :  { %v16104_v6 = vcombine.high %v242_v62, %v246_v0  ;;  %v16101_v8 = vcombine.low %v241_v60, %v245_v61  ;;  %v294_v50 = vld [vmem:[#allocation2 + $0x5b8] sm:$0xff] }
 0x193   :  { %3632 = vmatpush1.bf16.msra.mxu0 %v16037_v2  ;;  %3796 = vmatpush1.bf16.msra.mxu1 %v16039_v3  ;;  %v16095_v2 = vcombine.low %v234_v51, %v238_v54  ;;  %v16102_v3 = vcombine.high %v241_v60, %v245_v61  ;;  %v298_v60 = vld [vmem:[#allocation2 + $0x5d8] sm:$0xff] }
 0x194   :  { %3633 = vmatprep.subr.bf16.mxu0 %v16046_v38  ;;  %3797 = vmatprep.subr.bf16.mxu1 %v16048_v7  ;;  %v249_v38 = vld [vmem:[#allocation2 + $0x450] sm:$0xff]  ;;  %v254_v7 = vld [vmem:[#allocation2 + $0x478] sm:$0xff] }
 0x195   :  { %v16109_v18 = vcombine.low %v249_v38, %v253_v4  ;;  %v302_v61 = vld [vmem:[#allocation2 + $0x5f8] sm:$0xff] }
 0x197   :  { %3634 = vmatpush1.bf16.msra.mxu0 %v16045_v9  ;;  %3798 = vmatpush1.bf16.msra.mxu1 %v16047_v10  ;;  %v16103_v9 = vcombine.low %v242_v62, %v246_v0  ;;  %v16110_v10 = vcombine.high %v249_v38, %v253_v4  ;;  %v306_v38 = vld [vmem:[#allocation2 + $0x618] sm:$0xff] }
 0x198   :  { %3635 = vmatprep.subr.bf16.mxu0 %v16054_v11  ;;  %3799 = vmatprep.subr.bf16.mxu1 %v16056_v17  ;;  %v16112_v11 = vcombine.high %v250_v5, %v254_v7  ;;  %v262_v17 = vld [vmem:[#allocation2 + $0x4b8] sm:$0xff] }
 0x199   :  { %v310_v4 = vld [vmem:[#allocation2 + $0x638] sm:$0xff] }
 0x19b   :  { %3636 = vmatpush1.bf16.msra.mxu0 %v16053_v19  ;;  %3800 = vmatpush1.bf16.msra.mxu1 %v16055_v20  ;;  %v16111_v19 = vcombine.low %v250_v5, %v254_v7  ;;  %v16118_v20 = vcombine.high %v257_v13, %v261_v14  ;;  %v318_v13 = vld [vmem:[#allocation2 + $0x678] sm:$0xff] }
 0x19c   :  { %3637 = vmatprep.subr.bf16.mxu0 %v16062_v21  ;;  %3801 = vmatprep.subr.bf16.mxu1 %v16064_v26  ;;  %v16120_v21 = vcombine.high %v258_v16, %v262_v17  ;;  %v270_v26 = vld [vmem:[#allocation2 + $0x4f8] sm:$0xff] }
 0x19d   :  { %v16127_v35 = vcombine.low %v266_v57, %v270_v26 }
 0x19f   :  { %3638 = vmatpush1.bf16.msra.mxu0 %v16061_v28  ;;  %3802 = vmatpush1.bf16.msra.mxu1 %v16063_v29  ;;  %v16126_v28 = vcombine.high %v265_v22, %v269_v53  ;;  %v16128_v29 = vcombine.high %v266_v57, %v270_v26 }
 0x1a0   :  { %3639 = vmatprep.subr.bf16.mxu0 %v16070_v30  ;;  %3803 = vmatprep.subr.bf16.mxu1 %v16072_v15  ;;  %v273_v30 = vld [vmem:[#allocation2 + $0x510] sm:$0xff]  ;;  %v16125_v15 = vcombine.low %v265_v22, %v269_v53  ;;  %v326_v22 = vld [vmem:[#allocation2 + $0x6b8] sm:$0xff] }
 0x1a1   :  { %v16133_v43 = vcombine.low %v273_v30, %v277_v31 }
 0x1a3   :  { %3640 = vmatpush1.bf16.msra.mxu0 %v16069_v36  ;;  %3804 = vmatpush1.bf16.msra.mxu1 %v16071_v37  ;;  %v16134_v36 = vcombine.high %v273_v30, %v277_v31  ;;  %v281_v37 = vld [vmem:[#allocation2 + $0x550] sm:$0xff]  ;;  %v334_v30 = vld [vmem:[#allocation2 + $0x6f8] sm:$0xff] }
 0x1a4   :  { %3641 = vmatprep.subr.bf16.mxu0 %v16078_v40  ;;  %3805 = vmatprep.subr.bf16.mxu1 %v16080_v44  ;;  %v285_v40 = vld [vmem:[#allocation2 + $0x570] sm:$0xff]  ;;  %v16135_v44 = vcombine.low %v274_v32, %v278_v33 }
 0x1a5   :  { %v16142_v45 = vcombine.high %v281_v37, %v285_v40  ;;  %v16141_v51 = vcombine.low %v281_v37, %v285_v40  ;;  %v342_v37 = vld [vmem:[#allocation2 + $0x738] sm:$0xff] }
 0x1a7   :  { %3642 = vmatpush1.bf16.msra.mxu0 %v16077_v46  ;;  %3806 = vmatpush1.bf16.msra.mxu1 %v16079_v47  ;;  %v16144_v46 = vcombine.high %v282_v41, %v286_v42  ;;  %v289_v47 = vld [vmem:[#allocation2 + $0x590] sm:$0xff] }
 0x1a8   :  { %3643 = vmatprep.subr.bf16.mxu0 %v16086_v24  ;;  %3807 = vmatprep.subr.bf16.mxu1 %v16088_v52  ;;  %v293_v24 = vld [vmem:[#allocation2 + $0x5b0] sm:$0xff]  ;;  %v16143_v52 = vcombine.low %v282_v41, %v286_v42 }
 0x1a9   :  { %v16150_v54 = vcombine.high %v289_v47, %v293_v24  ;;  %v16149_v62 = vcombine.low %v289_v47, %v293_v24  ;;  %v350_v47 = vld [vmem:[#allocation2 + $0x778] sm:$0xff] }
 0x1ab   :  { %3644 = vmatpush1.bf16.msra.mxu0 %v16085_v55  ;;  %3808 = vmatpush1.bf16.msra.mxu1 %v16087_v56  ;;  %v16152_v55 = vcombine.high %v290_v49, %v294_v50  ;;  %v297_v56 = vld [vmem:[#allocation2 + $0x5d0] sm:$0xff] }
 0x1ac   :  { %3645 = vmatprep.subr.bf16.mxu0 %v16094_v59  ;;  %3809 = vmatprep.subr.bf16.mxu1 %v16096_v63  ;;  %v301_v59 = vld [vmem:[#allocation2 + $0x5f0] sm:$0xff]  ;;  %v16151_v63 = vcombine.low %v290_v49, %v294_v50 }
 0x1ad   :  { %v16158_v0 = vcombine.high %v297_v56, %v301_v59  ;;  %v16157_v5 = vcombine.low %v297_v56, %v301_v59  ;;  %v358_v56 = vld [vmem:[#allocation2 + $0x7b8] sm:$0xff] }
 0x1af   :  { %3646 = vmatpush1.bf16.msra.mxu0 %v16093_v1  ;;  %3810 = vmatpush1.bf16.msra.mxu1 %v16095_v2  ;;  %v16160_v1 = vcombine.high %v298_v60, %v302_v61  ;;  %v305_v2 = vld [vmem:[#allocation2 + $0x610] sm:$0xff] }
 0x1b0   :  { %3656 = vmatprep.subr.bf16.mxu0 %v16102_v3  ;;  %3820 = vmatprep.subr.bf16.mxu1 %v16104_v6  ;;  %v309_v3 = vld [vmem:[#allocation2 + $0x630] sm:$0xff]  ;;  %v16159_v6 = vcombine.low %v298_v60, %v302_v61 }
 0x1b1   :  { %v16166_v7 = vcombine.high %v305_v2, %v309_v3  ;;  %v16165_v14 = vcombine.low %v305_v2, %v309_v3  ;;  %v366_v2 = vld [vmem:[#allocation2 + $0x7f8] sm:$0xff] }
 0x1b2   :  { %3648 = vmatmul.mubr.bf16.vlgmr.msra.gmra.mrb[4].mxu0 %v19399_v12  ;;  %3812 = vmatmul.mubr.bf16.vlgmr.msra.gmra.mrb[4].mxu1 %v19399_v12  ;;  %v16119_v12 = vcombine.low %v258_v16, %v262_v17  ;;  %v16167_v16 = vcombine.low %v306_v38, %v310_v4 }
 0x1b3   :  { %3657 = vmatpush1.bf16.msra.mxu0 %v16101_v8  ;;  %3821 = vmatpush1.bf16.msra.mxu1 %v16103_v9  ;;  %v16168_v8 = vcombine.high %v306_v38, %v310_v4  ;;  %v313_v9 = vld [vmem:[#allocation2 + $0x650] sm:$0xff] }
 0x1b4   :  { %3658 = vmatprep.subr.bf16.mxu0 %v16110_v10  ;;  %3822 = vmatprep.subr.bf16.mxu1 %v16112_v11  ;;  %v317_v10 = vld [vmem:[#allocation2 + $0x670] sm:$0xff]  ;;  %v314_v11 = vld [vmem:[#allocation2 + $0x658] sm:$0xff] }
 0x1b5   :  { %3688 = vmatprep.mubr.bf16.mxu0 %v19408_v23  ;;  %3852 = vmatprep.mubr.bf16.mxu1 %v19408_v23  ;;  %v16136_v23 = vcombine.high %v274_v32, %v278_v33  ;;  %v16174_v17 = vcombine.high %v313_v9, %v317_v10  ;;  %v16173_v53 = vcombine.low %v313_v9, %v317_v10  ;;  %v374_v9 = vld [vmem:[#allocation2 + $0x838] sm:$0xff] }
 0x1b6   :  { %v16175_v57 = vcombine.low %v314_v11, %v318_v13 }
 0x1b7   :  { %3659 = vmatpush1.bf16.msra.mxu0 %v16109_v18  ;;  %3823 = vmatpush1.bf16.msra.mxu1 %v16111_v19  ;;  %v16176_v18 = vcombine.high %v314_v11, %v318_v13  ;;  %v321_v19 = vld [vmem:[#allocation2 + $0x690] sm:$0xff] }
 0x1b8   :  { %3660 = vmatprep.subr.bf16.mxu0 %v16118_v20  ;;  %3824 = vmatprep.subr.bf16.mxu1 %v16120_v21  ;;  %v325_v20 = vld [vmem:[#allocation2 + $0x6b0] sm:$0xff]  ;;  %v322_v21 = vld [vmem:[#allocation2 + $0x698] sm:$0xff] }
 0x1b9   :  { %v16182_v26 = vcombine.high %v321_v19, %v325_v20  ;;  %v16181_v31 = vcombine.low %v321_v19, %v325_v20  ;;  %v16183_v32 = vcombine.low %v322_v21, %v326_v22  ;;  %v382_v19 = vld [vmem:[#allocation2 + $0x878] sm:$0xff] }
 0x1bb   :  { %3661 = vmatpush1.bf16.msra.mxu0 %v16117_v27  ;;  %3825 = vmatpush1.bf16.msra.mxu1 %v16119_v12  ;;  %v16184_v27 = vcombine.high %v322_v21, %v326_v22  ;;  %v329_v12 = vld [vmem:[#allocation2 + $0x6d0] sm:$0xff] }
 0x1bc   :  { %3662 = vmatprep.subr.bf16.mxu0 %v16126_v28  ;;  %3826 = vmatprep.subr.bf16.mxu1 %v16128_v29  ;;  %v333_v28 = vld [vmem:[#allocation2 + $0x6f0] sm:$0xff]  ;;  %v330_v29 = vld [vmem:[#allocation2 + $0x6d8] sm:$0xff] }
 0x1bd   :  { %v16190_v33 = vcombine.high %v329_v12, %v333_v28  ;;  %v16189_v40 = vcombine.low %v329_v12, %v333_v28  ;;  %v16191_v41 = vcombine.low %v330_v29, %v334_v30  ;;  %v390_v12 = vld [vmem:[#allocation2 + $0x8b8] sm:$0xff] }
 0x1bf   :  { %3663 = vmatpush1.bf16.msra.mxu0 %v16125_v15  ;;  %3827 = vmatpush1.bf16.msra.mxu1 %v16127_v35  ;;  %v16192_v15 = vcombine.high %v330_v29, %v334_v30  ;;  %v337_v35 = vld [vmem:[#allocation2 + $0x710] sm:$0xff] }
 0x1c0   :  { %3664 = vmatprep.subr.bf16.mxu0 %v16134_v36  ;;  %3828 = vmatprep.subr.bf16.mxu1 %v16136_v23  ;;  %v341_v36 = vld [vmem:[#allocation2 + $0x730] sm:$0xff]  ;;  %v338_v23 = vld [vmem:[#allocation2 + $0x718] sm:$0xff] }
 0x1c1   :  { %v16198_v42 = vcombine.high %v337_v35, %v341_v36  ;;  %v16197_v24 = vcombine.low %v337_v35, %v341_v36  ;;  %v16199_v49 = vcombine.low %v338_v23, %v342_v37  ;;  %v398_v35 = vld [vmem:[#allocation2 + $0x8f8] sm:$0xff] }
 0x1c3   :  { %3665 = vmatpush1.bf16.msra.mxu0 %v16133_v43  ;;  %3829 = vmatpush1.bf16.msra.mxu1 %v16135_v44  ;;  %v16200_v43 = vcombine.high %v338_v23, %v342_v37  ;;  %v345_v44 = vld [vmem:[#allocation2 + $0x750] sm:$0xff] }
 0x1c4   :  { %3666 = vmatprep.subr.bf16.mxu0 %v16142_v45  ;;  %3830 = vmatprep.subr.bf16.mxu1 %v16144_v46  ;;  %v349_v45 = vld [vmem:[#allocation2 + $0x770] sm:$0xff]  ;;  %v346_v46 = vld [vmem:[#allocation2 + $0x758] sm:$0xff] }
 0x1c5   :  { %v16206_v50 = vcombine.high %v345_v44, %v349_v45  ;;  %v16205_v59 = vcombine.low %v345_v44, %v349_v45  ;;  %v16207_v60 = vcombine.low %v346_v46, %v350_v47 }
 0x1c7   :  { %3667 = vmatpush1.bf16.msra.mxu0 %v16141_v51  ;;  %3831 = vmatpush1.bf16.msra.mxu1 %v16143_v52  ;;  %v16208_v51 = vcombine.high %v346_v46, %v350_v47  ;;  %v353_v52 = vld [vmem:[#allocation2 + $0x790] sm:$0xff] }
 0x1c8   :  { %3668 = vmatprep.subr.bf16.mxu0 %v16150_v54  ;;  %3832 = vmatprep.subr.bf16.mxu1 %v16152_v55  ;;  %v357_v54 = vld [vmem:[#allocation2 + $0x7b0] sm:$0xff]  ;;  %v354_v55 = vld [vmem:[#allocation2 + $0x798] sm:$0xff] }
 0x1c9   :  { %v16214_v61 = vcombine.high %v353_v52, %v357_v54  ;;  %v16213_v3 = vcombine.low %v353_v52, %v357_v54  ;;  %v16215_v38 = vcombine.low %v354_v55, %v358_v56  ;;  %v409_v47 = vld [vmem:[#allocation2 + $0x950] sm:$0xff] }
 0x1cb   :  { %3669 = vmatpush1.bf16.msra.mxu0 %v16149_v62  ;;  %3833 = vmatpush1.bf16.msra.mxu1 %v16151_v63  ;;  %v16216_v62 = vcombine.high %v354_v55, %v358_v56  ;;  %v361_v63 = vld [vmem:[#allocation2 + $0x7d0] sm:$0xff] }
 0x1cc   :  { %3670 = vmatprep.subr.bf16.mxu0 %v16158_v0  ;;  %3834 = vmatprep.subr.bf16.mxu1 %v16160_v1  ;;  %v365_v0 = vld [vmem:[#allocation2 + $0x7f0] sm:$0xff]  ;;  %v362_v1 = vld [vmem:[#allocation2 + $0x7d8] sm:$0xff] }
 0x1cd   :  { %v16222_v4 = vcombine.high %v361_v63, %v365_v0  ;;  %v16221_v10 = vcombine.low %v361_v63, %v365_v0  ;;  %v16223_v11 = vcombine.low %v362_v1, %v366_v2  ;;  %v417_v56 = vld [vmem:[#allocation2 + $0x990] sm:$0xff] }
 0x1cf   :  { %3671 = vmatpush1.bf16.msra.mxu0 %v16157_v5  ;;  %3835 = vmatpush1.bf16.msra.mxu1 %v16159_v6  ;;  %v16224_v5 = vcombine.high %v362_v1, %v366_v2  ;;  %v369_v6 = vld [vmem:[#allocation2 + $0x810] sm:$0xff] }
 0x1d0   :  { %3672 = vmatprep.subr.bf16.mxu0 %v16166_v7  ;;  %3836 = vmatprep.subr.bf16.mxu1 %v16168_v8  ;;  %v373_v7 = vld [vmem:[#allocation2 + $0x830] sm:$0xff]  ;;  %v370_v8 = vld [vmem:[#allocation2 + $0x818] sm:$0xff] }
 0x1d1   :  { %v16230_v13 = vcombine.high %v369_v6, %v373_v7  ;;  %v16229_v20 = vcombine.low %v369_v6, %v373_v7  ;;  %v16231_v21 = vcombine.low %v370_v8, %v374_v9  ;;  %v425_v2 = vld [vmem:[#allocation2 + $0x9d0] sm:$0xff] }
 0x1d3   :  { %3673 = vmatpush1.bf16.msra.mxu0 %v16165_v14  ;;  %3837 = vmatpush1.bf16.msra.mxu1 %v16167_v16  ;;  %v16232_v14 = vcombine.high %v370_v8, %v374_v9  ;;  %v377_v16 = vld [vmem:[#allocation2 + $0x850] sm:$0xff] }
 0x1d4   :  { %3674 = vmatprep.subr.bf16.mxu0 %v16174_v17  ;;  %3838 = vmatprep.subr.bf16.mxu1 %v16176_v18  ;;  %v381_v17 = vld [vmem:[#allocation2 + $0x870] sm:$0xff]  ;;  %v378_v18 = vld [vmem:[#allocation2 + $0x858] sm:$0xff] }
 0x1d5   :  { %v16238_v22 = vcombine.high %v377_v16, %v381_v17  ;;  %v16237_v28 = vcombine.low %v377_v16, %v381_v17  ;;  %v16239_v29 = vcombine.low %v378_v18, %v382_v19  ;;  %v433_v9 = vld [vmem:[#allocation2 + $0xa10] sm:$0xff] }
 0x1d7   :  { %3675 = vmatpush1.bf16.msra.mxu0 %v16173_v53  ;;  %3839 = vmatpush1.bf16.msra.mxu1 %v16175_v57  ;;  %v16240_v53 = vcombine.high %v378_v18, %v382_v19  ;;  %v385_v57 = vld [vmem:[#allocation2 + $0x890] sm:$0xff] }
 0x1d8   :  { %3676 = vmatprep.subr.bf16.mxu0 %v16182_v26  ;;  %3840 = vmatprep.subr.bf16.mxu1 %v16184_v27  ;;  %v389_v26 = vld [vmem:[#allocation2 + $0x8b0] sm:$0xff]  ;;  %v386_v27 = vld [vmem:[#allocation2 + $0x898] sm:$0xff] }
 0x1d9   :  { %v16246_v30 = vcombine.high %v385_v57, %v389_v26  ;;  %v16245_v36 = vcombine.low %v385_v57, %v389_v26  ;;  %v441_v19 = vld [vmem:[#allocation2 + $0xa50] sm:$0xff] }
 0x1db   :  { %3677 = vmatpush1.bf16.msra.mxu0 %v16181_v31  ;;  %3841 = vmatpush1.bf16.msra.mxu1 %v16183_v32  ;;  %v16248_v31 = vcombine.high %v386_v27, %v390_v12  ;;  %v393_v32 = vld [vmem:[#allocation2 + $0x8d0] sm:$0xff] }
 0x1dc   :  { %3678 = vmatprep.subr.bf16.mxu0 %v16190_v33  ;;  %3842 = vmatprep.subr.bf16.mxu1 %v16192_v15  ;;  %v397_v33 = vld [vmem:[#allocation2 + $0x8f0] sm:$0xff]  ;;  %v394_v15 = vld [vmem:[#allocation2 + $0x8d8] sm:$0xff] }
 0x1dd   :  { %v16254_v23 = vcombine.high %v393_v32, %v397_v33  ;;  %v16256_v37 = vcombine.high %v394_v15, %v398_v35  ;;  %v16253_v44 = vcombine.low %v393_v32, %v397_v33  ;;  %v16255_v45 = vcombine.low %v394_v15, %v398_v35  ;;  %v457_v35 = vld [vmem:[#allocation2 + $0xad0] sm:$0xff] }
 0x1df   :  { %3679 = vmatpush1.bf16.msra.mxu0 %v16189_v40  ;;  %3843 = vmatpush1.bf16.msra.mxu1 %v16191_v41  ;;  %v401_v40 = vld [vmem:[#allocation2 + $0x910] sm:$0xff] }
 0x1e0   :  { %3680 = vmatprep.subr.bf16.mxu0 %v16198_v42  ;;  %3844 = vmatprep.subr.bf16.mxu1 %v16200_v43  ;;  %v405_v41 = vld [vmem:[#allocation2 + $0x930] sm:$0xff]  ;;  %v402_v42 = vld [vmem:[#allocation2 + $0x918] sm:$0xff] }
 0x1e1   :  { %v406_v43 = vld [vmem:[#allocation2 + $0x938] sm:$0xff]  ;;  %v16262_v46 = vcombine.high %v401_v40, %v405_v41 }
 0x1e2   :  { %v16263_v52 = vcombine.low %v402_v42, %v406_v43 }
 0x1e3   :  { %3681 = vmatpush1.bf16.msra.mxu0 %v16197_v24  ;;  %3845 = vmatpush1.bf16.msra.mxu1 %v16199_v49  ;;  %v413_v24 = vld [vmem:[#allocation2 + $0x970] sm:$0xff]  ;;  %v410_v49 = vld [vmem:[#allocation2 + $0x958] sm:$0xff] }
 0x1e4   :  { %3682 = vmatprep.subr.bf16.mxu0 %v16206_v50  ;;  %3846 = vmatprep.subr.bf16.mxu1 %v16208_v51  ;;  %v414_v50 = vld [vmem:[#allocation2 + $0x978] sm:$0xff]  ;;  %v16261_v51 = vcombine.low %v401_v40, %v405_v41  ;;  %v16270_v54 = vcombine.high %v409_v47, %v413_v24 }
 0x1e5   :  { %v16272_v55 = vcombine.high %v410_v49, %v414_v50  ;;  %v16271_v63 = vcombine.low %v410_v49, %v414_v50  ;;  %v473_v50 = vld [vmem:[#allocation2 + $0xb50] sm:$0xff] }
 0x1e7   :  { %3683 = vmatpush1.bf16.msra.mxu0 %v16205_v59  ;;  %3847 = vmatpush1.bf16.msra.mxu1 %v16207_v60  ;;  %v421_v59 = vld [vmem:[#allocation2 + $0x9b0] sm:$0xff]  ;;  %v418_v60 = vld [vmem:[#allocation2 + $0x998] sm:$0xff] }
 0x1e8   :  { %3684 = vmatprep.subr.bf16.mxu0 %v16214_v61  ;;  %3848 = vmatprep.subr.bf16.mxu1 %v16216_v62  ;;  %v422_v61 = vld [vmem:[#allocation2 + $0x9b8] sm:$0xff]  ;;  %v16269_v62 = vcombine.low %v409_v47, %v413_v24  ;;  %v16278_v0 = vcombine.high %v417_v56, %v421_v59 }
 0x1e9   :  { %v16280_v1 = vcombine.high %v418_v60, %v422_v61  ;;  %v16279_v6 = vcombine.low %v418_v60, %v422_v61  ;;  %v481_v61 = vld [vmem:[#allocation2 + $0xb90] sm:$0xff] }
 0x1eb   :  { %3685 = vmatpush1.bf16.msra.mxu0 %v16213_v3  ;;  %3849 = vmatpush1.bf16.msra.mxu1 %v16215_v38  ;;  %v429_v3 = vld [vmem:[#allocation2 + $0x9f0] sm:$0xff]  ;;  %v426_v38 = vld [vmem:[#allocation2 + $0x9d8] sm:$0xff] }
 0x1ec   :  { %3686 = vmatprep.subr.bf16.mxu0 %v16222_v4  ;;  %3850 = vmatprep.subr.bf16.mxu1 %v16224_v5  ;;  %v430_v4 = vld [vmem:[#allocation2 + $0x9f8] sm:$0xff]  ;;  %v16277_v5 = vcombine.low %v417_v56, %v421_v59  ;;  %v16286_v7 = vcombine.high %v425_v2, %v429_v3 }
 0x1ed   :  { %v16288_v8 = vcombine.high %v426_v38, %v430_v4  ;;  %v16287_v16 = vcombine.low %v426_v38, %v430_v4  ;;  %v489_v4 = vld [vmem:[#allocation2 + $0xbd0] sm:$0xff] }
 0x1ef   :  { %3687 = vmatpush1.bf16.msra.mxu0 %v16221_v10  ;;  %3851 = vmatpush1.bf16.msra.mxu1 %v16223_v11  ;;  %v437_v10 = vld [vmem:[#allocation2 + $0xa30] sm:$0xff]  ;;  %v434_v11 = vld [vmem:[#allocation2 + $0xa18] sm:$0xff] }
 0x1f0   :  { %3697 = vmatprep.subr.bf16.mxu0 %v16230_v13  ;;  %3861 = vmatprep.subr.bf16.mxu1 %v16232_v14  ;;  %v438_v13 = vld [vmem:[#allocation2 + $0xa38] sm:$0xff]  ;;  %v16285_v14 = vcombine.low %v425_v2, %v429_v3  ;;  %v16294_v17 = vcombine.high %v433_v9, %v437_v10 }
 0x1f1   :  { %v16296_v18 = vcombine.high %v434_v11, %v438_v13  ;;  %v16295_v57 = vcombine.low %v434_v11, %v438_v13  ;;  %v497_v13 = vld [vmem:[#allocation2 + $0xc10] sm:$0xff] }
 0x1f2   :  { %3689 = vmatmul.mubr.bf16.vlgmr.msra.gmra.mrb[4].mxu0 %v19421_v25  ;;  %3853 = vmatmul.mubr.bf16.vlgmr.msra.gmra.mrb[4].mxu1 %v19421_v25  ;;  %v16247_v25 = vcombine.low %v386_v27, %v390_v12  ;;  %v449_v12 = vld [vmem:[#allocation2 + $0xa90] sm:$0xff] }
 0x1f3   :  { %3698 = vmatpush1.bf16.msra.mxu0 %v16229_v20  ;;  %3862 = vmatpush1.bf16.msra.mxu1 %v16231_v21  ;;  %v445_v20 = vld [vmem:[#allocation2 + $0xa70] sm:$0xff]  ;;  %v442_v21 = vld [vmem:[#allocation2 + $0xa58] sm:$0xff] }
 0x1f4   :  { %3699 = vmatprep.subr.bf16.mxu0 %v16238_v22  ;;  %3863 = vmatprep.subr.bf16.mxu1 %v16240_v53  ;;  %v446_v22 = vld [vmem:[#allocation2 + $0xa78] sm:$0xff]  ;;  %v16293_v53 = vcombine.low %v433_v9, %v437_v10  ;;  %v16302_v26 = vcombine.high %v441_v19, %v445_v20 }
 0x1f5   :  { %3729 = vmatprep.mubr.bf16.mxu0 %v19425_v34  ;;  %3893 = vmatprep.mubr.bf16.mxu1 %v19425_v34  ;;  %v16264_v34 = vcombine.high %v402_v42, %v406_v43  ;;  %v16304_v27 = vcombine.high %v442_v21, %v446_v22  ;;  %v16303_v32 = vcombine.low %v442_v21, %v446_v22  ;;  %v465_v43 = vld [vmem:[#allocation2 + $0xb10] sm:$0xff] }
 0x1f6   :  { %v505_v22 = vld [vmem:[#allocation2 + $0xc50] sm:$0xff] }
 0x1f7   :  { %3700 = vmatpush1.bf16.msra.mxu0 %v16237_v28  ;;  %3864 = vmatpush1.bf16.msra.mxu1 %v16239_v29  ;;  %v453_v28 = vld [vmem:[#allocation2 + $0xab0] sm:$0xff]  ;;  %v450_v29 = vld [vmem:[#allocation2 + $0xa98] sm:$0xff] }
 0x1f8   :  { %3701 = vmatprep.subr.bf16.mxu0 %v16246_v30  ;;  %3865 = vmatprep.subr.bf16.mxu1 %v16248_v31  ;;  %v454_v30 = vld [vmem:[#allocation2 + $0xab8] sm:$0xff]  ;;  %v16301_v31 = vcombine.low %v441_v19, %v445_v20  ;;  %v16310_v33 = vcombine.high %v449_v12, %v453_v28 }
 0x1f9   :  { %v16312_v15 = vcombine.high %v450_v29, %v454_v30  ;;  %v16311_v40 = vcombine.low %v450_v29, %v454_v30  ;;  %v513_v30 = vld [vmem:[#allocation2 + $0xc90] sm:$0xff] }
 0x1fb   :  { %3702 = vmatpush1.bf16.msra.mxu0 %v16245_v36  ;;  %3866 = vmatpush1.bf16.msra.mxu1 %v16247_v25  ;;  %v461_v36 = vld [vmem:[#allocation2 + $0xaf0] sm:$0xff]  ;;  %v458_v25 = vld [vmem:[#allocation2 + $0xad8] sm:$0xff] }
 0x1fc   :  { %3703 = vmatprep.subr.bf16.mxu0 %v16254_v23  ;;  %3867 = vmatprep.subr.bf16.mxu1 %v16256_v37  ;;  %v462_v23 = vld [vmem:[#allocation2 + $0xaf8] sm:$0xff]  ;;  %v16309_v37 = vcombine.low %v449_v12, %v453_v28  ;;  %v16318_v41 = vcombine.high %v457_v35, %v461_v36 }
 0x1fd   :  { %v16320_v42 = vcombine.high %v458_v25, %v462_v23  ;;  %v16319_v47 = vcombine.low %v458_v25, %v462_v23 }
 0x1ff   :  { %3704 = vmatpush1.bf16.msra.mxu0 %v16253_v44  ;;  %3868 = vmatpush1.bf16.msra.mxu1 %v16255_v45  ;;  %v469_v44 = vld [vmem:[#allocation2 + $0xb30] sm:$0xff]  ;;  %v466_v45 = vld [vmem:[#allocation2 + $0xb18] sm:$0xff] }
 0x200   :  { %3705 = vmatprep.subr.bf16.mxu0 %v16262_v46  ;;  %3869 = vmatprep.subr.bf16.mxu1 %v16264_v34  ;;  %v470_v46 = vld [vmem:[#allocation2 + $0xb38] sm:$0xff]  ;;  %v16317_v34 = vcombine.low %v457_v35, %v461_v36  ;;  %v16326_v24 = vcombine.high %v465_v43, %v469_v44 }
 0x201   :  { %v16328_v49 = vcombine.high %v466_v45, %v470_v46  ;;  %v16327_v56 = vcombine.low %v466_v45, %v470_v46 }
 0x203   :  { %3706 = vmatpush1.bf16.msra.mxu0 %v16261_v51  ;;  %3870 = vmatpush1.bf16.msra.mxu1 %v16263_v52  ;;  %v477_v51 = vld [vmem:[#allocation2 + $0xb70] sm:$0xff]  ;;  %v474_v52 = vld [vmem:[#allocation2 + $0xb58] sm:$0xff] }
 0x204   :  { %3707 = vmatprep.subr.bf16.mxu0 %v16270_v54  ;;  %3871 = vmatprep.subr.bf16.mxu1 %v16272_v55  ;;  %v478_v54 = vld [vmem:[#allocation2 + $0xb78] sm:$0xff]  ;;  %v16325_v55 = vcombine.low %v465_v43, %v469_v44  ;;  %v16334_v59 = vcombine.high %v473_v50, %v477_v51 }
 0x205   :  { %v16336_v60 = vcombine.high %v474_v52, %v478_v54  ;;  %v16335_v2 = vcombine.low %v474_v52, %v478_v54  ;;  %v19473_v52 = vld [vmem:[#allocation5] sm:$0x77] }
 0x207   :  { %3708 = vmatpush1.bf16.msra.mxu0 %v16269_v62  ;;  %3872 = vmatpush1.bf16.msra.mxu1 %v16271_v63  ;;  %v485_v62 = vld [vmem:[#allocation2 + $0xbb0] sm:$0xff]  ;;  %v482_v63 = vld [vmem:[#allocation2 + $0xb98] sm:$0xff] }
 0x208   :  { %3709 = vmatprep.subr.bf16.mxu0 %v16278_v0  ;;  %3873 = vmatprep.subr.bf16.mxu1 %v16280_v1  ;;  %v486_v0 = vld [vmem:[#allocation2 + $0xbb8] sm:$0xff]  ;;  %v16333_v1 = vcombine.low %v473_v50, %v477_v51  ;;  %v16342_v3 = vcombine.high %v481_v61, %v485_v62 }
 0x209   :  { %v16344_v38 = vcombine.high %v482_v63, %v486_v0  ;;  %v16343_v9 = vcombine.low %v482_v63, %v486_v0  ;;  %v542_v63 = vld [vmem:[#allocation2 + $0xd78] sm:$0xff] }
 0x20b   :  { %3710 = vmatpush1.bf16.msra.mxu0 %v16277_v5  ;;  %3874 = vmatpush1.bf16.msra.mxu1 %v16279_v6  ;;  %v493_v5 = vld [vmem:[#allocation2 + $0xbf0] sm:$0xff]  ;;  %v490_v6 = vld [vmem:[#allocation2 + $0xbd8] sm:$0xff] }
 0x20c   :  { %3711 = vmatprep.subr.bf16.mxu0 %v16286_v7  ;;  %3875 = vmatprep.subr.bf16.mxu1 %v16288_v8  ;;  %v494_v7 = vld [vmem:[#allocation2 + $0xbf8] sm:$0xff]  ;;  %v16341_v8 = vcombine.low %v481_v61, %v485_v62  ;;  %v16350_v10 = vcombine.high %v489_v4, %v493_v5 }
 0x20d   :  { %v16352_v11 = vcombine.high %v490_v6, %v494_v7  ;;  %v16351_v19 = vcombine.low %v490_v6, %v494_v7  ;;  %v538_v62 = vld [vmem:[#allocation2 + $0xd58] sm:$0xff] }
 0x20e   :  { %v546_v7 = vld [vmem:[#allocation2 + $0xd98] sm:$0xff] }
 0x20f   :  { %3712 = vmatpush1.bf16.msra.mxu0 %v16285_v14  ;;  %3876 = vmatpush1.bf16.msra.mxu1 %v16287_v16  ;;  %v501_v14 = vld [vmem:[#allocation2 + $0xc30] sm:$0xff]  ;;  %v498_v16 = vld [vmem:[#allocation2 + $0xc18] sm:$0xff] }
 0x210   :  { %3713 = vmatprep.subr.bf16.mxu0 %v16294_v17  ;;  %3877 = vmatprep.subr.bf16.mxu1 %v16296_v18  ;;  %v502_v17 = vld [vmem:[#allocation2 + $0xc38] sm:$0xff]  ;;  %v16349_v18 = vcombine.low %v489_v4, %v493_v5  ;;  %v16358_v20 = vcombine.high %v497_v13, %v501_v14  ;;  %v545_v4 = vld [vmem:[#allocation2 + $0xd90] sm:$0xff] }
 0x211   :  { %v16360_v21 = vcombine.high %v498_v16, %v502_v17  ;;  %v16359_v12 = vcombine.low %v498_v16, %v502_v17  ;;  %v549_v5 = vld [vmem:[#allocation2 + $0xdb0] sm:$0xff] }
 0x212   :  { %v553_v17 = vld [vmem:[#allocation2 + $0xdd0] sm:$0xff] }
 0x213   :  { %3714 = vmatpush1.bf16.msra.mxu0 %v16293_v53  ;;  %3878 = vmatpush1.bf16.msra.mxu1 %v16295_v57  ;;  %v509_v53 = vld [vmem:[#allocation2 + $0xc70] sm:$0xff]  ;;  %v506_v57 = vld [vmem:[#allocation2 + $0xc58] sm:$0xff] }
 0x214   :  { %3715 = vmatprep.subr.bf16.mxu0 %v16302_v26  ;;  %3879 = vmatprep.subr.bf16.mxu1 %v16304_v27  ;;  %v510_v26 = vld [vmem:[#allocation2 + $0xc78] sm:$0xff]  ;;  %v16357_v27 = vcombine.low %v497_v13, %v501_v14  ;;  %v16366_v28 = vcombine.high %v505_v22, %v509_v53  ;;  %v16365_v35 = vcombine.low %v505_v22, %v509_v53 }
 0x215   :  { %v16368_v29 = vcombine.high %v506_v57, %v510_v26  ;;  %v16367_v36 = vcombine.low %v506_v57, %v510_v26  ;;  %v16406_v13 = vcombine.high %v545_v4, %v549_v5  ;;  %v554_v22 = vld [vmem:[#allocation2 + $0xdd8] sm:$0xff] }
 0x216   :  { %v558_v53 = vld [vmem:[#allocation2 + $0xdf8] sm:$0xff] }
 0x217   :  { %3716 = vmatpush1.bf16.msra.mxu0 %v16301_v31  ;;  %3880 = vmatpush1.bf16.msra.mxu1 %v16303_v32  ;;  %v517_v31 = vld [vmem:[#allocation2 + $0xcb0] sm:$0xff]  ;;  %v514_v32 = vld [vmem:[#allocation2 + $0xc98] sm:$0xff] }
 0x218   :  { %3717 = vmatprep.subr.bf16.mxu0 %v16310_v33  ;;  %3881 = vmatprep.subr.bf16.mxu1 %v16312_v15  ;;  %v518_v33 = vld [vmem:[#allocation2 + $0xcb8] sm:$0xff]  ;;  %v627_v15 = vlaneseq  ;;  %v16374_v25 = vcombine.high %v513_v30, %v517_v31  ;;  %v16373_v44 = vcombine.low %v513_v30, %v517_v31 }
 0x219   :  { %v16376_v23 = vcombine.high %v514_v32, %v518_v33 }
 0x21a   :  { %v19467_v43 = vshrl.u32 %v627_v15, 7 }
 0x21b   :  { %3718 = vmatpush1.bf16.msra.mxu0 %v16309_v37  ;;  %3882 = vmatpush1.bf16.msra.mxu1 %v16311_v40  ;;  %v521_v37 = vld [vmem:[#allocation2 + $0xcd0] sm:$0xff] }
 0x21c   :  { %3719 = vmatprep.subr.bf16.mxu0 %v16318_v41  ;;  %3883 = vmatprep.subr.bf16.mxu1 %v16320_v42  ;;  %v525_v40 = vld [vmem:[#allocation2 + $0xcf0] sm:$0xff]  ;;  %v522_v41 = vld [vmem:[#allocation2 + $0xcd8] sm:$0xff]  ;;  %v19471_v50 = vsub.s32 0, %v19467_v43  ;;  %v19486_v57 = vsub.s32 1, %v19467_v43 }
 0x21d   :  { %v526_v42 = vld [vmem:[#allocation2 + $0xcf8] sm:$0xff]  ;;  %v16382_v45 = vcombine.high %v521_v37, %v525_v40  ;;  %v16381_v51 = vcombine.low %v521_v37, %v525_v40 }
 0x21e   :  { %v16384_v46 = vcombine.high %v522_v41, %v526_v42  ;;  %v630_v61 = vrot.slane %v19473_v52, %v19471_v50  ;;  %v566_v37 = vld [vmem:[#allocation2 + $0xe38] sm:$0xff]  ;;  %v3954_v40 = vrot.slane %v19473_v52, %v19486_v57 }
 0x21f   :  { %3720 = vmatpush1.bf16.msra.mxu0 %v16317_v34  ;;  %3884 = vmatpush1.bf16.msra.mxu1 %v16319_v47  ;;  %v529_v34 = vld [vmem:[#allocation2 + $0xd10] sm:$0xff] }
 0x220   :  { %3721 = vmatprep.subr.bf16.mxu0 %v16326_v24  ;;  %3885 = vmatprep.subr.bf16.mxu1 %v16328_v49  ;;  %v533_v47 = vld [vmem:[#allocation2 + $0xd30] sm:$0xff]  ;;  %v530_v24 = vld [vmem:[#allocation2 + $0xd18] sm:$0xff]  ;;  %v670_v6 = vrot.slane %v630_v61, %v19471_v50 }
 0x221   :  { %v534_v49 = vld [vmem:[#allocation2 + $0xd38] sm:$0xff]  ;;  %v16390_v54 = vcombine.high %v529_v34, %v533_v47  ;;  %v16389_v0 = vcombine.low %v529_v34, %v533_v47  ;;  %v569_v47 = vld [vmem:[#allocation2 + $0xe50] sm:$0xff] }
 0x223   :  { %3722 = vmatpush1.bf16.msra.mxu0 %v16325_v55  ;;  %3886 = vmatpush1.bf16.msra.mxu1 %v16327_v56  ;;  %v19475_v55 = vld [vmem:[#allocation5 + $0x8] sm:$0x77]  ;;  %v16392_v56 = vcombine.high %v530_v24, %v534_v49 }
 0x224   :  { %3723 = vmatprep.subr.bf16.mxu0 %v16334_v59  ;;  %3887 = vmatprep.subr.bf16.mxu1 %v16336_v60  ;;  %v537_v59 = vld [vmem:[#allocation2 + $0xd50] sm:$0xff] }
 0x225   :  { %v541_v60 = vld [vmem:[#allocation2 + $0xd70] sm:$0xff] }
 0x227   :  { %3724 = vmatpush1.bf16.msra.mxu0 %v16333_v1  ;;  %3888 = vmatpush1.bf16.msra.mxu1 %v16335_v2  ;;  %v638_v1 = vrot.slane %v19475_v55, %v19471_v50  ;;  %v16391_v2 = vcombine.low %v530_v24, %v534_v49  ;;  %v573_v24 = vld [vmem:[#allocation2 + $0xe70] sm:$0xff] }
 0x228   :  { %3725 = vmatprep.subr.bf16.mxu0 %v16342_v3  ;;  %3889 = vmatprep.subr.bf16.mxu1 %v16344_v38  ;;  %v16398_v3 = vcombine.high %v537_v59, %v541_v60  ;;  %v16400_v38 = vcombine.high %v538_v62, %v542_v63  ;;  %v16430_v61 = vcombine.high %v569_v47, %v573_v24 }
 0x22b   :  { %3726 = vmatpush1.bf16.msra.mxu0 %v16341_v8  ;;  %3890 = vmatpush1.bf16.msra.mxu1 %v16343_v9  ;;  %v550_v8 = vld [vmem:[#allocation2 + $0xdb8] sm:$0xff]  ;;  %v678_v9 = vrot.slane %v638_v1, %v19471_v50  ;;  %v577_v1 = vld [vmem:[#allocation2 + $0xe90] sm:$0xff] }
 0x22c   :  { %3727 = vmatprep.subr.bf16.mxu0 %v16350_v10  ;;  %3891 = vmatprep.subr.bf16.mxu1 %v16352_v11  ;;  %v16397_v10 = vcombine.low %v537_v59, %v541_v60  ;;  %v16399_v11 = vcombine.low %v538_v62, %v542_v63  ;;  %v16408_v16 = vcombine.high %v546_v7, %v550_v8 }
 0x22d   :  { %v16407_v31 = vcombine.low %v546_v7, %v550_v8  ;;  %v16429_v8 = vcombine.low %v569_v47, %v573_v24  ;;  %v609_v47 = vld [vmem:[#allocation2 + $0xf90] sm:$0xff] }
 0x22e   :  { %v613_v24 = vld [vmem:[#allocation2 + $0xfb0] sm:$0xff] }
 0x22f   :  { %3728 = vmatpush1.bf16.msra.mxu0 %v16349_v18  ;;  %3892 = vmatpush1.bf16.msra.mxu1 %v16351_v19  ;;  %v557_v18 = vld [vmem:[#allocation2 + $0xdf0] sm:$0xff] }
 0x230   :  { %3738 = vmatprep.subr.bf16.mxu0 %v16358_v20  ;;  %3902 = vmatprep.subr.bf16.mxu1 %v16360_v21 }
 0x232   :  { %3730 = vmatmul.mubr.bf16.vlgmr.msra.gmra.mrb[4].mxu0 %v19438_v39  ;;  %3894 = vmatmul.mubr.bf16.vlgmr.msra.gmra.mrb[4].mxu1 %v19438_v39  ;;  %v16375_v39 = vcombine.low %v514_v32, %v518_v33  ;;  %v16414_v32 = vcombine.high %v553_v17, %v557_v18  ;;  %v19491_v33 = vsub.s32 2, %v19467_v43 }
 0x233   :  { %3739 = vmatpush1.bf16.msra.mxu0 %v16357_v27  ;;  %3903 = vmatpush1.bf16.msra.mxu1 %v16359_v12 }
 0x234   :  { %3740 = vmatprep.subr.bf16.mxu0 %v16366_v28  ;;  %3904 = vmatprep.subr.bf16.mxu1 %v16368_v29  ;;  %v16405_v28 = vcombine.low %v545_v4, %v549_v5  ;;  %v4042_v49 = vrot.slane %v19475_v55, %v19491_v33  ;;  %v578_v4 = vld [vmem:[#allocation2 + $0xe98] sm:$0xff] }
 0x235   :  { %3770 = vmatprep.mubr.bf16.mxu0 %v19442_v48  ;;  %3934 = vmatprep.mubr.bf16.mxu1 %v19442_v48  ;;  %v16383_v48 = vcombine.low %v522_v41, %v526_v42  ;;  %v16413_v41 = vcombine.low %v553_v17, %v557_v18  ;;  %v3962_v42 = vrot.slane %v19475_v55, %v19486_v57  ;;  %v582_v5 = vld [vmem:[#allocation2 + $0xeb8] sm:$0xff]  ;;  %v585_v17 = vld [vmem:[#allocation2 + $0xed0] sm:$0xff] }
 0x236   :  { %v589_v18 = vld [vmem:[#allocation2 + $0xef0] sm:$0xff] }
 0x237   :  { %3741 = vmatpush1.bf16.msra.mxu0 %v16365_v35  ;;  %3905 = vmatpush1.bf16.msra.mxu1 %v16367_v36  ;;  %v16416_v35 = vcombine.high %v554_v22, %v558_v53  ;;  %v561_v36 = vld [vmem:[#allocation2 + $0xe10] sm:$0xff]  ;;  %v4002_v59 = vrot.slane %v3962_v42, %v19486_v57  ;;  %v606_v42 = vld [vmem:[#allocation2 + $0xf78] sm:$0xff] }
 0x238   :  { %3742 = vmatprep.subr.bf16.mxu0 %v16374_v25  ;;  %3906 = vmatprep.subr.bf16.mxu1 %v16376_v23  ;;  %v565_v25 = vld [vmem:[#allocation2 + $0xe30] sm:$0xff]  ;;  %v562_v23 = vld [vmem:[#allocation2 + $0xe18] sm:$0xff] }
 0x239   :  { %v16424_v34 = vcombine.high %v562_v23, %v566_v37  ;;  %v16423_v60 = vcombine.low %v562_v23, %v566_v37  ;;  %v601_v37 = vld [vmem:[#allocation2 + $0xf50] sm:$0xff] }
 0x23b   :  { %3743 = vmatpush1.bf16.msra.mxu0 %v16373_v44  ;;  %3907 = vmatpush1.bf16.msra.mxu1 %v16375_v39  ;;  %v16415_v44 = vcombine.low %v554_v22, %v558_v53  ;;  %v16422_v39 = vcombine.high %v561_v36, %v565_v25  ;;  %v590_v22 = vld [vmem:[#allocation2 + $0xef8] sm:$0xff] }
 0x23c   :  { %3744 = vmatprep.subr.bf16.mxu0 %v16382_v45  ;;  %3908 = vmatprep.subr.bf16.mxu1 %v16384_v46  ;;  %v4034_v45 = vrot.slane %v19473_v52, %v19491_v33  ;;  %v19500_v46 = vsub.s32 4, %v19467_v43 }
 0x23e   :  { %v4074_v62 = vrot.slane %v4034_v45, %v19491_v33  ;;  %v634_v63 = vrot.slane %v19473_v52, %v19500_v46 }
 0x23f   :  { %3745 = vmatpush1.bf16.msra.mxu0 %v16381_v51  ;;  %3909 = vmatpush1.bf16.msra.mxu1 %v16383_v48  ;;  %v570_v51 = vld [vmem:[#allocation2 + $0xe58] sm:$0xff] }
 0x240   :  { %3746 = vmatprep.subr.bf16.mxu0 %v16390_v54  ;;  %3910 = vmatprep.subr.bf16.mxu1 %v16392_v56  ;;  %v574_v48 = vld [vmem:[#allocation2 + $0xe78] sm:$0xff]  ;;  %v3994_v54 = vrot.slane %v3954_v40, %v19486_v57  ;;  %v16421_v56 = vcombine.low %v561_v36, %v565_v25  ;;  %v605_v40 = vld [vmem:[#allocation2 + $0xf70] sm:$0xff] }
 0x241   :  { %v16462_v45 = vcombine.high %v601_v37, %v605_v40 }
 0x243   :  { %3747 = vmatpush1.bf16.msra.mxu0 %v16389_v0  ;;  %3911 = vmatpush1.bf16.msra.mxu1 %v16391_v2  ;;  %v16432_v0 = vcombine.high %v570_v51, %v574_v48  ;;  %v581_v2 = vld [vmem:[#allocation2 + $0xeb0] sm:$0xff] }
 0x244   :  { %3748 = vmatprep.subr.bf16.mxu0 %v16398_v3  ;;  %3912 = vmatprep.subr.bf16.mxu1 %v16400_v38  ;;  %v4082_v38 = vrot.slane %v4042_v49, %v19491_v33  ;;  %v16437_v53 = vcombine.low %v577_v1, %v581_v2 }
 0x245   :  { %v3444_v14 = vpop.f32.mrb[0].mxu0  ;;  %v3608_v20 = vpop.f32.mrb[0].mxu1 }
 0x246   :  { %v18017_v19 = vadd.f32 %v3444_v14, %v670_v6  ;;  %v19483_v21 = vpop.f32.mrb[1].mxu0  ;;  %v18019_v26 = vadd.f32 %v3608_v20, %v678_v9  ;;  %v19488_v27 = vpop.f32.mrb[1].mxu1  ;;  %v674_v14 = vrot.slane %v634_v63, %v19471_v50  ;;  %v586_v20 = vld [vmem:[#allocation2 + $0xed8] sm:$0xff]  ;;  %v621_v63 = vld [vmem:[#allocation2 + $0xff0] sm:$0xff] }
 0x247   :  { %v3448_v12 = vpop.f32.mrb[2].mxu0  ;;  %3749 = vmatpush1.bf16.msra.mxu0 %v16397_v10  ;;  %v3612_v29 = vpop.f32.mrb[2].mxu1  ;;  %3913 = vmatpush1.bf16.msra.mxu1 %v16399_v11  ;;  %v16431_v10 = vcombine.low %v570_v51, %v574_v48  ;;  %v16438_v11 = vcombine.high %v577_v1, %v581_v2  ;;  %v16447_v36 = vcombine.low %v586_v20, %v590_v22  ;;  %v19522_v51 = vsub.s32 6, %v19467_v43  ;;  %v610_v48 = vld [vmem:[#allocation2 + $0xf98] sm:$0xff] }
 0x248   :  { %19034 = vtanh.f32 %v18017_v19  ;;  %v3449_v30 = vpop.f32.mrb[3].mxu0  ;;  %3750 = vmatprep.subr.bf16.mxu0 %v16406_v13  ;;  %v3613_v15 = vpop.f32.mrb[3].mxu1  ;;  %3914 = vmatprep.subr.bf16.mxu1 %v16408_v16  ;;  %v16440_v16 = vcombine.high %v578_v4, %v582_v5  ;;  %v16446_v12 = vcombine.high %v585_v17, %v589_v18  ;;  %v16448_v29 = vcombine.high %v586_v20, %v590_v22  ;;  %v618_v2 = vld [vmem:[#allocation2 + $0xfd8] sm:$0xff]  ;;  %v4143_v22 = vld [vmem:[#allocation7 + $0x80] sm:$0xff] }
 0x249   :  { %19036 = vtanh.f32 %v18019_v26  ;;  %v16439_v26 = vcombine.low %v578_v4, %v582_v5  ;;  %v593_v30 = vld [vmem:[#allocation2 + $0xf10] sm:$0xff]  ;;  %v598_v15 = vld [vmem:[#allocation2 + $0xf38] sm:$0xff]  ;;  %v4038_v1 = vrot.slane %v19473_v52, %v19522_v51 }
 0x24b   :  { %3751 = vmatpush1.bf16.msra.mxu0 %v16405_v28  ;;  %3915 = vmatpush1.bf16.msra.mxu1 %v16407_v31  ;;  %v18018_v28 = vadd.f32 %v19483_v21, %v674_v14  ;;  %v597_v31 = vld [vmem:[#allocation2 + $0xf30] sm:$0xff]  ;;  %v602_v21 = vld [vmem:[#allocation2 + $0xf58] sm:$0xff]  ;;  %v4136_v14 = vld [vmem:[#allocation7 + $0x48] sm:$0xff] }
 0x24c   :  { %3752 = vmatprep.subr.bf16.mxu0 %v16414_v32  ;;  %3916 = vmatprep.subr.bf16.mxu1 %v16416_v35  ;;  %v594_v32 = vld [vmem:[#allocation2 + $0xf18] sm:$0xff]  ;;  %v16445_v35 = vcombine.low %v585_v17, %v589_v18  ;;  %v16454_v25 = vcombine.high %v593_v30, %v597_v31 }
 0x24d   :  { %19038 = vtanh.f32 %v18018_v28  ;;  %v16456_v23 = vcombine.high %v594_v32, %v598_v15  ;;  %v4152_v28 = vld [vmem:[#allocation7 + $0xc8] sm:$0xff] }
 0x24f   :  { %3753 = vmatpush1.bf16.msra.mxu0 %v16413_v41  ;;  %3917 = vmatpush1.bf16.msra.mxu1 %v16415_v44  ;;  %v19517_v41 = vsub.s32 5, %v19467_v43  ;;  %v16453_v44 = vcombine.low %v593_v30, %v597_v31  ;;  %v622_v43 = vld [vmem:[#allocation2 + $0xff8] sm:$0xff]  ;;  %v4159_v31 = vld [vmem:[#allocation7 + $0x100] sm:$0xff] }
 0x250   :  { %3754 = vmatprep.subr.bf16.mxu0 %v16422_v39  ;;  %3918 = vmatprep.subr.bf16.mxu1 %v16424_v34  ;;  %v16455_v39 = vcombine.low %v594_v32, %v598_v15  ;;  %v16464_v34 = vcombine.high %v602_v21, %v606_v42  ;;  %v4167_v32 = vld [vmem:[#allocation7 + $0x140] sm:$0xff] }
 0x251   :  { %v3958_v49 = vrot.slane %v19473_v52, %v19517_v41 }
 0x252   :  { %v19035_v3 = vpop.eup %19034 }
 0x253   :  { %v19037_v6 = vpop.eup %19036  ;;  %v4023_v7 = vmul.f32 %v19035_v3, %v3994_v54  ;;  %3755 = vmatpush1.bf16.msra.mxu0 %v16421_v56  ;;  %3919 = vmatpush1.bf16.msra.mxu1 %v16423_v60  ;;  %v614_v54 = vld [vmem:[#allocation2 + $0xfb8] sm:$0xff]  ;;  %v16461_v56 = vcombine.low %v601_v37, %v605_v40  ;;  %v16470_v60 = vcombine.high %v609_v47, %v613_v24 }
 0x254   :  { %v4025_v9 = vmul.f32 %v19037_v6, %v4002_v59  ;;  %3756 = vmatprep.subr.bf16.mxu0 %v16430_v61  ;;  %3920 = vmatprep.subr.bf16.mxu1 %v16432_v0  ;;  %v16463_v59 = vcombine.low %v602_v21, %v606_v42  ;;  %v16472_v61 = vcombine.high %v610_v48, %v614_v54  ;;  %v4175_v42 = vld [vmem:[#allocation7 + $0x180] sm:$0xff] }
 0x255   :  { %v19510_v13 = vadd.f32 %v4074_v62, %v4023_v7  ;;  %v617_v62 = vld [vmem:[#allocation2 + $0xfd0] sm:$0xff]  ;;  %v3998_v0 = vrot.slane %v3958_v49, %v19486_v57  ;;  %v16471_v4 = vcombine.low %v610_v48, %v614_v54  ;;  %v16480_v6 = vcombine.high %v618_v2, %v622_v43  ;;  %v4127_v7 = vld [vmem:[#allocation7] sm:$0xff]  ;;  %v4192_v54 = vld [vmem:[#allocation7 + $0x208] sm:$0xff] }
 0x256   :  { %v19513_v19 = vadd.f32 %v4082_v38, %v4025_v9  ;;  %v16469_v38 = vcombine.low %v609_v47, %v613_v24  ;;  %v16478_v5 = vcombine.high %v617_v62, %v621_v63  ;;  %v16477_v52 = vcombine.low %v617_v62, %v621_v63  ;;  %v4191_v49 = vld [vmem:[#allocation7 + $0x200] sm:$0xff] }
 0x257   :  { %3757 = vmatpush1.bf16.msra.mxu0 %v16429_v8  ;;  %3921 = vmatpush1.bf16.msra.mxu1 %v16431_v10  ;;  %v19039_v3 = vpop.eup %19038  ;;  %v4135_v8 = vld [vmem:[#allocation7 + $0x40] sm:$0xff]  ;;  %v4078_v10 = vrot.slane %v4038_v1, %v19491_v33  ;;  %v16514_v40 = vcombine.high %v4159_v31, %v4167_v32  ;;  %v4208_v1 = vld [vmem:[#allocation7 + $0x288] sm:$0xff] }
 0x258   :  { %3758 = vmatprep.subr.bf16.mxu0 %v16438_v11  ;;  %3922 = vmatprep.subr.bf16.mxu1 %v16440_v16  ;;  %v4024_v9 = vmul.f32 %v19039_v3, %v3998_v0  ;;  %v4128_v11 = vld [vmem:[#allocation7 + $0x8] sm:$0xff]  ;;  %v16479_v16 = vcombine.low %v618_v2, %v622_v43  ;;  %v16482_v17 = vcombine.high %v4127_v7, %v4135_v8  ;;  %v4199_v48 = vld [vmem:[#allocation7 + $0x240] sm:$0xff] }
 0x259   :  { %v16484_v18 = vcombine.high %v4128_v11, %v4136_v14  ;;  %v4207_v63 = vld [vmem:[#allocation7 + $0x280] sm:$0xff]  ;;  %v4216_v2 = vld [vmem:[#allocation7 + $0x2c8] sm:$0xff]  ;;  %v16545_v43 = vcombine.low %v4191_v49, %v4199_v48 }
 0x25a   :  { %v4104_v20 = vadd.f32 %v4078_v10, %v4024_v9  ;;  %v4215_v0 = vld [vmem:[#allocation7 + $0x2c0] sm:$0xff]  ;;  %v16563_v10 = vcombine.low %v4208_v1, %v4216_v2 }
 0x25b   :  { %3759 = vmatpush1.bf16.msra.mxu0 %v16437_v53  ;;  %3923 = vmatpush1.bf16.msra.mxu1 %v16439_v26  ;;  %v4151_v53 = vld [vmem:[#allocation7 + $0xc0] sm:$0xff]  ;;  %v16481_v26 = vcombine.low %v4127_v7, %v4135_v8  ;;  %v4224_v7 = vld [vmem:[#allocation7 + $0x308] sm:$0xff]  ;;  %v16561_v9 = vcombine.low %v4207_v63, %v4215_v0 }
 0x25c   :  { %3760 = vmatprep.subr.bf16.mxu0 %v16446_v12  ;;  %3924 = vmatprep.subr.bf16.mxu1 %v16448_v29  ;;  %v4144_v12 = vld [vmem:[#allocation7 + $0x88] sm:$0xff]  ;;  %v16483_v29 = vcombine.low %v4128_v11, %v4136_v14  ;;  %v16498_v30 = vcombine.high %v4143_v22, %v4151_v53  ;;  %v19528_v15 = vpack.c.bf16 %v4104_v20, %v4104_v20 }
 0x25d   :  { %v16499_v37 = vcombine.low %v4144_v12, %v4152_v28  ;;  %v4232_v8 = vld [vmem:[#allocation7 + $0x348] sm:$0xff] }
 0x25e   :  { %v16580_v14 = vcombine.high %v4224_v7, %v4232_v8 }
 0x25f   :  { %3761 = vmatpush1.bf16.msra.mxu0 %v16445_v35  ;;  %3925 = vmatpush1.bf16.msra.mxu1 %v16447_v36  ;;  %v16500_v35 = vcombine.high %v4144_v12, %v4152_v28  ;;  %v4160_v36 = vld [vmem:[#allocation7 + $0x108] sm:$0xff]  ;;  %v4255_v12 = vld [vmem:[#allocation7 + $0x400] sm:$0xff] }
 0x260   :  { %3762 = vmatprep.subr.bf16.mxu0 %v16454_v25  ;;  %3926 = vmatprep.subr.bf16.mxu1 %v16456_v23  ;;  %v4168_v25 = vld [vmem:[#allocation7 + $0x148] sm:$0xff]  ;;  %v16497_v23 = vcombine.low %v4143_v22, %v4151_v53  ;;  %v16579_v22 = vcombine.low %v4224_v7, %v4232_v8  ;;  %v4263_v28 = vld [vmem:[#allocation7 + $0x440] sm:$0xff] }
 0x261   :  { %v16516_v21 = vcombine.high %v4160_v36, %v4168_v25 }
 0x263   :  { %3763 = vmatpush1.bf16.msra.mxu0 %v16453_v44  ;;  %3927 = vmatpush1.bf16.msra.mxu1 %v16455_v39  ;;  %v4183_v44 = vld [vmem:[#allocation7 + $0x1c0] sm:$0xff]  ;;  %v4176_v39 = vld [vmem:[#allocation7 + $0x188] sm:$0xff] }
 0x264   :  { %3764 = vmatprep.subr.bf16.mxu0 %v16462_v45  ;;  %3928 = vmatprep.subr.bf16.mxu1 %v16464_v34  ;;  %v4184_v45 = vld [vmem:[#allocation7 + $0x1c8] sm:$0xff]  ;;  %v16513_v34 = vcombine.low %v4159_v31, %v4167_v32  ;;  %v16530_v47 = vcombine.high %v4175_v42, %v4183_v44 }
 0x265   :  { %v16532_v24 = vcombine.high %v4176_v39, %v4184_v45 }
 0x267   :  { %3765 = vmatpush1.bf16.msra.mxu0 %v16461_v56  ;;  %3929 = vmatpush1.bf16.msra.mxu1 %v16463_v59  ;;  %v4200_v56 = vld [vmem:[#allocation7 + $0x248] sm:$0xff]  ;;  %v16529_v59 = vcombine.low %v4175_v42, %v4183_v44 }
 0x268   :  { %3766 = vmatprep.subr.bf16.mxu0 %v16470_v60  ;;  %3930 = vmatprep.subr.bf16.mxu1 %v16472_v61  ;;  %v16531_v60 = vcombine.low %v4176_v39, %v4184_v45  ;;  %v16546_v61 = vcombine.high %v4191_v49, %v4199_v48  ;;  %v16548_v62 = vcombine.high %v4192_v54, %v4200_v56 }
 0x269   :  { %v16547_v3 = vcombine.low %v4192_v54, %v4200_v56  ;;  %v642_v39 = vrot.slane %v19475_v55, %v19500_v46 }
 0x26b   :  { %3767 = vmatpush1.bf16.msra.mxu0 %v16469_v38  ;;  %3931 = vmatpush1.bf16.msra.mxu1 %v16471_v4  ;;  %v16562_v38 = vcombine.high %v4207_v63, %v4215_v0  ;;  %v16564_v4 = vcombine.high %v4208_v1, %v4216_v2  ;;  %v682_v56 = vrot.slane %v642_v39, %v19471_v50  ;;  %v4312_v63 = vld [vmem:[#allocation7 + $0x5c8] sm:$0xff] }
 0x26c   :  { %3768 = vmatprep.subr.bf16.mxu0 %v16478_v5  ;;  %3932 = vmatprep.subr.bf16.mxu1 %v16480_v6  ;;  %v4223_v5 = vld [vmem:[#allocation7 + $0x300] sm:$0xff] }
 0x26d   :  { %v4231_v6 = vld [vmem:[#allocation7 + $0x340] sm:$0xff] }
 0x26e   :  { %v16578_v11 = vcombine.high %v4223_v5, %v4231_v6  ;;  %v16577_v20 = vcombine.low %v4223_v5, %v4231_v6  ;;  %v4320_v5 = vld [vmem:[#allocation7 + $0x608] sm:$0xff] }
 0x26f   :  { %3769 = vmatpush1.bf16.msra.mxu0 %v16477_v52  ;;  %3933 = vmatpush1.bf16.msra.mxu1 %v16479_v16  ;;  %v4239_v52 = vld [vmem:[#allocation7 + $0x380] sm:$0xff]  ;;  %v4328_v6 = vld [vmem:[#allocation7 + $0x648] sm:$0xff] }
 0x270   :  { %10423 = vmatprep.subr.bf16.mxu0 %v16482_v17  ;;  %10587 = vmatprep.subr.bf16.mxu1 %v16484_v18  ;;  %v4247_v16 = vld [vmem:[#allocation7 + $0x3c0] sm:$0xff]  ;;  %v4240_v17 = vld [vmem:[#allocation7 + $0x388] sm:$0xff] }
 0x271   :  { %v4248_v18 = vld [vmem:[#allocation7 + $0x3c8] sm:$0xff]  ;;  %v16594_v53 = vcombine.high %v4239_v52, %v4247_v16  ;;  %v16593_v31 = vcombine.low %v4239_v52, %v4247_v16 }
 0x272   :  { %3771 = vmatmul.mubr.bf16.vlgmr.msra.gmra.mrb[4].mxu0 %v19450_v58  ;;  %3935 = vmatmul.mubr.bf16.vlgmr.msra.gmra.mrb[4].mxu1 %v19450_v58  ;;  %v16515_v58 = vcombine.low %v4160_v36, %v4168_v25  ;;  %v16595_v32 = vcombine.low %v4240_v17, %v4248_v18  ;;  %v4271_v25 = vld [vmem:[#allocation7 + $0x480] sm:$0xff]  ;;  %v4336_v52 = vld [vmem:[#allocation7 + $0x688] sm:$0xff] }
 0x273   :  { %10424 = vmatpush1.bf16.msra.mxu0 %v16481_v26  ;;  %10455 = vmatprep.mubr.bf16.mxu0 %v19528_v15  ;;  %v16596_v26 = vcombine.high %v4240_v17, %v4248_v18  ;;  %v4344_v16 = vld [vmem:[#allocation7 + $0x6c8] sm:$0xff]  ;;  %v16675_v17 = vcombine.low %v4320_v5, %v4328_v6 }
 0x274   :  { %10588 = vmatpush1.bf16.msra.mxu1 %v16483_v29  ;;  %10619 = vmatprep.mubr.bf16.mxu1 %v19528_v15  ;;  %v4256_v29 = vld [vmem:[#allocation7 + $0x408] sm:$0xff] }
 0x275   :  { %10425 = vmatprep.subr.bf16.mxu0 %v16498_v30  ;;  %10589 = vmatprep.subr.bf16.mxu1 %v16500_v35  ;;  %v4264_v30 = vld [vmem:[#allocation7 + $0x448] sm:$0xff]  ;;  %v16610_v35 = vcombine.high %v4255_v12, %v4263_v28 }
 0x276   :  { %v16612_v36 = vcombine.high %v4256_v29, %v4264_v30  ;;  %v16611_v42 = vcombine.low %v4256_v29, %v4264_v30  ;;  %v16691_v30 = vcombine.low %v4336_v52, %v4344_v16 }
 0x277   :  { %10426 = vmatpush1.bf16.msra.mxu0 %v16497_v23  ;;  %v4279_v23 = vld [vmem:[#allocation7 + $0x4c0] sm:$0xff] }
 0x278   :  { %10590 = vmatpush1.bf16.msra.mxu1 %v16499_v37  ;;  %10427 = vmatprep.subr.bf16.mxu0 %v16514_v40  ;;  %v4272_v37 = vld [vmem:[#allocation7 + $0x488] sm:$0xff]  ;;  %v16626_v44 = vcombine.high %v4271_v25, %v4279_v23  ;;  %v16625_v49 = vcombine.low %v4271_v25, %v4279_v23  ;;  %v4046_v23 = vrot.slane %v19475_v55, %v19522_v51 }
 0x279   :  { %10591 = vmatprep.subr.bf16.mxu1 %v16516_v21  ;;  %v4280_v40 = vld [vmem:[#allocation7 + $0x4c8] sm:$0xff]  ;;  %v16609_v21 = vcombine.low %v4255_v12, %v4263_v28 }
 0x27a   :  { %v16628_v45 = vcombine.high %v4272_v37, %v4280_v40  ;;  %v16627_v48 = vcombine.low %v4272_v37, %v4280_v40  ;;  %v4352_v12 = vld [vmem:[#allocation7 + $0x708] sm:$0xff] }
 0x27b   :  { %10428 = vmatpush1.bf16.msra.mxu0 %v16513_v34  ;;  %v4287_v34 = vld [vmem:[#allocation7 + $0x500] sm:$0xff]  ;;  %v4360_v28 = vld [vmem:[#allocation7 + $0x748] sm:$0xff] }
 0x27c   :  { %10592 = vmatpush1.bf16.msra.mxu1 %v16515_v58  ;;  %10429 = vmatprep.subr.bf16.mxu0 %v16530_v47  ;;  %v4295_v58 = vld [vmem:[#allocation7 + $0x540] sm:$0xff]  ;;  %v4288_v47 = vld [vmem:[#allocation7 + $0x508] sm:$0xff] }
 0x27d   :  { %10593 = vmatprep.subr.bf16.mxu1 %v16532_v24  ;;  %v4296_v24 = vld [vmem:[#allocation7 + $0x548] sm:$0xff]  ;;  %v16642_v54 = vcombine.high %v4287_v34, %v4295_v58  ;;  %v16641_v0 = vcombine.low %v4287_v34, %v4295_v58  ;;  %v4383_v34 = vld [vmem:[#allocation7 + $0x800] sm:$0xff] }
 0x27e   :  { %v16643_v1 = vcombine.low %v4288_v47, %v4296_v24  ;;  %v4368_v37 = vld [vmem:[#allocation7 + $0x788] sm:$0xff]  ;;  %v4391_v58 = vld [vmem:[#allocation7 + $0x840] sm:$0xff] }
 0x27f   :  { %10430 = vmatpush1.bf16.msra.mxu0 %v16529_v59  ;;  %v16644_v59 = vcombine.high %v4288_v47, %v4296_v24  ;;  %v4376_v40 = vld [vmem:[#allocation7 + $0x7c8] sm:$0xff]  ;;  %v4086_v24 = vrot.slane %v4046_v23, %v19491_v33 }
 0x280   :  { %10594 = vmatpush1.bf16.msra.mxu1 %v16531_v60  ;;  %10431 = vmatprep.subr.bf16.mxu0 %v16546_v61  ;;  %v4303_v60 = vld [vmem:[#allocation7 + $0x580] sm:$0xff]  ;;  %v4472_v23 = vld [vmem:[#allocation7 + $0xac8] sm:$0xff] }
 0x281   :  { %10595 = vmatprep.subr.bf16.mxu1 %v16548_v62  ;;  %v4311_v61 = vld [vmem:[#allocation7 + $0x5c0] sm:$0xff]  ;;  %v4304_v62 = vld [vmem:[#allocation7 + $0x588] sm:$0xff] }
 0x282   :  { %v16658_v2 = vcombine.high %v4303_v60, %v4311_v61  ;;  %v16657_v7 = vcombine.low %v4303_v60, %v4311_v61  ;;  %v16659_v8 = vcombine.low %v4304_v62, %v4312_v63  ;;  %v4399_v61 = vld [vmem:[#allocation7 + $0x880] sm:$0xff] }
 0x283   :  { %10432 = vmatpush1.bf16.msra.mxu0 %v16545_v43  ;;  %v18020_v43 = vadd.f32 %v19488_v27, %v682_v56  ;;  %v16738_v56 = vcombine.high %v4383_v34, %v4391_v58 }
 0x284   :  { %10596 = vmatpush1.bf16.msra.mxu1 %v16547_v3  ;;  %10433 = vmatprep.subr.bf16.mxu0 %v16562_v38  ;;  %v16660_v3 = vcombine.high %v4304_v62, %v4312_v63  ;;  %v4319_v38 = vld [vmem:[#allocation7 + $0x600] sm:$0xff]  ;;  %v16737_v63 = vcombine.low %v4383_v34, %v4391_v58  ;;  %v4488_v34 = vld [vmem:[#allocation7 + $0xb48] sm:$0xff] }
 0x285   :  { %10597 = vmatprep.subr.bf16.mxu1 %v16564_v4  ;;  %v4327_v4 = vld [vmem:[#allocation7 + $0x640] sm:$0xff]  ;;  %19040 = vtanh.f32 %v18020_v43 }
 0x286   :  { %v16673_v27 = vcombine.low %v4319_v38, %v4327_v4  ;;  %v4407_v62 = vld [vmem:[#allocation7 + $0x8c0] sm:$0xff] }
 0x287   :  { %10434 = vmatpush1.bf16.msra.mxu0 %v16561_v9  ;;  %v16674_v9 = vcombine.high %v4319_v38, %v4327_v4  ;;  %v4415_v38 = vld [vmem:[#allocation7 + $0x900] sm:$0xff] }
 0x288   :  { %10598 = vmatpush1.bf16.msra.mxu1 %v16563_v10  ;;  %10435 = vmatprep.subr.bf16.mxu0 %v16578_v11  ;;  %v16676_v10 = vcombine.high %v4320_v5, %v4328_v6  ;;  %v4335_v11 = vld [vmem:[#allocation7 + $0x680] sm:$0xff] }
 0x289   :  { %10599 = vmatprep.subr.bf16.mxu1 %v16580_v14  ;;  %v4343_v14 = vld [vmem:[#allocation7 + $0x6c0] sm:$0xff] }
 0x28a   :  { %v16690_v18 = vcombine.high %v4335_v11, %v4343_v14  ;;  %v16689_v29 = vcombine.low %v4335_v11, %v4343_v14  ;;  %v4423_v4 = vld [vmem:[#allocation7 + $0x940] sm:$0xff] }
 0x28b   :  { %10436 = vmatpush1.bf16.msra.mxu0 %v16577_v20  ;;  %v16692_v20 = vcombine.high %v4336_v52, %v4344_v16  ;;  %v4431_v14 = vld [vmem:[#allocation7 + $0x980] sm:$0xff]  ;;  %v4432_v16 = vld [vmem:[#allocation7 + $0x988] sm:$0xff] }
 0x28c   :  { %10600 = vmatpush1.bf16.msra.mxu1 %v16579_v22  ;;  %10437 = vmatprep.subr.bf16.mxu0 %v16594_v53  ;;  %v4351_v22 = vld [vmem:[#allocation7 + $0x700] sm:$0xff] }
 0x28d   :  { %10601 = vmatprep.subr.bf16.mxu1 %v16596_v26  ;;  %v4359_v53 = vld [vmem:[#allocation7 + $0x740] sm:$0xff]  ;;  %v3966_v26 = vrot.slane %v19475_v55, %v19517_v41 }
 0x28e   :  { %v4439_v52 = vld [vmem:[#allocation7 + $0x9c0] sm:$0xff] }
 0x28f   :  { %10438 = vmatpush1.bf16.msra.mxu0 %v16593_v31  ;;  %v16706_v31 = vcombine.high %v4351_v22, %v4359_v53  ;;  %v4006_v25 = vrot.slane %v3966_v26, %v19486_v57  ;;  %v4455_v26 = vld [vmem:[#allocation7 + $0xa40] sm:$0xff] }
 0x290   :  { %10602 = vmatpush1.bf16.msra.mxu1 %v16595_v32  ;;  %10439 = vmatprep.subr.bf16.mxu0 %v16610_v35  ;;  %v16708_v32 = vcombine.high %v4352_v12, %v4360_v28  ;;  %v4367_v35 = vld [vmem:[#allocation7 + $0x780] sm:$0xff] }
 0x291   :  { %10603 = vmatprep.subr.bf16.mxu1 %v16612_v36  ;;  %v4375_v36 = vld [vmem:[#allocation7 + $0x7c0] sm:$0xff] }
 0x292   :  { %v16722_v39 = vcombine.high %v4367_v35, %v4375_v36  ;;  %v16721_v55 = vcombine.low %v4367_v35, %v4375_v36  ;;  %v4463_v35 = vld [vmem:[#allocation7 + $0xa80] sm:$0xff] }
 0x293   :  { %10440 = vmatpush1.bf16.msra.mxu0 %v16609_v21  ;;  %v19041_v21 = vpop.eup %19040  ;;  %v4471_v36 = vld [vmem:[#allocation7 + $0xac0] sm:$0xff] }
 0x294   :  { %10604 = vmatpush1.bf16.msra.mxu1 %v16611_v42  ;;  %10441 = vmatprep.subr.bf16.mxu0 %v16626_v44  ;;  %v16705_v42 = vcombine.low %v4351_v22, %v4359_v53  ;;  %v16707_v44 = vcombine.low %v4352_v12, %v4360_v28  ;;  %v4026_v47 = vmul.f32 %v19041_v21, %v4006_v25  ;;  %v4447_v53 = vld [vmem:[#allocation7 + $0xa00] sm:$0xff]  ;;  %v4448_v12 = vld [vmem:[#allocation7 + $0xa08] sm:$0xff] }
 0x295   :  { %10605 = vmatprep.subr.bf16.mxu1 %v16628_v45  ;;  %v16724_v45 = vcombine.high %v4368_v37, %v4376_v40  ;;  %v4456_v28 = vld [vmem:[#allocation7 + $0xa48] sm:$0xff]  ;;  %v16818_v21 = vcombine.high %v4463_v35, %v4471_v36  ;;  %v16817_v58 = vcombine.low %v4463_v35, %v4471_v36 }
 0x296   :  { %v4106_v60 = vadd.f32 %v4086_v24, %v4026_v47  ;;  %v4464_v25 = vld [vmem:[#allocation7 + $0xa88] sm:$0xff] }
 0x297   :  { %10442 = vmatpush1.bf16.msra.mxu0 %v16625_v49  ;;  %v4384_v49 = vld [vmem:[#allocation7 + $0x808] sm:$0xff]  ;;  %v16819_v47 = vcombine.low %v4464_v25, %v4472_v23 }
 0x298   :  { %10606 = vmatpush1.bf16.msra.mxu1 %v16627_v48  ;;  %10443 = vmatprep.subr.bf16.mxu0 %v16642_v54  ;;  %v4392_v48 = vld [vmem:[#allocation7 + $0x848] sm:$0xff]  ;;  %v16723_v54 = vcombine.low %v4368_v37, %v4376_v40  ;;  %v19548_v5 = vpack.c.bf16 %v4106_v60, %v4106_v60  ;;  %v16801_v37 = vcombine.low %v4447_v53, %v4455_v26 }
 0x299   :  { %10607 = vmatprep.subr.bf16.mxu1 %v16644_v59  ;;  %v16740_v59 = vcombine.high %v4384_v49, %v4392_v48  ;;  %v16739_v43 = vcombine.low %v4384_v49, %v4392_v48  ;;  %v16803_v40 = vcombine.low %v4448_v12, %v4456_v28  ;;  %v4495_v48 = vld [vmem:[#allocation7 + $0xb80] sm:$0xff] }
 0x29b   :  { %10444 = vmatpush1.bf16.msra.mxu0 %v16641_v0  ;;  %v4400_v0 = vld [vmem:[#allocation7 + $0x888] sm:$0xff] }
 0x29c   :  { %10608 = vmatpush1.bf16.msra.mxu1 %v16643_v1  ;;  %10445 = vmatprep.subr.bf16.mxu0 %v16658_v2  ;;  %v4408_v1 = vld [vmem:[#allocation7 + $0x8c8] sm:$0xff]  ;;  %v19546_v2 = vpack.c.bf16 %v19510_v13, %v19510_v13 }
 0x29d   :  { %10609 = vmatprep.subr.bf16.mxu1 %v16660_v3  ;;  %v16754_v3 = vcombine.high %v4399_v61, %v4407_v62  ;;  %v16756_v6 = vcombine.high %v4400_v0, %v4408_v1  ;;  %v16755_v13 = vcombine.low %v4400_v0, %v4408_v1  ;;  %v4519_v0 = vld [vmem:[#allocation7 + $0xc40] sm:$0xff]  ;;  %v4512_v1 = vld [vmem:[#allocation7 + $0xc08] sm:$0xff] }
 0x29f   :  { %10446 = vmatpush1.bf16.msra.mxu0 %v16657_v7  ;;  %v4416_v7 = vld [vmem:[#allocation7 + $0x908] sm:$0xff] }
 0x2a0   :  { %10610 = vmatpush1.bf16.msra.mxu1 %v16659_v8  ;;  %10447 = vmatprep.subr.bf16.mxu0 %v16674_v9  ;;  %v4424_v8 = vld [vmem:[#allocation7 + $0x948] sm:$0xff]  ;;  %v16753_v9 = vcombine.low %v4399_v61, %v4407_v62 }
 0x2a1   :  { %10611 = vmatprep.subr.bf16.mxu1 %v16676_v10  ;;  %v16770_v10 = vcombine.high %v4415_v38, %v4423_v4  ;;  %v16772_v11 = vcombine.high %v4416_v7, %v4424_v8 }
 0x2a3   :  { %10448 = vmatpush1.bf16.msra.mxu0 %v16673_v27  ;;  %v4440_v27 = vld [vmem:[#allocation7 + $0x9c8] sm:$0xff] }
 0x2a4   :  { %10612 = vmatpush1.bf16.msra.mxu1 %v16675_v17  ;;  %10449 = vmatprep.subr.bf16.mxu0 %v16690_v18  ;;  %v16769_v17 = vcombine.low %v4415_v38, %v4423_v4  ;;  %v16771_v18 = vcombine.low %v4416_v7, %v4424_v8  ;;  %v16788_v22 = vcombine.high %v4432_v16, %v4440_v27  ;;  %v4527_v7 = vld [vmem:[#allocation7 + $0xc80] sm:$0xff] }
 0x2a5   :  { %10613 = vmatprep.subr.bf16.mxu1 %v16692_v20  ;;  %v16786_v20 = vcombine.high %v4431_v14, %v4439_v52  ;;  %v4535_v8 = vld [vmem:[#allocation7 + $0xcc0] sm:$0xff] }
 0x2a7   :  { %10450 = vmatpush1.bf16.msra.mxu0 %v16689_v29  ;;  %v16785_v29 = vcombine.low %v4431_v14, %v4439_v52  ;;  %v16882_v14 = vcombine.high %v4527_v7, %v4535_v8 }
 0x2a8   :  { %10614 = vmatpush1.bf16.msra.mxu1 %v16691_v30  ;;  %10451 = vmatprep.subr.bf16.mxu0 %v16706_v31  ;;  %v16787_v30 = vcombine.low %v4432_v16, %v4440_v27  ;;  %v16802_v31 = vcombine.high %v4447_v53, %v4455_v26  ;;  %v4543_v16 = vld [vmem:[#allocation7 + $0xd00] sm:$0xff] }
 0x2a9   :  { %10615 = vmatprep.subr.bf16.mxu1 %v16708_v32  ;;  %v16804_v32 = vcombine.high %v4448_v12, %v4456_v28  ;;  %v4551_v27 = vld [vmem:[#allocation7 + $0xd40] sm:$0xff] }
 0x2aa   :  { %v16898_v53 = vcombine.high %v4543_v16, %v4551_v27  ;;  %v4559_v12 = vld [vmem:[#allocation7 + $0xd80] sm:$0xff] }
 0x2ab   :  { %10452 = vmatpush1.bf16.msra.mxu0 %v16705_v42  ;;  %v16820_v42 = vcombine.high %v4464_v25, %v4472_v23  ;;  %v4567_v28 = vld [vmem:[#allocation7 + $0xdc0] sm:$0xff] }
 0x2ac   :  { %10616 = vmatpush1.bf16.msra.mxu1 %v16707_v44  ;;  %10453 = vmatprep.subr.bf16.mxu0 %v16722_v39  ;;  %v4479_v44 = vld [vmem:[#allocation7 + $0xb00] sm:$0xff]  ;;  %v16914_v35 = vcombine.high %v4559_v12, %v4567_v28 }
 0x2ad   :  { %10617 = vmatprep.subr.bf16.mxu1 %v16724_v45  ;;  %v4487_v39 = vld [vmem:[#allocation7 + $0xb40] sm:$0xff]  ;;  %v4480_v45 = vld [vmem:[#allocation7 + $0xb08] sm:$0xff] }
 0x2ae   :  { %v16834_v24 = vcombine.high %v4479_v44, %v4487_v39  ;;  %v16836_v49 = vcombine.high %v4480_v45, %v4488_v34  ;;  %v16835_v60 = vcombine.low %v4480_v45, %v4488_v34  ;;  %v4575_v25 = vld [vmem:[#allocation7 + $0xe00] sm:$0xff] }
 0x2af   :  { %10454 = vmatpush1.bf16.msra.mxu0 %v16721_v55  ;;  %v4503_v55 = vld [vmem:[#allocation7 + $0xbc0] sm:$0xff] }
 0x2b0   :  { %10618 = vmatpush1.bf16.msra.mxu1 %v16723_v54  ;;  %10464 = vmatprep.subr.bf16.mxu0 %v16738_v56  ;;  %v4496_v54 = vld [vmem:[#allocation7 + $0xb88] sm:$0xff]  ;;  %v16850_v61 = vcombine.high %v4495_v48, %v4503_v55  ;;  %v4583_v23 = vld [vmem:[#allocation7 + $0xe40] sm:$0xff] }
 0x2b1   :  { %10628 = vmatprep.subr.bf16.mxu1 %v16740_v59  ;;  %v4504_v56 = vld [vmem:[#allocation7 + $0xbc8] sm:$0xff]  ;;  %v16833_v59 = vcombine.low %v4479_v44, %v4487_v39  ;;  %v16930_v44 = vcombine.high %v4575_v25, %v4583_v23  ;;  %v4591_v45 = vld [vmem:[#allocation7 + $0xe80] sm:$0xff] }
 0x2b2   :  { %10456 = vmatmul.mubr.bf16.vlgmr.msra.gmra.mrb[8].mxu0 %v19546_v2  ;;  %v16852_v62 = vcombine.high %v4496_v54, %v4504_v56  ;;  %v16851_v38 = vcombine.low %v4496_v54, %v4504_v56  ;;  %v4599_v34 = vld [vmem:[#allocation7 + $0xec0] sm:$0xff] }
 0x2b3   :  { %10620 = vmatmul.mubr.bf16.vlgmr.msra.gmra.mrb[8].mxu1 %v19546_v2  ;;  %10465 = vmatpush1.bf16.msra.mxu0 %v16737_v63  ;;  %v4511_v63 = vld [vmem:[#allocation7 + $0xc00] sm:$0xff] }
 0x2b4   :  { %10496 = vmatprep.mubr.bf16.mxu0 %v19548_v5  ;;  %10629 = vmatpush1.bf16.msra.mxu1 %v16739_v43  ;;  %v4520_v43 = vld [vmem:[#allocation7 + $0xc48] sm:$0xff]  ;;  %v16866_v4 = vcombine.high %v4511_v63, %v4519_v0  ;;  %v4607_v54 = vld [vmem:[#allocation7 + $0xf00] sm:$0xff] }
 0x2b5   :  { %10660 = vmatprep.mubr.bf16.mxu1 %v19548_v5  ;;  %10466 = vmatprep.subr.bf16.mxu0 %v16754_v3  ;;  %v16849_v3 = vcombine.low %v4495_v48, %v4503_v55  ;;  %v16946_v48 = vcombine.high %v4591_v45, %v4599_v34  ;;  %v4615_v56 = vld [vmem:[#allocation7 + $0xf40] sm:$0xff] }
 0x2b6   :  { %10630 = vmatprep.subr.bf16.mxu1 %v16756_v6  ;;  %v16868_v6 = vcombine.high %v4512_v1, %v4520_v43 }
 0x2b7   :  { %10467 = vmatpush1.bf16.msra.mxu0 %v16753_v9  ;;  %v4528_v9 = vld [vmem:[#allocation7 + $0xc88] sm:$0xff] }
 0x2b8   :  { %10631 = vmatpush1.bf16.msra.mxu1 %v16755_v13  ;;  %10468 = vmatprep.subr.bf16.mxu0 %v16770_v10  ;;  %v4536_v13 = vld [vmem:[#allocation7 + $0xcc8] sm:$0xff]  ;;  %v16865_v10 = vcombine.low %v4511_v63, %v4519_v0  ;;  %v16962_v63 = vcombine.high %v4607_v54, %v4615_v56 }
 0x2b9   :  { %10632 = vmatprep.subr.bf16.mxu1 %v16772_v11  ;;  %v16867_v11 = vcombine.low %v4512_v1, %v4520_v43  ;;  %v16884_v52 = vcombine.high %v4528_v9, %v4536_v13  ;;  %v4623_v1 = vld [vmem:[#allocation7 + $0xf80] sm:$0xff] }
 0x2ba   :  { %v4631_v43 = vld [vmem:[#allocation7 + $0xfc0] sm:$0xff] }
 0x2bb   :  { %10469 = vmatpush1.bf16.msra.mxu0 %v16769_v17  ;;  %v4544_v17 = vld [vmem:[#allocation7 + $0xd08] sm:$0xff] }
 0x2bc   :  { %10633 = vmatpush1.bf16.msra.mxu1 %v16771_v18  ;;  %10470 = vmatprep.subr.bf16.mxu0 %v16786_v20  ;;  %v4552_v18 = vld [vmem:[#allocation7 + $0xd48] sm:$0xff]  ;;  %v16881_v20 = vcombine.low %v4527_v7, %v4535_v8  ;;  %v16978_v7 = vcombine.high %v4623_v1, %v4631_v43 }
 0x2bd   :  { %10634 = vmatprep.subr.bf16.mxu1 %v16788_v22  ;;  %v16883_v22 = vcombine.low %v4528_v9, %v4536_v13  ;;  %v16900_v26 = vcombine.high %v4544_v17, %v4552_v18  ;;  %v4639_v9 = vld [vmem:[#allocation7 + $0x1000] sm:$0xff] }
 0x2be   :  { %v4647_v13 = vld [vmem:[#allocation7 + $0x1040] sm:$0xff] }
 0x2bf   :  { %10471 = vmatpush1.bf16.msra.mxu0 %v16785_v29  ;;  %v4560_v29 = vld [vmem:[#allocation7 + $0xd88] sm:$0xff] }
 0x2c0   :  { %10635 = vmatpush1.bf16.msra.mxu1 %v16787_v30  ;;  %10472 = vmatprep.subr.bf16.mxu0 %v16802_v31  ;;  %v4568_v30 = vld [vmem:[#allocation7 + $0xdc8] sm:$0xff]  ;;  %v16897_v31 = vcombine.low %v4543_v16, %v4551_v27  ;;  %v16994_v16 = vcombine.high %v4639_v9, %v4647_v13 }
 0x2c1   :  { %10636 = vmatprep.subr.bf16.mxu1 %v16804_v32  ;;  %v16899_v32 = vcombine.low %v4544_v17, %v4552_v18  ;;  %v16916_v36 = vcombine.high %v4560_v29, %v4568_v30  ;;  %v4655_v17 = vld [vmem:[#allocation7 + $0x1080] sm:$0xff] }
 0x2c2   :  { %v4663_v18 = vld [vmem:[#allocation7 + $0x10c0] sm:$0xff] }
 0x2c3   :  { %10473 = vmatpush1.bf16.msra.mxu0 %v16801_v37  ;;  %v4576_v37 = vld [vmem:[#allocation7 + $0xe08] sm:$0xff] }
 0x2c4   :  { %10637 = vmatpush1.bf16.msra.mxu1 %v16803_v40  ;;  %10474 = vmatprep.subr.bf16.mxu0 %v16818_v21  ;;  %v4584_v40 = vld [vmem:[#allocation7 + $0xe48] sm:$0xff]  ;;  %v16913_v21 = vcombine.low %v4559_v12, %v4567_v28  ;;  %v17010_v28 = vcombine.high %v4655_v17, %v4663_v18 }
 0x2c5   :  { %10638 = vmatprep.subr.bf16.mxu1 %v16820_v42  ;;  %v16915_v42 = vcombine.low %v4560_v29, %v4568_v30  ;;  %v16932_v39 = vcombine.high %v4576_v37, %v4584_v40  ;;  %v4671_v30 = vld [vmem:[#allocation7 + $0x1100] sm:$0xff] }
 0x2c7   :  { %10475 = vmatpush1.bf16.msra.mxu0 %v16817_v58  ;;  %v4592_v58 = vld [vmem:[#allocation7 + $0xe88] sm:$0xff] }
 0x2c8   :  { %10639 = vmatpush1.bf16.msra.mxu1 %v16819_v47  ;;  %10476 = vmatprep.subr.bf16.mxu0 %v16834_v24  ;;  %v4600_v47 = vld [vmem:[#allocation7 + $0xec8] sm:$0xff]  ;;  %v16929_v24 = vcombine.low %v4575_v25, %v4583_v23 }
 0x2c9   :  { %10640 = vmatprep.subr.bf16.mxu1 %v16836_v49  ;;  %v16931_v49 = vcombine.low %v4576_v37, %v4584_v40  ;;  %v16948_v55 = vcombine.high %v4592_v58, %v4600_v47  ;;  %v4687_v37 = vld [vmem:[#allocation7 + $0x1180] sm:$0xff] }
 0x2ca   :  { %v4695_v40 = vld [vmem:[#allocation7 + $0x11c0] sm:$0xff] }
 0x2cb   :  { %10477 = vmatpush1.bf16.msra.mxu0 %v16833_v59  ;;  %v4608_v59 = vld [vmem:[#allocation7 + $0xf08] sm:$0xff] }
 0x2cc   :  { %10641 = vmatpush1.bf16.msra.mxu1 %v16835_v60  ;;  %10478 = vmatprep.subr.bf16.mxu0 %v16850_v61  ;;  %v4616_v60 = vld [vmem:[#allocation7 + $0xf48] sm:$0xff]  ;;  %v16945_v61 = vcombine.low %v4591_v45, %v4599_v34  ;;  %v17042_v45 = vcombine.high %v4687_v37, %v4695_v40 }
 0x2cd   :  { %10642 = vmatprep.subr.bf16.mxu1 %v16852_v62  ;;  %v16947_v62 = vcombine.low %v4592_v58, %v4600_v47  ;;  %v16964_v0 = vcombine.high %v4608_v59, %v4616_v60  ;;  %v4703_v58 = vld [vmem:[#allocation7 + $0x1200] sm:$0xff] }
 0x2ce   :  { %v4711_v47 = vld [vmem:[#allocation7 + $0x1240] sm:$0xff] }
 0x2cf   :  { %10479 = vmatpush1.bf16.msra.mxu0 %v16849_v3  ;;  %v4624_v3 = vld [vmem:[#allocation7 + $0xf88] sm:$0xff] }
 0x2d0   :  { %10643 = vmatpush1.bf16.msra.mxu1 %v16851_v38  ;;  %10480 = vmatprep.subr.bf16.mxu0 %v16866_v4  ;;  %v4632_v38 = vld [vmem:[#allocation7 + $0xfc8] sm:$0xff]  ;;  %v16961_v4 = vcombine.low %v4607_v54, %v4615_v56  ;;  %v17058_v54 = vcombine.high %v4703_v58, %v4711_v47 }
 0x2d1   :  { %10644 = vmatprep.subr.bf16.mxu1 %v16868_v6  ;;  %v16963_v6 = vcombine.low %v4608_v59, %v4616_v60  ;;  %v16980_v8 = vcombine.high %v4624_v3, %v4632_v38  ;;  %v4719_v59 = vld [vmem:[#allocation7 + $0x1280] sm:$0xff] }
 0x2d2   :  { %v4727_v60 = vld [vmem:[#allocation7 + $0x12c0] sm:$0xff] }
 0x2d3   :  { %10481 = vmatpush1.bf16.msra.mxu0 %v16865_v10  ;;  %v4640_v10 = vld [vmem:[#allocation7 + $0x1008] sm:$0xff] }
 0x2d4   :  { %10645 = vmatpush1.bf16.msra.mxu1 %v16867_v11  ;;  %10482 = vmatprep.subr.bf16.mxu0 %v16882_v14  ;;  %v4648_v11 = vld [vmem:[#allocation7 + $0x1048] sm:$0xff]  ;;  %v16977_v14 = vcombine.low %v4623_v1, %v4631_v43  ;;  %v17074_v1 = vcombine.high %v4719_v59, %v4727_v60 }
 0x2d5   :  { %10646 = vmatprep.subr.bf16.mxu1 %v16884_v52  ;;  %v16979_v52 = vcombine.low %v4624_v3, %v4632_v38  ;;  %v16996_v27 = vcombine.high %v4640_v10, %v4648_v11  ;;  %v16995_v12 = vcombine.low %v4640_v10, %v4648_v11  ;;  %v4735_v3 = vld [vmem:[#allocation7 + $0x1300] sm:$0xff] }
 0x2d6   :  { %v4743_v38 = vld [vmem:[#allocation7 + $0x1340] sm:$0xff] }
 0x2d7   :  { %10483 = vmatpush1.bf16.msra.mxu0 %v16881_v20  ;;  %v4656_v20 = vld [vmem:[#allocation7 + $0x1088] sm:$0xff]  ;;  %v4751_v10 = vld [vmem:[#allocation7 + $0x1380] sm:$0xff] }
 0x2d8   :  { %10647 = vmatpush1.bf16.msra.mxu1 %v16883_v22  ;;  %10484 = vmatprep.subr.bf16.mxu0 %v16898_v53  ;;  %v4664_v22 = vld [vmem:[#allocation7 + $0x10c8] sm:$0xff]  ;;  %v16993_v53 = vcombine.low %v4639_v9, %v4647_v13  ;;  %v17090_v9 = vcombine.high %v4735_v3, %v4743_v38  ;;  %v4759_v11 = vld [vmem:[#allocation7 + $0x13c0] sm:$0xff] }
 0x2d9   :  { %10648 = vmatprep.subr.bf16.mxu1 %v16900_v26  ;;  %v19556_v26 = vpack.c.bf16 %v19513_v19, %v19513_v19  ;;  %v17012_v29 = vcombine.high %v4656_v20, %v4664_v22  ;;  %v17011_v19 = vcombine.low %v4656_v20, %v4664_v22  ;;  %v4767_v20 = vld [vmem:[#allocation7 + $0x1400] sm:$0xff] }
 0x2da   :  { %v4775_v22 = vld [vmem:[#allocation7 + $0x1440] sm:$0xff] }
 0x2db   :  { %10485 = vmatpush1.bf16.msra.mxu0 %v16897_v31  ;;  %v4679_v31 = vld [vmem:[#allocation7 + $0x1140] sm:$0xff] }
 0x2dc   :  { %10649 = vmatpush1.bf16.msra.mxu1 %v16899_v32  ;;  %10486 = vmatprep.subr.bf16.mxu0 %v16914_v35  ;;  %v4672_v32 = vld [vmem:[#allocation7 + $0x1108] sm:$0xff]  ;;  %v17026_v25 = vcombine.high %v4671_v30, %v4679_v31 }
 0x2dd   :  { %10650 = vmatprep.subr.bf16.mxu1 %v16916_v36  ;;  %v4680_v35 = vld [vmem:[#allocation7 + $0x1148] sm:$0xff]  ;;  %v17009_v36 = vcombine.low %v4655_v17, %v4663_v18  ;;  %v17106_v17 = vcombine.high %v4751_v10, %v4759_v11 }
 0x2de   :  { %v17028_v23 = vcombine.high %v4672_v32, %v4680_v35 }
 0x2df   :  { %10487 = vmatpush1.bf16.msra.mxu0 %v16913_v21  ;;  %v4688_v21 = vld [vmem:[#allocation7 + $0x1188] sm:$0xff] }
 0x2e0   :  { %10651 = vmatpush1.bf16.msra.mxu1 %v16915_v42  ;;  %10488 = vmatprep.subr.bf16.mxu0 %v16930_v44  ;;  %v4696_v42 = vld [vmem:[#allocation7 + $0x11c8] sm:$0xff]  ;;  %v17025_v44 = vcombine.low %v4671_v30, %v4679_v31  ;;  %v17122_v30 = vcombine.high %v4767_v20, %v4775_v22 }
 0x2e1   :  { %10652 = vmatprep.subr.bf16.mxu1 %v16932_v39  ;;  %v17027_v39 = vcombine.low %v4672_v32, %v4680_v35  ;;  %v17044_v34 = vcombine.high %v4688_v21, %v4696_v42  ;;  %v4783_v32 = vld [vmem:[#allocation7 + $0x1480] sm:$0xff] }
 0x2e2   :  { %v4791_v35 = vld [vmem:[#allocation7 + $0x14c0] sm:$0xff] }
 0x2e3   :  { %10489 = vmatpush1.bf16.msra.mxu0 %v16929_v24  ;;  %v4704_v24 = vld [vmem:[#allocation7 + $0x1208] sm:$0xff] }
 0x2e4   :  { %10653 = vmatpush1.bf16.msra.mxu1 %v16931_v49  ;;  %10490 = vmatprep.subr.bf16.mxu0 %v16946_v48  ;;  %v4712_v49 = vld [vmem:[#allocation7 + $0x1248] sm:$0xff]  ;;  %v17041_v48 = vcombine.low %v4687_v37, %v4695_v40  ;;  %v17138_v37 = vcombine.high %v4783_v32, %v4791_v35 }
 0x2e5   :  { %10654 = vmatprep.subr.bf16.mxu1 %v16948_v55  ;;  %v17043_v55 = vcombine.low %v4688_v21, %v4696_v42  ;;  %v17060_v56 = vcombine.high %v4704_v24, %v4712_v49  ;;  %v4799_v21 = vld [vmem:[#allocation7 + $0x1500] sm:$0xff] }
 0x2e6   :  { %v4807_v42 = vld [vmem:[#allocation7 + $0x1540] sm:$0xff] }
 0x2e7   :  { %10491 = vmatpush1.bf16.msra.mxu0 %v16945_v61  ;;  %v4720_v61 = vld [vmem:[#allocation7 + $0x1288] sm:$0xff] }
 0x2e8   :  { %10655 = vmatpush1.bf16.msra.mxu1 %v16947_v62  ;;  %10492 = vmatprep.subr.bf16.mxu0 %v16962_v63  ;;  %v4728_v62 = vld [vmem:[#allocation7 + $0x12c8] sm:$0xff]  ;;  %v17057_v63 = vcombine.low %v4703_v58, %v4711_v47  ;;  %v17154_v58 = vcombine.high %v4799_v21, %v4807_v42 }
 0x2e9   :  { %10656 = vmatprep.subr.bf16.mxu1 %v16964_v0  ;;  %v17059_v0 = vcombine.low %v4704_v24, %v4712_v49  ;;  %v17076_v43 = vcombine.high %v4720_v61, %v4728_v62  ;;  %v4815_v24 = vld [vmem:[#allocation7 + $0x1580] sm:$0xff] }
 0x2ea   :  { %v4823_v49 = vld [vmem:[#allocation7 + $0x15c0] sm:$0xff] }
 0x2eb   :  { %10493 = vmatpush1.bf16.msra.mxu0 %v16961_v4  ;;  %v4736_v4 = vld [vmem:[#allocation7 + $0x1308] sm:$0xff] }
 0x2ec   :  { %10657 = vmatpush1.bf16.msra.mxu1 %v16963_v6  ;;  %10494 = vmatprep.subr.bf16.mxu0 %v16978_v7  ;;  %v4744_v6 = vld [vmem:[#allocation7 + $0x1348] sm:$0xff]  ;;  %v17073_v7 = vcombine.low %v4719_v59, %v4727_v60  ;;  %v17170_v59 = vcombine.high %v4815_v24, %v4823_v49 }
 0x2ed   :  { %10658 = vmatprep.subr.bf16.mxu1 %v16980_v8  ;;  %v17075_v8 = vcombine.low %v4720_v61, %v4728_v62  ;;  %v17092_v13 = vcombine.high %v4736_v4, %v4744_v6  ;;  %v4831_v61 = vld [vmem:[#allocation7 + $0x1600] sm:$0xff] }
 0x2ee   :  { %v4839_v62 = vld [vmem:[#allocation7 + $0x1640] sm:$0xff] }
 0x2ef   :  { %10495 = vmatpush1.bf16.msra.mxu0 %v16977_v14  ;;  %v4752_v14 = vld [vmem:[#allocation7 + $0x1388] sm:$0xff] }
 0x2f0   :  { %10659 = vmatpush1.bf16.msra.mxu1 %v16979_v52  ;;  %10505 = vmatprep.subr.bf16.mxu0 %v16994_v16  ;;  %v4760_v52 = vld [vmem:[#allocation7 + $0x13c8] sm:$0xff]  ;;  %v17089_v16 = vcombine.low %v4735_v3, %v4743_v38  ;;  %v17186_v3 = vcombine.high %v4831_v61, %v4839_v62 }
 0x2f1   :  { %10669 = vmatprep.subr.bf16.mxu1 %v16996_v27  ;;  %v17091_v27 = vcombine.low %v4736_v4, %v4744_v6  ;;  %v17108_v18 = vcombine.high %v4752_v14, %v4760_v52  ;;  %v4847_v4 = vld [vmem:[#allocation7 + $0x1680] sm:$0xff] }
 0x2f2   :  { %10497 = vmatmul.mubr.bf16.vlgmr.msra.gmra.mrb[8].mxu0 %v19556_v26  ;;  %v4855_v6 = vld [vmem:[#allocation7 + $0x16c0] sm:$0xff] }
 0x2f3   :  { %10661 = vmatmul.mubr.bf16.vlgmr.msra.gmra.mrb[8].mxu1 %v19556_v26  ;;  %10506 = vmatpush1.bf16.msra.mxu0 %v16993_v53  ;;  %v4768_v53 = vld [vmem:[#allocation7 + $0x1408] sm:$0xff] }
 0x2f4   :  { %10670 = vmatpush1.bf16.msra.mxu1 %v16995_v12  ;;  %10507 = vmatprep.subr.bf16.mxu0 %v17010_v28  ;;  %v4776_v12 = vld [vmem:[#allocation7 + $0x1448] sm:$0xff]  ;;  %v17105_v28 = vcombine.low %v4751_v10, %v4759_v11  ;;  %v17202_v10 = vcombine.high %v4847_v4, %v4855_v6 }
 0x2f5   :  { %10671 = vmatprep.subr.bf16.mxu1 %v17012_v29  ;;  %v17107_v29 = vcombine.low %v4752_v14, %v4760_v52  ;;  %v17124_v31 = vcombine.high %v4768_v53, %v4776_v12  ;;  %v4863_v14 = vld [vmem:[#allocation7 + $0x1700] sm:$0xff] }
 0x2f6   :  { %v4871_v52 = vld [vmem:[#allocation7 + $0x1740] sm:$0xff] }
 0x2f7   :  { %10508 = vmatpush1.bf16.msra.mxu0 %v17009_v36  ;;  %v4784_v36 = vld [vmem:[#allocation7 + $0x1488] sm:$0xff] }
 0x2f8   :  { %10672 = vmatpush1.bf16.msra.mxu1 %v17011_v19  ;;  %10509 = vmatprep.subr.bf16.mxu0 %v17026_v25  ;;  %v4792_v19 = vld [vmem:[#allocation7 + $0x14c8] sm:$0xff]  ;;  %v17121_v25 = vcombine.low %v4767_v20, %v4775_v22  ;;  %v17218_v20 = vcombine.high %v4863_v14, %v4871_v52 }
 0x2f9   :  { %10673 = vmatprep.subr.bf16.mxu1 %v17028_v23  ;;  %v17123_v23 = vcombine.low %v4768_v53, %v4776_v12  ;;  %v17140_v40 = vcombine.high %v4784_v36, %v4792_v19  ;;  %v4879_v53 = vld [vmem:[#allocation7 + $0x1780] sm:$0xff] }
 0x2fa   :  { %v4887_v12 = vld [vmem:[#allocation7 + $0x17c0] sm:$0xff] }
 0x2fb   :  { %10510 = vmatpush1.bf16.msra.mxu0 %v17025_v44  ;;  %v4800_v44 = vld [vmem:[#allocation7 + $0x1508] sm:$0xff] }
 0x2fc   :  { %10674 = vmatpush1.bf16.msra.mxu1 %v17027_v39  ;;  %10511 = vmatprep.subr.bf16.mxu0 %v17042_v45  ;;  %v4808_v39 = vld [vmem:[#allocation7 + $0x1548] sm:$0xff]  ;;  %v17137_v45 = vcombine.low %v4783_v32, %v4791_v35  ;;  %v17234_v32 = vcombine.high %v4879_v53, %v4887_v12 }
 0x2fd   :  { %10675 = vmatprep.subr.bf16.mxu1 %v17044_v34  ;;  %v17139_v34 = vcombine.low %v4784_v36, %v4792_v19  ;;  %v17156_v47 = vcombine.high %v4800_v44, %v4808_v39  ;;  %v19560_v36 = vld [vmem:[#allocation7 + $0x1800] sm:$0xff] }
 0x2fe   :  { %v19562_v19 = vld [vmem:[#allocation7 + $0x1840] sm:$0xff] }
 0x2ff   :  { %10512 = vmatpush1.bf16.msra.mxu0 %v17041_v48  ;;  %v4816_v48 = vld [vmem:[#allocation7 + $0x1588] sm:$0xff] }
 0x300   :  { %10676 = vmatpush1.bf16.msra.mxu1 %v17043_v55  ;;  %10513 = vmatprep.subr.bf16.mxu0 %v17058_v54  ;;  %v4824_v55 = vld [vmem:[#allocation7 + $0x15c8] sm:$0xff]  ;;  %v17153_v54 = vcombine.low %v4799_v21, %v4807_v42  ;;  %v17250_v21 = vcombine.high %v19560_v36, %v19562_v19 }
 0x301   :  { %10677 = vmatprep.subr.bf16.mxu1 %v17060_v56  ;;  %v17155_v56 = vcombine.low %v4800_v44, %v4808_v39  ;;  %v17172_v60 = vcombine.high %v4816_v48, %v4824_v55  ;;  %v109_v44 = vld [vmem:[#allocation5 + $0x10] sm:$0x77]  ;;  %v110_v39 = vld [vmem:[#allocation5 + $0x18] sm:$0x77] }
 0x303   :  { %10514 = vmatpush1.bf16.msra.mxu0 %v17057_v63  ;;  %v4832_v63 = vld [vmem:[#allocation7 + $0x1608] sm:$0xff] }
 0x304   :  { %10678 = vmatpush1.bf16.msra.mxu1 %v17059_v0  ;;  %10515 = vmatprep.subr.bf16.mxu0 %v17074_v1  ;;  %v4840_v0 = vld [vmem:[#allocation7 + $0x1648] sm:$0xff]  ;;  %v17169_v1 = vcombine.low %v4815_v24, %v4823_v49 }
 0x305   :  { %10679 = vmatprep.subr.bf16.mxu1 %v17076_v43  ;;  %v17171_v43 = vcombine.low %v4816_v48, %v4824_v55  ;;  %v17188_v38 = vcombine.high %v4832_v63, %v4840_v0 }
 0x307   :  { %10516 = vmatpush1.bf16.msra.mxu0 %v17073_v7  ;;  %v4848_v7 = vld [vmem:[#allocation7 + $0x1688] sm:$0xff] }
 0x308   :  { %10680 = vmatpush1.bf16.msra.mxu1 %v17075_v8  ;;  %10517 = vmatprep.subr.bf16.mxu0 %v17090_v9  ;;  %v4856_v8 = vld [vmem:[#allocation7 + $0x16c8] sm:$0xff]  ;;  %v17185_v9 = vcombine.low %v4831_v61, %v4839_v62 }
 0x309   :  { %10681 = vmatprep.subr.bf16.mxu1 %v17092_v13  ;;  %v17187_v13 = vcombine.low %v4832_v63, %v4840_v0  ;;  %v17204_v11 = vcombine.high %v4848_v7, %v4856_v8 }
 0x30b   :  { %10518 = vmatpush1.bf16.msra.mxu0 %v17089_v16  ;;  %v4864_v16 = vld [vmem:[#allocation7 + $0x1708] sm:$0xff] }
 0x30c   :  { %10682 = vmatpush1.bf16.msra.mxu1 %v17091_v27  ;;  %10519 = vmatprep.subr.bf16.mxu0 %v17106_v17  ;;  %v4872_v27 = vld [vmem:[#allocation7 + $0x1748] sm:$0xff]  ;;  %v17201_v17 = vcombine.low %v4847_v4, %v4855_v6  ;;  %v3970_v4 = vrot.slane %v109_v44, %v19486_v57  ;;  %v3978_v6 = vrot.slane %v110_v39, %v19486_v57 }
 0x30d   :  { %10683 = vmatprep.subr.bf16.mxu1 %v17108_v18  ;;  %v17203_v18 = vcombine.low %v4848_v7, %v4856_v8  ;;  %v17220_v22 = vcombine.high %v4864_v16, %v4872_v27  ;;  %v3974_v7 = vrot.slane %v109_v44, %v19517_v41  ;;  %v4050_v8 = vrot.slane %v109_v44, %v19491_v33 }
 0x30f   :  { %10520 = vmatpush1.bf16.msra.mxu0 %v17105_v28  ;;  %v4880_v28 = vld [vmem:[#allocation7 + $0x1788] sm:$0xff] }
 0x310   :  { %10684 = vmatpush1.bf16.msra.mxu1 %v17107_v29  ;;  %10521 = vmatprep.subr.bf16.mxu0 %v17122_v30  ;;  %v4888_v29 = vld [vmem:[#allocation7 + $0x17c8] sm:$0xff]  ;;  %v17217_v30 = vcombine.low %v4863_v14, %v4871_v52  ;;  %v4018_v14 = vrot.slane %v3978_v6, %v19486_v57  ;;  %v4062_v52 = vrot.slane %v110_v39, %v19522_v51  ;;  %v4959_v6 = vld [vmem:[#allocation7 + $0x1a00] sm:$0xff] }
 0x311   :  { %10685 = vmatprep.subr.bf16.mxu1 %v17124_v31  ;;  %v17219_v31 = vcombine.low %v4864_v16, %v4872_v27  ;;  %v17236_v35 = vcombine.high %v4880_v28, %v4888_v29  ;;  %v4014_v16 = vrot.slane %v3974_v7, %v19486_v57  ;;  %v4967_v7 = vld [vmem:[#allocation7 + $0x1a40] sm:$0xff] }
 0x313   :  { %10522 = vmatpush1.bf16.msra.mxu0 %v17121_v25  ;;  %v19564_v25 = vld [vmem:[#allocation7 + $0x1808] sm:$0xff] }
 0x314   :  { %10686 = vmatpush1.bf16.msra.mxu1 %v17123_v23  ;;  %10523 = vmatprep.subr.bf16.mxu0 %v17138_v37  ;;  %v19566_v23 = vld [vmem:[#allocation7 + $0x1848] sm:$0xff]  ;;  %v17233_v37 = vcombine.low %v4879_v53, %v4887_v12 }
 0x315   :  { %10687 = vmatprep.subr.bf16.mxu1 %v17140_v40  ;;  %v17235_v40 = vcombine.low %v4880_v28, %v4888_v29  ;;  %v17252_v42 = vcombine.high %v19564_v25, %v19566_v23 }
 0x317   :  { %10524 = vmatpush1.bf16.msra.mxu0 %v17137_v45  ;;  %v646_v45 = vrot.slane %v109_v44, %v19471_v50 }
 0x318   :  { %10688 = vmatpush1.bf16.msra.mxu1 %v17139_v34  ;;  %10525 = vmatprep.subr.bf16.mxu0 %v17154_v58  ;;  %v654_v34 = vrot.slane %v110_v39, %v19471_v50  ;;  %v650_v58 = vrot.slane %v109_v44, %v19500_v46 }
 0x319   :  { %10689 = vmatprep.subr.bf16.mxu1 %v17156_v47  ;;  %v658_v47 = vrot.slane %v110_v39, %v19500_v46  ;;  %v686_v24 = vrot.slane %v646_v45, %v19471_v50  ;;  %v4912_v45 = vld [vmem:[#allocation7 + $0x1888] sm:$0xff] }
 0x31a   :  { %v694_v49 = vrot.slane %v654_v34, %v19471_v50  ;;  %v690_v48 = vrot.slane %v650_v58, %v19471_v50  ;;  %v4920_v34 = vld [vmem:[#allocation7 + $0x18c8] sm:$0xff] }
 0x31b   :  { %10526 = vmatpush1.bf16.msra.mxu0 %v17153_v54  ;;  %v698_v55 = vrot.slane %v658_v47, %v19471_v50  ;;  %v17249_v47 = vcombine.low %v19560_v36, %v19562_v19  ;;  %v17267_v19 = vcombine.low %v4912_v45, %v4920_v34 }
 0x31c   :  { %10690 = vmatpush1.bf16.msra.mxu1 %v17155_v56  ;;  %10527 = vmatprep.subr.bf16.mxu0 %v17170_v59 }
 0x31d   :  { %10691 = vmatprep.subr.bf16.mxu1 %v17172_v60 }
 0x31f   :  { %10528 = vmatpush1.bf16.msra.mxu0 %v17169_v1 }
 0x320   :  { %10692 = vmatpush1.bf16.msra.mxu1 %v17171_v43  ;;  %10529 = vmatprep.subr.bf16.mxu0 %v17186_v3 }
 0x321   :  { %10693 = vmatprep.subr.bf16.mxu1 %v17188_v38 }
 0x323   :  { %10530 = vmatpush1.bf16.msra.mxu0 %v17185_v9  ;;  %v4058_v9 = vrot.slane %v110_v39, %v19491_v33 }
 0x324   :  { %10694 = vmatpush1.bf16.msra.mxu1 %v17187_v13  ;;  %10531 = vmatprep.subr.bf16.mxu0 %v17202_v10  ;;  %v3982_v13 = vrot.slane %v110_v39, %v19517_v41  ;;  %v4010_v10 = vrot.slane %v3970_v4, %v19486_v57  ;;  %v4919_v39 = vld [vmem:[#allocation7 + $0x18c0] sm:$0xff] }
 0x325   :  { %10695 = vmatprep.subr.bf16.mxu1 %v17204_v11  ;;  %v4054_v11 = vrot.slane %v109_v44, %v19522_v51 }
 0x327   :  { %10532 = vmatpush1.bf16.msra.mxu0 %v17201_v17  ;;  %v4090_v17 = vrot.slane %v4050_v8, %v19491_v33  ;;  %v4094_v12 = vrot.slane %v4054_v11, %v19491_v33  ;;  %v4960_v8 = vld [vmem:[#allocation7 + $0x1a08] sm:$0xff]  ;;  %v17314_v11 = vcombine.high %v4959_v6, %v4967_v7 }
 0x328   :  { %10696 = vmatpush1.bf16.msra.mxu1 %v17203_v18  ;;  %10533 = vmatprep.subr.bf16.mxu0 %v17218_v20  ;;  %v4098_v18 = vrot.slane %v4058_v9, %v19491_v33  ;;  %v4022_v20 = vrot.slane %v3982_v13, %v19486_v57  ;;  %v4968_v9 = vld [vmem:[#allocation7 + $0x1a48] sm:$0xff] }
 0x329   :  { %10697 = vmatprep.subr.bf16.mxu1 %v17220_v22 }
 0x32b   :  { %10534 = vmatpush1.bf16.msra.mxu0 %v17217_v30  ;;  %v4102_v30 = vrot.slane %v4062_v52, %v19491_v33  ;;  %v4975_v52 = vld [vmem:[#allocation7 + $0x1a80] sm:$0xff] }
 0x32c   :  { %10698 = vmatpush1.bf16.msra.mxu1 %v17219_v31  ;;  %10535 = vmatprep.subr.bf16.mxu0 %v17234_v32 }
 0x32d   :  { %10699 = vmatprep.subr.bf16.mxu1 %v17236_v35 }
 0x32f   :  { %10536 = vmatpush1.bf16.msra.mxu0 %v17233_v37 }
 0x330   :  { %10700 = vmatpush1.bf16.msra.mxu1 %v17235_v40  ;;  %10546 = vmatprep.subr.bf16.mxu0 %v17250_v21 }
 0x331   :  { %10710 = vmatprep.subr.bf16.mxu1 %v17252_v42  ;;  %v4911_v42 = vld [vmem:[#allocation7 + $0x1880] sm:$0xff] }
 0x332   :  { %v17265_v36 = vcombine.low %v4911_v42, %v4919_v39 }
 0x345   :  { %v3772_v54 = vpop.f32.mrb[4].mxu0  ;;  %v3936_v59 = vpop.f32.mrb[4].mxu1 }
 0x346   :  { %v18021_v56 = vadd.f32 %v3772_v54, %v686_v24  ;;  %v3774_v60 = vpop.f32.mrb[5].mxu0  ;;  %v18023_v61 = vadd.f32 %v3936_v59, %v694_v49  ;;  %v3938_v63 = vpop.f32.mrb[5].mxu1  ;;  %v17251_v24 = vcombine.low %v19564_v25, %v19566_v23  ;;  %v17268_v54 = vcombine.high %v4912_v45, %v4920_v34  ;;  %v4928_v59 = vld [vmem:[#allocation7 + $0x1908] sm:$0xff] }
 0x347   :  { %v18022_v62 = vadd.f32 %v3774_v60, %v690_v48  ;;  %v3776_v0 = vpop.f32.mrb[6].mxu0  ;;  %v18024_v1 = vadd.f32 %v3938_v63, %v698_v55  ;;  %v3940_v43 = vpop.f32.mrb[6].mxu1  ;;  %v4927_v48 = vld [vmem:[#allocation7 + $0x1900] sm:$0xff]  ;;  %v17266_v55 = vcombine.high %v4911_v42, %v4919_v39  ;;  %v4936_v60 = vld [vmem:[#allocation7 + $0x1948] sm:$0xff] }
 0x348   :  { %19042 = vtanh.f32 %v18021_v56  ;;  %v3777_v3 = vpop.f32.mrb[7].mxu0  ;;  %v3941_v38 = vpop.f32.mrb[7].mxu1  ;;  %v4935_v56 = vld [vmem:[#allocation7 + $0x1940] sm:$0xff]  ;;  %v17284_v23 = vcombine.high %v4928_v59, %v4936_v60  ;;  %v4944_v0 = vld [vmem:[#allocation7 + $0x1988] sm:$0xff] }
 0x349   :  { %19044 = vtanh.f32 %v18023_v61  ;;  %v17282_v25 = vcombine.high %v4927_v48, %v4935_v56  ;;  %v4951_v63 = vld [vmem:[#allocation7 + $0x19c0] sm:$0xff]  ;;  %v17281_v43 = vcombine.low %v4927_v48, %v4935_v56  ;;  %v17283_v3 = vcombine.low %v4928_v59, %v4936_v60  ;;  %v5016_v39 = vld [vmem:[#allocation7 + $0x1bc8] sm:$0xff] }
 0x34a   :  { %19046 = vtanh.f32 %v18022_v62  ;;  %v4943_v62 = vld [vmem:[#allocation7 + $0x1980] sm:$0xff]  ;;  %v5032_v56 = vld [vmem:[#allocation7 + $0x1c48] sm:$0xff] }
 0x34b   :  { %19048 = vtanh.f32 %v18024_v1  ;;  %v4952_v1 = vld [vmem:[#allocation7 + $0x19c8] sm:$0xff]  ;;  %v17298_v38 = vcombine.high %v4943_v62, %v4951_v63  ;;  %v17297_v13 = vcombine.low %v4943_v62, %v4951_v63  ;;  %v5015_v42 = vld [vmem:[#allocation7 + $0x1bc0] sm:$0xff] }
 0x34c   :  { %v17300_v4 = vcombine.high %v4944_v0, %v4952_v1  ;;  %v5023_v48 = vld [vmem:[#allocation7 + $0x1c00] sm:$0xff]  ;;  %v5040_v62 = vld [vmem:[#allocation7 + $0x1c88] sm:$0xff] }
 0x34d   :  { %v5048_v63 = vld [vmem:[#allocation7 + $0x1cc8] sm:$0xff] }
 0x352   :  { %v19043_v27 = vpop.eup %19042 }
 0x353   :  { %v19045_v22 = vpop.eup %19044  ;;  %v4027_v53 = vmul.f32 %v19043_v27, %v4010_v10  ;;  %v17299_v10 = vcombine.low %v4944_v0, %v4952_v1  ;;  %v4976_v27 = vld [vmem:[#allocation7 + $0x1a88] sm:$0xff] }
 0x354   :  { %v19047_v28 = vpop.eup %19046  ;;  %v4029_v29 = vmul.f32 %v19045_v22, %v4018_v14  ;;  %v17316_v14 = vcombine.high %v4960_v8, %v4968_v9 }
 0x355   :  { %v19049_v31 = vpop.eup %19048  ;;  %v4028_v32 = vmul.f32 %v19047_v28, %v4014_v16  ;;  %v4107_v35 = vadd.f32 %v4090_v17, %v4027_v53  ;;  %v4983_v16 = vld [vmem:[#allocation7 + $0x1ac0] sm:$0xff]  ;;  %v4984_v17 = vld [vmem:[#allocation7 + $0x1ac8] sm:$0xff] }
 0x356   :  { %v19596_v37 = vadd.f32 %v4098_v18, %v4029_v29  ;;  %v4030_v40 = vmul.f32 %v19049_v31, %v4022_v20  ;;  %v17313_v18 = vcombine.low %v4959_v6, %v4967_v7  ;;  %v17315_v20 = vcombine.low %v4960_v8, %v4968_v9  ;;  %v4999_v28 = vld [vmem:[#allocation7 + $0x1b40] sm:$0xff]  ;;  %v4992_v29 = vld [vmem:[#allocation7 + $0x1b08] sm:$0xff] }
 0x357   :  { %v4108_v21 = vadd.f32 %v4094_v12, %v4028_v32  ;;  %v19604_v49 = vpack.c.bf16 %v4107_v35, %v4107_v35  ;;  %v17330_v22 = vcombine.high %v4975_v52, %v4983_v16  ;;  %v17332_v53 = vcombine.high %v4976_v27, %v4984_v17  ;;  %v4991_v12 = vld [vmem:[#allocation7 + $0x1b00] sm:$0xff]  ;;  %v5056_v6 = vld [vmem:[#allocation7 + $0x1d08] sm:$0xff] }
 0x358   :  { %v4110_v44 = vadd.f32 %v4102_v30, %v4030_v40  ;;  %v5000_v30 = vld [vmem:[#allocation7 + $0x1b48] sm:$0xff]  ;;  %v17329_v31 = vcombine.low %v4975_v52, %v4983_v16  ;;  %v17331_v32 = vcombine.low %v4976_v27, %v4984_v17  ;;  %v17346_v35 = vcombine.high %v4991_v12, %v4999_v28 }
 0x359   :  { %v19598_v58 = vpack.c.bf16 %v4108_v21, %v4108_v21  ;;  %v17348_v40 = vcombine.high %v4992_v29, %v5000_v30  ;;  %v5007_v21 = vld [vmem:[#allocation7 + $0x1b80] sm:$0xff]  ;;  %v17345_v45 = vcombine.low %v4991_v12, %v4999_v28  ;;  %v17347_v34 = vcombine.low %v4992_v29, %v5000_v30  ;;  %v5064_v7 = vld [vmem:[#allocation7 + $0x1d48] sm:$0xff] }
 0x35a   :  { %v19608_v61 = vpack.c.bf16 %v4110_v44, %v4110_v44  ;;  %v5008_v44 = vld [vmem:[#allocation7 + $0x1b88] sm:$0xff]  ;;  %v17361_v59 = vcombine.low %v5007_v21, %v5015_v42  ;;  %v17395_v9 = vcombine.low %v5040_v62, %v5048_v63  ;;  %v17411_v17 = vcombine.low %v5056_v6, %v5064_v7 }
 0x35b   :  { %10537 = vmatprep.mubr.bf16.mxu0 %v19598_v58  ;;  %10701 = vmatprep.mubr.bf16.mxu1 %v19598_v58  ;;  %v17363_v60 = vcombine.low %v5008_v44, %v5016_v39  ;;  %v5072_v52 = vld [vmem:[#allocation7 + $0x1d88] sm:$0xff] }
 0x35c   :  { %10538 = vmatmul.mubr.bf16.vlgmr.msra.gmra.mrb[8].mxu0 %v19604_v49  ;;  %10702 = vmatmul.mubr.bf16.vlgmr.msra.gmra.mrb[8].mxu1 %v19604_v49  ;;  %v5080_v16 = vld [vmem:[#allocation7 + $0x1dc8] sm:$0xff] }
 0x35d   :  { %10547 = vmatpush1.bf16.msra.mxu0 %v17249_v47  ;;  %10711 = vmatpush1.bf16.msra.mxu1 %v17251_v24  ;;  %v17362_v47 = vcombine.high %v5007_v21, %v5015_v42  ;;  %v17364_v24 = vcombine.high %v5008_v44, %v5016_v39  ;;  %v5088_v12 = vld [vmem:[#allocation7 + $0x1e08] sm:$0xff]  ;;  %v17427_v30 = vcombine.low %v5072_v52, %v5080_v16 }
 0x35e   :  { %10578 = vmatprep.mubr.bf16.mxu0 %v19608_v61  ;;  %10742 = vmatprep.mubr.bf16.mxu1 %v19608_v61  ;;  %v5096_v28 = vld [vmem:[#allocation7 + $0x1e48] sm:$0xff] }
 0x35f   :  { %10548 = vmatprep.subr.bf16.mxu0 %v17266_v55  ;;  %10712 = vmatprep.subr.bf16.mxu1 %v17268_v54  ;;  %v5031_v55 = vld [vmem:[#allocation7 + $0x1c40] sm:$0xff]  ;;  %v5024_v54 = vld [vmem:[#allocation7 + $0x1c08] sm:$0xff]  ;;  %v17443_v39 = vcombine.low %v5088_v12, %v5096_v28 }
 0x360   :  { %v17377_v0 = vcombine.low %v5023_v48, %v5031_v55  ;;  %v17379_v1 = vcombine.low %v5024_v54, %v5032_v56  ;;  %v5104_v21 = vld [vmem:[#allocation7 + $0x1e88] sm:$0xff] }
 0x361   :  { %10549 = vmatpush1.bf16.msra.mxu0 %v17265_v36  ;;  %10713 = vmatpush1.bf16.msra.mxu1 %v17267_v19  ;;  %v17378_v36 = vcombine.high %v5023_v48, %v5031_v55  ;;  %v17380_v19 = vcombine.high %v5024_v54, %v5032_v56  ;;  %v5112_v42 = vld [vmem:[#allocation7 + $0x1ec8] sm:$0xff] }
 0x362   :  { %10550 = vmatprep.subr.bf16.mxu0 %v17282_v25  ;;  %10714 = vmatprep.subr.bf16.mxu1 %v17284_v23  ;;  %v5039_v25 = vld [vmem:[#allocation7 + $0x1c80] sm:$0xff]  ;;  %v5120_v48 = vld [vmem:[#allocation7 + $0x1f08] sm:$0xff]  ;;  %v17459_v56 = vcombine.low %v5104_v21, %v5112_v42 }
 0x363   :  { %v5047_v23 = vld [vmem:[#allocation7 + $0x1cc0] sm:$0xff]  ;;  %v5128_v55 = vld [vmem:[#allocation7 + $0x1f48] sm:$0xff] }
 0x364   :  { %v17393_v8 = vcombine.low %v5039_v25, %v5047_v23 }
 0x365   :  { %10551 = vmatpush1.bf16.msra.mxu0 %v17281_v43  ;;  %10715 = vmatpush1.bf16.msra.mxu1 %v17283_v3  ;;  %v17394_v43 = vcombine.high %v5039_v25, %v5047_v23  ;;  %v17396_v3 = vcombine.high %v5040_v62, %v5048_v63  ;;  %v5136_v25 = vld [vmem:[#allocation7 + $0x1f88] sm:$0xff]  ;;  %v17475_v63 = vcombine.low %v5120_v48, %v5128_v55 }
 0x366   :  { %10552 = vmatprep.subr.bf16.mxu0 %v17298_v38  ;;  %10716 = vmatprep.subr.bf16.mxu1 %v17300_v4  ;;  %v5055_v38 = vld [vmem:[#allocation7 + $0x1d00] sm:$0xff]  ;;  %v5144_v23 = vld [vmem:[#allocation7 + $0x1fc8] sm:$0xff] }
 0x367   :  { %v5063_v4 = vld [vmem:[#allocation7 + $0x1d40] sm:$0xff] }
 0x368   :  { %v17409_v27 = vcombine.low %v5055_v38, %v5063_v4 }
 0x369   :  { %10553 = vmatpush1.bf16.msra.mxu0 %v17297_v13  ;;  %10717 = vmatpush1.bf16.msra.mxu1 %v17299_v10  ;;  %v17410_v13 = vcombine.high %v5055_v38, %v5063_v4  ;;  %v17412_v10 = vcombine.high %v5056_v6, %v5064_v7  ;;  %v4130_v38 = vld [vmem:[#allocation7 + $0x18] sm:$0xff]  ;;  %v17491_v7 = vcombine.low %v5136_v25, %v5144_v23 }
 0x36a   :  { %10554 = vmatprep.subr.bf16.mxu0 %v17314_v11  ;;  %10718 = vmatprep.subr.bf16.mxu1 %v17316_v14  ;;  %v5071_v11 = vld [vmem:[#allocation7 + $0x1d80] sm:$0xff]  ;;  %v4138_v4 = vld [vmem:[#allocation7 + $0x58] sm:$0xff] }
 0x36b   :  { %v5079_v14 = vld [vmem:[#allocation7 + $0x1dc0] sm:$0xff] }
 0x36c   :  { %v17425_v29 = vcombine.low %v5071_v11, %v5079_v14 }
 0x36d   :  { %10555 = vmatpush1.bf16.msra.mxu0 %v17313_v18  ;;  %10719 = vmatpush1.bf16.msra.mxu1 %v17315_v20  ;;  %v17426_v18 = vcombine.high %v5071_v11, %v5079_v14  ;;  %v17428_v20 = vcombine.high %v5072_v52, %v5080_v16  ;;  %v4146_v11 = vld [vmem:[#allocation7 + $0x98] sm:$0xff]  ;;  %v19616_v16 = vpack.c.bf16 %v19596_v37, %v19596_v37 }
 0x36e   :  { %10556 = vmatprep.subr.bf16.mxu0 %v17330_v22  ;;  %10720 = vmatprep.subr.bf16.mxu1 %v17332_v53  ;;  %v5087_v22 = vld [vmem:[#allocation7 + $0x1e00] sm:$0xff]  ;;  %v4154_v14 = vld [vmem:[#allocation7 + $0xd8] sm:$0xff] }
 0x36f   :  { %v5095_v53 = vld [vmem:[#allocation7 + $0x1e40] sm:$0xff]  ;;  %v16503_v37 = vcombine.low %v4146_v11, %v4154_v14 }
 0x370   :  { %v17441_v44 = vcombine.low %v5087_v22, %v5095_v53 }
 0x371   :  { %10557 = vmatpush1.bf16.msra.mxu0 %v17329_v31  ;;  %10721 = vmatpush1.bf16.msra.mxu1 %v17331_v32  ;;  %v17442_v31 = vcombine.high %v5087_v22, %v5095_v53  ;;  %v17444_v32 = vcombine.high %v5088_v12, %v5096_v28  ;;  %v4169_v22 = vld [vmem:[#allocation7 + $0x150] sm:$0xff]  ;;  %v4162_v53 = vld [vmem:[#allocation7 + $0x118] sm:$0xff] }
 0x372   :  { %10558 = vmatprep.subr.bf16.mxu0 %v17346_v35  ;;  %10722 = vmatprep.subr.bf16.mxu1 %v17348_v40  ;;  %v5103_v35 = vld [vmem:[#allocation7 + $0x1e80] sm:$0xff]  ;;  %v4170_v12 = vld [vmem:[#allocation7 + $0x158] sm:$0xff] }
 0x373   :  { %v5111_v40 = vld [vmem:[#allocation7 + $0x1ec0] sm:$0xff] }
 0x374   :  { %v17457_v54 = vcombine.low %v5103_v35, %v5111_v40 }
 0x375   :  { %10559 = vmatpush1.bf16.msra.mxu0 %v17345_v45  ;;  %10723 = vmatpush1.bf16.msra.mxu1 %v17347_v34  ;;  %v17458_v45 = vcombine.high %v5103_v35, %v5111_v40  ;;  %v17460_v34 = vcombine.high %v5104_v21, %v5112_v42  ;;  %v4178_v35 = vld [vmem:[#allocation7 + $0x198] sm:$0xff]  ;;  %v16519_v42 = vcombine.low %v4162_v53, %v4170_v12 }
 0x376   :  { %10560 = vmatprep.subr.bf16.mxu0 %v17362_v47  ;;  %10724 = vmatprep.subr.bf16.mxu1 %v17364_v24  ;;  %v5119_v47 = vld [vmem:[#allocation7 + $0x1f00] sm:$0xff]  ;;  %v4186_v40 = vld [vmem:[#allocation7 + $0x1d8] sm:$0xff] }
 0x377   :  { %v5127_v24 = vld [vmem:[#allocation7 + $0x1f40] sm:$0xff] }
 0x378   :  { %v17473_v62 = vcombine.low %v5119_v47, %v5127_v24 }
 0x379   :  { %10561 = vmatpush1.bf16.msra.mxu0 %v17361_v59  ;;  %10725 = vmatpush1.bf16.msra.mxu1 %v17363_v60  ;;  %v17474_v59 = vcombine.high %v5119_v47, %v5127_v24  ;;  %v17476_v60 = vcombine.high %v5120_v48, %v5128_v55  ;;  %v4194_v47 = vld [vmem:[#allocation7 + $0x218] sm:$0xff]  ;;  %v16535_v55 = vcombine.low %v4178_v35, %v4186_v40 }
 0x37a   :  { %10562 = vmatprep.subr.bf16.mxu0 %v17378_v36  ;;  %10726 = vmatprep.subr.bf16.mxu1 %v17380_v19  ;;  %v5135_v36 = vld [vmem:[#allocation7 + $0x1f80] sm:$0xff]  ;;  %v4202_v24 = vld [vmem:[#allocation7 + $0x258] sm:$0xff] }
 0x37b   :  { %v5143_v19 = vld [vmem:[#allocation7 + $0x1fc0] sm:$0xff] }
 0x37c   :  { %v17489_v6 = vcombine.low %v5135_v36, %v5143_v19 }
 0x37d   :  { %10563 = vmatpush1.bf16.msra.mxu0 %v17377_v0  ;;  %10727 = vmatpush1.bf16.msra.mxu1 %v17379_v1  ;;  %v17490_v0 = vcombine.high %v5135_v36, %v5143_v19  ;;  %v17492_v1 = vcombine.high %v5136_v25, %v5144_v23  ;;  %v4210_v36 = vld [vmem:[#allocation7 + $0x298] sm:$0xff]  ;;  %v16551_v23 = vcombine.low %v4194_v47, %v4202_v24 }
 0x37e   :  { %10564 = vmatprep.subr.bf16.mxu0 %v17394_v43  ;;  %10728 = vmatprep.subr.bf16.mxu1 %v17396_v3  ;;  %v4129_v43 = vld [vmem:[#allocation7 + $0x10] sm:$0xff]  ;;  %v4218_v19 = vld [vmem:[#allocation7 + $0x2d8] sm:$0xff] }
 0x37f   :  { %v4137_v3 = vld [vmem:[#allocation7 + $0x50] sm:$0xff] }
 0x380   :  { %v16485_v52 = vcombine.low %v4129_v43, %v4137_v3 }
 0x381   :  { %10565 = vmatpush1.bf16.msra.mxu0 %v17393_v8  ;;  %10729 = vmatpush1.bf16.msra.mxu1 %v17395_v9  ;;  %v16486_v8 = vcombine.high %v4129_v43, %v4137_v3  ;;  %v16488_v9 = vcombine.high %v4130_v38, %v4138_v4  ;;  %v4226_v43 = vld [vmem:[#allocation7 + $0x318] sm:$0xff] }
 0x382   :  { %10566 = vmatprep.subr.bf16.mxu0 %v17410_v13  ;;  %10730 = vmatprep.subr.bf16.mxu1 %v17412_v10  ;;  %v4145_v13 = vld [vmem:[#allocation7 + $0x90] sm:$0xff]  ;;  %v4234_v3 = vld [vmem:[#allocation7 + $0x358] sm:$0xff] }
 0x383   :  { %v4153_v10 = vld [vmem:[#allocation7 + $0xd0] sm:$0xff] }
 0x384   :  { %v16501_v28 = vcombine.low %v4145_v13, %v4153_v10 }
 0x385   :  { %10567 = vmatpush1.bf16.msra.mxu0 %v17409_v27  ;;  %10731 = vmatpush1.bf16.msra.mxu1 %v17411_v17  ;;  %v16487_v27 = vcombine.low %v4130_v38, %v4138_v4  ;;  %v16502_v17 = vcombine.high %v4145_v13, %v4153_v10  ;;  %v16567_v4 = vcombine.low %v4210_v36, %v4218_v19  ;;  %v4242_v13 = vld [vmem:[#allocation7 + $0x398] sm:$0xff] }
 0x386   :  { %10568 = vmatprep.subr.bf16.mxu0 %v17426_v18  ;;  %10732 = vmatprep.subr.bf16.mxu1 %v17428_v20  ;;  %v16504_v18 = vcombine.high %v4146_v11, %v4154_v14  ;;  %v4161_v20 = vld [vmem:[#allocation7 + $0x110] sm:$0xff]  ;;  %v4250_v10 = vld [vmem:[#allocation7 + $0x3d8] sm:$0xff]  ;;  %v16583_v14 = vcombine.low %v4226_v43, %v4234_v3 }
 0x387   :  { %v16517_v21 = vcombine.low %v4161_v20, %v4169_v22 }
 0x389   :  { %10569 = vmatpush1.bf16.msra.mxu0 %v17425_v29  ;;  %10733 = vmatpush1.bf16.msra.mxu1 %v17427_v30  ;;  %v16518_v29 = vcombine.high %v4161_v20, %v4169_v22  ;;  %v16520_v30 = vcombine.high %v4162_v53, %v4170_v12  ;;  %v4258_v20 = vld [vmem:[#allocation7 + $0x418] sm:$0xff]  ;;  %v16599_v12 = vcombine.low %v4242_v13, %v4250_v10 }
 0x38a   :  { %10570 = vmatprep.subr.bf16.mxu0 %v17442_v31  ;;  %10734 = vmatprep.subr.bf16.mxu1 %v17444_v32  ;;  %v4177_v31 = vld [vmem:[#allocation7 + $0x190] sm:$0xff]  ;;  %v4266_v22 = vld [vmem:[#allocation7 + $0x458] sm:$0xff] }
 0x38b   :  { %v4185_v32 = vld [vmem:[#allocation7 + $0x1d0] sm:$0xff] }
 0x38c   :  { %v16533_v48 = vcombine.low %v4177_v31, %v4185_v32 }
 0x38d   :  { %10571 = vmatpush1.bf16.msra.mxu0 %v17441_v44  ;;  %10735 = vmatpush1.bf16.msra.mxu1 %v17443_v39  ;;  %v16534_v44 = vcombine.high %v4177_v31, %v4185_v32  ;;  %v16536_v39 = vcombine.high %v4178_v35, %v4186_v40  ;;  %v4274_v31 = vld [vmem:[#allocation7 + $0x498] sm:$0xff]  ;;  %v16615_v40 = vcombine.low %v4258_v20, %v4266_v22 }
 0x38e   :  { %10572 = vmatprep.subr.bf16.mxu0 %v17458_v45  ;;  %10736 = vmatprep.subr.bf16.mxu1 %v17460_v34  ;;  %v4193_v45 = vld [vmem:[#allocation7 + $0x210] sm:$0xff]  ;;  %v4282_v32 = vld [vmem:[#allocation7 + $0x4d8] sm:$0xff] }
 0x38f   :  { %v4201_v34 = vld [vmem:[#allocation7 + $0x250] sm:$0xff] }
 0x390   :  { %v16549_v25 = vcombine.low %v4193_v45, %v4201_v34 }
 0x391   :  { %10573 = vmatpush1.bf16.msra.mxu0 %v17457_v54  ;;  %10737 = vmatpush1.bf16.msra.mxu1 %v17459_v56  ;;  %v16550_v54 = vcombine.high %v4193_v45, %v4201_v34  ;;  %v16552_v56 = vcombine.high %v4194_v47, %v4202_v24  ;;  %v4290_v45 = vld [vmem:[#allocation7 + $0x518] sm:$0xff]  ;;  %v16631_v24 = vcombine.low %v4274_v31, %v4282_v32 }
 0x392   :  { %10574 = vmatprep.subr.bf16.mxu0 %v17474_v59  ;;  %10738 = vmatprep.subr.bf16.mxu1 %v17476_v60  ;;  %v4209_v59 = vld [vmem:[#allocation7 + $0x290] sm:$0xff]  ;;  %v4298_v34 = vld [vmem:[#allocation7 + $0x558] sm:$0xff] }
 0x393   :  { %v4217_v60 = vld [vmem:[#allocation7 + $0x2d0] sm:$0xff] }
 0x394   :  { %v16565_v38 = vcombine.low %v4209_v59, %v4217_v60 }
 0x395   :  { %10575 = vmatpush1.bf16.msra.mxu0 %v17473_v62  ;;  %10739 = vmatpush1.bf16.msra.mxu1 %v17475_v63  ;;  %v16566_v62 = vcombine.high %v4209_v59, %v4217_v60  ;;  %v16568_v63 = vcombine.high %v4210_v36, %v4218_v19  ;;  %v4306_v59 = vld [vmem:[#allocation7 + $0x598] sm:$0xff]  ;;  %v16647_v19 = vcombine.low %v4290_v45, %v4298_v34 }
 0x396   :  { %10576 = vmatprep.subr.bf16.mxu0 %v17490_v0  ;;  %10740 = vmatprep.subr.bf16.mxu1 %v17492_v1  ;;  %v4225_v0 = vld [vmem:[#allocation7 + $0x310] sm:$0xff]  ;;  %v4314_v60 = vld [vmem:[#allocation7 + $0x5d8] sm:$0xff] }
 0x397   :  { %v4233_v1 = vld [vmem:[#allocation7 + $0x350] sm:$0xff] }
 0x398   :  { %v16581_v11 = vcombine.low %v4225_v0, %v4233_v1 }
 0x399   :  { %10577 = vmatpush1.bf16.msra.mxu0 %v17489_v6  ;;  %10741 = vmatpush1.bf16.msra.mxu1 %v17491_v7  ;;  %v16582_v6 = vcombine.high %v4225_v0, %v4233_v1  ;;  %v16584_v7 = vcombine.high %v4226_v43, %v4234_v3  ;;  %v4322_v0 = vld [vmem:[#allocation7 + $0x618] sm:$0xff]  ;;  %v16663_v3 = vcombine.low %v4306_v59, %v4314_v60 }
 0x39a   :  { %10751 = vmatprep.subr.bf16.mxu0 %v16486_v8  ;;  %10915 = vmatprep.subr.bf16.mxu1 %v16488_v9  ;;  %v4241_v8 = vld [vmem:[#allocation7 + $0x390] sm:$0xff]  ;;  %v4330_v1 = vld [vmem:[#allocation7 + $0x658] sm:$0xff] }
 0x39b   :  { %v4249_v9 = vld [vmem:[#allocation7 + $0x3d0] sm:$0xff] }
 0x39c   :  { %10579 = vmatmul.mubr.bf16.vlgmr.msra.gmra.mrb[8].mxu0 %v19616_v16  ;;  %10743 = vmatmul.mubr.bf16.vlgmr.msra.gmra.mrb[8].mxu1 %v19616_v16  ;;  %v16597_v53 = vcombine.low %v4241_v8, %v4249_v9 }
 0x39d   :  { %10752 = vmatpush1.bf16.msra.mxu0 %v16485_v52  ;;  %10783 = vmatprep.mubr.bf16.mxu0 %v19528_v15  ;;  %v16598_v52 = vcombine.high %v4241_v8, %v4249_v9  ;;  %v4338_v8 = vld [vmem:[#allocation7 + $0x698] sm:$0xff] }
 0x39e   :  { %10916 = vmatpush1.bf16.msra.mxu1 %v16487_v27  ;;  %10947 = vmatprep.mubr.bf16.mxu1 %v19528_v15  ;;  %v16600_v27 = vcombine.high %v4242_v13, %v4250_v10  ;;  %v4346_v9 = vld [vmem:[#allocation7 + $0x6d8] sm:$0xff]  ;;  %v16679_v10 = vcombine.low %v4322_v0, %v4330_v1 }
 0x39f   :  { %10753 = vmatprep.subr.bf16.mxu0 %v16502_v17  ;;  %10917 = vmatprep.subr.bf16.mxu1 %v16504_v18  ;;  %v4257_v17 = vld [vmem:[#allocation7 + $0x410] sm:$0xff] }
 0x3a0   :  { %v4265_v18 = vld [vmem:[#allocation7 + $0x450] sm:$0xff] }
 0x3a1   :  { %10754 = vmatpush1.bf16.msra.mxu0 %v16501_v28  ;;  %v16614_v28 = vcombine.high %v4257_v17, %v4265_v18  ;;  %v16613_v35 = vcombine.low %v4257_v17, %v4265_v18  ;;  %v4354_v17 = vld [vmem:[#allocation7 + $0x718] sm:$0xff] }
 0x3a2   :  { %10918 = vmatpush1.bf16.msra.mxu1 %v16503_v37  ;;  %10755 = vmatprep.subr.bf16.mxu0 %v16518_v29  ;;  %v16616_v37 = vcombine.high %v4258_v20, %v4266_v22  ;;  %v4273_v29 = vld [vmem:[#allocation7 + $0x490] sm:$0xff]  ;;  %v4362_v18 = vld [vmem:[#allocation7 + $0x758] sm:$0xff]  ;;  %v16695_v22 = vcombine.low %v4338_v8, %v4346_v9 }
 0x3a3   :  { %10919 = vmatprep.subr.bf16.mxu1 %v16520_v30  ;;  %v4281_v30 = vld [vmem:[#allocation7 + $0x4d0] sm:$0xff] }
 0x3a4   :  { %v16629_v47 = vcombine.low %v4273_v29, %v4281_v30 }
 0x3a5   :  { %10756 = vmatpush1.bf16.msra.mxu0 %v16517_v21  ;;  %v16630_v21 = vcombine.high %v4273_v29, %v4281_v30  ;;  %v4370_v29 = vld [vmem:[#allocation7 + $0x798] sm:$0xff] }
 0x3a6   :  { %10920 = vmatpush1.bf16.msra.mxu1 %v16519_v42  ;;  %10757 = vmatprep.subr.bf16.mxu0 %v16534_v44  ;;  %v16632_v42 = vcombine.high %v4274_v31, %v4282_v32  ;;  %v4289_v44 = vld [vmem:[#allocation7 + $0x510] sm:$0xff]  ;;  %v4378_v30 = vld [vmem:[#allocation7 + $0x7d8] sm:$0xff]  ;;  %v16711_v32 = vcombine.low %v4354_v17, %v4362_v18 }
 0x3a7   :  { %10921 = vmatprep.subr.bf16.mxu1 %v16536_v39  ;;  %v4297_v39 = vld [vmem:[#allocation7 + $0x550] sm:$0xff] }
 0x3a8   :  { %v16645_v36 = vcombine.low %v4289_v44, %v4297_v39 }
 0x3a9   :  { %10758 = vmatpush1.bf16.msra.mxu0 %v16533_v48  ;;  %v16646_v48 = vcombine.high %v4289_v44, %v4297_v39  ;;  %v4386_v44 = vld [vmem:[#allocation7 + $0x818] sm:$0xff] }
 0x3aa   :  { %10922 = vmatpush1.bf16.msra.mxu1 %v16535_v55  ;;  %10759 = vmatprep.subr.bf16.mxu0 %v16550_v54  ;;  %v16648_v55 = vcombine.high %v4290_v45, %v4298_v34  ;;  %v4305_v54 = vld [vmem:[#allocation7 + $0x590] sm:$0xff]  ;;  %v4394_v39 = vld [vmem:[#allocation7 + $0x858] sm:$0xff]  ;;  %v16727_v34 = vcombine.low %v4370_v29, %v4378_v30 }
 0x3ab   :  { %10923 = vmatprep.subr.bf16.mxu1 %v16552_v56  ;;  %v4313_v56 = vld [vmem:[#allocation7 + $0x5d0] sm:$0xff] }
 0x3ac   :  { %v16661_v43 = vcombine.low %v4305_v54, %v4313_v56 }
 0x3ad   :  { %10760 = vmatpush1.bf16.msra.mxu0 %v16549_v25  ;;  %v16662_v25 = vcombine.high %v4305_v54, %v4313_v56  ;;  %v4402_v56 = vld [vmem:[#allocation7 + $0x898] sm:$0xff] }
 0x3ae   :  { %10924 = vmatpush1.bf16.msra.mxu1 %v16551_v23  ;;  %10761 = vmatprep.subr.bf16.mxu0 %v16566_v62  ;;  %v16664_v23 = vcombine.high %v4306_v59, %v4314_v60  ;;  %v4321_v62 = vld [vmem:[#allocation7 + $0x610] sm:$0xff]  ;;  %v4410_v59 = vld [vmem:[#allocation7 + $0x8d8] sm:$0xff]  ;;  %v16743_v60 = vcombine.low %v4386_v44, %v4394_v39 }
 0x3af   :  { %10925 = vmatprep.subr.bf16.mxu1 %v16568_v63  ;;  %v4329_v63 = vld [vmem:[#allocation7 + $0x650] sm:$0xff] }
 0x3b0   :  { %v16677_v13 = vcombine.low %v4321_v62, %v4329_v63 }
 0x3b1   :  { %10762 = vmatpush1.bf16.msra.mxu0 %v16565_v38  ;;  %v16678_v38 = vcombine.high %v4321_v62, %v4329_v63  ;;  %v4418_v62 = vld [vmem:[#allocation7 + $0x918] sm:$0xff] }
 0x3b2   :  { %10926 = vmatpush1.bf16.msra.mxu1 %v16567_v4  ;;  %10763 = vmatprep.subr.bf16.mxu0 %v16582_v6  ;;  %v16680_v4 = vcombine.high %v4322_v0, %v4330_v1  ;;  %v4337_v6 = vld [vmem:[#allocation7 + $0x690] sm:$0xff]  ;;  %v4426_v63 = vld [vmem:[#allocation7 + $0x958] sm:$0xff]  ;;  %v16759_v1 = vcombine.low %v4402_v56, %v4410_v59 }
 0x3b3   :  { %10927 = vmatprep.subr.bf16.mxu1 %v16584_v7  ;;  %v4345_v7 = vld [vmem:[#allocation7 + $0x6d0] sm:$0xff] }
 0x3b4   :  { %v16693_v20 = vcombine.low %v4337_v6, %v4345_v7 }
 0x3b5   :  { %10764 = vmatpush1.bf16.msra.mxu0 %v16581_v11  ;;  %v16694_v11 = vcombine.high %v4337_v6, %v4345_v7  ;;  %v4434_v6 = vld [vmem:[#allocation7 + $0x998] sm:$0xff] }
 0x3b6   :  { %10928 = vmatpush1.bf16.msra.mxu1 %v16583_v14  ;;  %10765 = vmatprep.subr.bf16.mxu0 %v16598_v52  ;;  %v16696_v14 = vcombine.high %v4338_v8, %v4346_v9  ;;  %v4353_v52 = vld [vmem:[#allocation7 + $0x710] sm:$0xff]  ;;  %v4442_v7 = vld [vmem:[#allocation7 + $0x9d8] sm:$0xff]  ;;  %v16775_v9 = vcombine.low %v4418_v62, %v4426_v63 }
 0x3b7   :  { %10929 = vmatprep.subr.bf16.mxu1 %v16600_v27  ;;  %v4361_v27 = vld [vmem:[#allocation7 + $0x750] sm:$0xff] }
 0x3b8   :  { %v16709_v31 = vcombine.low %v4353_v52, %v4361_v27 }
 0x3b9   :  { %10766 = vmatpush1.bf16.msra.mxu0 %v16597_v53  ;;  %v16710_v53 = vcombine.high %v4353_v52, %v4361_v27  ;;  %v4450_v52 = vld [vmem:[#allocation7 + $0xa18] sm:$0xff] }
 0x3ba   :  { %10930 = vmatpush1.bf16.msra.mxu1 %v16599_v12  ;;  %10767 = vmatprep.subr.bf16.mxu0 %v16614_v28  ;;  %v16712_v12 = vcombine.high %v4354_v17, %v4362_v18  ;;  %v4369_v28 = vld [vmem:[#allocation7 + $0x790] sm:$0xff]  ;;  %v4458_v27 = vld [vmem:[#allocation7 + $0xa58] sm:$0xff]  ;;  %v16791_v18 = vcombine.low %v4434_v6, %v4442_v7 }
 0x3bb   :  { %10931 = vmatprep.subr.bf16.mxu1 %v16616_v37  ;;  %v4377_v37 = vld [vmem:[#allocation7 + $0x7d0] sm:$0xff] }
 0x3bc   :  { %v16725_v45 = vcombine.low %v4369_v28, %v4377_v37 }
 0x3bd   :  { %10768 = vmatpush1.bf16.msra.mxu0 %v16613_v35  ;;  %v16726_v35 = vcombine.high %v4369_v28, %v4377_v37  ;;  %v4466_v28 = vld [vmem:[#allocation7 + $0xa98] sm:$0xff] }
 0x3be   :  { %10932 = vmatpush1.bf16.msra.mxu1 %v16615_v40  ;;  %10769 = vmatprep.subr.bf16.mxu0 %v16630_v21  ;;  %v16728_v40 = vcombine.high %v4370_v29, %v4378_v30  ;;  %v4385_v21 = vld [vmem:[#allocation7 + $0x810] sm:$0xff]  ;;  %v4474_v37 = vld [vmem:[#allocation7 + $0xad8] sm:$0xff]  ;;  %v16807_v30 = vcombine.low %v4450_v52, %v4458_v27 }
 0x3bf   :  { %10933 = vmatprep.subr.bf16.mxu1 %v16632_v42  ;;  %v4393_v42 = vld [vmem:[#allocation7 + $0x850] sm:$0xff] }
 0x3c0   :  { %v16741_v54 = vcombine.low %v4385_v21, %v4393_v42 }
 0x3c1   :  { %10770 = vmatpush1.bf16.msra.mxu0 %v16629_v47  ;;  %v16742_v47 = vcombine.high %v4385_v21, %v4393_v42  ;;  %v4482_v21 = vld [vmem:[#allocation7 + $0xb18] sm:$0xff] }
 0x3c2   :  { %10934 = vmatpush1.bf16.msra.mxu1 %v16631_v24  ;;  %10771 = vmatprep.subr.bf16.mxu0 %v16646_v48  ;;  %v16744_v24 = vcombine.high %v4386_v44, %v4394_v39  ;;  %v4401_v48 = vld [vmem:[#allocation7 + $0x890] sm:$0xff]  ;;  %v4490_v42 = vld [vmem:[#allocation7 + $0xb58] sm:$0xff]  ;;  %v16823_v39 = vcombine.low %v4466_v28, %v4474_v37 }
 0x3c3   :  { %10935 = vmatprep.subr.bf16.mxu1 %v16648_v55  ;;  %v4409_v55 = vld [vmem:[#allocation7 + $0x8d0] sm:$0xff] }
 0x3c4   :  { %v16757_v0 = vcombine.low %v4401_v48, %v4409_v55 }
 0x3c5   :  { %10772 = vmatpush1.bf16.msra.mxu0 %v16645_v36  ;;  %v16758_v36 = vcombine.high %v4401_v48, %v4409_v55  ;;  %v4498_v48 = vld [vmem:[#allocation7 + $0xb98] sm:$0xff] }
 0x3c6   :  { %10936 = vmatpush1.bf16.msra.mxu1 %v16647_v19  ;;  %10773 = vmatprep.subr.bf16.mxu0 %v16662_v25  ;;  %v4417_v19 = vld [vmem:[#allocation7 + $0x910] sm:$0xff]  ;;  %v4506_v55 = vld [vmem:[#allocation7 + $0xbd8] sm:$0xff] }
 0x3c7   :  { %10937 = vmatprep.subr.bf16.mxu1 %v16664_v23  ;;  %v4425_v25 = vld [vmem:[#allocation7 + $0x950] sm:$0xff]  ;;  %v16760_v23 = vcombine.high %v4402_v56, %v4410_v59  ;;  %v16839_v56 = vcombine.low %v4482_v21, %v4490_v42 }
 0x3c8   :  { %v16773_v8 = vcombine.low %v4417_v19, %v4425_v25 }
 0x3c9   :  { %10774 = vmatpush1.bf16.msra.mxu0 %v16661_v43  ;;  %v16774_v43 = vcombine.high %v4417_v19, %v4425_v25  ;;  %v4521_v19 = vld [vmem:[#allocation7 + $0xc50] sm:$0xff]  ;;  %v4514_v25 = vld [vmem:[#allocation7 + $0xc18] sm:$0xff] }
 0x3ca   :  { %10938 = vmatpush1.bf16.msra.mxu1 %v16663_v3  ;;  %10775 = vmatprep.subr.bf16.mxu0 %v16678_v38  ;;  %v16776_v3 = vcombine.high %v4418_v62, %v4426_v63  ;;  %v4433_v38 = vld [vmem:[#allocation7 + $0x990] sm:$0xff]  ;;  %v16855_v63 = vcombine.low %v4498_v48, %v4506_v55 }
 0x3cb   :  { %10939 = vmatprep.subr.bf16.mxu1 %v16680_v4  ;;  %v4441_v4 = vld [vmem:[#allocation7 + $0x9d0] sm:$0xff] }
 0x3cc   :  { %v16789_v17 = vcombine.low %v4433_v38, %v4441_v4 }
 0x3cd   :  { %10776 = vmatpush1.bf16.msra.mxu0 %v16677_v13  ;;  %v16790_v13 = vcombine.high %v4433_v38, %v4441_v4  ;;  %v4530_v38 = vld [vmem:[#allocation7 + $0xc98] sm:$0xff] }
 0x3ce   :  { %10940 = vmatpush1.bf16.msra.mxu1 %v16679_v10  ;;  %10777 = vmatprep.subr.bf16.mxu0 %v16694_v11  ;;  %v16792_v10 = vcombine.high %v4434_v6, %v4442_v7  ;;  %v4449_v11 = vld [vmem:[#allocation7 + $0xa10] sm:$0xff]  ;;  %v4538_v4 = vld [vmem:[#allocation7 + $0xcd8] sm:$0xff] }
 0x3cf   :  { %10941 = vmatprep.subr.bf16.mxu1 %v16696_v14  ;;  %v4457_v14 = vld [vmem:[#allocation7 + $0xa50] sm:$0xff] }
 0x3d0   :  { %v16805_v29 = vcombine.low %v4449_v11, %v4457_v14 }
 0x3d1   :  { %10778 = vmatpush1.bf16.msra.mxu0 %v16693_v20  ;;  %v16806_v20 = vcombine.high %v4449_v11, %v4457_v14  ;;  %v4546_v11 = vld [vmem:[#allocation7 + $0xd18] sm:$0xff] }
 0x3d2   :  { %10942 = vmatpush1.bf16.msra.mxu1 %v16695_v22  ;;  %10779 = vmatprep.subr.bf16.mxu0 %v16710_v53  ;;  %v16808_v22 = vcombine.high %v4450_v52, %v4458_v27  ;;  %v4465_v53 = vld [vmem:[#allocation7 + $0xa90] sm:$0xff]  ;;  %v4554_v14 = vld [vmem:[#allocation7 + $0xd58] sm:$0xff]  ;;  %v16887_v27 = vcombine.low %v4530_v38, %v4538_v4 }
 0x3d3   :  { %10943 = vmatprep.subr.bf16.mxu1 %v16712_v12  ;;  %v4473_v12 = vld [vmem:[#allocation7 + $0xad0] sm:$0xff] }
 0x3d4   :  { %v16821_v44 = vcombine.low %v4465_v53, %v4473_v12 }
 0x3d5   :  { %10780 = vmatpush1.bf16.msra.mxu0 %v16709_v31  ;;  %v16822_v31 = vcombine.high %v4465_v53, %v4473_v12  ;;  %v4562_v53 = vld [vmem:[#allocation7 + $0xd98] sm:$0xff] }
 0x3d6   :  { %10944 = vmatpush1.bf16.msra.mxu1 %v16711_v32  ;;  %10781 = vmatprep.subr.bf16.mxu0 %v16726_v35  ;;  %v16824_v32 = vcombine.high %v4466_v28, %v4474_v37  ;;  %v4481_v35 = vld [vmem:[#allocation7 + $0xb10] sm:$0xff]  ;;  %v4570_v12 = vld [vmem:[#allocation7 + $0xdd8] sm:$0xff]  ;;  %v16903_v37 = vcombine.low %v4546_v11, %v4554_v14 }
 0x3d7   :  { %10945 = vmatprep.subr.bf16.mxu1 %v16728_v40  ;;  %v4489_v40 = vld [vmem:[#allocation7 + $0xb50] sm:$0xff] }
 0x3d9   :  { %10782 = vmatpush1.bf16.msra.mxu0 %v16725_v45  ;;  %v16838_v45 = vcombine.high %v4481_v35, %v4489_v40 }
 0x3da   :  { %10946 = vmatpush1.bf16.msra.mxu1 %v16727_v34  ;;  %10792 = vmatprep.subr.bf16.mxu0 %v16742_v47  ;;  %v16840_v34 = vcombine.high %v4482_v21, %v4490_v42  ;;  %v4497_v47 = vld [vmem:[#allocation7 + $0xb90] sm:$0xff]  ;;  %v16919_v42 = vcombine.low %v4562_v53, %v4570_v12 }
 0x3db   :  { %10956 = vmatprep.subr.bf16.mxu1 %v16744_v24  ;;  %v4505_v24 = vld [vmem:[#allocation7 + $0xbd0] sm:$0xff] }
 0x3dc   :  { %10784 = vmatmul.mubr.bf16.vlgmr.msra.gmra.mrb[12].mxu0 %v19546_v2  ;;  %v16854_v59 = vcombine.high %v4497_v47, %v4505_v24  ;;  %v16853_v62 = vcombine.low %v4497_v47, %v4505_v24  ;;  %v4594_v47 = vld [vmem:[#allocation7 + $0xe98] sm:$0xff] }
 0x3dd   :  { %10948 = vmatmul.mubr.bf16.vlgmr.msra.gmra.mrb[12].mxu1 %v19546_v2  ;;  %10793 = vmatpush1.bf16.msra.mxu0 %v16741_v54  ;;  %v16837_v54 = vcombine.low %v4481_v35, %v4489_v40  ;;  %v4578_v35 = vld [vmem:[#allocation7 + $0xe18] sm:$0xff] }
 0x3de   :  { %10824 = vmatprep.mubr.bf16.mxu0 %v19548_v5  ;;  %10957 = vmatpush1.bf16.msra.mxu1 %v16743_v60  ;;  %v16856_v60 = vcombine.high %v4498_v48, %v4506_v55  ;;  %v4586_v40 = vld [vmem:[#allocation7 + $0xe58] sm:$0xff] }
 0x3df   :  { %10988 = vmatprep.mubr.bf16.mxu1 %v19548_v5  ;;  %10794 = vmatprep.subr.bf16.mxu0 %v16758_v36  ;;  %v4513_v36 = vld [vmem:[#allocation7 + $0xc10] sm:$0xff]  ;;  %v4602_v24 = vld [vmem:[#allocation7 + $0xed8] sm:$0xff]  ;;  %v16935_v55 = vcombine.low %v4578_v35, %v4586_v40 }
 0x3e0   :  { %10958 = vmatprep.subr.bf16.mxu1 %v16760_v23  ;;  %v4522_v23 = vld [vmem:[#allocation7 + $0xc58] sm:$0xff]  ;;  %v16869_v6 = vcombine.low %v4513_v36, %v4521_v19 }
 0x3e1   :  { %10795 = vmatpush1.bf16.msra.mxu0 %v16757_v0  ;;  %v16870_v0 = vcombine.high %v4513_v36, %v4521_v19  ;;  %v16871_v7 = vcombine.low %v4514_v25, %v4522_v23  ;;  %v4610_v36 = vld [vmem:[#allocation7 + $0xf18] sm:$0xff] }
 0x3e2   :  { %10959 = vmatpush1.bf16.msra.mxu1 %v16759_v1  ;;  %10796 = vmatprep.subr.bf16.mxu0 %v16774_v43  ;;  %v16872_v1 = vcombine.high %v4514_v25, %v4522_v23  ;;  %v4529_v43 = vld [vmem:[#allocation7 + $0xc90] sm:$0xff]  ;;  %v4618_v19 = vld [vmem:[#allocation7 + $0xf58] sm:$0xff]  ;;  %v16951_v23 = vcombine.low %v4594_v47, %v4602_v24 }
 0x3e3   :  { %10960 = vmatprep.subr.bf16.mxu1 %v16776_v3  ;;  %v4537_v3 = vld [vmem:[#allocation7 + $0xcd0] sm:$0xff] }
 0x3e4   :  { %v16885_v52 = vcombine.low %v4529_v43, %v4537_v3 }
 0x3e5   :  { %10797 = vmatpush1.bf16.msra.mxu0 %v16773_v8  ;;  %v16886_v8 = vcombine.high %v4529_v43, %v4537_v3  ;;  %v4626_v43 = vld [vmem:[#allocation7 + $0xf98] sm:$0xff] }
 0x3e6   :  { %10961 = vmatpush1.bf16.msra.mxu1 %v16775_v9  ;;  %10798 = vmatprep.subr.bf16.mxu0 %v16790_v13  ;;  %v16888_v9 = vcombine.high %v4530_v38, %v4538_v4  ;;  %v4545_v13 = vld [vmem:[#allocation7 + $0xd10] sm:$0xff]  ;;  %v4634_v3 = vld [vmem:[#allocation7 + $0xfd8] sm:$0xff]  ;;  %v16967_v4 = vcombine.low %v4610_v36, %v4618_v19 }
 0x3e7   :  { %10962 = vmatprep.subr.bf16.mxu1 %v16792_v10  ;;  %v4553_v10 = vld [vmem:[#allocation7 + $0xd50] sm:$0xff] }
 0x3e8   :  { %v16901_v28 = vcombine.low %v4545_v13, %v4553_v10 }
 0x3e9   :  { %10799 = vmatpush1.bf16.msra.mxu0 %v16789_v17  ;;  %v16902_v17 = vcombine.high %v4545_v13, %v4553_v10  ;;  %v4642_v13 = vld [vmem:[#allocation7 + $0x1018] sm:$0xff] }
 0x3ea   :  { %10963 = vmatpush1.bf16.msra.mxu1 %v16791_v18  ;;  %10800 = vmatprep.subr.bf16.mxu0 %v16806_v20  ;;  %v16904_v18 = vcombine.high %v4546_v11, %v4554_v14  ;;  %v4561_v20 = vld [vmem:[#allocation7 + $0xd90] sm:$0xff]  ;;  %v4650_v10 = vld [vmem:[#allocation7 + $0x1058] sm:$0xff]  ;;  %v16983_v14 = vcombine.low %v4626_v43, %v4634_v3 }
 0x3eb   :  { %10964 = vmatprep.subr.bf16.mxu1 %v16808_v22  ;;  %v4569_v22 = vld [vmem:[#allocation7 + $0xdd0] sm:$0xff] }
 0x3ec   :  { %v16917_v21 = vcombine.low %v4561_v20, %v4569_v22 }
 0x3ed   :  { %10801 = vmatpush1.bf16.msra.mxu0 %v16805_v29  ;;  %v16918_v29 = vcombine.high %v4561_v20, %v4569_v22  ;;  %v4658_v22 = vld [vmem:[#allocation7 + $0x1098] sm:$0xff] }
 0x3ee   :  { %10965 = vmatpush1.bf16.msra.mxu1 %v16807_v30  ;;  %10802 = vmatprep.subr.bf16.mxu0 %v16822_v31  ;;  %v16920_v30 = vcombine.high %v4562_v53, %v4570_v12  ;;  %v4577_v31 = vld [vmem:[#allocation7 + $0xe10] sm:$0xff]  ;;  %v4666_v53 = vld [vmem:[#allocation7 + $0x10d8] sm:$0xff]  ;;  %v16999_v12 = vcombine.low %v4642_v13, %v4650_v10 }
 0x3ef   :  { %10966 = vmatprep.subr.bf16.mxu1 %v16824_v32  ;;  %v4585_v32 = vld [vmem:[#allocation7 + $0xe50] sm:$0xff] }
 0x3f0   :  { %v16933_v48 = vcombine.low %v4577_v31, %v4585_v32 }
 0x3f1   :  { %10803 = vmatpush1.bf16.msra.mxu0 %v16821_v44  ;;  %v16934_v44 = vcombine.high %v4577_v31, %v4585_v32  ;;  %v4674_v31 = vld [vmem:[#allocation7 + $0x1118] sm:$0xff] }
 0x3f2   :  { %10967 = vmatpush1.bf16.msra.mxu1 %v16823_v39  ;;  %10804 = vmatprep.subr.bf16.mxu0 %v16838_v45  ;;  %v16936_v39 = vcombine.high %v4578_v35, %v4586_v40  ;;  %v4593_v45 = vld [vmem:[#allocation7 + $0xe90] sm:$0xff]  ;;  %v4682_v32 = vld [vmem:[#allocation7 + $0x1158] sm:$0xff]  ;;  %v17015_v40 = vcombine.low %v4658_v22, %v4666_v53 }
 0x3f3   :  { %10968 = vmatprep.subr.bf16.mxu1 %v16840_v34  ;;  %v4601_v34 = vld [vmem:[#allocation7 + $0xed0] sm:$0xff] }
 0x3f4   :  { %v16949_v25 = vcombine.low %v4593_v45, %v4601_v34 }
 0x3f5   :  { %10805 = vmatpush1.bf16.msra.mxu0 %v16837_v54  ;;  %v16950_v54 = vcombine.high %v4593_v45, %v4601_v34  ;;  %v4690_v45 = vld [vmem:[#allocation7 + $0x1198] sm:$0xff] }
 0x3f6   :  { %10969 = vmatpush1.bf16.msra.mxu1 %v16839_v56  ;;  %10806 = vmatprep.subr.bf16.mxu0 %v16854_v59  ;;  %v16952_v56 = vcombine.high %v4594_v47, %v4602_v24  ;;  %v4609_v59 = vld [vmem:[#allocation7 + $0xf10] sm:$0xff]  ;;  %v4698_v34 = vld [vmem:[#allocation7 + $0x11d8] sm:$0xff]  ;;  %v17031_v24 = vcombine.low %v4674_v31, %v4682_v32 }
 0x3f7   :  { %10970 = vmatprep.subr.bf16.mxu1 %v16856_v60  ;;  %v4617_v60 = vld [vmem:[#allocation7 + $0xf50] sm:$0xff] }
 0x3f8   :  { %v16965_v38 = vcombine.low %v4609_v59, %v4617_v60 }
 0x3f9   :  { %10807 = vmatpush1.bf16.msra.mxu0 %v16853_v62  ;;  %v16966_v62 = vcombine.high %v4609_v59, %v4617_v60  ;;  %v4706_v59 = vld [vmem:[#allocation7 + $0x1218] sm:$0xff] }
 0x3fa   :  { %10971 = vmatpush1.bf16.msra.mxu1 %v16855_v63  ;;  %10808 = vmatprep.subr.bf16.mxu0 %v16870_v0  ;;  %v16968_v63 = vcombine.high %v4610_v36, %v4618_v19  ;;  %v4625_v0 = vld [vmem:[#allocation7 + $0xf90] sm:$0xff]  ;;  %v4714_v60 = vld [vmem:[#allocation7 + $0x1258] sm:$0xff]  ;;  %v17047_v19 = vcombine.low %v4690_v45, %v4698_v34 }
 0x3fb   :  { %10972 = vmatprep.subr.bf16.mxu1 %v16872_v1  ;;  %v4633_v1 = vld [vmem:[#allocation7 + $0xfd0] sm:$0xff] }
 0x3fc   :  { %v16981_v11 = vcombine.low %v4625_v0, %v4633_v1 }
 0x3fd   :  { %10809 = vmatpush1.bf16.msra.mxu0 %v16869_v6  ;;  %v16982_v6 = vcombine.high %v4625_v0, %v4633_v1  ;;  %v4722_v0 = vld [vmem:[#allocation7 + $0x1298] sm:$0xff] }
 0x3fe   :  { %10973 = vmatpush1.bf16.msra.mxu1 %v16871_v7  ;;  %10810 = vmatprep.subr.bf16.mxu0 %v16886_v8  ;;  %v16984_v7 = vcombine.high %v4626_v43, %v4634_v3  ;;  %v4641_v8 = vld [vmem:[#allocation7 + $0x1010] sm:$0xff]  ;;  %v4730_v1 = vld [vmem:[#allocation7 + $0x12d8] sm:$0xff]  ;;  %v17063_v3 = vcombine.low %v4706_v59, %v4714_v60 }
 0x3ff   :  { %10974 = vmatprep.subr.bf16.mxu1 %v16888_v9  ;;  %v4649_v9 = vld [vmem:[#allocation7 + $0x1050] sm:$0xff] }
 0x400   :  { %v16997_v20 = vcombine.low %v4641_v8, %v4649_v9 }
 0x401   :  { %10811 = vmatpush1.bf16.msra.mxu0 %v16885_v52  ;;  %v16998_v52 = vcombine.high %v4641_v8, %v4649_v9  ;;  %v4738_v8 = vld [vmem:[#allocation7 + $0x1318] sm:$0xff] }
 0x402   :  { %10975 = vmatpush1.bf16.msra.mxu1 %v16887_v27  ;;  %10812 = vmatprep.subr.bf16.mxu0 %v16902_v17  ;;  %v17000_v27 = vcombine.high %v4642_v13, %v4650_v10  ;;  %v4657_v17 = vld [vmem:[#allocation7 + $0x1090] sm:$0xff]  ;;  %v4746_v9 = vld [vmem:[#allocation7 + $0x1358] sm:$0xff]  ;;  %v17079_v10 = vcombine.low %v4722_v0, %v4730_v1 }
 0x403   :  { %10976 = vmatprep.subr.bf16.mxu1 %v16904_v18  ;;  %v4665_v18 = vld [vmem:[#allocation7 + $0x10d0] sm:$0xff] }
 0x404   :  { %v17013_v35 = vcombine.low %v4657_v17, %v4665_v18 }
 0x405   :  { %10813 = vmatpush1.bf16.msra.mxu0 %v16901_v28  ;;  %v17014_v28 = vcombine.high %v4657_v17, %v4665_v18  ;;  %v4754_v17 = vld [vmem:[#allocation7 + $0x1398] sm:$0xff] }
 0x406   :  { %10977 = vmatpush1.bf16.msra.mxu1 %v16903_v37  ;;  %10814 = vmatprep.subr.bf16.mxu0 %v16918_v29  ;;  %v4673_v37 = vld [vmem:[#allocation7 + $0x1110] sm:$0xff]  ;;  %v4762_v18 = vld [vmem:[#allocation7 + $0x13d8] sm:$0xff] }
 0x407   :  { %10978 = vmatprep.subr.bf16.mxu1 %v16920_v30  ;;  %v4681_v29 = vld [vmem:[#allocation7 + $0x1150] sm:$0xff]  ;;  %v17016_v30 = vcombine.high %v4658_v22, %v4666_v53  ;;  %v17095_v22 = vcombine.low %v4738_v8, %v4746_v9 }
 0x408   :  { %v17029_v47 = vcombine.low %v4673_v37, %v4681_v29 }
 0x409   :  { %10815 = vmatpush1.bf16.msra.mxu0 %v16917_v21  ;;  %v17030_v21 = vcombine.high %v4673_v37, %v4681_v29  ;;  %v4777_v37 = vld [vmem:[#allocation7 + $0x1450] sm:$0xff]  ;;  %v4770_v29 = vld [vmem:[#allocation7 + $0x1418] sm:$0xff] }
 0x40a   :  { %10979 = vmatpush1.bf16.msra.mxu1 %v16919_v42  ;;  %10816 = vmatprep.subr.bf16.mxu0 %v16934_v44  ;;  %v17032_v42 = vcombine.high %v4674_v31, %v4682_v32  ;;  %v4689_v44 = vld [vmem:[#allocation7 + $0x1190] sm:$0xff]  ;;  %v17111_v32 = vcombine.low %v4754_v17, %v4762_v18 }
 0x40b   :  { %10980 = vmatprep.subr.bf16.mxu1 %v16936_v39  ;;  %v4697_v39 = vld [vmem:[#allocation7 + $0x11d0] sm:$0xff] }
 0x40c   :  { %v17045_v36 = vcombine.low %v4689_v44, %v4697_v39 }
 0x40d   :  { %10817 = vmatpush1.bf16.msra.mxu0 %v16933_v48  ;;  %v17046_v48 = vcombine.high %v4689_v44, %v4697_v39  ;;  %v4786_v44 = vld [vmem:[#allocation7 + $0x1498] sm:$0xff] }
 0x40e   :  { %10981 = vmatpush1.bf16.msra.mxu1 %v16935_v55  ;;  %10818 = vmatprep.subr.bf16.mxu0 %v16950_v54  ;;  %v17048_v55 = vcombine.high %v4690_v45, %v4698_v34  ;;  %v4705_v54 = vld [vmem:[#allocation7 + $0x1210] sm:$0xff]  ;;  %v4794_v39 = vld [vmem:[#allocation7 + $0x14d8] sm:$0xff] }
 0x40f   :  { %10982 = vmatprep.subr.bf16.mxu1 %v16952_v56  ;;  %v4713_v56 = vld [vmem:[#allocation7 + $0x1250] sm:$0xff] }
 0x410   :  { %v17061_v43 = vcombine.low %v4705_v54, %v4713_v56 }
 0x411   :  { %10819 = vmatpush1.bf16.msra.mxu0 %v16949_v25  ;;  %v17062_v25 = vcombine.high %v4705_v54, %v4713_v56  ;;  %v4802_v54 = vld [vmem:[#allocation7 + $0x1518] sm:$0xff] }
 0x412   :  { %10983 = vmatpush1.bf16.msra.mxu1 %v16951_v23  ;;  %10820 = vmatprep.subr.bf16.mxu0 %v16966_v62  ;;  %v17064_v23 = vcombine.high %v4706_v59, %v4714_v60  ;;  %v4721_v62 = vld [vmem:[#allocation7 + $0x1290] sm:$0xff]  ;;  %v4810_v56 = vld [vmem:[#allocation7 + $0x1558] sm:$0xff]  ;;  %v17143_v60 = vcombine.low %v4786_v44, %v4794_v39 }
 0x413   :  { %10984 = vmatprep.subr.bf16.mxu1 %v16968_v63  ;;  %v4729_v63 = vld [vmem:[#allocation7 + $0x12d0] sm:$0xff] }
 0x414   :  { %v17077_v13 = vcombine.low %v4721_v62, %v4729_v63 }
 0x415   :  { %10821 = vmatpush1.bf16.msra.mxu0 %v16965_v38  ;;  %v17078_v38 = vcombine.high %v4721_v62, %v4729_v63  ;;  %v4818_v62 = vld [vmem:[#allocation7 + $0x1598] sm:$0xff] }
 0x416   :  { %10985 = vmatpush1.bf16.msra.mxu1 %v16967_v4  ;;  %10822 = vmatprep.subr.bf16.mxu0 %v16982_v6  ;;  %v17080_v4 = vcombine.high %v4722_v0, %v4730_v1  ;;  %v4737_v6 = vld [vmem:[#allocation7 + $0x1310] sm:$0xff]  ;;  %v4826_v63 = vld [vmem:[#allocation7 + $0x15d8] sm:$0xff]  ;;  %v17159_v1 = vcombine.low %v4802_v54, %v4810_v56 }
 0x417   :  { %10986 = vmatprep.subr.bf16.mxu1 %v16984_v7  ;;  %v4745_v7 = vld [vmem:[#allocation7 + $0x1350] sm:$0xff] }
 0x419   :  { %10823 = vmatpush1.bf16.msra.mxu0 %v16981_v11  ;;  %v17094_v11 = vcombine.high %v4737_v6, %v4745_v7 }
 0x41a   :  { %10987 = vmatpush1.bf16.msra.mxu1 %v16983_v14  ;;  %10833 = vmatprep.subr.bf16.mxu0 %v16998_v52  ;;  %v17096_v14 = vcombine.high %v4738_v8, %v4746_v9  ;;  %v4753_v52 = vld [vmem:[#allocation7 + $0x1390] sm:$0xff]  ;;  %v17175_v9 = vcombine.low %v4818_v62, %v4826_v63 }
 0x41b   :  { %10997 = vmatprep.subr.bf16.mxu1 %v17000_v27  ;;  %v4761_v27 = vld [vmem:[#allocation7 + $0x13d0] sm:$0xff] }
 0x41c   :  { %10825 = vmatmul.mubr.bf16.vlgmr.msra.gmra.mrb[12].mxu0 %v19556_v26  ;;  %v17110_v53 = vcombine.high %v4753_v52, %v4761_v27  ;;  %v17109_v31 = vcombine.low %v4753_v52, %v4761_v27  ;;  %v4850_v52 = vld [vmem:[#allocation7 + $0x1698] sm:$0xff] }
 0x41d   :  { %10989 = vmatmul.mubr.bf16.vlgmr.msra.gmra.mrb[12].mxu1 %v19556_v26  ;;  %10834 = vmatpush1.bf16.msra.mxu0 %v16997_v20  ;;  %v17093_v20 = vcombine.low %v4737_v6, %v4745_v7  ;;  %v4834_v6 = vld [vmem:[#allocation7 + $0x1618] sm:$0xff] }
 0x41e   :  { %10865 = vmatprep.mubr.bf16.mxu0 %v19598_v58  ;;  %10998 = vmatpush1.bf16.msra.mxu1 %v16999_v12  ;;  %v17112_v12 = vcombine.high %v4754_v17, %v4762_v18  ;;  %v4842_v7 = vld [vmem:[#allocation7 + $0x1658] sm:$0xff] }
 0x41f   :  { %11029 = vmatprep.mubr.bf16.mxu1 %v19598_v58  ;;  %10835 = vmatprep.subr.bf16.mxu0 %v17014_v28  ;;  %v4769_v28 = vld [vmem:[#allocation7 + $0x1410] sm:$0xff]  ;;  %v4858_v27 = vld [vmem:[#allocation7 + $0x16d8] sm:$0xff]  ;;  %v17191_v18 = vcombine.low %v4834_v6, %v4842_v7 }
 0x420   :  { %10999 = vmatprep.subr.bf16.mxu1 %v17016_v30  ;;  %v4778_v30 = vld [vmem:[#allocation7 + $0x1458] sm:$0xff]  ;;  %v17125_v45 = vcombine.low %v4769_v28, %v4777_v37 }
 0x421   :  { %10836 = vmatpush1.bf16.msra.mxu0 %v17013_v35  ;;  %v17126_v35 = vcombine.high %v4769_v28, %v4777_v37  ;;  %v17127_v34 = vcombine.low %v4770_v29, %v4778_v30  ;;  %v4866_v28 = vld [vmem:[#allocation7 + $0x1718] sm:$0xff] }
 0x422   :  { %11000 = vmatpush1.bf16.msra.mxu1 %v17015_v40  ;;  %10837 = vmatprep.subr.bf16.mxu0 %v17030_v21  ;;  %v17128_v40 = vcombine.high %v4770_v29, %v4778_v30  ;;  %v4785_v21 = vld [vmem:[#allocation7 + $0x1490] sm:$0xff]  ;;  %v4874_v37 = vld [vmem:[#allocation7 + $0x1758] sm:$0xff]  ;;  %v17207_v30 = vcombine.low %v4850_v52, %v4858_v27 }
 0x423   :  { %11001 = vmatprep.subr.bf16.mxu1 %v17032_v42  ;;  %v4793_v42 = vld [vmem:[#allocation7 + $0x14d0] sm:$0xff] }
 0x424   :  { %v17141_v59 = vcombine.low %v4785_v21, %v4793_v42 }
 0x425   :  { %10838 = vmatpush1.bf16.msra.mxu0 %v17029_v47  ;;  %v17142_v47 = vcombine.high %v4785_v21, %v4793_v42  ;;  %v4882_v21 = vld [vmem:[#allocation7 + $0x1798] sm:$0xff] }
 0x426   :  { %11002 = vmatpush1.bf16.msra.mxu1 %v17031_v24  ;;  %10839 = vmatprep.subr.bf16.mxu0 %v17046_v48  ;;  %v17144_v24 = vcombine.high %v4786_v44, %v4794_v39  ;;  %v4801_v48 = vld [vmem:[#allocation7 + $0x1510] sm:$0xff]  ;;  %v4890_v42 = vld [vmem:[#allocation7 + $0x17d8] sm:$0xff]  ;;  %v17223_v39 = vcombine.low %v4866_v28, %v4874_v37 }
 0x427   :  { %11003 = vmatprep.subr.bf16.mxu1 %v17048_v55  ;;  %v4809_v55 = vld [vmem:[#allocation7 + $0x1550] sm:$0xff] }
 0x428   :  { %v17157_v0 = vcombine.low %v4801_v48, %v4809_v55 }
 0x429   :  { %10840 = vmatpush1.bf16.msra.mxu0 %v17045_v36  ;;  %v17158_v36 = vcombine.high %v4801_v48, %v4809_v55  ;;  %v4898_v48 = vld [vmem:[#allocation7 + $0x1818] sm:$0xff] }
 0x42a   :  { %11004 = vmatpush1.bf16.msra.mxu1 %v17047_v19  ;;  %10841 = vmatprep.subr.bf16.mxu0 %v17062_v25  ;;  %v17160_v19 = vcombine.high %v4802_v54, %v4810_v56  ;;  %v4817_v25 = vld [vmem:[#allocation7 + $0x1590] sm:$0xff]  ;;  %v4906_v55 = vld [vmem:[#allocation7 + $0x1858] sm:$0xff]  ;;  %v17239_v56 = vcombine.low %v4882_v21, %v4890_v42 }
 0x42b   :  { %11005 = vmatprep.subr.bf16.mxu1 %v17064_v23  ;;  %v4825_v23 = vld [vmem:[#allocation7 + $0x15d0] sm:$0xff] }
 0x42c   :  { %v17173_v8 = vcombine.low %v4817_v25, %v4825_v23 }
 0x42d   :  { %10842 = vmatpush1.bf16.msra.mxu0 %v17061_v43  ;;  %v17174_v43 = vcombine.high %v4817_v25, %v4825_v23  ;;  %v4914_v23 = vld [vmem:[#allocation7 + $0x1898] sm:$0xff] }
 0x42e   :  { %11006 = vmatpush1.bf16.msra.mxu1 %v17063_v3  ;;  %10843 = vmatprep.subr.bf16.mxu0 %v17078_v38  ;;  %v17176_v3 = vcombine.high %v4818_v62, %v4826_v63  ;;  %v4833_v38 = vld [vmem:[#allocation7 + $0x1610] sm:$0xff]  ;;  %v4922_v62 = vld [vmem:[#allocation7 + $0x18d8] sm:$0xff]  ;;  %v17255_v63 = vcombine.low %v4898_v48, %v4906_v55 }
 0x42f   :  { %11007 = vmatprep.subr.bf16.mxu1 %v17080_v4  ;;  %v4841_v4 = vld [vmem:[#allocation7 + $0x1650] sm:$0xff] }
 0x430   :  { %v17189_v17 = vcombine.low %v4833_v38, %v4841_v4 }
 0x431   :  { %10844 = vmatpush1.bf16.msra.mxu0 %v17077_v13  ;;  %v17190_v13 = vcombine.high %v4833_v38, %v4841_v4  ;;  %v4930_v38 = vld [vmem:[#allocation7 + $0x1918] sm:$0xff] }
 0x432   :  { %11008 = vmatpush1.bf16.msra.mxu1 %v17079_v10  ;;  %10845 = vmatprep.subr.bf16.mxu0 %v17094_v11  ;;  %v17192_v10 = vcombine.high %v4834_v6, %v4842_v7  ;;  %v4849_v11 = vld [vmem:[#allocation7 + $0x1690] sm:$0xff]  ;;  %v4938_v4 = vld [vmem:[#allocation7 + $0x1958] sm:$0xff]  ;;  %v17271_v7 = vcombine.low %v4914_v23, %v4922_v62 }
 0x433   :  { %11009 = vmatprep.subr.bf16.mxu1 %v17096_v14  ;;  %v4857_v14 = vld [vmem:[#allocation7 + $0x16d0] sm:$0xff] }
 0x434   :  { %v17205_v29 = vcombine.low %v4849_v11, %v4857_v14 }
 0x435   :  { %10846 = vmatpush1.bf16.msra.mxu0 %v17093_v20  ;;  %v17206_v20 = vcombine.high %v4849_v11, %v4857_v14  ;;  %v4946_v11 = vld [vmem:[#allocation7 + $0x1998] sm:$0xff] }
 0x436   :  { %11010 = vmatpush1.bf16.msra.mxu1 %v17095_v22  ;;  %10847 = vmatprep.subr.bf16.mxu0 %v17110_v53  ;;  %v17208_v22 = vcombine.high %v4850_v52, %v4858_v27  ;;  %v4865_v53 = vld [vmem:[#allocation7 + $0x1710] sm:$0xff]  ;;  %v4954_v14 = vld [vmem:[#allocation7 + $0x19d8] sm:$0xff]  ;;  %v17287_v27 = vcombine.low %v4930_v38, %v4938_v4 }
 0x437   :  { %11011 = vmatprep.subr.bf16.mxu1 %v17112_v12  ;;  %v4873_v12 = vld [vmem:[#allocation7 + $0x1750] sm:$0xff] }
 0x438   :  { %v17221_v44 = vcombine.low %v4865_v53, %v4873_v12 }
 0x439   :  { %10848 = vmatpush1.bf16.msra.mxu0 %v17109_v31  ;;  %v17222_v31 = vcombine.high %v4865_v53, %v4873_v12  ;;  %v4962_v53 = vld [vmem:[#allocation7 + $0x1a18] sm:$0xff] }
 0x43a   :  { %11012 = vmatpush1.bf16.msra.mxu1 %v17111_v32  ;;  %10849 = vmatprep.subr.bf16.mxu0 %v17126_v35  ;;  %v17224_v32 = vcombine.high %v4866_v28, %v4874_v37  ;;  %v4881_v35 = vld [vmem:[#allocation7 + $0x1790] sm:$0xff]  ;;  %v4970_v12 = vld [vmem:[#allocation7 + $0x1a58] sm:$0xff]  ;;  %v19634_v37 = vld [vmem:[#allocation8] sm:$0x77] }
 0x43b   :  { %11013 = vmatprep.subr.bf16.mxu1 %v17128_v40  ;;  %v4889_v40 = vld [vmem:[#allocation7 + $0x17d0] sm:$0xff] }
 0x43c   :  { %v17237_v54 = vcombine.low %v4881_v35, %v4889_v40 }
 0x43d   :  { %10850 = vmatpush1.bf16.msra.mxu0 %v17125_v45  ;;  %v17238_v45 = vcombine.high %v4881_v35, %v4889_v40  ;;  %v4977_v35 = vld [vmem:[#allocation7 + $0x1a90] sm:$0xff] }
 0x43e   :  { %11014 = vmatpush1.bf16.msra.mxu1 %v17127_v34  ;;  %10851 = vmatprep.subr.bf16.mxu0 %v17142_v47  ;;  %v17240_v34 = vcombine.high %v4882_v21, %v4890_v42  ;;  %v4897_v47 = vld [vmem:[#allocation7 + $0x1810] sm:$0xff]  ;;  %v5162_v21 = vrot.slane %v19634_v37, %v19471_v50 }
 0x43f   :  { %11015 = vmatprep.subr.bf16.mxu1 %v17144_v24  ;;  %v4905_v24 = vld [vmem:[#allocation7 + $0x1850] sm:$0xff] }
 0x440   :  { %v17253_v25 = vcombine.low %v4897_v47, %v4905_v24  ;;  %v4985_v40 = vld [vmem:[#allocation7 + $0x1ad0] sm:$0xff] }
 0x441   :  { %10852 = vmatpush1.bf16.msra.mxu0 %v17141_v59  ;;  %v17254_v59 = vcombine.high %v4897_v47, %v4905_v24  ;;  %v17334_v47 = vcombine.high %v4977_v35, %v4985_v40 }
 0x442   :  { %11016 = vmatpush1.bf16.msra.mxu1 %v17143_v60  ;;  %10853 = vmatprep.subr.bf16.mxu0 %v17158_v36  ;;  %v17256_v60 = vcombine.high %v4898_v48, %v4906_v55  ;;  %v4913_v36 = vld [vmem:[#allocation7 + $0x1890] sm:$0xff] }
 0x443   :  { %11017 = vmatprep.subr.bf16.mxu1 %v17160_v19  ;;  %v4921_v19 = vld [vmem:[#allocation7 + $0x18d0] sm:$0xff] }
 0x444   :  { %v17269_v6 = vcombine.low %v4913_v36, %v4921_v19  ;;  %v4993_v48 = vld [vmem:[#allocation7 + $0x1b10] sm:$0xff] }
 0x445   :  { %10854 = vmatpush1.bf16.msra.mxu0 %v17157_v0  ;;  %v17270_v0 = vcombine.high %v4913_v36, %v4921_v19  ;;  %v5001_v55 = vld [vmem:[#allocation7 + $0x1b50] sm:$0xff]  ;;  %v17333_v36 = vcombine.low %v4977_v35, %v4985_v40 }
 0x446   :  { %11018 = vmatpush1.bf16.msra.mxu1 %v17159_v1  ;;  %10855 = vmatprep.subr.bf16.mxu0 %v17174_v43  ;;  %v4929_v1 = vld [vmem:[#allocation7 + $0x1910] sm:$0xff] }
 0x447   :  { %11019 = vmatprep.subr.bf16.mxu1 %v17176_v3  ;;  %v4937_v43 = vld [vmem:[#allocation7 + $0x1950] sm:$0xff]  ;;  %v17272_v3 = vcombine.high %v4914_v23, %v4922_v62 }
 0x448   :  { %v17285_v52 = vcombine.low %v4929_v1, %v4937_v43  ;;  %v5041_v35 = vld [vmem:[#allocation7 + $0x1c90] sm:$0xff] }
 0x449   :  { %10856 = vmatpush1.bf16.msra.mxu0 %v17173_v8  ;;  %v17286_v8 = vcombine.high %v4929_v1, %v4937_v43  ;;  %v5017_v1 = vld [vmem:[#allocation7 + $0x1bd0] sm:$0xff] }
 0x44a   :  { %11020 = vmatpush1.bf16.msra.mxu1 %v17175_v9  ;;  %10857 = vmatprep.subr.bf16.mxu0 %v17190_v13  ;;  %v17288_v9 = vcombine.high %v4930_v38, %v4938_v4  ;;  %v4945_v13 = vld [vmem:[#allocation7 + $0x1990] sm:$0xff] }
 0x44b   :  { %11021 = vmatprep.subr.bf16.mxu1 %v17192_v10  ;;  %v4953_v10 = vld [vmem:[#allocation7 + $0x19d0] sm:$0xff] }
 0x44c   :  { %v17301_v28 = vcombine.low %v4945_v13, %v4953_v10  ;;  %v5049_v40 = vld [vmem:[#allocation7 + $0x1cd0] sm:$0xff] }
 0x44d   :  { %10858 = vmatpush1.bf16.msra.mxu0 %v17189_v17  ;;  %v17302_v17 = vcombine.high %v4945_v13, %v4953_v10  ;;  %v17349_v13 = vcombine.low %v4993_v48, %v5001_v55 }
 0x44e   :  { %11022 = vmatpush1.bf16.msra.mxu1 %v17191_v18  ;;  %10859 = vmatprep.subr.bf16.mxu0 %v17206_v20  ;;  %v17304_v18 = vcombine.high %v4946_v11, %v4954_v14  ;;  %v4961_v20 = vld [vmem:[#allocation7 + $0x1a10] sm:$0xff] }
 0x44f   :  { %11023 = vmatprep.subr.bf16.mxu1 %v17208_v22  ;;  %v4969_v22 = vld [vmem:[#allocation7 + $0x1a50] sm:$0xff] }
 0x451   :  { %10860 = vmatpush1.bf16.msra.mxu0 %v17205_v29  ;;  %v19636_v29 = vld [vmem:[#allocation8 + $0x8] sm:$0x77] }
 0x452   :  { %11024 = vmatpush1.bf16.msra.mxu1 %v17207_v30  ;;  %10861 = vmatprep.subr.bf16.mxu0 %v17222_v31  ;;  %v17303_v30 = vcombine.low %v4946_v11, %v4954_v14  ;;  %v17318_v31 = vcombine.high %v4961_v20, %v4969_v22  ;;  %v5170_v42 = vrot.slane %v19636_v29, %v19471_v50 }
 0x453   :  { %11025 = vmatprep.subr.bf16.mxu1 %v17224_v32  ;;  %v17320_v32 = vcombine.high %v4962_v53, %v4970_v12 }
 0x455   :  { %10862 = vmatpush1.bf16.msra.mxu0 %v17221_v44  ;;  %v4978_v44 = vld [vmem:[#allocation7 + $0x1a98] sm:$0xff] }
 0x456   :  { %11026 = vmatpush1.bf16.msra.mxu1 %v17223_v39  ;;  %10863 = vmatprep.subr.bf16.mxu0 %v17238_v45  ;;  %v4986_v39 = vld [vmem:[#allocation7 + $0x1ad8] sm:$0xff]  ;;  %v17317_v45 = vcombine.low %v4961_v20, %v4969_v22 }
 0x457   :  { %11027 = vmatprep.subr.bf16.mxu1 %v17240_v34  ;;  %v17319_v34 = vcombine.low %v4962_v53, %v4970_v12  ;;  %v17336_v24 = vcombine.high %v4978_v44, %v4986_v39  ;;  %v17335_v19 = vcombine.low %v4978_v44, %v4986_v39  ;;  %v5026_v20 = vld [vmem:[#allocation7 + $0x1c18] sm:$0xff]  ;;  %v11754_v12 = vrot.slane %v19634_v37, %v19486_v57 }
 0x458   :  { %v5034_v22 = vld [vmem:[#allocation7 + $0x1c58] sm:$0xff]  ;;  %v11922_v39 = vrot.slane %v19636_v29, %v19491_v33 }
 0x459   :  { %10864 = vmatpush1.bf16.msra.mxu0 %v17237_v54  ;;  %v5242_v54 = vrot.slane %v5162_v21, %v19471_v50  ;;  %v11914_v21 = vrot.slane %v19634_v37, %v19491_v33  ;;  %v5050_v44 = vld [vmem:[#allocation7 + $0x1cd8] sm:$0xff] }
 0x45a   :  { %11028 = vmatpush1.bf16.msra.mxu1 %v17239_v56  ;;  %10874 = vmatprep.subr.bf16.mxu0 %v17254_v59  ;;  %v5250_v56 = vrot.slane %v5170_v42, %v19471_v50  ;;  %v4994_v59 = vld [vmem:[#allocation7 + $0x1b18] sm:$0xff] }
 0x45b   :  { %11038 = vmatprep.subr.bf16.mxu1 %v17256_v60  ;;  %v5002_v60 = vld [vmem:[#allocation7 + $0x1b58] sm:$0xff]  ;;  %v11994_v37 = vrot.slane %v11914_v21, %v19491_v33 }
 0x45c   :  { %10866 = vmatmul.mubr.bf16.vlgmr.msra.gmra.mrb[12].mxu0 %v19604_v49  ;;  %v17351_v14 = vcombine.low %v4994_v59, %v5002_v60  ;;  %v5042_v42 = vld [vmem:[#allocation7 + $0x1c98] sm:$0xff] }
 0x45d   :  { %11030 = vmatmul.mubr.bf16.vlgmr.msra.gmra.mrb[12].mxu1 %v19604_v49  ;;  %10875 = vmatpush1.bf16.msra.mxu0 %v17253_v25  ;;  %v17350_v25 = vcombine.high %v4993_v48, %v5001_v55  ;;  %v17400_v55 = vcombine.high %v5042_v42, %v5050_v44 }
 0x45e   :  { %10906 = vmatprep.mubr.bf16.mxu0 %v19608_v61  ;;  %11039 = vmatpush1.bf16.msra.mxu1 %v17255_v63  ;;  %v17352_v63 = vcombine.high %v4994_v59, %v5002_v60  ;;  %v5058_v60 = vld [vmem:[#allocation7 + $0x1d18] sm:$0xff] }
 0x45f   :  { %11070 = vmatprep.mubr.bf16.mxu1 %v19608_v61  ;;  %10876 = vmatprep.subr.bf16.mxu0 %v17270_v0  ;;  %v5009_v0 = vld [vmem:[#allocation7 + $0x1b90] sm:$0xff] }
 0x460   :  { %11040 = vmatprep.subr.bf16.mxu1 %v17272_v3  ;;  %v17365_v53 = vcombine.low %v5009_v0, %v5017_v1 }
 0x461   :  { %10877 = vmatpush1.bf16.msra.mxu0 %v17269_v6  ;;  %v5010_v6 = vld [vmem:[#allocation7 + $0x1b98] sm:$0xff] }
 0x462   :  { %11041 = vmatpush1.bf16.msra.mxu1 %v17271_v7  ;;  %10878 = vmatprep.subr.bf16.mxu0 %v17286_v8  ;;  %v5018_v7 = vld [vmem:[#allocation7 + $0x1bd8] sm:$0xff] }
 0x463   :  { %11042 = vmatprep.subr.bf16.mxu1 %v17288_v9 }
 0x465   :  { %10879 = vmatpush1.bf16.msra.mxu0 %v17285_v52  ;;  %v17366_v52 = vcombine.high %v5009_v0, %v5017_v1 }
 0x466   :  { %11043 = vmatpush1.bf16.msra.mxu1 %v17287_v27  ;;  %10880 = vmatprep.subr.bf16.mxu0 %v17302_v17  ;;  %v17368_v27 = vcombine.high %v5010_v6, %v5018_v7  ;;  %v5025_v17 = vld [vmem:[#allocation7 + $0x1c10] sm:$0xff] }
 0x467   :  { %11044 = vmatprep.subr.bf16.mxu1 %v17304_v18  ;;  %v5033_v18 = vld [vmem:[#allocation7 + $0x1c50] sm:$0xff] }
 0x469   :  { %10881 = vmatpush1.bf16.msra.mxu0 %v17301_v28  ;;  %v17367_v28 = vcombine.low %v5010_v6, %v5018_v7  ;;  %v5074_v7 = vld [vmem:[#allocation7 + $0x1d98] sm:$0xff] }
 0x46a   :  { %11045 = vmatpush1.bf16.msra.mxu1 %v17303_v30  ;;  %10882 = vmatprep.subr.bf16.mxu0 %v17318_v31  ;;  %v17382_v30 = vcombine.high %v5025_v17, %v5033_v18  ;;  %v11762_v31 = vrot.slane %v19636_v29, %v19486_v57  ;;  %v12002_v29 = vrot.slane %v11922_v39, %v19491_v33  ;;  %v5129_v39 = vld [vmem:[#allocation7 + $0x1f50] sm:$0xff] }
 0x46b   :  { %11046 = vmatprep.subr.bf16.mxu1 %v17320_v32  ;;  %v17384_v32 = vcombine.high %v5026_v20, %v5034_v22 }
 0x46c   :  { %v11842_v48 = vrot.slane %v11762_v31, %v19486_v57  ;;  %v5106_v31 = vld [vmem:[#allocation7 + $0x1e98] sm:$0xff] }
 0x46d   :  { %10883 = vmatpush1.bf16.msra.mxu0 %v17317_v45  ;;  %v17381_v45 = vcombine.low %v5025_v17, %v5033_v18  ;;  %v5090_v17 = vld [vmem:[#allocation7 + $0x1e18] sm:$0xff] }
 0x46e   :  { %11047 = vmatpush1.bf16.msra.mxu1 %v17319_v34  ;;  %10884 = vmatprep.subr.bf16.mxu0 %v17334_v47  ;;  %v11834_v34 = vrot.slane %v11754_v12, %v19486_v57  ;;  %v17383_v47 = vcombine.low %v5026_v20, %v5034_v22  ;;  %v5098_v18 = vld [vmem:[#allocation7 + $0x1e58] sm:$0xff] }
 0x46f   :  { %v10580_v23 = vpop.f32.mrb[8].mxu0  ;;  %v10744_v62 = vpop.f32.mrb[8].mxu1  ;;  %11048 = vmatprep.subr.bf16.mxu1 %v17336_v24  ;;  %v17398_v24 = vcombine.high %v5041_v35, %v5049_v40  ;;  %v17448_v12 = vcombine.high %v5090_v17, %v5098_v18 }
 0x470   :  { %v18025_v43 = vadd.f32 %v10580_v23, %v5242_v54  ;;  %v18027_v3 = vadd.f32 %v10744_v62, %v5250_v56  ;;  %v19644_v38 = vpop.f32.mrb[9].mxu0  ;;  %v19646_v4 = vpop.f32.mrb[9].mxu1  ;;  %v5057_v54 = vld [vmem:[#allocation7 + $0x1d10] sm:$0xff]  ;;  %v17399_v62 = vcombine.low %v5042_v42, %v5050_v44 }
 0x471   :  { %v10584_v8 = vpop.f32.mrb[10].mxu0  ;;  %v10748_v9 = vpop.f32.mrb[10].mxu1  ;;  %10885 = vmatpush1.bf16.msra.mxu0 %v17333_v36  ;;  %v5065_v56 = vld [vmem:[#allocation7 + $0x1d50] sm:$0xff]  ;;  %v5066_v36 = vld [vmem:[#allocation7 + $0x1d58] sm:$0xff] }
 0x472   :  { %19050 = vtanh.f32 %v18025_v43  ;;  %11049 = vmatpush1.bf16.msra.mxu1 %v17335_v19  ;;  %v10585_v10 = vpop.f32.mrb[11].mxu0  ;;  %v10749_v11 = vpop.f32.mrb[11].mxu1  ;;  %10886 = vmatprep.subr.bf16.mxu0 %v17350_v25  ;;  %v17397_v25 = vcombine.low %v5041_v35, %v5049_v40  ;;  %v17416_v1 = vcombine.high %v5058_v60, %v5066_v36  ;;  %v5073_v43 = vld [vmem:[#allocation7 + $0x1d90] sm:$0xff]  ;;  %v5082_v8 = vld [vmem:[#allocation7 + $0x1dd8] sm:$0xff]  ;;  %v17447_v40 = vcombine.low %v5090_v17, %v5098_v18  ;;  %v4171_v17 = vld [vmem:[#allocation7 + $0x160] sm:$0xff] }
 0x473   :  { %19052 = vtanh.f32 %v18027_v3  ;;  %11050 = vmatprep.subr.bf16.mxu1 %v17352_v63  ;;  %v17414_v63 = vcombine.high %v5057_v54, %v5065_v56  ;;  %v5081_v3 = vld [vmem:[#allocation7 + $0x1dd0] sm:$0xff]  ;;  %v17415_v10 = vcombine.low %v5058_v60, %v5066_v36  ;;  %v17431_v22 = vcombine.low %v5074_v7, %v5082_v8 }
 0x474   :  { %v17430_v11 = vcombine.high %v5073_v43, %v5081_v3  ;;  %v17429_v20 = vcombine.low %v5073_v43, %v5081_v3  ;;  %v5121_v44 = vld [vmem:[#allocation7 + $0x1f10] sm:$0xff] }
 0x475   :  { %10887 = vmatpush1.bf16.msra.mxu0 %v17349_v13  ;;  %v17413_v13 = vcombine.low %v5057_v54, %v5065_v56  ;;  %v5137_v54 = vld [vmem:[#allocation7 + $0x1f90] sm:$0xff]  ;;  %v17477_v60 = vcombine.low %v5121_v44, %v5129_v39 }
 0x476   :  { %11051 = vmatpush1.bf16.msra.mxu1 %v17351_v14  ;;  %10888 = vmatprep.subr.bf16.mxu0 %v17366_v52  ;;  %v17432_v14 = vcombine.high %v5074_v7, %v5082_v8  ;;  %v5089_v52 = vld [vmem:[#allocation7 + $0x1e10] sm:$0xff]  ;;  %v4147_v7 = vld [vmem:[#allocation7 + $0xa0] sm:$0xff] }
 0x477   :  { %11052 = vmatprep.subr.bf16.mxu1 %v17368_v27  ;;  %v5097_v27 = vld [vmem:[#allocation7 + $0x1e50] sm:$0xff]  ;;  %v4155_v8 = vld [vmem:[#allocation7 + $0xe0] sm:$0xff] }
 0x478   :  { %v17445_v35 = vcombine.low %v5089_v52, %v5097_v27  ;;  %v5145_v56 = vld [vmem:[#allocation7 + $0x1fd0] sm:$0xff] }
 0x479   :  { %10889 = vmatpush1.bf16.msra.mxu0 %v17365_v53  ;;  %v17446_v53 = vcombine.high %v5089_v52, %v5097_v27  ;;  %v16506_v52 = vcombine.high %v4147_v7, %v4155_v8  ;;  %v4163_v27 = vld [vmem:[#allocation7 + $0x120] sm:$0xff] }
 0x47a   :  { %11053 = vmatpush1.bf16.msra.mxu1 %v17367_v28  ;;  %10890 = vmatprep.subr.bf16.mxu0 %v17382_v30  ;;  %v5105_v28 = vld [vmem:[#allocation7 + $0x1e90] sm:$0xff] }
 0x47b   :  { %11054 = vmatprep.subr.bf16.mxu1 %v17384_v32  ;;  %v5113_v30 = vld [vmem:[#allocation7 + $0x1ed0] sm:$0xff]  ;;  %v5114_v32 = vld [vmem:[#allocation7 + $0x1ed8] sm:$0xff] }
 0x47c   :  { %v19051_v59 = vpop.eup %19050  ;;  %v17462_v21 = vcombine.high %v5105_v28, %v5113_v30  ;;  %v17464_v42 = vcombine.high %v5106_v31, %v5114_v32 }
 0x47d   :  { %v19053_v19 = vpop.eup %19052  ;;  %10891 = vmatpush1.bf16.msra.mxu0 %v17381_v45  ;;  %v11895_v23 = vmul.f32 %v19051_v59, %v11834_v34  ;;  %v5122_v45 = vld [vmem:[#allocation7 + $0x1f18] sm:$0xff] }
 0x47e   :  { %11055 = vmatpush1.bf16.msra.mxu1 %v17383_v47  ;;  %10892 = vmatprep.subr.bf16.mxu0 %v17398_v24  ;;  %v11897_v0 = vmul.f32 %v19053_v19, %v11842_v48  ;;  %v5130_v34 = vld [vmem:[#allocation7 + $0x1f58] sm:$0xff]  ;;  %v17461_v47 = vcombine.low %v5105_v28, %v5113_v30  ;;  %v17463_v24 = vcombine.low %v5106_v31, %v5114_v32  ;;  %v4179_v31 = vld [vmem:[#allocation7 + $0x1a0] sm:$0xff] }
 0x47f   :  { %11056 = vmatprep.subr.bf16.mxu1 %v17400_v55  ;;  %v19660_v6 = vadd.f32 %v11994_v37, %v11895_v23  ;;  %v17478_v48 = vcombine.high %v5121_v44, %v5129_v39  ;;  %v17480_v55 = vcombine.high %v5122_v45, %v5130_v34  ;;  %v5138_v37 = vld [vmem:[#allocation7 + $0x1f98] sm:$0xff]  ;;  %v17479_v36 = vcombine.low %v5122_v45, %v5130_v34  ;;  %v4139_v23 = vld [vmem:[#allocation7 + $0x60] sm:$0xff] }
 0x480   :  { %v19662_v9 = vadd.f32 %v12002_v29, %v11897_v0  ;;  %v5146_v59 = vld [vmem:[#allocation7 + $0x1fd8] sm:$0xff]  ;;  %v17494_v29 = vcombine.high %v5137_v54, %v5145_v56  ;;  %v17493_v0 = vcombine.low %v5137_v54, %v5145_v56  ;;  %v16522_v28 = vcombine.high %v4163_v27, %v4171_v17  ;;  %v4187_v32 = vld [vmem:[#allocation7 + $0x1e0] sm:$0xff] }
 0x481   :  { %10893 = vmatpush1.bf16.msra.mxu0 %v17397_v25  ;;  %v17496_v19 = vcombine.high %v5138_v37, %v5146_v59  ;;  %v4131_v25 = vld [vmem:[#allocation7 + $0x20] sm:$0xff]  ;;  %v16538_v44 = vcombine.high %v4179_v31, %v4187_v32 }
 0x482   :  { %11057 = vmatpush1.bf16.msra.mxu1 %v17399_v62  ;;  %10894 = vmatprep.subr.bf16.mxu0 %v17414_v63  ;;  %v4132_v62 = vld [vmem:[#allocation7 + $0x28] sm:$0xff]  ;;  %v16490_v43 = vcombine.high %v4131_v25, %v4139_v23  ;;  %v4195_v45 = vld [vmem:[#allocation7 + $0x220] sm:$0xff] }
 0x483   :  { %11058 = vmatprep.subr.bf16.mxu1 %v17416_v1  ;;  %v4140_v63 = vld [vmem:[#allocation7 + $0x68] sm:$0xff]  ;;  %v17495_v1 = vcombine.low %v5138_v37, %v5146_v59  ;;  %v4203_v34 = vld [vmem:[#allocation7 + $0x260] sm:$0xff] }
 0x484   :  { %v16492_v3 = vcombine.high %v4132_v62, %v4140_v63  ;;  %v16554_v54 = vcombine.high %v4195_v45, %v4203_v34  ;;  %v4211_v37 = vld [vmem:[#allocation7 + $0x2a0] sm:$0xff] }
 0x485   :  { %10895 = vmatpush1.bf16.msra.mxu0 %v17413_v13  ;;  %v16489_v13 = vcombine.low %v4131_v25, %v4139_v23  ;;  %v4219_v59 = vld [vmem:[#allocation7 + $0x2e0] sm:$0xff] }
 0x486   :  { %11059 = vmatpush1.bf16.msra.mxu1 %v17415_v10  ;;  %10896 = vmatprep.subr.bf16.mxu0 %v17430_v11  ;;  %v4148_v10 = vld [vmem:[#allocation7 + $0xa8] sm:$0xff]  ;;  %v16570_v25 = vcombine.high %v4211_v37, %v4219_v59 }
 0x487   :  { %11060 = vmatprep.subr.bf16.mxu1 %v17432_v14  ;;  %v4156_v11 = vld [vmem:[#allocation7 + $0xe8] sm:$0xff]  ;;  %v16491_v14 = vcombine.low %v4132_v62, %v4140_v63  ;;  %v4227_v62 = vld [vmem:[#allocation7 + $0x320] sm:$0xff] }
 0x488   :  { %v16508_v18 = vcombine.high %v4148_v10, %v4156_v11  ;;  %v4235_v63 = vld [vmem:[#allocation7 + $0x360] sm:$0xff] }
 0x489   :  { %10897 = vmatpush1.bf16.msra.mxu0 %v17429_v20  ;;  %v4164_v20 = vld [vmem:[#allocation7 + $0x128] sm:$0xff] }
 0x48a   :  { %11061 = vmatpush1.bf16.msra.mxu1 %v17431_v22  ;;  %10898 = vmatprep.subr.bf16.mxu0 %v17446_v53  ;;  %v4172_v22 = vld [vmem:[#allocation7 + $0x168] sm:$0xff]  ;;  %v16505_v53 = vcombine.low %v4147_v7, %v4155_v8  ;;  %v16586_v7 = vcombine.high %v4227_v62, %v4235_v63 }
 0x48b   :  { %11062 = vmatprep.subr.bf16.mxu1 %v17448_v12  ;;  %v16507_v12 = vcombine.low %v4148_v10, %v4156_v11  ;;  %v16524_v30 = vcombine.high %v4164_v20, %v4172_v22  ;;  %v4251_v10 = vld [vmem:[#allocation7 + $0x3e0] sm:$0xff]  ;;  %v4244_v11 = vld [vmem:[#allocation7 + $0x3a8] sm:$0xff] }
 0x48d   :  { %10899 = vmatpush1.bf16.msra.mxu0 %v17445_v35  ;;  %v4180_v35 = vld [vmem:[#allocation7 + $0x1a8] sm:$0xff] }
 0x48e   :  { %11063 = vmatpush1.bf16.msra.mxu1 %v17447_v40  ;;  %10900 = vmatprep.subr.bf16.mxu0 %v17462_v21  ;;  %v4188_v40 = vld [vmem:[#allocation7 + $0x1e8] sm:$0xff]  ;;  %v16521_v21 = vcombine.low %v4163_v27, %v4171_v17 }
 0x48f   :  { %11064 = vmatprep.subr.bf16.mxu1 %v17464_v42  ;;  %v16523_v42 = vcombine.low %v4164_v20, %v4172_v22  ;;  %v16540_v39 = vcombine.high %v4180_v35, %v4188_v40  ;;  %v4259_v20 = vld [vmem:[#allocation7 + $0x420] sm:$0xff] }
 0x490   :  { %v4267_v22 = vld [vmem:[#allocation7 + $0x460] sm:$0xff] }
 0x491   :  { %10901 = vmatpush1.bf16.msra.mxu0 %v17461_v47  ;;  %v4196_v47 = vld [vmem:[#allocation7 + $0x228] sm:$0xff] }
 0x492   :  { %11065 = vmatpush1.bf16.msra.mxu1 %v17463_v24  ;;  %10902 = vmatprep.subr.bf16.mxu0 %v17478_v48  ;;  %v4204_v24 = vld [vmem:[#allocation7 + $0x268] sm:$0xff]  ;;  %v16537_v48 = vcombine.low %v4179_v31, %v4187_v32  ;;  %v16618_v31 = vcombine.high %v4259_v20, %v4267_v22 }
 0x493   :  { %11066 = vmatprep.subr.bf16.mxu1 %v17480_v55  ;;  %v16539_v55 = vcombine.low %v4180_v35, %v4188_v40  ;;  %v16556_v56 = vcombine.high %v4196_v47, %v4204_v24  ;;  %v4275_v35 = vld [vmem:[#allocation7 + $0x4a0] sm:$0xff] }
 0x494   :  { %v4283_v40 = vld [vmem:[#allocation7 + $0x4e0] sm:$0xff] }
 0x495   :  { %10903 = vmatpush1.bf16.msra.mxu0 %v17477_v60  ;;  %v4212_v60 = vld [vmem:[#allocation7 + $0x2a8] sm:$0xff] }
 0x496   :  { %11067 = vmatpush1.bf16.msra.mxu1 %v17479_v36  ;;  %10904 = vmatprep.subr.bf16.mxu0 %v17494_v29  ;;  %v4220_v36 = vld [vmem:[#allocation7 + $0x2e8] sm:$0xff]  ;;  %v16553_v29 = vcombine.low %v4195_v45, %v4203_v34  ;;  %v16634_v45 = vcombine.high %v4275_v35, %v4283_v40 }
 0x497   :  { %11068 = vmatprep.subr.bf16.mxu1 %v17496_v19  ;;  %v16555_v19 = vcombine.low %v4196_v47, %v4204_v24  ;;  %v16572_v23 = vcombine.high %v4212_v60, %v4220_v36  ;;  %v4291_v47 = vld [vmem:[#allocation7 + $0x520] sm:$0xff] }
 0x498   :  { %v4299_v24 = vld [vmem:[#allocation7 + $0x560] sm:$0xff] }
 0x499   :  { %10905 = vmatpush1.bf16.msra.mxu0 %v17493_v0  ;;  %v4228_v0 = vld [vmem:[#allocation7 + $0x328] sm:$0xff] }
 0x49a   :  { %11069 = vmatpush1.bf16.msra.mxu1 %v17495_v1  ;;  %11079 = vmatprep.subr.bf16.mxu0 %v16490_v43  ;;  %v4236_v1 = vld [vmem:[#allocation7 + $0x368] sm:$0xff]  ;;  %v16569_v43 = vcombine.low %v4211_v37, %v4219_v59  ;;  %v16650_v37 = vcombine.high %v4291_v47, %v4299_v24 }
 0x49b   :  { %11243 = vmatprep.subr.bf16.mxu1 %v16492_v3  ;;  %v16571_v3 = vcombine.low %v4212_v60, %v4220_v36  ;;  %v16588_v8 = vcombine.high %v4228_v0, %v4236_v1  ;;  %v16587_v27 = vcombine.low %v4228_v0, %v4236_v1  ;;  %v4307_v60 = vld [vmem:[#allocation7 + $0x5a0] sm:$0xff] }
 0x49c   :  { %10907 = vmatmul.mubr.bf16.vlgmr.msra.gmra.mrb[12].mxu0 %v19616_v16  ;;  %v4315_v36 = vld [vmem:[#allocation7 + $0x5e0] sm:$0xff] }
 0x49d   :  { %11071 = vmatmul.mubr.bf16.vlgmr.msra.gmra.mrb[12].mxu1 %v19616_v16  ;;  %11080 = vmatpush1.bf16.msra.mxu0 %v16489_v13  ;;  %v4243_v13 = vld [vmem:[#allocation7 + $0x3a0] sm:$0xff] }
 0x49e   :  { %11111 = vmatprep.mubr.bf16.mxu0 %v19528_v15  ;;  %11244 = vmatpush1.bf16.msra.mxu1 %v16491_v14  ;;  %v4252_v14 = vld [vmem:[#allocation7 + $0x3e8] sm:$0xff]  ;;  %v16602_v17 = vcombine.high %v4243_v13, %v4251_v10  ;;  %v4323_v0 = vld [vmem:[#allocation7 + $0x620] sm:$0xff] }
 0x49f   :  { %11275 = vmatprep.mubr.bf16.mxu1 %v19528_v15  ;;  %11081 = vmatprep.subr.bf16.mxu0 %v16506_v52  ;;  %v16585_v52 = vcombine.low %v4227_v62, %v4235_v63  ;;  %v16666_v62 = vcombine.high %v4307_v60, %v4315_v36  ;;  %v4331_v1 = vld [vmem:[#allocation7 + $0x660] sm:$0xff] }
 0x4a0   :  { %11245 = vmatprep.subr.bf16.mxu1 %v16508_v18  ;;  %v16604_v18 = vcombine.high %v4244_v11, %v4252_v14 }
 0x4a1   :  { %11082 = vmatpush1.bf16.msra.mxu0 %v16505_v53  ;;  %v4260_v53 = vld [vmem:[#allocation7 + $0x428] sm:$0xff] }
 0x4a2   :  { %11246 = vmatpush1.bf16.msra.mxu1 %v16507_v12  ;;  %11083 = vmatprep.subr.bf16.mxu0 %v16522_v28  ;;  %v4268_v12 = vld [vmem:[#allocation7 + $0x468] sm:$0xff]  ;;  %v16601_v28 = vcombine.low %v4243_v13, %v4251_v10  ;;  %v16682_v13 = vcombine.high %v4323_v0, %v4331_v1 }
 0x4a3   :  { %11247 = vmatprep.subr.bf16.mxu1 %v16524_v30  ;;  %v16603_v30 = vcombine.low %v4244_v11, %v4252_v14  ;;  %v16620_v32 = vcombine.high %v4260_v53, %v4268_v12  ;;  %v4339_v11 = vld [vmem:[#allocation7 + $0x6a0] sm:$0xff] }
 0x4a4   :  { %v4347_v14 = vld [vmem:[#allocation7 + $0x6e0] sm:$0xff] }
 0x4a5   :  { %11084 = vmatpush1.bf16.msra.mxu0 %v16521_v21  ;;  %v4276_v21 = vld [vmem:[#allocation7 + $0x4a8] sm:$0xff] }
 0x4a6   :  { %11248 = vmatpush1.bf16.msra.mxu1 %v16523_v42  ;;  %11085 = vmatprep.subr.bf16.mxu0 %v16538_v44  ;;  %v4284_v42 = vld [vmem:[#allocation7 + $0x4e8] sm:$0xff]  ;;  %v16617_v44 = vcombine.low %v4259_v20, %v4267_v22  ;;  %v16698_v20 = vcombine.high %v4339_v11, %v4347_v14 }
 0x4a7   :  { %11249 = vmatprep.subr.bf16.mxu1 %v16540_v39  ;;  %v16619_v39 = vcombine.low %v4260_v53, %v4268_v12  ;;  %v16636_v34 = vcombine.high %v4276_v21, %v4284_v42  ;;  %v4355_v53 = vld [vmem:[#allocation7 + $0x720] sm:$0xff] }
 0x4a8   :  { %v4363_v12 = vld [vmem:[#allocation7 + $0x760] sm:$0xff] }
 0x4a9   :  { %11086 = vmatpush1.bf16.msra.mxu0 %v16537_v48  ;;  %v4292_v48 = vld [vmem:[#allocation7 + $0x528] sm:$0xff] }
 0x4aa   :  { %11250 = vmatpush1.bf16.msra.mxu1 %v16539_v55  ;;  %11087 = vmatprep.subr.bf16.mxu0 %v16554_v54  ;;  %v4300_v55 = vld [vmem:[#allocation7 + $0x568] sm:$0xff]  ;;  %v16633_v54 = vcombine.low %v4275_v35, %v4283_v40  ;;  %v16714_v35 = vcombine.high %v4355_v53, %v4363_v12 }
 0x4ab   :  { %11251 = vmatprep.subr.bf16.mxu1 %v16556_v56  ;;  %v16635_v56 = vcombine.low %v4276_v21, %v4284_v42  ;;  %v16652_v59 = vcombine.high %v4292_v48, %v4300_v55  ;;  %v4371_v21 = vld [vmem:[#allocation7 + $0x7a0] sm:$0xff] }
 0x4ac   :  { %v4379_v42 = vld [vmem:[#allocation7 + $0x7e0] sm:$0xff] }
 0x4ad   :  { %11088 = vmatpush1.bf16.msra.mxu0 %v16553_v29  ;;  %v4308_v29 = vld [vmem:[#allocation7 + $0x5a8] sm:$0xff] }
 0x4ae   :  { %11252 = vmatpush1.bf16.msra.mxu1 %v16555_v19  ;;  %11089 = vmatprep.subr.bf16.mxu0 %v16570_v25  ;;  %v4316_v19 = vld [vmem:[#allocation7 + $0x5e8] sm:$0xff]  ;;  %v16649_v25 = vcombine.low %v4291_v47, %v4299_v24  ;;  %v16730_v47 = vcombine.high %v4371_v21, %v4379_v42 }
 0x4af   :  { %11253 = vmatprep.subr.bf16.mxu1 %v16572_v23  ;;  %v16651_v23 = vcombine.low %v4292_v48, %v4300_v55  ;;  %v16668_v63 = vcombine.high %v4308_v29, %v4316_v19  ;;  %v4387_v48 = vld [vmem:[#allocation7 + $0x820] sm:$0xff] }
 0x4b0   :  { %v4395_v55 = vld [vmem:[#allocation7 + $0x860] sm:$0xff] }
 0x4b1   :  { %11090 = vmatpush1.bf16.msra.mxu0 %v16569_v43  ;;  %v4324_v43 = vld [vmem:[#allocation7 + $0x628] sm:$0xff] }
 0x4b2   :  { %11254 = vmatpush1.bf16.msra.mxu1 %v16571_v3  ;;  %11091 = vmatprep.subr.bf16.mxu0 %v16586_v7  ;;  %v4332_v3 = vld [vmem:[#allocation7 + $0x668] sm:$0xff]  ;;  %v16665_v7 = vcombine.low %v4307_v60, %v4315_v36  ;;  %v16746_v60 = vcombine.high %v4387_v48, %v4395_v55 }
 0x4b3   :  { %11255 = vmatprep.subr.bf16.mxu1 %v16588_v8  ;;  %v16667_v8 = vcombine.low %v4308_v29, %v4316_v19  ;;  %v16684_v10 = vcombine.high %v4324_v43, %v4332_v3  ;;  %v4403_v29 = vld [vmem:[#allocation7 + $0x8a0] sm:$0xff] }
 0x4b4   :  { %v4411_v19 = vld [vmem:[#allocation7 + $0x8e0] sm:$0xff] }
 0x4b5   :  { %11092 = vmatpush1.bf16.msra.mxu0 %v16585_v52  ;;  %v4340_v52 = vld [vmem:[#allocation7 + $0x6a8] sm:$0xff] }
 0x4b6   :  { %11256 = vmatpush1.bf16.msra.mxu1 %v16587_v27  ;;  %11093 = vmatprep.subr.bf16.mxu0 %v16602_v17  ;;  %v4348_v27 = vld [vmem:[#allocation7 + $0x6e8] sm:$0xff]  ;;  %v16681_v17 = vcombine.low %v4323_v0, %v4331_v1  ;;  %v16762_v0 = vcombine.high %v4403_v29, %v4411_v19  ;;  %v4419_v1 = vld [vmem:[#allocation7 + $0x920] sm:$0xff] }
 0x4b7   :  { %11257 = vmatprep.subr.bf16.mxu1 %v16604_v18  ;;  %v16683_v18 = vcombine.low %v4324_v43, %v4332_v3  ;;  %v16700_v22 = vcombine.high %v4340_v52, %v4348_v27  ;;  %v4427_v43 = vld [vmem:[#allocation7 + $0x960] sm:$0xff] }
 0x4b9   :  { %11094 = vmatpush1.bf16.msra.mxu0 %v16601_v28  ;;  %v4356_v28 = vld [vmem:[#allocation7 + $0x728] sm:$0xff] }
 0x4ba   :  { %11258 = vmatpush1.bf16.msra.mxu1 %v16603_v30  ;;  %11095 = vmatprep.subr.bf16.mxu0 %v16618_v31  ;;  %v4364_v30 = vld [vmem:[#allocation7 + $0x768] sm:$0xff]  ;;  %v16697_v31 = vcombine.low %v4339_v11, %v4347_v14  ;;  %v16778_v11 = vcombine.high %v4419_v1, %v4427_v43 }
 0x4bb   :  { %11259 = vmatprep.subr.bf16.mxu1 %v16620_v32  ;;  %v16699_v32 = vcombine.low %v4340_v52, %v4348_v27  ;;  %v16716_v40 = vcombine.high %v4356_v28, %v4364_v30  ;;  %v4435_v52 = vld [vmem:[#allocation7 + $0x9a0] sm:$0xff] }
 0x4bc   :  { %v4443_v27 = vld [vmem:[#allocation7 + $0x9e0] sm:$0xff] }
 0x4bd   :  { %11096 = vmatpush1.bf16.msra.mxu0 %v16617_v44  ;;  %v4372_v44 = vld [vmem:[#allocation7 + $0x7a8] sm:$0xff] }
 0x4be   :  { %11260 = vmatpush1.bf16.msra.mxu1 %v16619_v39  ;;  %11097 = vmatprep.subr.bf16.mxu0 %v16634_v45  ;;  %v4380_v39 = vld [vmem:[#allocation7 + $0x7e8] sm:$0xff]  ;;  %v16713_v45 = vcombine.low %v4355_v53, %v4363_v12  ;;  %v16794_v53 = vcombine.high %v4435_v52, %v4443_v27 }
 0x4bf   :  { %11261 = vmatprep.subr.bf16.mxu1 %v16636_v34  ;;  %v16715_v34 = vcombine.low %v4356_v28, %v4364_v30  ;;  %v16732_v24 = vcombine.high %v4372_v44, %v4380_v39  ;;  %v4451_v28 = vld [vmem:[#allocation7 + $0xa20] sm:$0xff] }
 0x4c0   :  { %v4459_v30 = vld [vmem:[#allocation7 + $0xa60] sm:$0xff] }
 0x4c1   :  { %11098 = vmatpush1.bf16.msra.mxu0 %v16633_v54  ;;  %v4388_v54 = vld [vmem:[#allocation7 + $0x828] sm:$0xff] }
 0x4c2   :  { %11262 = vmatpush1.bf16.msra.mxu1 %v16635_v56  ;;  %11099 = vmatprep.subr.bf16.mxu0 %v16650_v37  ;;  %v4396_v56 = vld [vmem:[#allocation7 + $0x868] sm:$0xff]  ;;  %v16729_v37 = vcombine.low %v4371_v21, %v4379_v42  ;;  %v16810_v21 = vcombine.high %v4451_v28, %v4459_v30 }
 0x4c3   :  { %11263 = vmatprep.subr.bf16.mxu1 %v16652_v59  ;;  %v16731_v59 = vcombine.low %v4372_v44, %v4380_v39  ;;  %v16748_v36 = vcombine.high %v4388_v54, %v4396_v56  ;;  %v4467_v44 = vld [vmem:[#allocation7 + $0xaa0] sm:$0xff] }
 0x4c4   :  { %v4475_v39 = vld [vmem:[#allocation7 + $0xae0] sm:$0xff] }
 0x4c5   :  { %11100 = vmatpush1.bf16.msra.mxu0 %v16649_v25  ;;  %v16745_v25 = vcombine.low %v4387_v48, %v4395_v55  ;;  %v16826_v48 = vcombine.high %v4467_v44, %v4475_v39 }
 0x4c6   :  { %11264 = vmatpush1.bf16.msra.mxu1 %v16651_v23  ;;  %11101 = vmatprep.subr.bf16.mxu0 %v16666_v62  ;;  %v4404_v23 = vld [vmem:[#allocation7 + $0x8a8] sm:$0xff] }
 0x4c7   :  { %11265 = vmatprep.subr.bf16.mxu1 %v16668_v63  ;;  %v4412_v62 = vld [vmem:[#allocation7 + $0x8e8] sm:$0xff]  ;;  %v16747_v63 = vcombine.low %v4388_v54, %v4396_v56  ;;  %v4483_v54 = vld [vmem:[#allocation7 + $0xb20] sm:$0xff] }
 0x4c8   :  { %v16764_v3 = vcombine.high %v4404_v23, %v4412_v62  ;;  %v4491_v56 = vld [vmem:[#allocation7 + $0xb60] sm:$0xff] }
 0x4c9   :  { %11102 = vmatpush1.bf16.msra.mxu0 %v16665_v7  ;;  %v4420_v7 = vld [vmem:[#allocation7 + $0x928] sm:$0xff] }
 0x4ca   :  { %11266 = vmatpush1.bf16.msra.mxu1 %v16667_v8  ;;  %11103 = vmatprep.subr.bf16.mxu0 %v16682_v13  ;;  %v4428_v8 = vld [vmem:[#allocation7 + $0x968] sm:$0xff]  ;;  %v16761_v13 = vcombine.low %v4403_v29, %v4411_v19  ;;  %v16842_v29 = vcombine.high %v4483_v54, %v4491_v56 }
 0x4cb   :  { %11267 = vmatprep.subr.bf16.mxu1 %v16684_v10  ;;  %v16763_v10 = vcombine.low %v4404_v23, %v4412_v62  ;;  %v16780_v14 = vcombine.high %v4420_v7, %v4428_v8  ;;  %v4507_v23 = vld [vmem:[#allocation7 + $0xbe0] sm:$0xff]  ;;  %v4500_v62 = vld [vmem:[#allocation7 + $0xba8] sm:$0xff] }
 0x4cd   :  { %11104 = vmatpush1.bf16.msra.mxu0 %v16681_v17  ;;  %v4436_v17 = vld [vmem:[#allocation7 + $0x9a8] sm:$0xff] }
 0x4ce   :  { %11268 = vmatpush1.bf16.msra.mxu1 %v16683_v18  ;;  %11105 = vmatprep.subr.bf16.mxu0 %v16698_v20  ;;  %v4444_v18 = vld [vmem:[#allocation7 + $0x9e8] sm:$0xff]  ;;  %v16777_v20 = vcombine.low %v4419_v1, %v4427_v43 }
 0x4cf   :  { %11269 = vmatprep.subr.bf16.mxu1 %v16700_v22  ;;  %v16779_v22 = vcombine.low %v4420_v7, %v4428_v8  ;;  %v16796_v12 = vcombine.high %v4436_v17, %v4444_v18  ;;  %v4515_v7 = vld [vmem:[#allocation7 + $0xc20] sm:$0xff] }
 0x4d0   :  { %v4523_v8 = vld [vmem:[#allocation7 + $0xc60] sm:$0xff] }
 0x4d1   :  { %11106 = vmatpush1.bf16.msra.mxu0 %v16697_v31  ;;  %v4452_v31 = vld [vmem:[#allocation7 + $0xa28] sm:$0xff] }
 0x4d2   :  { %11270 = vmatpush1.bf16.msra.mxu1 %v16699_v32  ;;  %11107 = vmatprep.subr.bf16.mxu0 %v16714_v35  ;;  %v4460_v32 = vld [vmem:[#allocation7 + $0xa68] sm:$0xff]  ;;  %v16793_v35 = vcombine.low %v4435_v52, %v4443_v27  ;;  %v16874_v52 = vcombine.high %v4515_v7, %v4523_v8 }
 0x4d3   :  { %11271 = vmatprep.subr.bf16.mxu1 %v16716_v40  ;;  %v16795_v40 = vcombine.low %v4436_v17, %v4444_v18  ;;  %v16812_v42 = vcombine.high %v4452_v31, %v4460_v32  ;;  %v4531_v17 = vld [vmem:[#allocation7 + $0xca0] sm:$0xff] }
 0x4d4   :  { %v4539_v18 = vld [vmem:[#allocation7 + $0xce0] sm:$0xff] }
 0x4d5   :  { %11108 = vmatpush1.bf16.msra.mxu0 %v16713_v45  ;;  %v4468_v45 = vld [vmem:[#allocation7 + $0xaa8] sm:$0xff] }
 0x4d6   :  { %11272 = vmatpush1.bf16.msra.mxu1 %v16715_v34  ;;  %11109 = vmatprep.subr.bf16.mxu0 %v16730_v47  ;;  %v4476_v34 = vld [vmem:[#allocation7 + $0xae8] sm:$0xff]  ;;  %v16809_v47 = vcombine.low %v4451_v28, %v4459_v30  ;;  %v16890_v28 = vcombine.high %v4531_v17, %v4539_v18 }
 0x4d7   :  { %11273 = vmatprep.subr.bf16.mxu1 %v16732_v24  ;;  %v16811_v24 = vcombine.low %v4452_v31, %v4460_v32  ;;  %v16828_v55 = vcombine.high %v4468_v45, %v4476_v34  ;;  %v4547_v31 = vld [vmem:[#allocation7 + $0xd20] sm:$0xff] }
 0x4d8   :  { %v4555_v32 = vld [vmem:[#allocation7 + $0xd60] sm:$0xff] }
 0x4d9   :  { %11110 = vmatpush1.bf16.msra.mxu0 %v16729_v37  ;;  %v4484_v37 = vld [vmem:[#allocation7 + $0xb28] sm:$0xff] }
 0x4da   :  { %11274 = vmatpush1.bf16.msra.mxu1 %v16731_v59  ;;  %11120 = vmatprep.subr.bf16.mxu0 %v16746_v60  ;;  %v4492_v59 = vld [vmem:[#allocation7 + $0xb68] sm:$0xff]  ;;  %v16825_v60 = vcombine.low %v4467_v44, %v4475_v39  ;;  %v16906_v44 = vcombine.high %v4547_v31, %v4555_v32 }
 0x4db   :  { %11284 = vmatprep.subr.bf16.mxu1 %v16748_v36  ;;  %v16827_v36 = vcombine.low %v4468_v45, %v4476_v34  ;;  %v16844_v19 = vcombine.high %v4484_v37, %v4492_v59  ;;  %v16843_v1 = vcombine.low %v4484_v37, %v4492_v59  ;;  %v4563_v45 = vld [vmem:[#allocation7 + $0xda0] sm:$0xff] }
 0x4dc   :  { %11112 = vmatmul.mubr.bf16.vlgmr.msra.gmra.mrb[16].mxu0 %v19546_v2  ;;  %v4571_v34 = vld [vmem:[#allocation7 + $0xde0] sm:$0xff] }
 0x4dd   :  { %11276 = vmatmul.mubr.bf16.vlgmr.msra.gmra.mrb[16].mxu1 %v19546_v2  ;;  %11121 = vmatpush1.bf16.msra.mxu0 %v16745_v25  ;;  %v4499_v25 = vld [vmem:[#allocation7 + $0xba0] sm:$0xff] }
 0x4de   :  { %11152 = vmatprep.mubr.bf16.mxu0 %v19548_v5  ;;  %11285 = vmatpush1.bf16.msra.mxu1 %v16747_v63  ;;  %v4508_v63 = vld [vmem:[#allocation7 + $0xbe8] sm:$0xff]  ;;  %v16858_v43 = vcombine.high %v4499_v25, %v4507_v23  ;;  %v4579_v37 = vld [vmem:[#allocation7 + $0xe20] sm:$0xff] }
 0x4df   :  { %11316 = vmatprep.mubr.bf16.mxu1 %v19548_v5  ;;  %11122 = vmatprep.subr.bf16.mxu0 %v16762_v0  ;;  %v16841_v0 = vcombine.low %v4483_v54, %v4491_v56  ;;  %v16922_v54 = vcombine.high %v4563_v45, %v4571_v34  ;;  %v4587_v59 = vld [vmem:[#allocation7 + $0xe60] sm:$0xff] }
 0x4e0   :  { %11286 = vmatprep.subr.bf16.mxu1 %v16764_v3  ;;  %v16860_v3 = vcombine.high %v4500_v62, %v4508_v63 }
 0x4e1   :  { %11123 = vmatpush1.bf16.msra.mxu0 %v16761_v13  ;;  %v4516_v13 = vld [vmem:[#allocation7 + $0xc28] sm:$0xff] }
 0x4e2   :  { %11287 = vmatpush1.bf16.msra.mxu1 %v16763_v10  ;;  %11124 = vmatprep.subr.bf16.mxu0 %v16778_v11  ;;  %v4524_v10 = vld [vmem:[#allocation7 + $0xc68] sm:$0xff]  ;;  %v16857_v11 = vcombine.low %v4499_v25, %v4507_v23  ;;  %v16938_v25 = vcombine.high %v4579_v37, %v4587_v59 }
 0x4e3   :  { %11288 = vmatprep.subr.bf16.mxu1 %v16780_v14  ;;  %v16859_v14 = vcombine.low %v4500_v62, %v4508_v63  ;;  %v16876_v27 = vcombine.high %v4516_v13, %v4524_v10  ;;  %v4595_v62 = vld [vmem:[#allocation7 + $0xea0] sm:$0xff] }
 0x4e4   :  { %v4603_v63 = vld [vmem:[#allocation7 + $0xee0] sm:$0xff] }
 0x4e5   :  { %11125 = vmatpush1.bf16.msra.mxu0 %v16777_v20  ;;  %v4532_v20 = vld [vmem:[#allocation7 + $0xca8] sm:$0xff] }
 0x4e6   :  { %11289 = vmatpush1.bf16.msra.mxu1 %v16779_v22  ;;  %11126 = vmatprep.subr.bf16.mxu0 %v16794_v53  ;;  %v4540_v22 = vld [vmem:[#allocation7 + $0xce8] sm:$0xff]  ;;  %v16873_v53 = vcombine.low %v4515_v7, %v4523_v8  ;;  %v16954_v7 = vcombine.high %v4595_v62, %v4603_v63 }
 0x4e7   :  { %11290 = vmatprep.subr.bf16.mxu1 %v16796_v12  ;;  %v16875_v12 = vcombine.low %v4516_v13, %v4524_v10  ;;  %v16892_v30 = vcombine.high %v4532_v20, %v4540_v22  ;;  %v4611_v13 = vld [vmem:[#allocation7 + $0xf20] sm:$0xff] }
 0x4e8   :  { %v4619_v10 = vld [vmem:[#allocation7 + $0xf60] sm:$0xff] }
 0x4e9   :  { %11127 = vmatpush1.bf16.msra.mxu0 %v16793_v35  ;;  %v4548_v35 = vld [vmem:[#allocation7 + $0xd28] sm:$0xff] }
 0x4ea   :  { %11291 = vmatpush1.bf16.msra.mxu1 %v16795_v40  ;;  %11128 = vmatprep.subr.bf16.mxu0 %v16810_v21  ;;  %v4556_v40 = vld [vmem:[#allocation7 + $0xd68] sm:$0xff]  ;;  %v16889_v21 = vcombine.low %v4531_v17, %v4539_v18  ;;  %v16970_v17 = vcombine.high %v4611_v13, %v4619_v10 }
 0x4eb   :  { %11292 = vmatprep.subr.bf16.mxu1 %v16812_v42  ;;  %v16891_v42 = vcombine.low %v4532_v20, %v4540_v22  ;;  %v16908_v39 = vcombine.high %v4548_v35, %v4556_v40  ;;  %v4627_v20 = vld [vmem:[#allocation7 + $0xfa0] sm:$0xff] }
 0x4ec   :  { %v4635_v22 = vld [vmem:[#allocation7 + $0xfe0] sm:$0xff] }
 0x4ed   :  { %11129 = vmatpush1.bf16.msra.mxu0 %v16809_v47  ;;  %v4564_v47 = vld [vmem:[#allocation7 + $0xda8] sm:$0xff] }
 0x4ee   :  { %11293 = vmatpush1.bf16.msra.mxu1 %v16811_v24  ;;  %11130 = vmatprep.subr.bf16.mxu0 %v16826_v48  ;;  %v4572_v24 = vld [vmem:[#allocation7 + $0xde8] sm:$0xff]  ;;  %v16905_v48 = vcombine.low %v4547_v31, %v4555_v32  ;;  %v16986_v31 = vcombine.high %v4627_v20, %v4635_v22 }
 0x4ef   :  { %11294 = vmatprep.subr.bf16.mxu1 %v16828_v55  ;;  %v16907_v55 = vcombine.low %v4548_v35, %v4556_v40  ;;  %v16924_v56 = vcombine.high %v4564_v47, %v4572_v24  ;;  %v4643_v35 = vld [vmem:[#allocation7 + $0x1020] sm:$0xff] }
 0x4f0   :  { %v4651_v40 = vld [vmem:[#allocation7 + $0x1060] sm:$0xff] }
 0x4f1   :  { %11131 = vmatpush1.bf16.msra.mxu0 %v16825_v60  ;;  %v4580_v60 = vld [vmem:[#allocation7 + $0xe28] sm:$0xff] }
 0x4f2   :  { %11295 = vmatpush1.bf16.msra.mxu1 %v16827_v36  ;;  %11132 = vmatprep.subr.bf16.mxu0 %v16842_v29  ;;  %v4588_v36 = vld [vmem:[#allocation7 + $0xe68] sm:$0xff]  ;;  %v16921_v29 = vcombine.low %v4563_v45, %v4571_v34  ;;  %v17002_v45 = vcombine.high %v4643_v35, %v4651_v40 }
 0x4f3   :  { %11296 = vmatprep.subr.bf16.mxu1 %v16844_v19  ;;  %v16923_v19 = vcombine.low %v4564_v47, %v4572_v24  ;;  %v16940_v23 = vcombine.high %v4580_v60, %v4588_v36  ;;  %v4659_v47 = vld [vmem:[#allocation7 + $0x10a0] sm:$0xff] }
 0x4f4   :  { %v4667_v24 = vld [vmem:[#allocation7 + $0x10e0] sm:$0xff] }
 0x4f5   :  { %11133 = vmatpush1.bf16.msra.mxu0 %v16841_v0  ;;  %v4596_v0 = vld [vmem:[#allocation7 + $0xea8] sm:$0xff] }
 0x4f6   :  { %11297 = vmatpush1.bf16.msra.mxu1 %v16843_v1  ;;  %11134 = vmatprep.subr.bf16.mxu0 %v16858_v43  ;;  %v4604_v1 = vld [vmem:[#allocation7 + $0xee8] sm:$0xff]  ;;  %v16937_v43 = vcombine.low %v4579_v37, %v4587_v59  ;;  %v17018_v37 = vcombine.high %v4659_v47, %v4667_v24  ;;  %v4675_v59 = vld [vmem:[#allocation7 + $0x1120] sm:$0xff] }
 0x4f7   :  { %11298 = vmatprep.subr.bf16.mxu1 %v16860_v3  ;;  %v16939_v3 = vcombine.low %v4580_v60, %v4588_v36  ;;  %v16956_v8 = vcombine.high %v4596_v0, %v4604_v1  ;;  %v4683_v60 = vld [vmem:[#allocation7 + $0x1160] sm:$0xff] }
 0x4f9   :  { %11135 = vmatpush1.bf16.msra.mxu0 %v16857_v11  ;;  %v4612_v11 = vld [vmem:[#allocation7 + $0xf28] sm:$0xff] }
 0x4fa   :  { %11299 = vmatpush1.bf16.msra.mxu1 %v16859_v14  ;;  %11136 = vmatprep.subr.bf16.mxu0 %v16874_v52  ;;  %v4620_v14 = vld [vmem:[#allocation7 + $0xf68] sm:$0xff]  ;;  %v16953_v52 = vcombine.low %v4595_v62, %v4603_v63  ;;  %v17034_v62 = vcombine.high %v4675_v59, %v4683_v60 }
 0x4fb   :  { %11300 = vmatprep.subr.bf16.mxu1 %v16876_v27  ;;  %v16955_v27 = vcombine.low %v4596_v0, %v4604_v1  ;;  %v16972_v18 = vcombine.high %v4612_v11, %v4620_v14  ;;  %v4691_v0 = vld [vmem:[#allocation7 + $0x11a0] sm:$0xff] }
 0x4fc   :  { %v4699_v1 = vld [vmem:[#allocation7 + $0x11e0] sm:$0xff] }
 0x4fd   :  { %11137 = vmatpush1.bf16.msra.mxu0 %v16873_v53  ;;  %v4628_v53 = vld [vmem:[#allocation7 + $0xfa8] sm:$0xff] }
 0x4fe   :  { %11301 = vmatpush1.bf16.msra.mxu1 %v16875_v12  ;;  %11138 = vmatprep.subr.bf16.mxu0 %v16890_v28  ;;  %v4636_v12 = vld [vmem:[#allocation7 + $0xfe8] sm:$0xff]  ;;  %v16969_v28 = vcombine.low %v4611_v13, %v4619_v10  ;;  %v17050_v13 = vcombine.high %v4691_v0, %v4699_v1 }
 0x4ff   :  { %11302 = vmatprep.subr.bf16.mxu1 %v16892_v30  ;;  %v16971_v30 = vcombine.low %v4612_v11, %v4620_v14  ;;  %v16988_v32 = vcombine.high %v4628_v53, %v4636_v12  ;;  %v4707_v11 = vld [vmem:[#allocation7 + $0x1220] sm:$0xff] }
 0x500   :  { %v4715_v14 = vld [vmem:[#allocation7 + $0x1260] sm:$0xff] }
 0x501   :  { %11139 = vmatpush1.bf16.msra.mxu0 %v16889_v21  ;;  %v4644_v21 = vld [vmem:[#allocation7 + $0x1028] sm:$0xff] }
 0x502   :  { %11303 = vmatpush1.bf16.msra.mxu1 %v16891_v42  ;;  %11140 = vmatprep.subr.bf16.mxu0 %v16906_v44  ;;  %v4652_v42 = vld [vmem:[#allocation7 + $0x1068] sm:$0xff]  ;;  %v16985_v44 = vcombine.low %v4627_v20, %v4635_v22  ;;  %v17066_v20 = vcombine.high %v4707_v11, %v4715_v14 }
 0x503   :  { %11304 = vmatprep.subr.bf16.mxu1 %v16908_v39  ;;  %v16987_v39 = vcombine.low %v4628_v53, %v4636_v12  ;;  %v17004_v34 = vcombine.high %v4644_v21, %v4652_v42  ;;  %v4723_v53 = vld [vmem:[#allocation7 + $0x12a0] sm:$0xff] }
 0x504   :  { %v4731_v12 = vld [vmem:[#allocation7 + $0x12e0] sm:$0xff] }
 0x505   :  { %11141 = vmatpush1.bf16.msra.mxu0 %v16905_v48  ;;  %v17001_v48 = vcombine.low %v4643_v35, %v4651_v40  ;;  %v17082_v35 = vcombine.high %v4723_v53, %v4731_v12 }
 0x506   :  { %11305 = vmatpush1.bf16.msra.mxu1 %v16907_v55  ;;  %11142 = vmatprep.subr.bf16.mxu0 %v16922_v54  ;;  %v4660_v55 = vld [vmem:[#allocation7 + $0x10a8] sm:$0xff] }
 0x507   :  { %11306 = vmatprep.subr.bf16.mxu1 %v16924_v56  ;;  %v4668_v54 = vld [vmem:[#allocation7 + $0x10e8] sm:$0xff]  ;;  %v17003_v56 = vcombine.low %v4644_v21, %v4652_v42  ;;  %v4739_v21 = vld [vmem:[#allocation7 + $0x1320] sm:$0xff] }
 0x508   :  { %v17020_v36 = vcombine.high %v4660_v55, %v4668_v54  ;;  %v4747_v42 = vld [vmem:[#allocation7 + $0x1360] sm:$0xff] }
 0x509   :  { %11143 = vmatpush1.bf16.msra.mxu0 %v16921_v29  ;;  %v4676_v29 = vld [vmem:[#allocation7 + $0x1128] sm:$0xff] }
 0x50a   :  { %11307 = vmatpush1.bf16.msra.mxu1 %v16923_v19  ;;  %11144 = vmatprep.subr.bf16.mxu0 %v16938_v25  ;;  %v4684_v19 = vld [vmem:[#allocation7 + $0x1168] sm:$0xff]  ;;  %v17017_v25 = vcombine.low %v4659_v47, %v4667_v24  ;;  %v17098_v47 = vcombine.high %v4739_v21, %v4747_v42 }
 0x50b   :  { %11308 = vmatprep.subr.bf16.mxu1 %v16940_v23  ;;  %v17019_v23 = vcombine.low %v4660_v55, %v4668_v54  ;;  %v17036_v63 = vcombine.high %v4676_v29, %v4684_v19  ;;  %v4763_v55 = vld [vmem:[#allocation7 + $0x13e0] sm:$0xff]  ;;  %v4756_v54 = vld [vmem:[#allocation7 + $0x13a8] sm:$0xff] }
 0x50d   :  { %11145 = vmatpush1.bf16.msra.mxu0 %v16937_v43  ;;  %v4692_v43 = vld [vmem:[#allocation7 + $0x11a8] sm:$0xff] }
 0x50e   :  { %11309 = vmatpush1.bf16.msra.mxu1 %v16939_v3  ;;  %11146 = vmatprep.subr.bf16.mxu0 %v16954_v7  ;;  %v4700_v3 = vld [vmem:[#allocation7 + $0x11e8] sm:$0xff]  ;;  %v17033_v7 = vcombine.low %v4675_v59, %v4683_v60 }
 0x50f   :  { %11310 = vmatprep.subr.bf16.mxu1 %v16956_v8  ;;  %v17035_v8 = vcombine.low %v4676_v29, %v4684_v19  ;;  %v17052_v10 = vcombine.high %v4692_v43, %v4700_v3  ;;  %v4771_v29 = vld [vmem:[#allocation7 + $0x1420] sm:$0xff] }
 0x510   :  { %v4779_v19 = vld [vmem:[#allocation7 + $0x1460] sm:$0xff] }
 0x511   :  { %11147 = vmatpush1.bf16.msra.mxu0 %v16953_v52  ;;  %v4708_v52 = vld [vmem:[#allocation7 + $0x1228] sm:$0xff] }
 0x512   :  { %11311 = vmatpush1.bf16.msra.mxu1 %v16955_v27  ;;  %11148 = vmatprep.subr.bf16.mxu0 %v16970_v17  ;;  %v4716_v27 = vld [vmem:[#allocation7 + $0x1268] sm:$0xff]  ;;  %v17049_v17 = vcombine.low %v4691_v0, %v4699_v1  ;;  %v17130_v0 = vcombine.high %v4771_v29, %v4779_v19 }
 0x513   :  { %11312 = vmatprep.subr.bf16.mxu1 %v16972_v18  ;;  %v17051_v18 = vcombine.low %v4692_v43, %v4700_v3  ;;  %v17068_v22 = vcombine.high %v4708_v52, %v4716_v27  ;;  %v4787_v43 = vld [vmem:[#allocation7 + $0x14a0] sm:$0xff] }
 0x514   :  { %v4795_v3 = vld [vmem:[#allocation7 + $0x14e0] sm:$0xff] }
 0x515   :  { %11149 = vmatpush1.bf16.msra.mxu0 %v16969_v28  ;;  %v4724_v28 = vld [vmem:[#allocation7 + $0x12a8] sm:$0xff] }
 0x516   :  { %11313 = vmatpush1.bf16.msra.mxu1 %v16971_v30  ;;  %11150 = vmatprep.subr.bf16.mxu0 %v16986_v31  ;;  %v4732_v30 = vld [vmem:[#allocation7 + $0x12e8] sm:$0xff]  ;;  %v17065_v31 = vcombine.low %v4707_v11, %v4715_v14  ;;  %v17146_v11 = vcombine.high %v4787_v43, %v4795_v3 }
 0x517   :  { %11314 = vmatprep.subr.bf16.mxu1 %v16988_v32  ;;  %v17067_v32 = vcombine.low %v4708_v52, %v4716_v27  ;;  %v17084_v40 = vcombine.high %v4724_v28, %v4732_v30  ;;  %v4803_v52 = vld [vmem:[#allocation7 + $0x1520] sm:$0xff] }
 0x518   :  { %v4811_v27 = vld [vmem:[#allocation7 + $0x1560] sm:$0xff] }
 0x519   :  { %11151 = vmatpush1.bf16.msra.mxu0 %v16985_v44  ;;  %v4740_v44 = vld [vmem:[#allocation7 + $0x1328] sm:$0xff] }
 0x51a   :  { %11315 = vmatpush1.bf16.msra.mxu1 %v16987_v39  ;;  %11161 = vmatprep.subr.bf16.mxu0 %v17002_v45  ;;  %v4748_v39 = vld [vmem:[#allocation7 + $0x1368] sm:$0xff]  ;;  %v17081_v45 = vcombine.low %v4723_v53, %v4731_v12  ;;  %v17162_v53 = vcombine.high %v4803_v52, %v4811_v27 }
 0x51b   :  { %11325 = vmatprep.subr.bf16.mxu1 %v17004_v34  ;;  %v17083_v34 = vcombine.low %v4724_v28, %v4732_v30  ;;  %v17100_v24 = vcombine.high %v4740_v44, %v4748_v39  ;;  %v17099_v59 = vcombine.low %v4740_v44, %v4748_v39  ;;  %v4819_v28 = vld [vmem:[#allocation7 + $0x15a0] sm:$0xff] }
 0x51c   :  { %11153 = vmatmul.mubr.bf16.vlgmr.msra.gmra.mrb[16].mxu0 %v19556_v26  ;;  %v4827_v30 = vld [vmem:[#allocation7 + $0x15e0] sm:$0xff] }
 0x51d   :  { %11317 = vmatmul.mubr.bf16.vlgmr.msra.gmra.mrb[16].mxu1 %v19556_v26  ;;  %11162 = vmatpush1.bf16.msra.mxu0 %v17001_v48  ;;  %v4755_v48 = vld [vmem:[#allocation7 + $0x13a0] sm:$0xff] }
 0x51e   :  { %11193 = vmatprep.mubr.bf16.mxu0 %v19598_v58  ;;  %11326 = vmatpush1.bf16.msra.mxu1 %v17003_v56  ;;  %v4764_v56 = vld [vmem:[#allocation7 + $0x13e8] sm:$0xff]  ;;  %v17114_v60 = vcombine.high %v4755_v48, %v4763_v55  ;;  %v4835_v44 = vld [vmem:[#allocation7 + $0x1620] sm:$0xff] }
 0x51f   :  { %11357 = vmatprep.mubr.bf16.mxu1 %v19598_v58  ;;  %11163 = vmatprep.subr.bf16.mxu0 %v17018_v37  ;;  %v17097_v37 = vcombine.low %v4739_v21, %v4747_v42  ;;  %v17178_v21 = vcombine.high %v4819_v28, %v4827_v30  ;;  %v4843_v39 = vld [vmem:[#allocation7 + $0x1660] sm:$0xff] }
 0x520   :  { %11327 = vmatprep.subr.bf16.mxu1 %v17020_v36  ;;  %v17116_v36 = vcombine.high %v4756_v54, %v4764_v56 }
 0x521   :  { %11164 = vmatpush1.bf16.msra.mxu0 %v17017_v25  ;;  %v4772_v25 = vld [vmem:[#allocation7 + $0x1428] sm:$0xff] }
 0x522   :  { %11328 = vmatpush1.bf16.msra.mxu1 %v17019_v23  ;;  %11165 = vmatprep.subr.bf16.mxu0 %v17034_v62  ;;  %v4780_v23 = vld [vmem:[#allocation7 + $0x1468] sm:$0xff]  ;;  %v17113_v62 = vcombine.low %v4755_v48, %v4763_v55  ;;  %v17194_v48 = vcombine.high %v4835_v44, %v4843_v39 }
 0x523   :  { %11329 = vmatprep.subr.bf16.mxu1 %v17036_v63  ;;  %v17115_v63 = vcombine.low %v4756_v54, %v4764_v56  ;;  %v17132_v1 = vcombine.high %v4772_v25, %v4780_v23  ;;  %v4851_v54 = vld [vmem:[#allocation7 + $0x16a0] sm:$0xff] }
 0x524   :  { %v4859_v56 = vld [vmem:[#allocation7 + $0x16e0] sm:$0xff] }
 0x525   :  { %11166 = vmatpush1.bf16.msra.mxu0 %v17033_v7  ;;  %v4788_v7 = vld [vmem:[#allocation7 + $0x14a8] sm:$0xff] }
 0x526   :  { %11330 = vmatpush1.bf16.msra.mxu1 %v17035_v8  ;;  %11167 = vmatprep.subr.bf16.mxu0 %v17050_v13  ;;  %v4796_v8 = vld [vmem:[#allocation7 + $0x14e8] sm:$0xff]  ;;  %v17129_v13 = vcombine.low %v4771_v29, %v4779_v19  ;;  %v17210_v29 = vcombine.high %v4851_v54, %v4859_v56 }
 0x527   :  { %11331 = vmatprep.subr.bf16.mxu1 %v17052_v10  ;;  %v17131_v10 = vcombine.low %v4772_v25, %v4780_v23  ;;  %v17148_v14 = vcombine.high %v4788_v7, %v4796_v8  ;;  %v4867_v25 = vld [vmem:[#allocation7 + $0x1720] sm:$0xff] }
 0x528   :  { %v4875_v23 = vld [vmem:[#allocation7 + $0x1760] sm:$0xff] }
 0x529   :  { %11168 = vmatpush1.bf16.msra.mxu0 %v17049_v17  ;;  %v4804_v17 = vld [vmem:[#allocation7 + $0x1528] sm:$0xff] }
 0x52a   :  { %11332 = vmatpush1.bf16.msra.mxu1 %v17051_v18  ;;  %11169 = vmatprep.subr.bf16.mxu0 %v17066_v20  ;;  %v4812_v18 = vld [vmem:[#allocation7 + $0x1568] sm:$0xff]  ;;  %v17145_v20 = vcombine.low %v4787_v43, %v4795_v3  ;;  %v17226_v43 = vcombine.high %v4867_v25, %v4875_v23 }
 0x52b   :  { %11333 = vmatprep.subr.bf16.mxu1 %v17068_v22  ;;  %v17147_v22 = vcombine.low %v4788_v7, %v4796_v8  ;;  %v17164_v12 = vcombine.high %v4804_v17, %v4812_v18  ;;  %v4883_v7 = vld [vmem:[#allocation7 + $0x17a0] sm:$0xff] }
 0x52c   :  { %v4891_v8 = vld [vmem:[#allocation7 + $0x17e0] sm:$0xff] }
 0x52d   :  { %11170 = vmatpush1.bf16.msra.mxu0 %v17065_v31  ;;  %v4820_v31 = vld [vmem:[#allocation7 + $0x15a8] sm:$0xff] }
 0x52e   :  { %11334 = vmatpush1.bf16.msra.mxu1 %v17067_v32  ;;  %11171 = vmatprep.subr.bf16.mxu0 %v17082_v35  ;;  %v4828_v32 = vld [vmem:[#allocation7 + $0x15e8] sm:$0xff]  ;;  %v17161_v35 = vcombine.low %v4803_v52, %v4811_v27  ;;  %v17242_v52 = vcombine.high %v4883_v7, %v4891_v8 }
 0x52f   :  { %11335 = vmatprep.subr.bf16.mxu1 %v17084_v40  ;;  %v17163_v40 = vcombine.low %v4804_v17, %v4812_v18  ;;  %v17180_v42 = vcombine.high %v4820_v31, %v4828_v32  ;;  %v4899_v17 = vld [vmem:[#allocation7 + $0x1820] sm:$0xff] }
 0x530   :  { %v4907_v18 = vld [vmem:[#allocation7 + $0x1860] sm:$0xff] }
 0x531   :  { %11172 = vmatpush1.bf16.msra.mxu0 %v17081_v45  ;;  %v4836_v45 = vld [vmem:[#allocation7 + $0x1628] sm:$0xff] }
 0x532   :  { %11336 = vmatpush1.bf16.msra.mxu1 %v17083_v34  ;;  %11173 = vmatprep.subr.bf16.mxu0 %v17098_v47  ;;  %v4844_v34 = vld [vmem:[#allocation7 + $0x1668] sm:$0xff]  ;;  %v17177_v47 = vcombine.low %v4819_v28, %v4827_v30  ;;  %v17258_v28 = vcombine.high %v4899_v17, %v4907_v18 }
 0x533   :  { %11337 = vmatprep.subr.bf16.mxu1 %v17100_v24  ;;  %v17179_v24 = vcombine.low %v4820_v31, %v4828_v32  ;;  %v17196_v55 = vcombine.high %v4836_v45, %v4844_v34  ;;  %v4915_v31 = vld [vmem:[#allocation7 + $0x18a0] sm:$0xff] }
 0x534   :  { %v4923_v32 = vld [vmem:[#allocation7 + $0x18e0] sm:$0xff] }
 0x535   :  { %11174 = vmatpush1.bf16.msra.mxu0 %v17097_v37  ;;  %v4852_v37 = vld [vmem:[#allocation7 + $0x16a8] sm:$0xff] }
 0x536   :  { %11338 = vmatpush1.bf16.msra.mxu1 %v17099_v59  ;;  %11175 = vmatprep.subr.bf16.mxu0 %v17114_v60  ;;  %v4860_v59 = vld [vmem:[#allocation7 + $0x16e8] sm:$0xff]  ;;  %v17193_v60 = vcombine.low %v4835_v44, %v4843_v39  ;;  %v17274_v44 = vcombine.high %v4915_v31, %v4923_v32  ;;  %v4931_v39 = vld [vmem:[#allocation7 + $0x1920] sm:$0xff] }
 0x537   :  { %11339 = vmatprep.subr.bf16.mxu1 %v17116_v36  ;;  %v17195_v36 = vcombine.low %v4836_v45, %v4844_v34  ;;  %v17212_v19 = vcombine.high %v4852_v37, %v4860_v59  ;;  %v4939_v45 = vld [vmem:[#allocation7 + $0x1960] sm:$0xff] }
 0x539   :  { %11176 = vmatpush1.bf16.msra.mxu0 %v17113_v62  ;;  %v4868_v62 = vld [vmem:[#allocation7 + $0x1728] sm:$0xff] }
 0x53a   :  { %11340 = vmatpush1.bf16.msra.mxu1 %v17115_v63  ;;  %11177 = vmatprep.subr.bf16.mxu0 %v17130_v0  ;;  %v4876_v63 = vld [vmem:[#allocation7 + $0x1768] sm:$0xff]  ;;  %v17209_v0 = vcombine.low %v4851_v54, %v4859_v56  ;;  %v17290_v54 = vcombine.high %v4931_v39, %v4939_v45 }
 0x53b   :  { %11341 = vmatprep.subr.bf16.mxu1 %v17132_v1  ;;  %v17211_v1 = vcombine.low %v4852_v37, %v4860_v59  ;;  %v17228_v3 = vcombine.high %v4868_v62, %v4876_v63  ;;  %v4947_v37 = vld [vmem:[#allocation7 + $0x19a0] sm:$0xff] }
 0x53c   :  { %v4955_v59 = vld [vmem:[#allocation7 + $0x19e0] sm:$0xff] }
 0x53d   :  { %11178 = vmatpush1.bf16.msra.mxu0 %v17129_v13  ;;  %v4884_v13 = vld [vmem:[#allocation7 + $0x17a8] sm:$0xff] }
 0x53e   :  { %11342 = vmatpush1.bf16.msra.mxu1 %v17131_v10  ;;  %11179 = vmatprep.subr.bf16.mxu0 %v17146_v11  ;;  %v4892_v10 = vld [vmem:[#allocation7 + $0x17e8] sm:$0xff]  ;;  %v17225_v11 = vcombine.low %v4867_v25, %v4875_v23  ;;  %v17306_v25 = vcombine.high %v4947_v37, %v4955_v59 }
 0x53f   :  { %11343 = vmatprep.subr.bf16.mxu1 %v17148_v14  ;;  %v17227_v14 = vcombine.low %v4868_v62, %v4876_v63  ;;  %v17244_v27 = vcombine.high %v4884_v13, %v4892_v10  ;;  %v4963_v62 = vld [vmem:[#allocation7 + $0x1a20] sm:$0xff] }
 0x540   :  { %v4971_v63 = vld [vmem:[#allocation7 + $0x1a60] sm:$0xff] }
 0x541   :  { %11180 = vmatpush1.bf16.msra.mxu0 %v17145_v20  ;;  %v4900_v20 = vld [vmem:[#allocation7 + $0x1828] sm:$0xff] }
 0x542   :  { %11344 = vmatpush1.bf16.msra.mxu1 %v17147_v22  ;;  %11181 = vmatprep.subr.bf16.mxu0 %v17162_v53  ;;  %v4908_v22 = vld [vmem:[#allocation7 + $0x1868] sm:$0xff]  ;;  %v17241_v53 = vcombine.low %v4883_v7, %v4891_v8  ;;  %v17322_v8 = vcombine.high %v4963_v62, %v4971_v63 }
 0x543   :  { %11345 = vmatprep.subr.bf16.mxu1 %v17164_v12  ;;  %v17243_v12 = vcombine.low %v4884_v13, %v4892_v10  ;;  %v17260_v30 = vcombine.high %v4900_v20, %v4908_v22  ;;  %v19682_v13 = vld [vmem:[#allocation8 + $0x18] sm:$0x77] }
 0x545   :  { %11182 = vmatpush1.bf16.msra.mxu0 %v17161_v35  ;;  %v17257_v35 = vcombine.low %v4899_v17, %v4907_v18  ;;  %v4988_v17 = vld [vmem:[#allocation7 + $0x1ae8] sm:$0xff]  ;;  %v17321_v18 = vcombine.low %v4963_v62, %v4971_v63 }
 0x546   :  { %11346 = vmatpush1.bf16.msra.mxu1 %v17163_v40  ;;  %11183 = vmatprep.subr.bf16.mxu0 %v17178_v21  ;;  %v4916_v40 = vld [vmem:[#allocation7 + $0x18a8] sm:$0xff] }
 0x547   :  { %11347 = vmatprep.subr.bf16.mxu1 %v17180_v42  ;;  %v4924_v21 = vld [vmem:[#allocation7 + $0x18e8] sm:$0xff]  ;;  %v17259_v42 = vcombine.low %v4900_v20, %v4908_v22  ;;  %v5186_v20 = vrot.slane %v19682_v13, %v19471_v50 }
 0x548   :  { %v17276_v34 = vcombine.high %v4916_v40, %v4924_v21 }
 0x549   :  { %11184 = vmatpush1.bf16.msra.mxu0 %v17177_v47  ;;  %v4932_v47 = vld [vmem:[#allocation7 + $0x1928] sm:$0xff] }
 0x54a   :  { %11348 = vmatpush1.bf16.msra.mxu1 %v17179_v24  ;;  %11185 = vmatprep.subr.bf16.mxu0 %v17194_v48  ;;  %v4940_v24 = vld [vmem:[#allocation7 + $0x1968] sm:$0xff]  ;;  %v17273_v48 = vcombine.low %v4915_v31, %v4923_v32 }
 0x54b   :  { %11349 = vmatprep.subr.bf16.mxu1 %v17196_v55  ;;  %v17275_v55 = vcombine.low %v4916_v40, %v4924_v21  ;;  %v17292_v56 = vcombine.high %v4932_v47, %v4940_v24  ;;  %v4996_v32 = vld [vmem:[#allocation7 + $0x1b28] sm:$0xff]  ;;  %v5266_v40 = vrot.slane %v5186_v20, %v19471_v50 }
 0x54d   :  { %11186 = vmatpush1.bf16.msra.mxu0 %v17193_v60  ;;  %v4948_v60 = vld [vmem:[#allocation7 + $0x19a8] sm:$0xff] }
 0x54e   :  { %11350 = vmatpush1.bf16.msra.mxu1 %v17195_v36  ;;  %11187 = vmatprep.subr.bf16.mxu0 %v17210_v29  ;;  %v4956_v36 = vld [vmem:[#allocation7 + $0x19e8] sm:$0xff]  ;;  %v17289_v29 = vcombine.low %v4931_v39, %v4939_v45 }
 0x54f   :  { %11351 = vmatprep.subr.bf16.mxu1 %v17212_v19  ;;  %v17291_v19 = vcombine.low %v4932_v47, %v4940_v24  ;;  %v17308_v23 = vcombine.high %v4948_v60, %v4956_v36  ;;  %v17307_v7 = vcombine.low %v4948_v60, %v4956_v36  ;;  %v5019_v47 = vld [vmem:[#allocation7 + $0x1be0] sm:$0xff] }
 0x551   :  { %11188 = vmatpush1.bf16.msra.mxu0 %v17209_v0  ;;  %v4964_v0 = vld [vmem:[#allocation7 + $0x1a28] sm:$0xff] }
 0x552   :  { %11352 = vmatpush1.bf16.msra.mxu1 %v17211_v1  ;;  %11189 = vmatprep.subr.bf16.mxu0 %v17226_v43  ;;  %v4972_v1 = vld [vmem:[#allocation7 + $0x1a68] sm:$0xff]  ;;  %v17305_v43 = vcombine.low %v4947_v37, %v4955_v59 }
 0x553   :  { %11353 = vmatprep.subr.bf16.mxu1 %v17228_v3  ;;  %v19680_v3 = vld [vmem:[#allocation8 + $0x10] sm:$0x77]  ;;  %v17324_v10 = vcombine.high %v4964_v0, %v4972_v1  ;;  %v17323_v22 = vcombine.low %v4964_v0, %v4972_v1  ;;  %v5027_v0 = vld [vmem:[#allocation7 + $0x1c20] sm:$0xff] }
 0x554   :  { %v5035_v1 = vld [vmem:[#allocation7 + $0x1c60] sm:$0xff]  ;;  %v11930_v20 = vrot.slane %v19680_v3, %v19491_v33 }
 0x555   :  { %11190 = vmatpush1.bf16.msra.mxu0 %v17225_v11  ;;  %v4979_v11 = vld [vmem:[#allocation7 + $0x1aa0] sm:$0xff] }
 0x556   :  { %11354 = vmatpush1.bf16.msra.mxu1 %v17227_v14  ;;  %11191 = vmatprep.subr.bf16.mxu0 %v17242_v52  ;;  %v4987_v14 = vld [vmem:[#allocation7 + $0x1ae0] sm:$0xff]  ;;  %v5178_v52 = vrot.slane %v19680_v3, %v19471_v50 }
 0x557   :  { %11355 = vmatprep.subr.bf16.mxu1 %v17244_v27  ;;  %v4980_v27 = vld [vmem:[#allocation7 + $0x1aa8] sm:$0xff]  ;;  %v17337_v21 = vcombine.low %v4979_v11, %v4987_v14 }
 0x558   :  { %v5258_v31 = vrot.slane %v5178_v52, %v19471_v50  ;;  %v11778_v52 = vrot.slane %v19682_v13, %v19486_v57 }
 0x559   :  { %11192 = vmatpush1.bf16.msra.mxu0 %v17241_v53  ;;  %v17338_v53 = vcombine.high %v4979_v11, %v4987_v14  ;;  %v17386_v14 = vcombine.high %v5027_v0, %v5035_v1 }
 0x55a   :  { %11356 = vmatpush1.bf16.msra.mxu1 %v17243_v12  ;;  %11202 = vmatprep.subr.bf16.mxu0 %v17258_v28  ;;  %v17340_v12 = vcombine.high %v4980_v27, %v4988_v17  ;;  %v4995_v28 = vld [vmem:[#allocation7 + $0x1b20] sm:$0xff] }
 0x55b   :  { %11366 = vmatprep.subr.bf16.mxu1 %v17260_v30  ;;  %v5003_v30 = vld [vmem:[#allocation7 + $0x1b60] sm:$0xff] }
 0x55c   :  { %11194 = vmatmul.mubr.bf16.vlgmr.msra.gmra.mrb[16].mxu0 %v19604_v49  ;;  %v17353_v36 = vcombine.low %v4995_v28, %v5003_v30 }
 0x55d   :  { %11358 = vmatmul.mubr.bf16.vlgmr.msra.gmra.mrb[16].mxu1 %v19604_v49  ;;  %11203 = vmatpush1.bf16.msra.mxu0 %v17257_v35  ;;  %v5004_v35 = vld [vmem:[#allocation7 + $0x1b68] sm:$0xff] }
 0x55e   :  { %11234 = vmatprep.mubr.bf16.mxu0 %v19608_v61  ;;  %11367 = vmatpush1.bf16.msra.mxu1 %v17259_v42  ;;  %v17339_v42 = vcombine.low %v4980_v27, %v4988_v17  ;;  %v17356_v45 = vcombine.high %v4996_v32, %v5004_v35  ;;  %v5043_v17 = vld [vmem:[#allocation7 + $0x1ca0] sm:$0xff] }
 0x55f   :  { %11398 = vmatprep.mubr.bf16.mxu1 %v19608_v61  ;;  %11204 = vmatprep.subr.bf16.mxu0 %v17274_v44  ;;  %v17354_v44 = vcombine.high %v4995_v28, %v5003_v30  ;;  %v17385_v28 = vcombine.low %v5027_v0, %v5035_v1 }
 0x560   :  { %11368 = vmatprep.subr.bf16.mxu1 %v17276_v34  ;;  %v5011_v34 = vld [vmem:[#allocation7 + $0x1ba0] sm:$0xff] }
 0x561   :  { %11205 = vmatpush1.bf16.msra.mxu0 %v17273_v48 }
 0x562   :  { %11369 = vmatpush1.bf16.msra.mxu1 %v17275_v55  ;;  %11206 = vmatprep.subr.bf16.mxu0 %v17290_v54  ;;  %v5012_v54 = vld [vmem:[#allocation7 + $0x1ba8] sm:$0xff] }
 0x563   :  { %11370 = vmatprep.subr.bf16.mxu1 %v17292_v56  ;;  %v5020_v56 = vld [vmem:[#allocation7 + $0x1be8] sm:$0xff] }
 0x564   :  { %v17372_v63 = vcombine.high %v5012_v54, %v5020_v56  ;;  %v17371_v11 = vcombine.low %v5012_v54, %v5020_v56 }
 0x565   :  { %11207 = vmatpush1.bf16.msra.mxu0 %v17289_v29 }
 0x566   :  { %11371 = vmatpush1.bf16.msra.mxu1 %v17291_v19  ;;  %11208 = vmatprep.subr.bf16.mxu0 %v17306_v25  ;;  %v17355_v25 = vcombine.low %v4996_v32, %v5004_v35  ;;  %v11858_v35 = vrot.slane %v11778_v52, %v19486_v57 }
 0x567   :  { %11372 = vmatprep.subr.bf16.mxu1 %v17308_v23  ;;  %v17370_v23 = vcombine.high %v5011_v34, %v5019_v47 }
 0x569   :  { %11209 = vmatpush1.bf16.msra.mxu0 %v17305_v43  ;;  %v5028_v43 = vld [vmem:[#allocation7 + $0x1c28] sm:$0xff] }
 0x56a   :  { %11373 = vmatpush1.bf16.msra.mxu1 %v17307_v7  ;;  %11210 = vmatprep.subr.bf16.mxu0 %v17322_v8  ;;  %v5036_v7 = vld [vmem:[#allocation7 + $0x1c68] sm:$0xff]  ;;  %v17369_v8 = vcombine.low %v5011_v34, %v5019_v47 }
 0x56b   :  { %11374 = vmatprep.subr.bf16.mxu1 %v17324_v10  ;;  %v11770_v10 = vrot.slane %v19680_v3, %v19486_v57  ;;  %v17388_v27 = vcombine.high %v5028_v43, %v5036_v7  ;;  %v12010_v3 = vrot.slane %v11930_v20, %v19491_v33  ;;  %v5108_v20 = vld [vmem:[#allocation7 + $0x1ea8] sm:$0xff] }
 0x56d   :  { %11211 = vmatpush1.bf16.msra.mxu0 %v17321_v18  ;;  %v5051_v18 = vld [vmem:[#allocation7 + $0x1ce0] sm:$0xff]  ;;  %v11850_v30 = vrot.slane %v11770_v10, %v19486_v57  ;;  %v5100_v10 = vld [vmem:[#allocation7 + $0x1e68] sm:$0xff] }
 0x56e   :  { %11375 = vmatpush1.bf16.msra.mxu1 %v17323_v22  ;;  %11212 = vmatprep.subr.bf16.mxu0 %v17338_v53  ;;  %v5044_v22 = vld [vmem:[#allocation7 + $0x1ca8] sm:$0xff]  ;;  %v17402_v32 = vcombine.high %v5043_v17, %v5051_v18  ;;  %v17401_v47 = vcombine.low %v5043_v17, %v5051_v18  ;;  %v5107_v17 = vld [vmem:[#allocation7 + $0x1ea0] sm:$0xff] }
 0x56f   :  { %v10908_v39 = vpop.f32.mrb[12].mxu0  ;;  %11376 = vmatprep.subr.bf16.mxu1 %v17340_v12  ;;  %v5052_v53 = vld [vmem:[#allocation7 + $0x1ce8] sm:$0xff]  ;;  %v11938_v12 = vrot.slane %v19682_v13, %v19491_v33  ;;  %v5115_v18 = vld [vmem:[#allocation7 + $0x1ee0] sm:$0xff] }
 0x570   :  { %v18029_v24 = vadd.f32 %v10908_v39, %v5258_v31  ;;  %v11072_v48 = vpop.f32.mrb[12].mxu1  ;;  %v19690_v55 = vpop.f32.mrb[13].mxu0  ;;  %v17387_v31 = vcombine.low %v5028_v43, %v5036_v7  ;;  %v5060_v39 = vld [vmem:[#allocation7 + $0x1d28] sm:$0xff]  ;;  %v5091_v43 = vld [vmem:[#allocation7 + $0x1e20] sm:$0xff] }
 0x571   :  { %v18031_v37 = vadd.f32 %v11072_v48, %v5266_v40  ;;  %v19692_v59 = vpop.f32.mrb[13].mxu1  ;;  %v10912_v60 = vpop.f32.mrb[14].mxu0  ;;  %11213 = vmatpush1.bf16.msra.mxu0 %v17337_v21  ;;  %v17404_v40 = vcombine.high %v5044_v22, %v5052_v53  ;;  %v5059_v21 = vld [vmem:[#allocation7 + $0x1d20] sm:$0xff]  ;;  %v12018_v13 = vrot.slane %v11938_v12, %v19491_v33  ;;  %v17403_v48 = vcombine.low %v5044_v22, %v5052_v53  ;;  %v5116_v22 = vld [vmem:[#allocation7 + $0x1ee8] sm:$0xff] }
 0x572   :  { %19054 = vtanh.f32 %v18029_v24  ;;  %v11076_v29 = vpop.f32.mrb[14].mxu1  ;;  %11377 = vmatpush1.bf16.msra.mxu1 %v17339_v42  ;;  %v10913_v19 = vpop.f32.mrb[15].mxu0  ;;  %11214 = vmatprep.subr.bf16.mxu0 %v17354_v44  ;;  %v5067_v42 = vld [vmem:[#allocation7 + $0x1d60] sm:$0xff] }
 0x573   :  { %19056 = vtanh.f32 %v18031_v37  ;;  %v11077_v62 = vpop.f32.mrb[15].mxu1  ;;  %11378 = vmatprep.subr.bf16.mxu1 %v17356_v45  ;;  %v5068_v45 = vld [vmem:[#allocation7 + $0x1d68] sm:$0xff]  ;;  %v17418_v54 = vcombine.high %v5059_v21, %v5067_v42  ;;  %v5075_v60 = vld [vmem:[#allocation7 + $0x1da0] sm:$0xff] }
 0x574   :  { %v17420_v37 = vcombine.high %v5060_v39, %v5068_v45  ;;  %v5076_v19 = vld [vmem:[#allocation7 + $0x1da8] sm:$0xff]  ;;  %v17417_v62 = vcombine.low %v5059_v21, %v5067_v42  ;;  %v5099_v7 = vld [vmem:[#allocation7 + $0x1e60] sm:$0xff]  ;;  %v17465_v21 = vcombine.low %v5107_v17, %v5115_v18  ;;  %v17467_v42 = vcombine.low %v5108_v20, %v5116_v22 }
 0x575   :  { %11215 = vmatpush1.bf16.msra.mxu0 %v17353_v36  ;;  %v5083_v36 = vld [vmem:[#allocation7 + $0x1de0] sm:$0xff]  ;;  %v17450_v52 = vcombine.high %v5091_v43, %v5099_v7  ;;  %v17449_v53 = vcombine.low %v5091_v43, %v5099_v7  ;;  %v4150_v7 = vld [vmem:[#allocation7 + $0xb8] sm:$0xff] }
 0x576   :  { %11379 = vmatpush1.bf16.msra.mxu1 %v17355_v25  ;;  %11216 = vmatprep.subr.bf16.mxu0 %v17370_v23  ;;  %v5084_v25 = vld [vmem:[#allocation7 + $0x1de8] sm:$0xff]  ;;  %v17434_v0 = vcombine.high %v5075_v60, %v5083_v36 }
 0x577   :  { %11380 = vmatprep.subr.bf16.mxu1 %v17372_v63  ;;  %v17419_v63 = vcombine.low %v5060_v39, %v5068_v45  ;;  %v17436_v1 = vcombine.high %v5076_v19, %v5084_v25  ;;  %v5139_v39 = vld [vmem:[#allocation7 + $0x1fa0] sm:$0xff] }
 0x578   :  { %v5147_v45 = vld [vmem:[#allocation7 + $0x1fe0] sm:$0xff] }
 0x579   :  { %11217 = vmatpush1.bf16.msra.mxu0 %v17369_v8  ;;  %v5092_v8 = vld [vmem:[#allocation7 + $0x1e28] sm:$0xff] }
 0x57a   :  { %11381 = vmatpush1.bf16.msra.mxu1 %v17371_v11  ;;  %11218 = vmatprep.subr.bf16.mxu0 %v17386_v14  ;;  %v17433_v11 = vcombine.low %v5075_v60, %v5083_v36  ;;  %v17435_v14 = vcombine.low %v5076_v19, %v5084_v25  ;;  %v17451_v12 = vcombine.low %v5092_v8, %v5100_v10  ;;  %v4134_v60 = vld [vmem:[#allocation7 + $0x38] sm:$0xff] }
 0x57b   :  { %11382 = vmatprep.subr.bf16.mxu1 %v17388_v27  ;;  %v17452_v27 = vcombine.high %v5092_v8, %v5100_v10  ;;  %v4142_v36 = vld [vmem:[#allocation7 + $0x78] sm:$0xff]  ;;  %v17497_v19 = vcombine.low %v5139_v39, %v5147_v45 }
 0x57c   :  { %v19055_v44 = vpop.eup %19054  ;;  %v4158_v8 = vld [vmem:[#allocation7 + $0xf8] sm:$0xff]  ;;  %v16495_v10 = vcombine.low %v4134_v60, %v4142_v36 }
 0x57d   :  { %v19057_v34 = vpop.eup %19056  ;;  %11219 = vmatpush1.bf16.msra.mxu0 %v17385_v28  ;;  %v11899_v24 = vmul.f32 %v19055_v44, %v11850_v30  ;;  %v17466_v28 = vcombine.high %v5107_v17, %v5115_v18  ;;  %v17468_v30 = vcombine.high %v5108_v20, %v5116_v22  ;;  %v4166_v17 = vld [vmem:[#allocation7 + $0x138] sm:$0xff]  ;;  %v16511_v22 = vcombine.low %v4150_v7, %v4158_v8 }
 0x57e   :  { %11383 = vmatpush1.bf16.msra.mxu1 %v17387_v31  ;;  %11220 = vmatprep.subr.bf16.mxu0 %v17402_v32  ;;  %v11901_v56 = vmul.f32 %v19057_v34, %v11858_v35  ;;  %v5123_v31 = vld [vmem:[#allocation7 + $0x1f20] sm:$0xff]  ;;  %v5124_v35 = vld [vmem:[#allocation7 + $0x1f28] sm:$0xff]  ;;  %v4174_v18 = vld [vmem:[#allocation7 + $0x178] sm:$0xff] }
 0x57f   :  { %11384 = vmatprep.subr.bf16.mxu1 %v17404_v40  ;;  %v19706_v29 = vadd.f32 %v12010_v3, %v11899_v24  ;;  %v5131_v32 = vld [vmem:[#allocation7 + $0x1f60] sm:$0xff]  ;;  %v5132_v40 = vld [vmem:[#allocation7 + $0x1f68] sm:$0xff] }
 0x580   :  { %v19708_v23 = vadd.f32 %v12018_v13, %v11901_v56  ;;  %v17482_v3 = vcombine.high %v5123_v31, %v5131_v32  ;;  %v17484_v44 = vcombine.high %v5124_v35, %v5132_v40  ;;  %v5140_v13 = vld [vmem:[#allocation7 + $0x1fa8] sm:$0xff]  ;;  %v17483_v24 = vcombine.low %v5124_v35, %v5132_v40  ;;  %v4133_v56 = vld [vmem:[#allocation7 + $0x30] sm:$0xff] }
 0x581   :  { %11221 = vmatpush1.bf16.msra.mxu0 %v17401_v47  ;;  %v5148_v34 = vld [vmem:[#allocation7 + $0x1fe8] sm:$0xff]  ;;  %v17481_v47 = vcombine.low %v5123_v31, %v5131_v32  ;;  %v4182_v31 = vld [vmem:[#allocation7 + $0x1b8] sm:$0xff]  ;;  %v16527_v40 = vcombine.low %v4166_v17, %v4174_v18 }
 0x582   :  { %11385 = vmatpush1.bf16.msra.mxu1 %v17403_v48  ;;  %11222 = vmatprep.subr.bf16.mxu0 %v17418_v54  ;;  %v17498_v48 = vcombine.high %v5139_v39, %v5147_v45  ;;  %v17500_v54 = vcombine.high %v5140_v13, %v5148_v34  ;;  %v17499_v25 = vcombine.low %v5140_v13, %v5148_v34  ;;  %v4190_v32 = vld [vmem:[#allocation7 + $0x1f8] sm:$0xff] }
 0x583   :  { %11386 = vmatprep.subr.bf16.mxu1 %v17420_v37  ;;  %v4141_v37 = vld [vmem:[#allocation7 + $0x70] sm:$0xff]  ;;  %v4198_v39 = vld [vmem:[#allocation7 + $0x238] sm:$0xff]  ;;  %v16543_v13 = vcombine.low %v4182_v31, %v4190_v32 }
 0x584   :  { %v16493_v43 = vcombine.low %v4133_v56, %v4141_v37  ;;  %v4206_v45 = vld [vmem:[#allocation7 + $0x278] sm:$0xff] }
 0x585   :  { %11223 = vmatpush1.bf16.msra.mxu0 %v17417_v62  ;;  %v16494_v62 = vcombine.high %v4133_v56, %v4141_v37  ;;  %v4222_v56 = vld [vmem:[#allocation7 + $0x2f8] sm:$0xff] }
 0x586   :  { %11387 = vmatpush1.bf16.msra.mxu1 %v17419_v63  ;;  %11224 = vmatprep.subr.bf16.mxu0 %v17434_v0  ;;  %v16496_v63 = vcombine.high %v4134_v60, %v4142_v36  ;;  %v4149_v0 = vld [vmem:[#allocation7 + $0xb0] sm:$0xff]  ;;  %v16559_v60 = vcombine.low %v4198_v39, %v4206_v45 }
 0x587   :  { %11388 = vmatprep.subr.bf16.mxu1 %v17436_v1  ;;  %v4157_v1 = vld [vmem:[#allocation7 + $0xf0] sm:$0xff] }
 0x588   :  { %v16509_v20 = vcombine.low %v4149_v0, %v4157_v1 }
 0x589   :  { %11225 = vmatpush1.bf16.msra.mxu0 %v17433_v11  ;;  %v16510_v11 = vcombine.high %v4149_v0, %v4157_v1  ;;  %v4238_v0 = vld [vmem:[#allocation7 + $0x378] sm:$0xff] }
 0x58a   :  { %11389 = vmatpush1.bf16.msra.mxu1 %v17435_v14  ;;  %11226 = vmatprep.subr.bf16.mxu0 %v17450_v52  ;;  %v4165_v14 = vld [vmem:[#allocation7 + $0x130] sm:$0xff] }
 0x58b   :  { %11390 = vmatprep.subr.bf16.mxu1 %v17452_v27  ;;  %v4173_v52 = vld [vmem:[#allocation7 + $0x170] sm:$0xff]  ;;  %v16512_v27 = vcombine.high %v4150_v7, %v4158_v8 }
 0x58c   :  { %v16525_v35 = vcombine.low %v4165_v14, %v4173_v52 }
 0x58d   :  { %11227 = vmatpush1.bf16.msra.mxu0 %v17449_v53  ;;  %v16526_v53 = vcombine.high %v4165_v14, %v4173_v52  ;;  %v4246_v14 = vld [vmem:[#allocation7 + $0x3b8] sm:$0xff] }
 0x58e   :  { %11391 = vmatpush1.bf16.msra.mxu1 %v17451_v12  ;;  %11228 = vmatprep.subr.bf16.mxu0 %v17466_v28  ;;  %v16528_v12 = vcombine.high %v4166_v17, %v4174_v18  ;;  %v4181_v28 = vld [vmem:[#allocation7 + $0x1b0] sm:$0xff]  ;;  %v4254_v52 = vld [vmem:[#allocation7 + $0x3f8] sm:$0xff] }
 0x58f   :  { %11392 = vmatprep.subr.bf16.mxu1 %v17468_v30  ;;  %v4189_v30 = vld [vmem:[#allocation7 + $0x1f0] sm:$0xff] }
 0x591   :  { %11229 = vmatpush1.bf16.msra.mxu0 %v17465_v21  ;;  %v16542_v21 = vcombine.high %v4181_v28, %v4189_v30 }
 0x592   :  { %11393 = vmatpush1.bf16.msra.mxu1 %v17467_v42  ;;  %11230 = vmatprep.subr.bf16.mxu0 %v17482_v3  ;;  %v16544_v42 = vcombine.high %v4182_v31, %v4190_v32  ;;  %v4197_v3 = vld [vmem:[#allocation7 + $0x230] sm:$0xff]  ;;  %v16607_v31 = vcombine.low %v4246_v14, %v4254_v52 }
 0x593   :  { %11394 = vmatprep.subr.bf16.mxu1 %v17484_v44  ;;  %v4205_v44 = vld [vmem:[#allocation7 + $0x270] sm:$0xff] }
 0x594   :  { %v16558_v34 = vcombine.high %v4197_v3, %v4205_v44  ;;  %v16557_v37 = vcombine.low %v4197_v3, %v4205_v44  ;;  %v4286_v3 = vld [vmem:[#allocation7 + $0x4f8] sm:$0xff] }
 0x595   :  { %11231 = vmatpush1.bf16.msra.mxu0 %v17481_v47  ;;  %v16560_v47 = vcombine.high %v4198_v39, %v4206_v45 }
 0x596   :  { %11395 = vmatpush1.bf16.msra.mxu1 %v17483_v24  ;;  %11232 = vmatprep.subr.bf16.mxu0 %v17498_v48  ;;  %v4213_v24 = vld [vmem:[#allocation7 + $0x2b0] sm:$0xff] }
 0x597   :  { %11396 = vmatprep.subr.bf16.mxu1 %v17500_v54  ;;  %v4221_v48 = vld [vmem:[#allocation7 + $0x2f0] sm:$0xff]  ;;  %v4214_v54 = vld [vmem:[#allocation7 + $0x2b8] sm:$0xff] }
 0x598   :  { %v16574_v36 = vcombine.high %v4213_v24, %v4221_v48  ;;  %v16573_v1 = vcombine.low %v4213_v24, %v4221_v48  ;;  %v4302_v24 = vld [vmem:[#allocation7 + $0x578] sm:$0xff] }
 0x599   :  { %11233 = vmatpush1.bf16.msra.mxu0 %v17497_v19  ;;  %v16576_v19 = vcombine.high %v4214_v54, %v4222_v56 }
 0x59a   :  { %11397 = vmatpush1.bf16.msra.mxu1 %v17499_v25  ;;  %11407 = vmatprep.subr.bf16.mxu0 %v16494_v62  ;;  %v4229_v25 = vld [vmem:[#allocation7 + $0x330] sm:$0xff] }
 0x59b   :  { %11571 = vmatprep.subr.bf16.mxu1 %v16496_v63  ;;  %v4237_v62 = vld [vmem:[#allocation7 + $0x370] sm:$0xff]  ;;  %v4230_v63 = vld [vmem:[#allocation7 + $0x338] sm:$0xff] }
 0x59c   :  { %11235 = vmatmul.mubr.bf16.vlgmr.msra.gmra.mrb[16].mxu0 %v19616_v16  ;;  %v16590_v7 = vcombine.high %v4229_v25, %v4237_v62  ;;  %v16592_v8 = vcombine.high %v4230_v63, %v4238_v0  ;;  %v16591_v17 = vcombine.low %v4230_v63, %v4238_v0 }
 0x59d   :  { %11399 = vmatmul.mubr.bf16.vlgmr.msra.gmra.mrb[16].mxu1 %v19616_v16  ;;  %11408 = vmatpush1.bf16.msra.mxu0 %v16493_v43  ;;  %v16575_v43 = vcombine.low %v4214_v54, %v4222_v56 }
 0x59e   :  { %11439 = vmatprep.mubr.bf16.mxu0 %v19528_v15  ;;  %11572 = vmatpush1.bf16.msra.mxu1 %v16495_v10  ;;  %v4245_v10 = vld [vmem:[#allocation7 + $0x3b0] sm:$0xff] }
 0x59f   :  { %11603 = vmatprep.mubr.bf16.mxu1 %v19528_v15  ;;  %11409 = vmatprep.subr.bf16.mxu0 %v16510_v11  ;;  %v16541_v15 = vcombine.low %v4181_v28, %v4189_v30  ;;  %v4253_v11 = vld [vmem:[#allocation7 + $0x3f0] sm:$0xff]  ;;  %v4270_v28 = vld [vmem:[#allocation7 + $0x478] sm:$0xff] }
 0x5a0   :  { %11573 = vmatprep.subr.bf16.mxu1 %v16512_v27  ;;  %v16589_v27 = vcombine.low %v4229_v25, %v4237_v62  ;;  %v16606_v18 = vcombine.high %v4245_v10, %v4253_v11  ;;  %v16605_v30 = vcombine.low %v4245_v10, %v4253_v11  ;;  %v4318_v25 = vld [vmem:[#allocation7 + $0x5f8] sm:$0xff] }
 0x5a1   :  { %11410 = vmatpush1.bf16.msra.mxu0 %v16509_v20  ;;  %v16608_v20 = vcombine.high %v4246_v14, %v4254_v52  ;;  %v4334_v10 = vld [vmem:[#allocation7 + $0x678] sm:$0xff] }
 0x5a2   :  { %11574 = vmatpush1.bf16.msra.mxu1 %v16511_v22  ;;  %11411 = vmatprep.subr.bf16.mxu0 %v16526_v53  ;;  %v4261_v22 = vld [vmem:[#allocation7 + $0x430] sm:$0xff] }
 0x5a3   :  { %11575 = vmatprep.subr.bf16.mxu1 %v16528_v12  ;;  %v4269_v53 = vld [vmem:[#allocation7 + $0x470] sm:$0xff]  ;;  %v4262_v12 = vld [vmem:[#allocation7 + $0x438] sm:$0xff] }
 0x5a4   :  { %v16622_v32 = vcombine.high %v4261_v22, %v4269_v53  ;;  %v16621_v44 = vcombine.low %v4261_v22, %v4269_v53  ;;  %v16623_v39 = vcombine.low %v4262_v12, %v4270_v28  ;;  %v4350_v22 = vld [vmem:[#allocation7 + $0x6f8] sm:$0xff] }
 0x5a5   :  { %11412 = vmatpush1.bf16.msra.mxu0 %v16525_v35  ;;  %v16624_v35 = vcombine.high %v4262_v12, %v4270_v28 }
 0x5a6   :  { %11576 = vmatpush1.bf16.msra.mxu1 %v16527_v40  ;;  %11413 = vmatprep.subr.bf16.mxu0 %v16542_v21  ;;  %v4277_v40 = vld [vmem:[#allocation7 + $0x4b0] sm:$0xff] }
 0x5a7   :  { %11577 = vmatprep.subr.bf16.mxu1 %v16544_v42  ;;  %v4285_v21 = vld [vmem:[#allocation7 + $0x4f0] sm:$0xff]  ;;  %v4278_v42 = vld [vmem:[#allocation7 + $0x4b8] sm:$0xff] }
 0x5a8   :  { %v16638_v45 = vcombine.high %v4277_v40, %v4285_v21  ;;  %v16637_v48 = vcombine.low %v4277_v40, %v4285_v21  ;;  %v16639_v54 = vcombine.low %v4278_v42, %v4286_v3  ;;  %v4366_v40 = vld [vmem:[#allocation7 + $0x778] sm:$0xff] }
 0x5a9   :  { %11414 = vmatpush1.bf16.msra.mxu0 %v16541_v15  ;;  %v16640_v15 = vcombine.high %v4278_v42, %v4286_v3 }
 0x5aa   :  { %11578 = vmatpush1.bf16.msra.mxu1 %v16543_v13  ;;  %11415 = vmatprep.subr.bf16.mxu0 %v16558_v34  ;;  %v4293_v13 = vld [vmem:[#allocation7 + $0x530] sm:$0xff] }
 0x5ab   :  { %11579 = vmatprep.subr.bf16.mxu1 %v16560_v47  ;;  %v4301_v34 = vld [vmem:[#allocation7 + $0x570] sm:$0xff]  ;;  %v4294_v47 = vld [vmem:[#allocation7 + $0x538] sm:$0xff] }
 0x5ac   :  { %v16654_v56 = vcombine.high %v4293_v13, %v4301_v34  ;;  %v16653_v62 = vcombine.low %v4293_v13, %v4301_v34  ;;  %v16655_v63 = vcombine.low %v4294_v47, %v4302_v24  ;;  %v4382_v13 = vld [vmem:[#allocation7 + $0x7f8] sm:$0xff] }
 0x5ad   :  { %11416 = vmatpush1.bf16.msra.mxu0 %v16557_v37  ;;  %v16656_v37 = vcombine.high %v4294_v47, %v4302_v24 }
 0x5ae   :  { %11580 = vmatpush1.bf16.msra.mxu1 %v16559_v60  ;;  %11417 = vmatprep.subr.bf16.mxu0 %v16574_v36  ;;  %v4309_v60 = vld [vmem:[#allocation7 + $0x5b0] sm:$0xff] }
 0x5af   :  { %11581 = vmatprep.subr.bf16.mxu1 %v16576_v19  ;;  %v4317_v36 = vld [vmem:[#allocation7 + $0x5f0] sm:$0xff]  ;;  %v4310_v19 = vld [vmem:[#allocation7 + $0x5b8] sm:$0xff] }
 0x5b0   :  { %v16670_v0 = vcombine.high %v4309_v60, %v4317_v36  ;;  %v16669_v11 = vcombine.low %v4309_v60, %v4317_v36  ;;  %v16671_v14 = vcombine.low %v4310_v19, %v4318_v25  ;;  %v4398_v60 = vld [vmem:[#allocation7 + $0x878] sm:$0xff] }
 0x5b1   :  { %11418 = vmatpush1.bf16.msra.mxu0 %v16573_v1  ;;  %v16672_v1 = vcombine.high %v4310_v19, %v4318_v25 }
 0x5b2   :  { %11582 = vmatpush1.bf16.msra.mxu1 %v16575_v43  ;;  %11419 = vmatprep.subr.bf16.mxu0 %v16590_v7  ;;  %v4325_v43 = vld [vmem:[#allocation7 + $0x630] sm:$0xff] }
 0x5b3   :  { %11583 = vmatprep.subr.bf16.mxu1 %v16592_v8  ;;  %v4333_v7 = vld [vmem:[#allocation7 + $0x670] sm:$0xff]  ;;  %v4326_v8 = vld [vmem:[#allocation7 + $0x638] sm:$0xff] }
 0x5b4   :  { %v16686_v52 = vcombine.high %v4325_v43, %v4333_v7  ;;  %v16685_v53 = vcombine.low %v4325_v43, %v4333_v7  ;;  %v16687_v12 = vcombine.low %v4326_v8, %v4334_v10  ;;  %v4406_v43 = vld [vmem:[#allocation7 + $0x8b8] sm:$0xff] }
 0x5b5   :  { %11420 = vmatpush1.bf16.msra.mxu0 %v16589_v27  ;;  %v16688_v27 = vcombine.high %v4326_v8, %v4334_v10  ;;  %v4414_v7 = vld [vmem:[#allocation7 + $0x8f8] sm:$0xff] }
 0x5b6   :  { %11584 = vmatpush1.bf16.msra.mxu1 %v16591_v17  ;;  %11421 = vmatprep.subr.bf16.mxu0 %v16606_v18  ;;  %v4341_v17 = vld [vmem:[#allocation7 + $0x6b0] sm:$0xff] }
 0x5b7   :  { %11585 = vmatprep.subr.bf16.mxu1 %v16608_v20  ;;  %v4349_v18 = vld [vmem:[#allocation7 + $0x6f0] sm:$0xff]  ;;  %v4342_v20 = vld [vmem:[#allocation7 + $0x6b8] sm:$0xff] }
 0x5b8   :  { %v16702_v28 = vcombine.high %v4341_v17, %v4349_v18  ;;  %v16701_v21 = vcombine.low %v4341_v17, %v4349_v18  ;;  %v16703_v42 = vcombine.low %v4342_v20, %v4350_v22  ;;  %v4430_v17 = vld [vmem:[#allocation7 + $0x978] sm:$0xff] }
 0x5b9   :  { %11422 = vmatpush1.bf16.msra.mxu0 %v16605_v30  ;;  %v16704_v30 = vcombine.high %v4342_v20, %v4350_v22  ;;  %v16767_v20 = vcombine.low %v4406_v43, %v4414_v7 }
 0x5ba   :  { %11586 = vmatpush1.bf16.msra.mxu1 %v16607_v31  ;;  %11423 = vmatprep.subr.bf16.mxu0 %v16622_v32  ;;  %v4357_v31 = vld [vmem:[#allocation7 + $0x730] sm:$0xff] }
 0x5bb   :  { %11587 = vmatprep.subr.bf16.mxu1 %v16624_v35  ;;  %v4365_v32 = vld [vmem:[#allocation7 + $0x770] sm:$0xff]  ;;  %v4358_v35 = vld [vmem:[#allocation7 + $0x738] sm:$0xff] }
 0x5bc   :  { %v16718_v3 = vcombine.high %v4357_v31, %v4365_v32  ;;  %v16717_v34 = vcombine.low %v4357_v31, %v4365_v32  ;;  %v16719_v47 = vcombine.low %v4358_v35, %v4366_v40  ;;  %v4446_v31 = vld [vmem:[#allocation7 + $0x9f8] sm:$0xff] }
 0x5bd   :  { %11424 = vmatpush1.bf16.msra.mxu0 %v16621_v44  ;;  %v16720_v44 = vcombine.high %v4358_v35, %v4366_v40 }
 0x5be   :  { %11588 = vmatpush1.bf16.msra.mxu1 %v16623_v39  ;;  %11425 = vmatprep.subr.bf16.mxu0 %v16638_v45  ;;  %v4373_v39 = vld [vmem:[#allocation7 + $0x7b0] sm:$0xff] }
 0x5bf   :  { %11589 = vmatprep.subr.bf16.mxu1 %v16640_v15  ;;  %v4381_v45 = vld [vmem:[#allocation7 + $0x7f0] sm:$0xff]  ;;  %v4374_v15 = vld [vmem:[#allocation7 + $0x7b8] sm:$0xff] }
 0x5c0   :  { %v16734_v24 = vcombine.high %v4373_v39, %v4381_v45  ;;  %v16733_v36 = vcombine.low %v4373_v39, %v4381_v45  ;;  %v16735_v19 = vcombine.low %v4374_v15, %v4382_v13 }
 0x5c1   :  { %11426 = vmatpush1.bf16.msra.mxu0 %v16637_v48  ;;  %v16736_v48 = vcombine.high %v4374_v15, %v4382_v13  ;;  %v4469_v13 = vld [vmem:[#allocation7 + $0xab0] sm:$0xff] }
 0x5c2   :  { %11590 = vmatpush1.bf16.msra.mxu1 %v16639_v54  ;;  %11427 = vmatprep.subr.bf16.mxu0 %v16654_v56  ;;  %v4389_v54 = vld [vmem:[#allocation7 + $0x830] sm:$0xff] }
 0x5c3   :  { %11591 = vmatprep.subr.bf16.mxu1 %v16656_v37  ;;  %v4397_v56 = vld [vmem:[#allocation7 + $0x870] sm:$0xff]  ;;  %v4390_v37 = vld [vmem:[#allocation7 + $0x838] sm:$0xff] }
 0x5c4   :  { %v16750_v25 = vcombine.high %v4389_v54, %v4397_v56  ;;  %v16751_v8 = vcombine.low %v4390_v37, %v4398_v60 }
 0x5c5   :  { %11428 = vmatpush1.bf16.msra.mxu0 %v16653_v62  ;;  %v16752_v62 = vcombine.high %v4390_v37, %v4398_v60  ;;  %v4485_v60 = vld [vmem:[#allocation7 + $0xb30] sm:$0xff] }
 0x5c6   :  { %11592 = vmatpush1.bf16.msra.mxu1 %v16655_v63  ;;  %11429 = vmatprep.subr.bf16.mxu0 %v16670_v0  ;;  %v4405_v63 = vld [vmem:[#allocation7 + $0x8b0] sm:$0xff] }
 0x5c7   :  { %11593 = vmatprep.subr.bf16.mxu1 %v16672_v1  ;;  %v4413_v0 = vld [vmem:[#allocation7 + $0x8f0] sm:$0xff]  ;;  %v16749_v1 = vcombine.low %v4389_v54, %v4397_v56 }
 0x5c8   :  { %v16766_v10 = vcombine.high %v4405_v63, %v4413_v0  ;;  %v16765_v18 = vcombine.low %v4405_v63, %v4413_v0 }
 0x5c9   :  { %11430 = vmatpush1.bf16.msra.mxu0 %v16669_v11  ;;  %v4421_v11 = vld [vmem:[#allocation7 + $0x930] sm:$0xff] }
 0x5ca   :  { %11594 = vmatpush1.bf16.msra.mxu1 %v16671_v14  ;;  %11431 = vmatprep.subr.bf16.mxu0 %v16686_v52  ;;  %v4429_v14 = vld [vmem:[#allocation7 + $0x970] sm:$0xff]  ;;  %v16768_v52 = vcombine.high %v4406_v43, %v4414_v7 }
 0x5cb   :  { %11595 = vmatprep.subr.bf16.mxu1 %v16688_v27  ;;  %v4422_v27 = vld [vmem:[#allocation7 + $0x938] sm:$0xff]  ;;  %v16782_v22 = vcombine.high %v4421_v11, %v4429_v14  ;;  %v16781_v32 = vcombine.low %v4421_v11, %v4429_v14  ;;  %v4501_v43 = vld [vmem:[#allocation7 + $0xbb0] sm:$0xff] }
 0x5cc   :  { %v4509_v7 = vld [vmem:[#allocation7 + $0xbf0] sm:$0xff] }
 0x5cd   :  { %11432 = vmatpush1.bf16.msra.mxu0 %v16685_v53  ;;  %v16784_v53 = vcombine.high %v4422_v27, %v4430_v17 }
 0x5ce   :  { %11596 = vmatpush1.bf16.msra.mxu1 %v16687_v12  ;;  %11433 = vmatprep.subr.bf16.mxu0 %v16702_v28  ;;  %v4437_v12 = vld [vmem:[#allocation7 + $0x9b0] sm:$0xff] }
 0x5cf   :  { %11597 = vmatprep.subr.bf16.mxu1 %v16704_v30  ;;  %v4445_v28 = vld [vmem:[#allocation7 + $0x9f0] sm:$0xff]  ;;  %v4438_v30 = vld [vmem:[#allocation7 + $0x9b8] sm:$0xff] }
 0x5d0   :  { %v16798_v35 = vcombine.high %v4437_v12, %v4445_v28  ;;  %v16800_v40 = vcombine.high %v4438_v30, %v4446_v31  ;;  %v16799_v39 = vcombine.low %v4438_v30, %v4446_v31  ;;  %v4533_v31 = vld [vmem:[#allocation7 + $0xcb0] sm:$0xff] }
 0x5d1   :  { %11434 = vmatpush1.bf16.msra.mxu0 %v16701_v21  ;;  %v4453_v21 = vld [vmem:[#allocation7 + $0xa30] sm:$0xff] }
 0x5d2   :  { %11598 = vmatpush1.bf16.msra.mxu1 %v16703_v42  ;;  %11435 = vmatprep.subr.bf16.mxu0 %v16718_v3  ;;  %v4461_v42 = vld [vmem:[#allocation7 + $0xa70] sm:$0xff]  ;;  %v4454_v3 = vld [vmem:[#allocation7 + $0xa38] sm:$0xff] }
 0x5d3   :  { %11599 = vmatprep.subr.bf16.mxu1 %v16720_v44  ;;  %v4462_v44 = vld [vmem:[#allocation7 + $0xa78] sm:$0xff]  ;;  %v16814_v45 = vcombine.high %v4453_v21, %v4461_v42 }
 0x5d4   :  { %v16816_v15 = vcombine.high %v4454_v3, %v4462_v44  ;;  %v16815_v54 = vcombine.low %v4454_v3, %v4462_v44  ;;  %v4549_v44 = vld [vmem:[#allocation7 + $0xd30] sm:$0xff] }
 0x5d5   :  { %11436 = vmatpush1.bf16.msra.mxu0 %v16717_v34  ;;  %v4477_v34 = vld [vmem:[#allocation7 + $0xaf0] sm:$0xff] }
 0x5d6   :  { %11600 = vmatpush1.bf16.msra.mxu1 %v16719_v47  ;;  %11437 = vmatprep.subr.bf16.mxu0 %v16734_v24  ;;  %v4470_v47 = vld [vmem:[#allocation7 + $0xab8] sm:$0xff]  ;;  %v16830_v56 = vcombine.high %v4469_v13, %v4477_v34 }
 0x5d7   :  { %11601 = vmatprep.subr.bf16.mxu1 %v16736_v48  ;;  %v4478_v24 = vld [vmem:[#allocation7 + $0xaf8] sm:$0xff]  ;;  %v16813_v48 = vcombine.low %v4453_v21, %v4461_v42 }
 0x5d8   :  { %v16832_v37 = vcombine.high %v4470_v47, %v4478_v24  ;;  %v16831_v63 = vcombine.low %v4470_v47, %v4478_v24  ;;  %v4565_v24 = vld [vmem:[#allocation7 + $0xdb0] sm:$0xff] }
 0x5d9   :  { %11438 = vmatpush1.bf16.msra.mxu0 %v16733_v36  ;;  %v4493_v36 = vld [vmem:[#allocation7 + $0xb70] sm:$0xff] }
 0x5da   :  { %11602 = vmatpush1.bf16.msra.mxu1 %v16735_v19  ;;  %11448 = vmatprep.subr.bf16.mxu0 %v16750_v25  ;;  %v4486_v19 = vld [vmem:[#allocation7 + $0xb38] sm:$0xff]  ;;  %v16846_v0 = vcombine.high %v4485_v60, %v4493_v36  ;;  %v16845_v11 = vcombine.low %v4485_v60, %v4493_v36 }
 0x5db   :  { %11612 = vmatprep.subr.bf16.mxu1 %v16752_v62  ;;  %v4494_v25 = vld [vmem:[#allocation7 + $0xb78] sm:$0xff]  ;;  %v16829_v62 = vcombine.low %v4469_v13, %v4477_v34 }
 0x5dc   :  { %11440 = vmatmul.mubr.bf16.vlgmr.msra.gmra.mrb[20].mxu0 %v19546_v2  ;;  %v16847_v14 = vcombine.low %v4486_v19, %v4494_v25 }
 0x5dd   :  { %11604 = vmatmul.mubr.bf16.vlgmr.msra.gmra.mrb[20].mxu1 %v19546_v2  ;;  %11449 = vmatpush1.bf16.msra.mxu0 %v16749_v1  ;;  %v16783_v2 = vcombine.low %v4422_v27, %v4430_v17  ;;  %v16848_v1 = vcombine.high %v4486_v19, %v4494_v25  ;;  %v4517_v17 = vld [vmem:[#allocation7 + $0xc30] sm:$0xff] }
 0x5de   :  { %11480 = vmatprep.mubr.bf16.mxu0 %v19548_v5  ;;  %11613 = vmatpush1.bf16.msra.mxu1 %v16751_v8  ;;  %v4502_v8 = vld [vmem:[#allocation7 + $0xbb8] sm:$0xff]  ;;  %v4581_v25 = vld [vmem:[#allocation7 + $0xe30] sm:$0xff] }
 0x5df   :  { %11644 = vmatprep.mubr.bf16.mxu1 %v19548_v5  ;;  %11450 = vmatprep.subr.bf16.mxu0 %v16766_v10  ;;  %v16797_v5 = vcombine.low %v4437_v12, %v4445_v28  ;;  %v4510_v10 = vld [vmem:[#allocation7 + $0xbf8] sm:$0xff] }
 0x5e0   :  { %11614 = vmatprep.subr.bf16.mxu1 %v16768_v52  ;;  %v16862_v52 = vcombine.high %v4501_v43, %v4509_v7  ;;  %v16864_v27 = vcombine.high %v4502_v8, %v4510_v10  ;;  %v16863_v12 = vcombine.low %v4502_v8, %v4510_v10  ;;  %v4597_v10 = vld [vmem:[#allocation7 + $0xeb0] sm:$0xff] }
 0x5e1   :  { %11451 = vmatpush1.bf16.msra.mxu0 %v16765_v18  ;;  %v4525_v18 = vld [vmem:[#allocation7 + $0xc70] sm:$0xff] }
 0x5e2   :  { %11615 = vmatpush1.bf16.msra.mxu1 %v16767_v20  ;;  %11452 = vmatprep.subr.bf16.mxu0 %v16782_v22  ;;  %v4518_v20 = vld [vmem:[#allocation7 + $0xc38] sm:$0xff]  ;;  %v16878_v28 = vcombine.high %v4517_v17, %v4525_v18 }
 0x5e3   :  { %11616 = vmatprep.subr.bf16.mxu1 %v16784_v53  ;;  %v4526_v22 = vld [vmem:[#allocation7 + $0xc78] sm:$0xff]  ;;  %v16861_v53 = vcombine.low %v4501_v43, %v4509_v7 }
 0x5e4   :  { %v16880_v30 = vcombine.high %v4518_v20, %v4526_v22  ;;  %v16879_v21 = vcombine.low %v4518_v20, %v4526_v22  ;;  %v4613_v22 = vld [vmem:[#allocation7 + $0xf30] sm:$0xff] }
 0x5e5   :  { %11453 = vmatpush1.bf16.msra.mxu0 %v16781_v32  ;;  %v4541_v32 = vld [vmem:[#allocation7 + $0xcf0] sm:$0xff] }
 0x5e6   :  { %11617 = vmatpush1.bf16.msra.mxu1 %v16783_v2  ;;  %11454 = vmatprep.subr.bf16.mxu0 %v16798_v35  ;;  %v4534_v2 = vld [vmem:[#allocation7 + $0xcb8] sm:$0xff]  ;;  %v16894_v42 = vcombine.high %v4533_v31, %v4541_v32 }
 0x5e7   :  { %11618 = vmatprep.subr.bf16.mxu1 %v16800_v40  ;;  %v4542_v35 = vld [vmem:[#allocation7 + $0xcf8] sm:$0xff]  ;;  %v16877_v40 = vcombine.low %v4517_v17, %v4525_v18 }
 0x5e8   :  { %v16896_v3 = vcombine.high %v4534_v2, %v4542_v35  ;;  %v16895_v13 = vcombine.low %v4534_v2, %v4542_v35  ;;  %v4629_v35 = vld [vmem:[#allocation7 + $0xfb0] sm:$0xff] }
 0x5e9   :  { %11455 = vmatpush1.bf16.msra.mxu0 %v16797_v5  ;;  %v4557_v5 = vld [vmem:[#allocation7 + $0xd70] sm:$0xff] }
 0x5ea   :  { %11619 = vmatpush1.bf16.msra.mxu1 %v16799_v39  ;;  %11456 = vmatprep.subr.bf16.mxu0 %v16814_v45  ;;  %v4550_v39 = vld [vmem:[#allocation7 + $0xd38] sm:$0xff]  ;;  %v16910_v34 = vcombine.high %v4549_v44, %v4557_v5 }
 0x5eb   :  { %11620 = vmatprep.subr.bf16.mxu1 %v16816_v15  ;;  %v4558_v45 = vld [vmem:[#allocation7 + $0xd78] sm:$0xff]  ;;  %v16893_v15 = vcombine.low %v4533_v31, %v4541_v32 }
 0x5ec   :  { %v16912_v47 = vcombine.high %v4550_v39, %v4558_v45  ;;  %v16911_v60 = vcombine.low %v4550_v39, %v4558_v45  ;;  %v4645_v45 = vld [vmem:[#allocation7 + $0x1030] sm:$0xff] }
 0x5ed   :  { %11457 = vmatpush1.bf16.msra.mxu0 %v16813_v48  ;;  %v4573_v48 = vld [vmem:[#allocation7 + $0xdf0] sm:$0xff] }
 0x5ee   :  { %11621 = vmatpush1.bf16.msra.mxu1 %v16815_v54  ;;  %11458 = vmatprep.subr.bf16.mxu0 %v16830_v56  ;;  %v4566_v54 = vld [vmem:[#allocation7 + $0xdb8] sm:$0xff]  ;;  %v16926_v36 = vcombine.high %v4565_v24, %v4573_v48 }
 0x5ef   :  { %11622 = vmatprep.subr.bf16.mxu1 %v16832_v37  ;;  %v4574_v56 = vld [vmem:[#allocation7 + $0xdf8] sm:$0xff]  ;;  %v16909_v37 = vcombine.low %v4549_v44, %v4557_v5 }
 0x5f0   :  { %v16928_v19 = vcombine.high %v4566_v54, %v4574_v56  ;;  %v16927_v43 = vcombine.low %v4566_v54, %v4574_v56  ;;  %v4661_v56 = vld [vmem:[#allocation7 + $0x10b0] sm:$0xff] }
 0x5f1   :  { %11459 = vmatpush1.bf16.msra.mxu0 %v16829_v62  ;;  %v4589_v62 = vld [vmem:[#allocation7 + $0xe70] sm:$0xff] }
 0x5f2   :  { %11623 = vmatpush1.bf16.msra.mxu1 %v16831_v63  ;;  %11460 = vmatprep.subr.bf16.mxu0 %v16846_v0  ;;  %v4582_v63 = vld [vmem:[#allocation7 + $0xe38] sm:$0xff]  ;;  %v16942_v7 = vcombine.high %v4581_v25, %v4589_v62 }
 0x5f3   :  { %11624 = vmatprep.subr.bf16.mxu1 %v16848_v1  ;;  %v4590_v0 = vld [vmem:[#allocation7 + $0xe78] sm:$0xff]  ;;  %v16925_v1 = vcombine.low %v4565_v24, %v4573_v48 }
 0x5f4   :  { %v16944_v8 = vcombine.high %v4582_v63, %v4590_v0  ;;  %v16943_v17 = vcombine.low %v4582_v63, %v4590_v0  ;;  %v4677_v63 = vld [vmem:[#allocation7 + $0x1130] sm:$0xff] }
 0x5f5   :  { %11461 = vmatpush1.bf16.msra.mxu0 %v16845_v11  ;;  %v4605_v11 = vld [vmem:[#allocation7 + $0xef0] sm:$0xff] }
 0x5f6   :  { %11625 = vmatpush1.bf16.msra.mxu1 %v16847_v14  ;;  %11462 = vmatprep.subr.bf16.mxu0 %v16862_v52  ;;  %v4598_v14 = vld [vmem:[#allocation7 + $0xeb8] sm:$0xff]  ;;  %v16958_v18 = vcombine.high %v4597_v10, %v4605_v11  ;;  %v4685_v0 = vld [vmem:[#allocation7 + $0x1170] sm:$0xff] }
 0x5f7   :  { %11626 = vmatprep.subr.bf16.mxu1 %v16864_v27  ;;  %v4606_v52 = vld [vmem:[#allocation7 + $0xef8] sm:$0xff]  ;;  %v16941_v27 = vcombine.low %v4581_v25, %v4589_v62 }
 0x5f8   :  { %v16960_v20 = vcombine.high %v4598_v14, %v4606_v52  ;;  %v16959_v31 = vcombine.low %v4598_v14, %v4606_v52  ;;  %v4693_v52 = vld [vmem:[#allocation7 + $0x11b0] sm:$0xff] }
 0x5f9   :  { %11463 = vmatpush1.bf16.msra.mxu0 %v16861_v53  ;;  %v4621_v53 = vld [vmem:[#allocation7 + $0xf70] sm:$0xff] }
 0x5fa   :  { %11627 = vmatpush1.bf16.msra.mxu1 %v16863_v12  ;;  %11464 = vmatprep.subr.bf16.mxu0 %v16878_v28  ;;  %v4614_v12 = vld [vmem:[#allocation7 + $0xf38] sm:$0xff]  ;;  %v16974_v32 = vcombine.high %v4613_v22, %v4621_v53 }
 0x5fb   :  { %11628 = vmatprep.subr.bf16.mxu1 %v16880_v30  ;;  %v4622_v28 = vld [vmem:[#allocation7 + $0xf78] sm:$0xff]  ;;  %v16957_v30 = vcombine.low %v4597_v10, %v4605_v11  ;;  %v17038_v11 = vcombine.high %v4677_v63, %v4685_v0 }
 0x5fc   :  { %v16976_v2 = vcombine.high %v4614_v12, %v4622_v28  ;;  %v16975_v44 = vcombine.low %v4614_v12, %v4622_v28  ;;  %v4709_v12 = vld [vmem:[#allocation7 + $0x1230] sm:$0xff] }
 0x5fd   :  { %11465 = vmatpush1.bf16.msra.mxu0 %v16877_v40  ;;  %v4637_v40 = vld [vmem:[#allocation7 + $0xff0] sm:$0xff] }
 0x5fe   :  { %11629 = vmatpush1.bf16.msra.mxu1 %v16879_v21  ;;  %11466 = vmatprep.subr.bf16.mxu0 %v16894_v42  ;;  %v4630_v21 = vld [vmem:[#allocation7 + $0xfb8] sm:$0xff]  ;;  %v16990_v5 = vcombine.high %v4629_v35, %v4637_v40  ;;  %v4717_v28 = vld [vmem:[#allocation7 + $0x1270] sm:$0xff] }
 0x5ff   :  { %11630 = vmatprep.subr.bf16.mxu1 %v16896_v3  ;;  %v4638_v42 = vld [vmem:[#allocation7 + $0xff8] sm:$0xff]  ;;  %v16973_v3 = vcombine.low %v4613_v22, %v4621_v53 }
 0x600   :  { %v16992_v39 = vcombine.high %v4630_v21, %v4638_v42  ;;  %v16991_v24 = vcombine.low %v4630_v21, %v4638_v42  ;;  %v4733_v21 = vld [vmem:[#allocation7 + $0x12f0] sm:$0xff]  ;;  %v4726_v42 = vld [vmem:[#allocation7 + $0x12b8] sm:$0xff] }
 0x601   :  { %11467 = vmatpush1.bf16.msra.mxu0 %v16893_v15  ;;  %v4653_v15 = vld [vmem:[#allocation7 + $0x1070] sm:$0xff] }
 0x602   :  { %11631 = vmatpush1.bf16.msra.mxu1 %v16895_v13  ;;  %11468 = vmatprep.subr.bf16.mxu0 %v16910_v34  ;;  %v4646_v13 = vld [vmem:[#allocation7 + $0x1038] sm:$0xff]  ;;  %v17006_v48 = vcombine.high %v4645_v45, %v4653_v15 }
 0x603   :  { %11632 = vmatprep.subr.bf16.mxu1 %v16912_v47  ;;  %v4654_v34 = vld [vmem:[#allocation7 + $0x1078] sm:$0xff]  ;;  %v16989_v47 = vcombine.low %v4629_v35, %v4637_v40  ;;  %v4725_v40 = vld [vmem:[#allocation7 + $0x12b0] sm:$0xff] }
 0x604   :  { %v17008_v54 = vcombine.high %v4646_v13, %v4654_v34  ;;  %v17007_v25 = vcombine.low %v4646_v13, %v4654_v34  ;;  %v4749_v13 = vld [vmem:[#allocation7 + $0x1370] sm:$0xff]  ;;  %v4742_v34 = vld [vmem:[#allocation7 + $0x1338] sm:$0xff] }
 0x605   :  { %11469 = vmatpush1.bf16.msra.mxu0 %v16909_v37  ;;  %v4669_v37 = vld [vmem:[#allocation7 + $0x10f0] sm:$0xff] }
 0x606   :  { %11633 = vmatpush1.bf16.msra.mxu1 %v16911_v60  ;;  %11470 = vmatprep.subr.bf16.mxu0 %v16926_v36  ;;  %v17005_v60 = vcombine.low %v4645_v45, %v4653_v15  ;;  %v4662_v36 = vld [vmem:[#allocation7 + $0x10b8] sm:$0xff]  ;;  %v17022_v62 = vcombine.high %v4661_v56, %v4669_v37  ;;  %v4741_v15 = vld [vmem:[#allocation7 + $0x1330] sm:$0xff] }
 0x607   :  { %11634 = vmatprep.subr.bf16.mxu1 %v16928_v19  ;;  %v4670_v19 = vld [vmem:[#allocation7 + $0x10f8] sm:$0xff] }
 0x608   :  { %v17023_v10 = vcombine.low %v4662_v36, %v4670_v19 }
 0x609   :  { %11471 = vmatpush1.bf16.msra.mxu0 %v16925_v1  ;;  %v17024_v1 = vcombine.high %v4662_v36, %v4670_v19  ;;  %v4758_v36 = vld [vmem:[#allocation7 + $0x13b8] sm:$0xff] }
 0x60a   :  { %11635 = vmatpush1.bf16.msra.mxu1 %v16927_v43  ;;  %11472 = vmatprep.subr.bf16.mxu0 %v16942_v7  ;;  %v4678_v43 = vld [vmem:[#allocation7 + $0x1138] sm:$0xff] }
 0x60b   :  { %11636 = vmatprep.subr.bf16.mxu1 %v16944_v8  ;;  %v4686_v7 = vld [vmem:[#allocation7 + $0x1178] sm:$0xff]  ;;  %v17021_v8 = vcombine.low %v4661_v56, %v4669_v37  ;;  %v4757_v37 = vld [vmem:[#allocation7 + $0x13b0] sm:$0xff] }
 0x60c   :  { %v17040_v14 = vcombine.high %v4678_v43, %v4686_v7  ;;  %v4766_v19 = vld [vmem:[#allocation7 + $0x13f8] sm:$0xff] }
 0x60d   :  { %11473 = vmatpush1.bf16.msra.mxu0 %v16941_v27  ;;  %v4701_v27 = vld [vmem:[#allocation7 + $0x11f0] sm:$0xff] }
 0x60e   :  { %11637 = vmatpush1.bf16.msra.mxu1 %v16943_v17  ;;  %11474 = vmatprep.subr.bf16.mxu0 %v16958_v18  ;;  %v4694_v17 = vld [vmem:[#allocation7 + $0x11b8] sm:$0xff]  ;;  %v17054_v22 = vcombine.high %v4693_v52, %v4701_v27 }
 0x60f   :  { %11638 = vmatprep.subr.bf16.mxu1 %v16960_v20  ;;  %v4702_v18 = vld [vmem:[#allocation7 + $0x11f8] sm:$0xff]  ;;  %v17037_v20 = vcombine.low %v4677_v63, %v4685_v0  ;;  %v17120_v0 = vcombine.high %v4758_v36, %v4766_v19 }
 0x610   :  { %v17056_v53 = vcombine.high %v4694_v17, %v4702_v18 }
 0x611   :  { %11475 = vmatpush1.bf16.msra.mxu0 %v16957_v30  ;;  %v4710_v30 = vld [vmem:[#allocation7 + $0x1238] sm:$0xff] }
 0x612   :  { %11639 = vmatpush1.bf16.msra.mxu1 %v16959_v31  ;;  %11476 = vmatprep.subr.bf16.mxu0 %v16974_v32  ;;  %v4718_v31 = vld [vmem:[#allocation7 + $0x1278] sm:$0xff]  ;;  %v17055_v32 = vcombine.low %v4694_v17, %v4702_v18  ;;  %v4797_v17 = vld [vmem:[#allocation7 + $0x14f0] sm:$0xff] }
 0x613   :  { %11640 = vmatprep.subr.bf16.mxu1 %v16976_v2  ;;  %v17070_v2 = vcombine.high %v4709_v12, %v4717_v28  ;;  %v17072_v35 = vcombine.high %v4710_v30, %v4718_v31  ;;  %v4790_v18 = vld [vmem:[#allocation7 + $0x14b8] sm:$0xff] }
 0x615   :  { %11477 = vmatpush1.bf16.msra.mxu0 %v16973_v3  ;;  %v4734_v3 = vld [vmem:[#allocation7 + $0x12f8] sm:$0xff] }
 0x616   :  { %11641 = vmatpush1.bf16.msra.mxu1 %v16975_v44  ;;  %11478 = vmatprep.subr.bf16.mxu0 %v16990_v5  ;;  %v17069_v44 = vcombine.low %v4709_v12, %v4717_v28  ;;  %v17071_v5 = vcombine.low %v4710_v30, %v4718_v31  ;;  %v17088_v45 = vcombine.high %v4726_v42, %v4734_v3  ;;  %v4805_v28 = vld [vmem:[#allocation7 + $0x1530] sm:$0xff]  ;;  %v4806_v31 = vld [vmem:[#allocation7 + $0x1538] sm:$0xff] }
 0x617   :  { %11642 = vmatprep.subr.bf16.mxu1 %v16992_v39  ;;  %v17086_v39 = vcombine.high %v4725_v40, %v4733_v21  ;;  %v4813_v30 = vld [vmem:[#allocation7 + $0x1570] sm:$0xff] }
 0x619   :  { %11479 = vmatpush1.bf16.msra.mxu0 %v16989_v47  ;;  %v4750_v47 = vld [vmem:[#allocation7 + $0x1378] sm:$0xff] }
 0x61a   :  { %11643 = vmatpush1.bf16.msra.mxu1 %v16991_v24  ;;  %11489 = vmatprep.subr.bf16.mxu0 %v17006_v48  ;;  %v17085_v24 = vcombine.low %v4725_v40, %v4733_v21  ;;  %v17087_v48 = vcombine.low %v4726_v42, %v4734_v3  ;;  %v17104_v56 = vcombine.high %v4742_v34, %v4750_v47  ;;  %v4821_v21 = vld [vmem:[#allocation7 + $0x15b0] sm:$0xff]  ;;  %v4822_v3 = vld [vmem:[#allocation7 + $0x15b8] sm:$0xff] }
 0x61b   :  { %11653 = vmatprep.subr.bf16.mxu1 %v17008_v54  ;;  %v17102_v54 = vcombine.high %v4741_v15, %v4749_v13  ;;  %v4829_v42 = vld [vmem:[#allocation7 + $0x15f0] sm:$0xff] }
 0x61c   :  { %11481 = vmatmul.mubr.bf16.vlgmr.msra.gmra.mrb[20].mxu0 %v19556_v26 }
 0x61d   :  { %11645 = vmatmul.mubr.bf16.vlgmr.msra.gmra.mrb[20].mxu1 %v19556_v26  ;;  %11490 = vmatpush1.bf16.msra.mxu0 %v17005_v60  ;;  %v17039_v26 = vcombine.low %v4678_v43, %v4686_v7  ;;  %v4765_v60 = vld [vmem:[#allocation7 + $0x13f0] sm:$0xff]  ;;  %v4774_v7 = vld [vmem:[#allocation7 + $0x1438] sm:$0xff] }
 0x61e   :  { %11521 = vmatprep.mubr.bf16.mxu0 %v19598_v58  ;;  %11654 = vmatpush1.bf16.msra.mxu1 %v17007_v25  ;;  %v17101_v25 = vcombine.low %v4741_v15, %v4749_v13  ;;  %v17118_v63 = vcombine.high %v4757_v37, %v4765_v60  ;;  %v4781_v43 = vld [vmem:[#allocation7 + $0x1470] sm:$0xff] }
 0x61f   :  { %11685 = vmatprep.mubr.bf16.mxu1 %v19598_v58  ;;  %11491 = vmatprep.subr.bf16.mxu0 %v17022_v62  ;;  %v17053_v58 = vcombine.low %v4693_v52, %v4701_v27  ;;  %v17103_v62 = vcombine.low %v4742_v34, %v4750_v47  ;;  %v4789_v27 = vld [vmem:[#allocation7 + $0x14b0] sm:$0xff]  ;;  %v4838_v47 = vld [vmem:[#allocation7 + $0x1638] sm:$0xff] }
 0x620   :  { %11655 = vmatprep.subr.bf16.mxu1 %v17024_v1  ;;  %v4773_v1 = vld [vmem:[#allocation7 + $0x1430] sm:$0xff] }
 0x621   :  { %11492 = vmatpush1.bf16.msra.mxu0 %v17021_v8  ;;  %v4782_v8 = vld [vmem:[#allocation7 + $0x1478] sm:$0xff]  ;;  %v4837_v13 = vld [vmem:[#allocation7 + $0x1630] sm:$0xff] }
 0x622   :  { %11656 = vmatpush1.bf16.msra.mxu1 %v17023_v10  ;;  %11493 = vmatprep.subr.bf16.mxu0 %v17038_v11  ;;  %v17117_v10 = vcombine.low %v4757_v37, %v4765_v60  ;;  %v17119_v11 = vcombine.low %v4758_v36, %v4766_v19  ;;  %v17136_v52 = vcombine.high %v4774_v7, %v4782_v8  ;;  %v4845_v34 = vld [vmem:[#allocation7 + $0x1670] sm:$0xff]  ;;  %v4854_v19 = vld [vmem:[#allocation7 + $0x16b8] sm:$0xff] }
 0x623   :  { %11657 = vmatprep.subr.bf16.mxu1 %v17040_v14  ;;  %v17134_v14 = vcombine.high %v4773_v1, %v4781_v43  ;;  %v4853_v60 = vld [vmem:[#allocation7 + $0x16b0] sm:$0xff] }
 0x624   :  { %v4861_v36 = vld [vmem:[#allocation7 + $0x16f0] sm:$0xff] }
 0x625   :  { %11494 = vmatpush1.bf16.msra.mxu0 %v17037_v20  ;;  %v4798_v20 = vld [vmem:[#allocation7 + $0x14f8] sm:$0xff] }
 0x626   :  { %11658 = vmatpush1.bf16.msra.mxu1 %v17039_v26  ;;  %11495 = vmatprep.subr.bf16.mxu0 %v17054_v22  ;;  %v17133_v26 = vcombine.low %v4773_v1, %v4781_v43  ;;  %v17135_v22 = vcombine.low %v4774_v7, %v4782_v8  ;;  %v17152_v12 = vcombine.high %v4790_v18, %v4798_v20  ;;  %v4869_v43 = vld [vmem:[#allocation7 + $0x1730] sm:$0xff]  ;;  %v4870_v8 = vld [vmem:[#allocation7 + $0x1738] sm:$0xff] }
 0x627   :  { %11659 = vmatprep.subr.bf16.mxu1 %v17056_v53  ;;  %v17150_v53 = vcombine.high %v4789_v27, %v4797_v17  ;;  %v4877_v7 = vld [vmem:[#allocation7 + $0x1770] sm:$0xff] }
 0x629   :  { %11496 = vmatpush1.bf16.msra.mxu0 %v17053_v58  ;;  %v4814_v58 = vld [vmem:[#allocation7 + $0x1578] sm:$0xff] }
 0x62a   :  { %11660 = vmatpush1.bf16.msra.mxu1 %v17055_v32  ;;  %11497 = vmatprep.subr.bf16.mxu0 %v17070_v2  ;;  %v17149_v32 = vcombine.low %v4789_v27, %v4797_v17  ;;  %v17151_v2 = vcombine.low %v4790_v18, %v4798_v20  ;;  %v17168_v40 = vcombine.high %v4806_v31, %v4814_v58  ;;  %v4885_v17 = vld [vmem:[#allocation7 + $0x17b0] sm:$0xff]  ;;  %v4886_v20 = vld [vmem:[#allocation7 + $0x17b8] sm:$0xff] }
 0x62b   :  { %11661 = vmatprep.subr.bf16.mxu1 %v17072_v35  ;;  %v17166_v35 = vcombine.high %v4805_v28, %v4813_v30  ;;  %v4893_v18 = vld [vmem:[#allocation7 + $0x17f0] sm:$0xff] }
 0x62d   :  { %11498 = vmatpush1.bf16.msra.mxu0 %v17069_v44  ;;  %v4830_v44 = vld [vmem:[#allocation7 + $0x15f8] sm:$0xff] }
 0x62e   :  { %11662 = vmatpush1.bf16.msra.mxu1 %v17071_v5  ;;  %11499 = vmatprep.subr.bf16.mxu0 %v17086_v39  ;;  %v17165_v5 = vcombine.low %v4805_v28, %v4813_v30  ;;  %v17167_v39 = vcombine.low %v4806_v31, %v4814_v58  ;;  %v17184_v15 = vcombine.high %v4822_v3, %v4830_v44  ;;  %v4901_v30 = vld [vmem:[#allocation7 + $0x1830] sm:$0xff]  ;;  %v4902_v58 = vld [vmem:[#allocation7 + $0x1838] sm:$0xff] }
 0x62f   :  { %11663 = vmatprep.subr.bf16.mxu1 %v17088_v45  ;;  %v17182_v45 = vcombine.high %v4821_v21, %v4829_v42  ;;  %v4909_v31 = vld [vmem:[#allocation7 + $0x1870] sm:$0xff] }
 0x631   :  { %11500 = vmatpush1.bf16.msra.mxu0 %v17085_v24  ;;  %v4846_v24 = vld [vmem:[#allocation7 + $0x1678] sm:$0xff] }
 0x632   :  { %11664 = vmatpush1.bf16.msra.mxu1 %v17087_v48  ;;  %11501 = vmatprep.subr.bf16.mxu0 %v17102_v54  ;;  %v17181_v48 = vcombine.low %v4821_v21, %v4829_v42  ;;  %v17183_v54 = vcombine.low %v4822_v3, %v4830_v44  ;;  %v17200_v37 = vcombine.high %v4838_v47, %v4846_v24  ;;  %v4917_v42 = vld [vmem:[#allocation7 + $0x18b0] sm:$0xff] }
 0x633   :  { %11665 = vmatprep.subr.bf16.mxu1 %v17104_v56  ;;  %v17198_v56 = vcombine.high %v4837_v13, %v4845_v34  ;;  %v4925_v3 = vld [vmem:[#allocation7 + $0x18f0] sm:$0xff]  ;;  %v17261_v44 = vcombine.low %v4901_v30, %v4909_v31 }
 0x635   :  { %11502 = vmatpush1.bf16.msra.mxu0 %v17101_v25  ;;  %v4862_v25 = vld [vmem:[#allocation7 + $0x16f8] sm:$0xff] }
 0x636   :  { %11666 = vmatpush1.bf16.msra.mxu1 %v17103_v62  ;;  %11503 = vmatprep.subr.bf16.mxu0 %v17118_v63  ;;  %v17197_v62 = vcombine.low %v4837_v13, %v4845_v34  ;;  %v17199_v63 = vcombine.low %v4838_v47, %v4846_v24  ;;  %v17216_v1 = vcombine.high %v4854_v19, %v4862_v25  ;;  %v4933_v13 = vld [vmem:[#allocation7 + $0x1930] sm:$0xff]  ;;  %v4934_v24 = vld [vmem:[#allocation7 + $0x1938] sm:$0xff] }
 0x637   :  { %11667 = vmatprep.subr.bf16.mxu1 %v17120_v0  ;;  %v17214_v0 = vcombine.high %v4853_v60, %v4861_v36  ;;  %v4941_v34 = vld [vmem:[#allocation7 + $0x1970] sm:$0xff] }
 0x639   :  { %11504 = vmatpush1.bf16.msra.mxu0 %v17117_v10  ;;  %v4878_v10 = vld [vmem:[#allocation7 + $0x1778] sm:$0xff] }
 0x63a   :  { %11668 = vmatpush1.bf16.msra.mxu1 %v17119_v11  ;;  %11505 = vmatprep.subr.bf16.mxu0 %v17134_v14  ;;  %v17213_v11 = vcombine.low %v4853_v60, %v4861_v36  ;;  %v17215_v14 = vcombine.low %v4854_v19, %v4862_v25  ;;  %v17232_v27 = vcombine.high %v4870_v8, %v4878_v10  ;;  %v4949_v36 = vld [vmem:[#allocation7 + $0x19b0] sm:$0xff]  ;;  %v4950_v25 = vld [vmem:[#allocation7 + $0x19b8] sm:$0xff] }
 0x63b   :  { %11669 = vmatprep.subr.bf16.mxu1 %v17136_v52  ;;  %v17230_v52 = vcombine.high %v4869_v43, %v4877_v7  ;;  %v4957_v19 = vld [vmem:[#allocation7 + $0x19f0] sm:$0xff] }
 0x63d   :  { %11506 = vmatpush1.bf16.msra.mxu0 %v17133_v26  ;;  %v4894_v26 = vld [vmem:[#allocation7 + $0x17f8] sm:$0xff] }
 0x63e   :  { %11670 = vmatpush1.bf16.msra.mxu1 %v17135_v22  ;;  %11507 = vmatprep.subr.bf16.mxu0 %v17150_v53  ;;  %v17229_v22 = vcombine.low %v4869_v43, %v4877_v7  ;;  %v17231_v53 = vcombine.low %v4870_v8, %v4878_v10  ;;  %v17248_v28 = vcombine.high %v4886_v20, %v4894_v26  ;;  %v4965_v43 = vld [vmem:[#allocation7 + $0x1a30] sm:$0xff]  ;;  %v4966_v8 = vld [vmem:[#allocation7 + $0x1a38] sm:$0xff] }
 0x63f   :  { %11671 = vmatprep.subr.bf16.mxu1 %v17152_v12  ;;  %v17246_v12 = vcombine.high %v4885_v17, %v4893_v18  ;;  %v4973_v7 = vld [vmem:[#allocation7 + $0x1a70] sm:$0xff]  ;;  %v4974_v10 = vld [vmem:[#allocation7 + $0x1a78] sm:$0xff] }
 0x641   :  { %11508 = vmatpush1.bf16.msra.mxu0 %v17149_v32  ;;  %v4910_v32 = vld [vmem:[#allocation7 + $0x1878] sm:$0xff] }
 0x642   :  { %11672 = vmatpush1.bf16.msra.mxu1 %v17151_v2  ;;  %11509 = vmatprep.subr.bf16.mxu0 %v17166_v35  ;;  %v17245_v2 = vcombine.low %v4885_v17, %v4893_v18  ;;  %v17247_v35 = vcombine.low %v4886_v20, %v4894_v26  ;;  %v17264_v21 = vcombine.high %v4902_v58, %v4910_v32  ;;  %v4981_v18 = vld [vmem:[#allocation7 + $0x1ab0] sm:$0xff] }
 0x643   :  { %11673 = vmatprep.subr.bf16.mxu1 %v17168_v40  ;;  %v17262_v40 = vcombine.high %v4901_v30, %v4909_v31  ;;  %v17328_v17 = vcombine.high %v4966_v8, %v4974_v10  ;;  %v4989_v20 = vld [vmem:[#allocation7 + $0x1af0] sm:$0xff]  ;;  %v17327_v30 = vcombine.low %v4966_v8, %v4974_v10  ;;  %v5038_v8 = vld [vmem:[#allocation7 + $0x1c78] sm:$0xff] }
 0x644   :  { %v17342_v31 = vcombine.high %v4981_v18, %v4989_v20 }
 0x645   :  { %11510 = vmatpush1.bf16.msra.mxu0 %v17165_v5  ;;  %v4918_v5 = vld [vmem:[#allocation7 + $0x18b8] sm:$0xff] }
 0x646   :  { %11674 = vmatpush1.bf16.msra.mxu1 %v17167_v39  ;;  %11511 = vmatprep.subr.bf16.mxu0 %v17182_v45  ;;  %v4926_v39 = vld [vmem:[#allocation7 + $0x18f8] sm:$0xff]  ;;  %v17263_v45 = vcombine.low %v4902_v58, %v4910_v32  ;;  %v4997_v32 = vld [vmem:[#allocation7 + $0x1b30] sm:$0xff] }
 0x647   :  { %11675 = vmatprep.subr.bf16.mxu1 %v17184_v15  ;;  %v17278_v15 = vcombine.high %v4917_v42, %v4925_v3  ;;  %v17280_v47 = vcombine.high %v4918_v5, %v4926_v39 }
 0x649   :  { %11512 = vmatpush1.bf16.msra.mxu0 %v17181_v48  ;;  %v4942_v48 = vld [vmem:[#allocation7 + $0x1978] sm:$0xff] }
 0x64a   :  { %11676 = vmatpush1.bf16.msra.mxu1 %v17183_v54  ;;  %11513 = vmatprep.subr.bf16.mxu0 %v17198_v56  ;;  %v17277_v54 = vcombine.low %v4917_v42, %v4925_v3  ;;  %v17279_v56 = vcombine.low %v4918_v5, %v4926_v39  ;;  %v17296_v60 = vcombine.high %v4934_v24, %v4942_v48 }
 0x64b   :  { %11677 = vmatprep.subr.bf16.mxu1 %v17200_v37  ;;  %v17294_v37 = vcombine.high %v4933_v13, %v4941_v34  ;;  %v17341_v3 = vcombine.low %v4981_v18, %v4989_v20  ;;  %v5045_v20 = vld [vmem:[#allocation7 + $0x1cb0] sm:$0xff] }
 0x64d   :  { %11514 = vmatpush1.bf16.msra.mxu0 %v17197_v62  ;;  %v4958_v62 = vld [vmem:[#allocation7 + $0x19f8] sm:$0xff] }
 0x64e   :  { %11678 = vmatpush1.bf16.msra.mxu1 %v17199_v63  ;;  %11515 = vmatprep.subr.bf16.mxu0 %v17214_v0  ;;  %v17293_v63 = vcombine.low %v4933_v13, %v4941_v34  ;;  %v17310_v0 = vcombine.high %v4949_v36, %v4957_v19  ;;  %v5021_v13 = vld [vmem:[#allocation7 + $0x1bf0] sm:$0xff] }
 0x64f   :  { %11679 = vmatprep.subr.bf16.mxu1 %v17216_v1  ;;  %v17312_v1 = vcombine.high %v4950_v25, %v4958_v62 }
 0x651   :  { %11516 = vmatpush1.bf16.msra.mxu0 %v17213_v11  ;;  %v19726_v11 = vld [vmem:[#allocation8 + $0x20] sm:$0x77] }
 0x652   :  { %11680 = vmatpush1.bf16.msra.mxu1 %v17215_v14  ;;  %11517 = vmatprep.subr.bf16.mxu0 %v17230_v52  ;;  %v17311_v14 = vcombine.low %v4950_v25, %v4958_v62  ;;  %v17326_v52 = vcombine.high %v4965_v43, %v4973_v7  ;;  %v5194_v26 = vrot.slane %v19726_v11, %v19471_v50 }
 0x653   :  { %11681 = vmatprep.subr.bf16.mxu1 %v17232_v27  ;;  %v19728_v27 = vld [vmem:[#allocation8 + $0x28] sm:$0x77] }
 0x655   :  { %11518 = vmatpush1.bf16.msra.mxu0 %v17229_v22  ;;  %v4982_v22 = vld [vmem:[#allocation7 + $0x1ab8] sm:$0xff] }
 0x656   :  { %11682 = vmatpush1.bf16.msra.mxu1 %v17231_v53  ;;  %11519 = vmatprep.subr.bf16.mxu0 %v17246_v12  ;;  %v4990_v53 = vld [vmem:[#allocation7 + $0x1af8] sm:$0xff]  ;;  %v17325_v12 = vcombine.low %v4965_v43, %v4973_v7  ;;  %v5037_v43 = vld [vmem:[#allocation7 + $0x1c70] sm:$0xff] }
 0x657   :  { %11683 = vmatprep.subr.bf16.mxu1 %v17248_v28  ;;  %v5202_v28 = vrot.slane %v19728_v27, %v19471_v50  ;;  %v17344_v58 = vcombine.high %v4982_v22, %v4990_v53  ;;  %v5030_v7 = vld [vmem:[#allocation7 + $0x1c38] sm:$0xff] }
 0x658   :  { %v17392_v18 = vcombine.high %v5030_v7, %v5038_v8 }
 0x659   :  { %11520 = vmatpush1.bf16.msra.mxu0 %v17245_v2  ;;  %v5005_v2 = vld [vmem:[#allocation7 + $0x1b70] sm:$0xff]  ;;  %v5282_v42 = vrot.slane %v5202_v28, %v19471_v50  ;;  %v11954_v28 = vrot.slane %v19728_v27, %v19491_v33 }
 0x65a   :  { %11684 = vmatpush1.bf16.msra.mxu1 %v17247_v35  ;;  %11530 = vmatprep.subr.bf16.mxu0 %v17262_v40  ;;  %v5274_v35 = vrot.slane %v5194_v26, %v19471_v50  ;;  %v4998_v40 = vld [vmem:[#allocation7 + $0x1b38] sm:$0xff]  ;;  %v17358_v5 = vcombine.high %v4997_v32, %v5005_v2  ;;  %v5053_v26 = vld [vmem:[#allocation7 + $0x1cf0] sm:$0xff] }
 0x65b   :  { %11694 = vmatprep.subr.bf16.mxu1 %v17264_v21  ;;  %v5006_v21 = vld [vmem:[#allocation7 + $0x1b78] sm:$0xff] }
 0x65c   :  { %11522 = vmatmul.mubr.bf16.vlgmr.msra.gmra.mrb[20].mxu0 %v19604_v49  ;;  %v17359_v62 = vcombine.low %v4998_v40, %v5006_v21 }
 0x65d   :  { %11686 = vmatmul.mubr.bf16.vlgmr.msra.gmra.mrb[20].mxu1 %v19604_v49  ;;  %11531 = vmatpush1.bf16.msra.mxu0 %v17261_v44  ;;  %v17295_v49 = vcombine.low %v4934_v24, %v4942_v48  ;;  %v17343_v44 = vcombine.low %v4982_v22, %v4990_v53  ;;  %v5014_v48 = vld [vmem:[#allocation7 + $0x1bb8] sm:$0xff]  ;;  %v11946_v22 = vrot.slane %v19726_v11, %v19491_v33 }
 0x65e   :  { %11562 = vmatprep.mubr.bf16.mxu0 %v19608_v61  ;;  %11695 = vmatpush1.bf16.msra.mxu1 %v17263_v45  ;;  %v17360_v45 = vcombine.high %v4998_v40, %v5006_v21  ;;  %v5046_v53 = vld [vmem:[#allocation7 + $0x1cb8] sm:$0xff]  ;;  %v5061_v21 = vld [vmem:[#allocation7 + $0x1d30] sm:$0xff] }
 0x65f   :  { %11726 = vmatprep.mubr.bf16.mxu1 %v19608_v61  ;;  %11532 = vmatprep.subr.bf16.mxu0 %v17278_v15  ;;  %v17309_v61 = vcombine.low %v4949_v36, %v4957_v19  ;;  %v5013_v15 = vld [vmem:[#allocation7 + $0x1bb0] sm:$0xff]  ;;  %v17357_v36 = vcombine.low %v4997_v32, %v5005_v2  ;;  %v17406_v32 = vcombine.high %v5045_v20, %v5053_v26 }
 0x660   :  { %11696 = vmatprep.subr.bf16.mxu1 %v17280_v47  ;;  %v17373_v10 = vcombine.low %v5013_v15, %v5021_v13 }
 0x661   :  { %11533 = vmatpush1.bf16.msra.mxu0 %v17277_v54  ;;  %v5022_v54 = vld [vmem:[#allocation7 + $0x1bf8] sm:$0xff] }
 0x662   :  { %11697 = vmatpush1.bf16.msra.mxu1 %v17279_v56  ;;  %11534 = vmatprep.subr.bf16.mxu0 %v17294_v37 }
 0x663   :  { %11698 = vmatprep.subr.bf16.mxu1 %v17296_v60 }
 0x665   :  { %11535 = vmatpush1.bf16.msra.mxu0 %v17293_v63  ;;  %v17374_v63 = vcombine.high %v5013_v15, %v5021_v13  ;;  %v17405_v15 = vcombine.low %v5045_v20, %v5053_v26  ;;  %v5109_v26 = vld [vmem:[#allocation7 + $0x1eb0] sm:$0xff] }
 0x666   :  { %11699 = vmatpush1.bf16.msra.mxu1 %v17295_v49  ;;  %11536 = vmatprep.subr.bf16.mxu0 %v17310_v0  ;;  %v17376_v0 = vcombine.high %v5014_v48, %v5022_v54 }
 0x667   :  { %11700 = vmatprep.subr.bf16.mxu1 %v17312_v1  ;;  %v5029_v1 = vld [vmem:[#allocation7 + $0x1c30] sm:$0xff] }
 0x669   :  { %11537 = vmatpush1.bf16.msra.mxu0 %v17309_v61  ;;  %v11786_v61 = vrot.slane %v19726_v11, %v19486_v57 }
 0x66a   :  { %11701 = vmatpush1.bf16.msra.mxu1 %v17311_v14  ;;  %11538 = vmatprep.subr.bf16.mxu0 %v17326_v52  ;;  %v17375_v14 = vcombine.low %v5014_v48, %v5022_v54  ;;  %v17390_v52 = vcombine.high %v5029_v1, %v5037_v43 }
 0x66b   :  { %11702 = vmatprep.subr.bf16.mxu1 %v17328_v17  ;;  %v11794_v17 = vrot.slane %v19728_v27, %v19486_v57  ;;  %v12026_v27 = vrot.slane %v11946_v22, %v19491_v33  ;;  %v5117_v22 = vld [vmem:[#allocation7 + $0x1ef0] sm:$0xff] }
 0x66d   :  { %11539 = vmatpush1.bf16.msra.mxu0 %v17325_v12  ;;  %v5054_v12 = vld [vmem:[#allocation7 + $0x1cf8] sm:$0xff]  ;;  %v11874_v2 = vrot.slane %v11794_v17, %v19486_v57 }
 0x66e   :  { %11703 = vmatpush1.bf16.msra.mxu1 %v17327_v30  ;;  %11540 = vmatprep.subr.bf16.mxu0 %v17342_v31  ;;  %v17389_v30 = vcombine.low %v5029_v1, %v5037_v43  ;;  %v11866_v31 = vrot.slane %v11786_v61, %v19486_v57  ;;  %v17408_v40 = vcombine.high %v5046_v53, %v5054_v12  ;;  %v5094_v61 = vld [vmem:[#allocation7 + $0x1e38] sm:$0xff] }
 0x66f   :  { %v11236_v39 = vpop.f32.mrb[16].mxu0  ;;  %11704 = vmatprep.subr.bf16.mxu1 %v17344_v58  ;;  %v17391_v58 = vcombine.low %v5030_v7, %v5038_v8  ;;  %v5093_v8 = vld [vmem:[#allocation7 + $0x1e30] sm:$0xff] }
 0x670   :  { %v18033_v34 = vadd.f32 %v11236_v39, %v5274_v35  ;;  %v11400_v47 = vpop.f32.mrb[16].mxu1  ;;  %v19736_v24 = vpop.f32.mrb[17].mxu0  ;;  %v19750_v35 = vld [vmem:[#allocation8] sm:$0x77]  ;;  %v12034_v39 = vrot.slane %v11954_v28, %v19491_v33 }
 0x671   :  { %v18035_v56 = vadd.f32 %v11400_v47, %v5282_v42  ;;  %v19738_v37 = vpop.f32.mrb[17].mxu1  ;;  %v11240_v60 = vpop.f32.mrb[18].mxu0  ;;  %11541 = vmatpush1.bf16.msra.mxu0 %v17341_v3  ;;  %v5166_v11 = vrot.slane %v19750_v35, %v19500_v46  ;;  %v5069_v42 = vld [vmem:[#allocation7 + $0x1d70] sm:$0xff] }
 0x672   :  { %19058 = vtanh.f32 %v18033_v34  ;;  %v11404_v19 = vpop.f32.mrb[18].mxu1  ;;  %11705 = vmatpush1.bf16.msra.mxu1 %v17343_v44  ;;  %v11241_v25 = vpop.f32.mrb[19].mxu0  ;;  %11542 = vmatprep.subr.bf16.mxu0 %v17358_v5  ;;  %v5062_v44 = vld [vmem:[#allocation7 + $0x1d38] sm:$0xff]  ;;  %v17407_v34 = vcombine.low %v5046_v53, %v5054_v12  ;;  %v17422_v47 = vcombine.high %v5061_v21, %v5069_v42  ;;  %v5077_v60 = vld [vmem:[#allocation7 + $0x1db0] sm:$0xff] }
 0x673   :  { %19060 = vtanh.f32 %v18035_v56  ;;  %v11405_v49 = vpop.f32.mrb[19].mxu1  ;;  %11706 = vmatprep.subr.bf16.mxu1 %v17360_v45  ;;  %v5070_v5 = vld [vmem:[#allocation7 + $0x1d78] sm:$0xff]  ;;  %v5246_v54 = vrot.slane %v5166_v11, %v19471_v50 }
 0x674   :  { %v17424_v56 = vcombine.high %v5062_v44, %v5070_v5  ;;  %v5078_v25 = vld [vmem:[#allocation7 + $0x1db8] sm:$0xff]  ;;  %v17421_v49 = vcombine.low %v5061_v21, %v5069_v42  ;;  %v17469_v21 = vcombine.low %v5109_v26, %v5117_v22 }
 0x675   :  { %11543 = vmatpush1.bf16.msra.mxu0 %v17357_v36  ;;  %v5085_v36 = vld [vmem:[#allocation7 + $0x1df0] sm:$0xff]  ;;  %v18026_v43 = vadd.f32 %v19644_v38, %v5246_v54  ;;  %v5110_v53 = vld [vmem:[#allocation7 + $0x1eb8] sm:$0xff] }
 0x676   :  { %11707 = vmatpush1.bf16.msra.mxu1 %v17359_v62  ;;  %11544 = vmatprep.subr.bf16.mxu0 %v17374_v63  ;;  %v5086_v62 = vld [vmem:[#allocation7 + $0x1df8] sm:$0xff]  ;;  %v17438_v1 = vcombine.high %v5077_v60, %v5085_v36 }
 0x677   :  { %11708 = vmatprep.subr.bf16.mxu1 %v17376_v0  ;;  %v17423_v0 = vcombine.low %v5062_v44, %v5070_v5  ;;  %v17440_v7 = vcombine.high %v5078_v25, %v5086_v62  ;;  %v17439_v17 = vcombine.low %v5078_v25, %v5086_v62  ;;  %19062 = vtanh.f32 %v18026_v43  ;;  %v5118_v12 = vld [vmem:[#allocation7 + $0x1ef8] sm:$0xff]  ;;  %v5141_v44 = vld [vmem:[#allocation7 + $0x1fb0] sm:$0xff] }
 0x678   :  { %v5134_v11 = vld [vmem:[#allocation7 + $0x1f78] sm:$0xff]  ;;  %v17471_v42 = vcombine.low %v5110_v53, %v5118_v12  ;;  %v5149_v5 = vld [vmem:[#allocation7 + $0x1ff0] sm:$0xff] }
 0x679   :  { %11545 = vmatpush1.bf16.msra.mxu0 %v17373_v10  ;;  %v5101_v10 = vld [vmem:[#allocation7 + $0x1e70] sm:$0xff]  ;;  %v17502_v54 = vcombine.high %v5141_v44, %v5149_v5  ;;  %v17501_v25 = vcombine.low %v5141_v44, %v5149_v5  ;;  %v18269_v43 = vld [vmem:[#allocation10 + $0x8] ss:$16 sps:$4 sm:$0xff]  }
 0x67a   :  { %11709 = vmatpush1.bf16.msra.mxu1 %v17375_v14  ;;  %11546 = vmatprep.subr.bf16.mxu0 %v17390_v52  ;;  %v5102_v14 = vld [vmem:[#allocation7 + $0x1e78] sm:$0xff]  ;;  %v17437_v52 = vcombine.low %v5077_v60, %v5085_v36  ;;  %v17453_v38 = vcombine.low %v5093_v8, %v5101_v10  ;;  %v18308_v44 = vld [vmem:[#allocation10 + $0xe0] ss:$16 sps:$4 sm:$0xff]  }
 0x67b   :  { %11710 = vmatprep.subr.bf16.mxu1 %v17392_v18  ;;  %v17454_v18 = vcombine.high %v5093_v8, %v5101_v10  ;;  %v17456_v20 = vcombine.high %v5094_v61, %v5102_v14  ;;  %v17455_v28 = vcombine.low %v5094_v61, %v5102_v14  ;;  %v18277_v10 = vld [vmem:[#allocation10 + $0x2c] ss:$16 sps:$4 sm:$0xff]   ;;  %v18272_v61 = vld [vmem:[#allocation10 + $0x20] ss:$16 sps:$4 sm:$0xff]   ;;  %v18275_v14 = vld [vmem:[#allocation10 + $0x28] ss:$16 sps:$4 sm:$0xff]  }
 0x67c   :  { %v19059_v3 = vpop.eup %19058  ;;  %v18311_v5 = vld [vmem:[#allocation10 + $0xe8] ss:$16 sps:$4 sm:$0xff]  }
 0x67d   :  { %v19061_v45 = vpop.eup %19060  ;;  %11547 = vmatpush1.bf16.msra.mxu0 %v17389_v30  ;;  %v11903_v13 = vmul.f32 %v19059_v3, %v11866_v31  ;;  %v17470_v30 = vcombine.high %v5109_v26, %v5117_v22  ;;  %v17472_v31 = vcombine.high %v5110_v53, %v5118_v12  ;;  %v18286_v26 = vld [vmem:[#allocation10 + $0x64] ss:$16 sps:$4 sm:$0xff]   ;;  %v18289_v22 = vld [vmem:[#allocation10 + $0x6c] ss:$16 sps:$4 sm:$0xff]   ;;  %v18287_v53 = vld [vmem:[#allocation10 + $0x68] ss:$16 sps:$4 sm:$0xff]  }
 0x67e   :  { %11711 = vmatpush1.bf16.msra.mxu1 %v17391_v58  ;;  %11548 = vmatprep.subr.bf16.mxu0 %v17406_v32  ;;  %v11905_v48 = vmul.f32 %v19061_v45, %v11874_v2  ;;  %v5125_v58 = vld [vmem:[#allocation7 + $0x1f30] sm:$0xff]  ;;  %v5126_v2 = vld [vmem:[#allocation7 + $0x1f38] sm:$0xff] }
 0x67f   :  { %11712 = vmatprep.subr.bf16.mxu1 %v17408_v40  ;;  %v19757_v19 = vadd.f32 %v12026_v27, %v11903_v13  ;;  %v5133_v32 = vld [vmem:[#allocation7 + $0x1f70] sm:$0xff]  ;;  %v11758_v40 = vrot.slane %v19750_v35, %v19517_v41  ;;  %v17488_v3 = vcombine.high %v5126_v2, %v5134_v11  ;;  %v5150_v45 = vld [vmem:[#allocation7 + $0x1ff8] sm:$0xff]  ;;  %v11918_v13 = vrot.slane %v19750_v35, %v19522_v51 }
 0x680   :  { %v19759_v63 = vadd.f32 %v12034_v39, %v11905_v48  ;;  %v17486_v27 = vcombine.high %v5125_v58, %v5133_v32  ;;  %v5142_v39 = vld [vmem:[#allocation7 + $0x1fb8] sm:$0xff]  ;;  %v17487_v48 = vcombine.low %v5126_v2, %v5134_v11  ;;  %v18292_v12 = vld [vmem:[#allocation10 + $0x84] ss:$16 sps:$4 sm:$0xff]  }
 0x681   :  { %11549 = vmatpush1.bf16.msra.mxu0 %v17405_v15  ;;  %v11838_v15 = vrot.slane %v11758_v40, %v19486_v57  ;;  %v11998_v36 = vrot.slane %v11918_v13, %v19491_v33  ;;  %v17503_v62 = vcombine.low %v5142_v39, %v5150_v45  ;;  %v18271_v35 = vld [vmem:[#allocation10 + $0xc] ss:$16 sps:$4 sm:$0xff]   ;;  %v18299_v2 = vld [vmem:[#allocation10 + $0xa8] ss:$16 sps:$4 sm:$0xff]   ;;  %v18304_v11 = vld [vmem:[#allocation10 + $0xc4] ss:$16 sps:$4 sm:$0xff]  }
 0x682   :  { %11713 = vmatpush1.bf16.msra.mxu1 %v17407_v34  ;;  %11550 = vmatprep.subr.bf16.mxu0 %v17422_v47  ;;  %v19063_v34 = vpop.eup %19062  ;;  %v17485_v47 = vcombine.low %v5125_v58, %v5133_v32  ;;  %v18301_v58 = vld [vmem:[#allocation10 + $0xac] ss:$16 sps:$4 sm:$0xff]   ;;  %v18296_v32 = vld [vmem:[#allocation10 + $0xa0] ss:$16 sps:$4 sm:$0xff]   ;;  %v18317_v13 = vld [vmem:[#allocation10 + $0x108] ss:$16 sps:$4 sm:$0xff]  }
 0x683   :  { %11714 = vmatprep.subr.bf16.mxu1 %v17424_v56  ;;  %v17504_v56 = vcombine.high %v5142_v39, %v5150_v45  ;;  %v11896_v60 = vmul.f32 %v19063_v34, %v11838_v15  ;;  %v18307_v40 = vld [vmem:[#allocation10 + $0xcc] ss:$16 sps:$4 sm:$0xff]   ;;  %v18316_v39 = vld [vmem:[#allocation10 + $0x104] ss:$16 sps:$4 sm:$0xff]   ;;  %v18314_v15 = vld [vmem:[#allocation10 + $0x100] ss:$16 sps:$4 sm:$0xff]  }
 0x684   :  { %v18319_v45 = vld [vmem:[#allocation10 + $0x10c] ss:$16 sps:$4 sm:$0xff]   ;;  %v18322_v34 = vld [vmem:[#allocation10 + $0x124] ss:$16 sps:$4 sm:$0xff]  }
 0x685   :  { %11551 = vmatpush1.bf16.msra.mxu0 %v17421_v49  ;;  %v18268_v49 = vld [vmem:[#allocation10 + $0x4] ss:$16 sps:$4 sm:$0xff]  }
 0x686   :  { %11715 = vmatpush1.bf16.msra.mxu1 %v17423_v0  ;;  %11552 = vmatprep.subr.bf16.mxu0 %v17438_v1  ;;  %v12056_v0 = vadd.f32 %v11998_v36, %v11896_v60  ;;  %v18266_v1 = vld [vmem:[#allocation10] ss:$16 sps:$4 sm:$0xff]   ;;  %v18323_v60 = vld [vmem:[#allocation10 + $0x128] ss:$16 sps:$4 sm:$0xff]   ;;  %v18328_v36 = vld [vmem:[#allocation10 + $0x144] ss:$16 sps:$4 sm:$0xff]  }
 0x687   :  { %11716 = vmatprep.subr.bf16.mxu1 %v17440_v7  ;;  %v18274_v7 = vld [vmem:[#allocation10 + $0x24] ss:$16 sps:$4 sm:$0xff]  }
 0x688   :  { %v12072_v8 = vpack.c.bf16 %v12056_v0, %v12056_v0  ;;  %v18334_v0 = vld [vmem:[#allocation10 + $0x164] ss:$16 sps:$4 sm:$0xff]  }
 0x689   :  { %11553 = vmatpush1.bf16.msra.mxu0 %v17437_v52  ;;  %v18280_v52 = vld [vmem:[#allocation10 + $0x44] ss:$16 sps:$4 sm:$0xff]  }
 0x68a   :  { %11717 = vmatpush1.bf16.msra.mxu1 %v17439_v17  ;;  %11554 = vmatprep.subr.bf16.mxu0 %v17454_v18  ;;  %v18283_v17 = vld [vmem:[#allocation10 + $0x4c] ss:$16 sps:$4 sm:$0xff]   ;;  %v18278_v18 = vld [vmem:[#allocation10 + $0x40] ss:$16 sps:$4 sm:$0xff]  }
 0x68b   :  { %11718 = vmatprep.subr.bf16.mxu1 %v17456_v20  ;;  %v18281_v20 = vld [vmem:[#allocation10 + $0x48] ss:$16 sps:$4 sm:$0xff]  }
 0x68d   :  { %11555 = vmatpush1.bf16.msra.mxu0 %v17453_v38  ;;  %v18295_v38 = vld [vmem:[#allocation10 + $0x8c] ss:$16 sps:$4 sm:$0xff]  }
 0x68e   :  { %11719 = vmatpush1.bf16.msra.mxu1 %v17455_v28  ;;  %11556 = vmatprep.subr.bf16.mxu0 %v17470_v30  ;;  %v18290_v28 = vld [vmem:[#allocation10 + $0x80] ss:$16 sps:$4 sm:$0xff]   ;;  %v18293_v30 = vld [vmem:[#allocation10 + $0x88] ss:$16 sps:$4 sm:$0xff]  }
 0x68f   :  { %11720 = vmatprep.subr.bf16.mxu1 %v17472_v31  ;;  %v18298_v31 = vld [vmem:[#allocation10 + $0xa4] ss:$16 sps:$4 sm:$0xff]  }
 0x691   :  { %11557 = vmatpush1.bf16.msra.mxu0 %v17469_v21  ;;  %v18302_v21 = vld [vmem:[#allocation10 + $0xc0] ss:$16 sps:$4 sm:$0xff]  }
 0x692   :  { %11721 = vmatpush1.bf16.msra.mxu1 %v17471_v42  ;;  %11558 = vmatprep.subr.bf16.mxu0 %v17486_v27  ;;  %v18305_v42 = vld [vmem:[#allocation10 + $0xc8] ss:$16 sps:$4 sm:$0xff]   ;;  %v18310_v27 = vld [vmem:[#allocation10 + $0xe4] ss:$16 sps:$4 sm:$0xff]  }
 0x693   :  { %11722 = vmatprep.subr.bf16.mxu1 %v17488_v3  ;;  %v18313_v3 = vld [vmem:[#allocation10 + $0xec] ss:$16 sps:$4 sm:$0xff]  }
 0x695   :  { %11559 = vmatpush1.bf16.msra.mxu0 %v17485_v47  ;;  %v19091_v47 = vld [vmem:[#allocation8 + $0x8] sm:$0x77] }
 0x696   :  { %11723 = vmatpush1.bf16.msra.mxu1 %v17487_v48  ;;  %11560 = vmatprep.subr.bf16.mxu0 %v17502_v54  ;;  %v5174_v48 = vrot.slane %v19091_v47, %v19500_v46  ;;  %v18325_v54 = vld [vmem:[#allocation10 + $0x12c] ss:$16 sps:$4 sm:$0xff]  }
 0x697   :  { %11724 = vmatprep.subr.bf16.mxu1 %v17504_v56  ;;  %v18320_v56 = vld [vmem:[#allocation10 + $0x120] ss:$16 sps:$4 sm:$0xff]  }
 0x699   :  { %11561 = vmatpush1.bf16.msra.mxu0 %v17501_v25  ;;  %v5254_v25 = vrot.slane %v5174_v48, %v19471_v50  ;;  %v18379_v48 = vld [vmem:[#allocation10 + $0x24c] ss:$16 sps:$4 sm:$0xff]  }
 0x69a   :  { %11725 = vmatpush1.bf16.msra.mxu1 %v17503_v62  ;;  %15199 = vmatprep.subr.bf16.mxu0 %v18268_v49  ;;  %v18331_v62 = vld [vmem:[#allocation10 + $0x14c] ss:$16 sps:$4 sm:$0xff]   ;;  %v18326_v49 = vld [vmem:[#allocation10 + $0x140] ss:$16 sps:$4 sm:$0xff]  }
 0x69b   :  { %15527 = vmatprep.subr.bf16.mxu1 %v18271_v35  ;;  %v18329_v35 = vld [vmem:[#allocation10 + $0x148] ss:$16 sps:$4 sm:$0xff]  }
 0x69c   :  { %11563 = vmatmul.mubr.bf16.vlgmr.msra.gmra.mrb[20].mxu0 %v19616_v16 }
 0x69d   :  { %11727 = vmatmul.mubr.bf16.vlgmr.msra.gmra.mrb[20].mxu1 %v19616_v16  ;;  %15200 = vmatpush1.bf16.msra.mxu0 %v18266_v1  ;;  %v18284_v16 = vld [vmem:[#allocation10 + $0x60] ss:$16 sps:$4 sm:$0xff]   ;;  %v18028_v1 = vadd.f32 %v19646_v4, %v5254_v25  ;;  %v11766_v4 = vrot.slane %v19091_v47, %v19517_v41  ;;  %v18383_v25 = vld [vmem:[#allocation10 + $0x268] ss:$16 sps:$4 sm:$0xff]  }
 0x69e   :  { %15231 = vmatprep.mubr.bf16.mxu0 %v12072_v8  ;;  %15528 = vmatpush1.bf16.msra.mxu1 %v18269_v43  ;;  %v18337_v43 = vld [vmem:[#allocation10 + $0x16c] ss:$16 sps:$4 sm:$0xff]  }
 0x69f   :  { %15559 = vmatprep.mubr.bf16.mxu1 %v12072_v8  ;;  %15201 = vmatprep.subr.bf16.mxu0 %v18274_v7  ;;  %v18332_v7 = vld [vmem:[#allocation10 + $0x160] ss:$16 sps:$4 sm:$0xff]   ;;  %v18335_v8 = vld [vmem:[#allocation10 + $0x168] ss:$16 sps:$4 sm:$0xff]   ;;  %19064 = vtanh.f32 %v18028_v1  ;;  %v18394_v1 = vld [vmem:[#allocation10 + $0x2a4] ss:$16 sps:$4 sm:$0xff]  }
 0x6a0   :  { %15529 = vmatprep.subr.bf16.mxu1 %v18277_v10  ;;  %v18340_v10 = vld [vmem:[#allocation10 + $0x184] ss:$16 sps:$4 sm:$0xff]  }
 0x6a1   :  { %15202 = vmatpush1.bf16.msra.mxu0 %v18272_v61  ;;  %v18343_v61 = vld [vmem:[#allocation10 + $0x18c] ss:$16 sps:$4 sm:$0xff]  }
 0x6a2   :  { %15530 = vmatpush1.bf16.msra.mxu1 %v18275_v14  ;;  %15203 = vmatprep.subr.bf16.mxu0 %v18280_v52  ;;  %v18338_v14 = vld [vmem:[#allocation10 + $0x180] ss:$16 sps:$4 sm:$0xff]   ;;  %v18341_v52 = vld [vmem:[#allocation10 + $0x188] ss:$16 sps:$4 sm:$0xff]  }
 0x6a3   :  { %15531 = vmatprep.subr.bf16.mxu1 %v18283_v17  ;;  %v18346_v17 = vld [vmem:[#allocation10 + $0x1a4] ss:$16 sps:$4 sm:$0xff]  }
 0x6a5   :  { %15204 = vmatpush1.bf16.msra.mxu0 %v18278_v18  ;;  %v18349_v18 = vld [vmem:[#allocation10 + $0x1ac] ss:$16 sps:$4 sm:$0xff]  }
 0x6a6   :  { %15532 = vmatpush1.bf16.msra.mxu1 %v18281_v20  ;;  %15205 = vmatprep.subr.bf16.mxu0 %v18286_v26  ;;  %v18344_v20 = vld [vmem:[#allocation10 + $0x1a0] ss:$16 sps:$4 sm:$0xff]   ;;  %v18347_v26 = vld [vmem:[#allocation10 + $0x1a8] ss:$16 sps:$4 sm:$0xff]  }
 0x6a7   :  { %15533 = vmatprep.subr.bf16.mxu1 %v18289_v22  ;;  %v18352_v22 = vld [vmem:[#allocation10 + $0x1c4] ss:$16 sps:$4 sm:$0xff]  }
 0x6a9   :  { %15206 = vmatpush1.bf16.msra.mxu0 %v18284_v16  ;;  %v18355_v16 = vld [vmem:[#allocation10 + $0x1cc] ss:$16 sps:$4 sm:$0xff]  }
 0x6aa   :  { %15534 = vmatpush1.bf16.msra.mxu1 %v18287_v53  ;;  %15207 = vmatprep.subr.bf16.mxu0 %v18292_v12  ;;  %v11846_v53 = vrot.slane %v11766_v4, %v19486_v57  ;;  %v11926_v12 = vrot.slane %v19091_v47, %v19522_v51  ;;  %v18376_v47 = vld [vmem:[#allocation10 + $0x244] ss:$16 sps:$4 sm:$0xff]   ;;  %v18404_v4 = vld [vmem:[#allocation10 + $0x2e0] ss:$16 sps:$4 sm:$0xff]  }
 0x6ab   :  { %15535 = vmatprep.subr.bf16.mxu1 %v18295_v38  ;;  %v19065_v38 = vpop.eup %19064 }
 0x6ad   :  { %15208 = vmatpush1.bf16.msra.mxu0 %v18290_v28  ;;  %v18350_v28 = vld [vmem:[#allocation10 + $0x1c0] ss:$16 sps:$4 sm:$0xff]  }
 0x6ae   :  { %15536 = vmatpush1.bf16.msra.mxu1 %v18293_v30  ;;  %15209 = vmatprep.subr.bf16.mxu0 %v18298_v31  ;;  %v18353_v30 = vld [vmem:[#allocation10 + $0x1c8] ss:$16 sps:$4 sm:$0xff]   ;;  %v18358_v31 = vld [vmem:[#allocation10 + $0x1e4] ss:$16 sps:$4 sm:$0xff]  }
 0x6af   :  { %15537 = vmatprep.subr.bf16.mxu1 %v18301_v58  ;;  %v18361_v58 = vld [vmem:[#allocation10 + $0x1ec] ss:$16 sps:$4 sm:$0xff]  }
 0x6b1   :  { %15210 = vmatpush1.bf16.msra.mxu0 %v18296_v32  ;;  %v11898_v32 = vmul.f32 %v19065_v38, %v11846_v53  ;;  %v18413_v53 = vld [vmem:[#allocation10 + $0x308] ss:$16 sps:$4 sm:$0xff]   ;;  %v19092_v38 = vld [vmem:[#allocation8 + $0x10] sm:$0x77] }
 0x6b2   :  { %15538 = vmatpush1.bf16.msra.mxu1 %v18299_v2  ;;  %15211 = vmatprep.subr.bf16.mxu0 %v18304_v11  ;;  %v12006_v2 = vrot.slane %v11926_v12, %v19491_v33  ;;  %v18356_v11 = vld [vmem:[#allocation10 + $0x1e0] ss:$16 sps:$4 sm:$0xff]   ;;  %v18418_v12 = vld [vmem:[#allocation10 + $0x324] ss:$16 sps:$4 sm:$0xff]  }
 0x6b3   :  { %15539 = vmatprep.subr.bf16.mxu1 %v18307_v40  ;;  %v18359_v40 = vld [vmem:[#allocation10 + $0x1e8] ss:$16 sps:$4 sm:$0xff]  }
 0x6b5   :  { %15212 = vmatpush1.bf16.msra.mxu0 %v18302_v21  ;;  %v18364_v21 = vld [vmem:[#allocation10 + $0x204] ss:$16 sps:$4 sm:$0xff]  }
 0x6b6   :  { %15540 = vmatpush1.bf16.msra.mxu1 %v18305_v42  ;;  %15213 = vmatprep.subr.bf16.mxu0 %v18310_v27  ;;  %v18367_v42 = vld [vmem:[#allocation10 + $0x20c] ss:$16 sps:$4 sm:$0xff]   ;;  %v12058_v27 = vadd.f32 %v12006_v2, %v11898_v32  ;;  %v18424_v32 = vld [vmem:[#allocation10 + $0x344] ss:$16 sps:$4 sm:$0xff]  }
 0x6b7   :  { %15541 = vmatprep.subr.bf16.mxu1 %v18313_v3  ;;  %v18362_v3 = vld [vmem:[#allocation10 + $0x200] ss:$16 sps:$4 sm:$0xff]  }
 0x6b9   :  { %15214 = vmatpush1.bf16.msra.mxu0 %v18308_v44  ;;  %v12071_v44 = vpack.c.bf16 %v19660_v6, %v19660_v6  ;;  %v18374_v6 = vld [vmem:[#allocation10 + $0x240] ss:$16 sps:$4 sm:$0xff]  }
 0x6ba   :  { %15542 = vmatpush1.bf16.msra.mxu1 %v18311_v5  ;;  %15215 = vmatprep.subr.bf16.mxu0 %v18316_v39  ;;  %v18365_v5 = vld [vmem:[#allocation10 + $0x208] ss:$16 sps:$4 sm:$0xff]   ;;  %v18370_v39 = vld [vmem:[#allocation10 + $0x224] ss:$16 sps:$4 sm:$0xff]  }
 0x6bb   :  { %15543 = vmatprep.subr.bf16.mxu1 %v18319_v45  ;;  %v12074_v45 = vpack.c.bf16 %v12058_v27, %v12058_v27 }
 0x6bd   :  { %15216 = vmatpush1.bf16.msra.mxu0 %v18314_v15  ;;  %v18373_v15 = vld [vmem:[#allocation10 + $0x22c] ss:$16 sps:$4 sm:$0xff]  }
 0x6be   :  { %15544 = vmatpush1.bf16.msra.mxu1 %v18317_v13  ;;  %15217 = vmatprep.subr.bf16.mxu0 %v18322_v34  ;;  %v18368_v13 = vld [vmem:[#allocation10 + $0x220] ss:$16 sps:$4 sm:$0xff]   ;;  %v18371_v34 = vld [vmem:[#allocation10 + $0x228] ss:$16 sps:$4 sm:$0xff]  }
 0x6bf   :  { %15545 = vmatprep.subr.bf16.mxu1 %v18325_v54  ;;  %v18377_v54 = vld [vmem:[#allocation10 + $0x248] ss:$16 sps:$4 sm:$0xff]  }
 0x6c1   :  { %15218 = vmatpush1.bf16.msra.mxu0 %v18320_v56  ;;  %v18382_v56 = vld [vmem:[#allocation10 + $0x264] ss:$16 sps:$4 sm:$0xff]  }
 0x6c2   :  { %15546 = vmatpush1.bf16.msra.mxu1 %v18323_v60  ;;  %15219 = vmatprep.subr.bf16.mxu0 %v18328_v36  ;;  %v18385_v60 = vld [vmem:[#allocation10 + $0x26c] ss:$16 sps:$4 sm:$0xff]   ;;  %v18380_v36 = vld [vmem:[#allocation10 + $0x260] ss:$16 sps:$4 sm:$0xff]  }
 0x6c3   :  { %15547 = vmatprep.subr.bf16.mxu1 %v18331_v62  ;;  %v18388_v62 = vld [vmem:[#allocation10 + $0x284] ss:$16 sps:$4 sm:$0xff]  }
 0x6c5   :  { %15220 = vmatpush1.bf16.msra.mxu0 %v18326_v49  ;;  %v18391_v49 = vld [vmem:[#allocation10 + $0x28c] ss:$16 sps:$4 sm:$0xff]  }
 0x6c6   :  { %15548 = vmatpush1.bf16.msra.mxu1 %v18329_v35  ;;  %15221 = vmatprep.subr.bf16.mxu0 %v18334_v0  ;;  %v18386_v35 = vld [vmem:[#allocation10 + $0x280] ss:$16 sps:$4 sm:$0xff]   ;;  %v18389_v0 = vld [vmem:[#allocation10 + $0x288] ss:$16 sps:$4 sm:$0xff]  }
 0x6c7   :  { %15549 = vmatprep.subr.bf16.mxu1 %v18337_v43  ;;  %v18397_v43 = vld [vmem:[#allocation10 + $0x2ac] ss:$16 sps:$4 sm:$0xff]  }
 0x6c9   :  { %15222 = vmatpush1.bf16.msra.mxu0 %v18332_v7  ;;  %v18392_v7 = vld [vmem:[#allocation10 + $0x2a0] ss:$16 sps:$4 sm:$0xff]  }
 0x6ca   :  { %15550 = vmatpush1.bf16.msra.mxu1 %v18335_v8  ;;  %15223 = vmatprep.subr.bf16.mxu0 %v18340_v10  ;;  %v18395_v8 = vld [vmem:[#allocation10 + $0x2a8] ss:$16 sps:$4 sm:$0xff]   ;;  %v18400_v10 = vld [vmem:[#allocation10 + $0x2c4] ss:$16 sps:$4 sm:$0xff]  }
 0x6cb   :  { %15551 = vmatprep.subr.bf16.mxu1 %v18343_v61  ;;  %v18403_v61 = vld [vmem:[#allocation10 + $0x2cc] ss:$16 sps:$4 sm:$0xff]  }
 0x6cd   :  { %15224 = vmatpush1.bf16.msra.mxu0 %v18338_v14  ;;  %v18398_v14 = vld [vmem:[#allocation10 + $0x2c0] ss:$16 sps:$4 sm:$0xff]  }
 0x6ce   :  { %15552 = vmatpush1.bf16.msra.mxu1 %v18341_v52  ;;  %15225 = vmatprep.subr.bf16.mxu0 %v18346_v17  ;;  %v18401_v52 = vld [vmem:[#allocation10 + $0x2c8] ss:$16 sps:$4 sm:$0xff]   ;;  %v18406_v17 = vld [vmem:[#allocation10 + $0x2e4] ss:$16 sps:$4 sm:$0xff]  }
 0x6cf   :  { %15553 = vmatprep.subr.bf16.mxu1 %v18349_v18  ;;  %v18409_v18 = vld [vmem:[#allocation10 + $0x2ec] ss:$16 sps:$4 sm:$0xff]  }
 0x6d1   :  { %15226 = vmatpush1.bf16.msra.mxu0 %v18344_v20  ;;  %v18407_v20 = vld [vmem:[#allocation10 + $0x2e8] ss:$16 sps:$4 sm:$0xff]  }
 0x6d2   :  { %15554 = vmatpush1.bf16.msra.mxu1 %v18347_v26  ;;  %15227 = vmatprep.subr.bf16.mxu0 %v18352_v22  ;;  %v18412_v26 = vld [vmem:[#allocation10 + $0x304] ss:$16 sps:$4 sm:$0xff]   ;;  %v18415_v22 = vld [vmem:[#allocation10 + $0x30c] ss:$16 sps:$4 sm:$0xff]  }
 0x6d3   :  { %15555 = vmatprep.subr.bf16.mxu1 %v18355_v16  ;;  %v18410_v16 = vld [vmem:[#allocation10 + $0x300] ss:$16 sps:$4 sm:$0xff]  }
 0x6d5   :  { %15228 = vmatpush1.bf16.msra.mxu0 %v18350_v28  ;;  %v5182_v28 = vrot.slane %v19092_v38, %v19500_v46 }
 0x6d6   :  { %15556 = vmatpush1.bf16.msra.mxu1 %v18353_v30  ;;  %15229 = vmatprep.subr.bf16.mxu0 %v18358_v31  ;;  %v18421_v30 = vld [vmem:[#allocation10 + $0x32c] ss:$16 sps:$4 sm:$0xff]   ;;  %v18416_v31 = vld [vmem:[#allocation10 + $0x320] ss:$16 sps:$4 sm:$0xff]  }
 0x6d7   :  { %15557 = vmatprep.subr.bf16.mxu1 %v18361_v58  ;;  %v18419_v58 = vld [vmem:[#allocation10 + $0x328] ss:$16 sps:$4 sm:$0xff]   ;;  %v5262_v2 = vrot.slane %v5182_v28, %v19471_v50  ;;  %v18478_v28 = vld [vmem:[#allocation10 + $0x464] ss:$16 sps:$4 sm:$0xff]  }
 0x6d9   :  { %15230 = vmatpush1.bf16.msra.mxu0 %v18356_v11  ;;  %v18427_v11 = vld [vmem:[#allocation10 + $0x34c] ss:$16 sps:$4 sm:$0xff]   ;;  %v18030_v27 = vadd.f32 %v19690_v55, %v5262_v2  ;;  %v11774_v55 = vrot.slane %v19092_v38, %v19517_v41 }
 0x6da   :  { %15558 = vmatpush1.bf16.msra.mxu1 %v18359_v40  ;;  %15240 = vmatprep.subr.bf16.mxu0 %v18364_v21  ;;  %v18422_v40 = vld [vmem:[#allocation10 + $0x340] ss:$16 sps:$4 sm:$0xff]   ;;  %v18425_v21 = vld [vmem:[#allocation10 + $0x348] ss:$16 sps:$4 sm:$0xff]   ;;  %v18487_v2 = vld [vmem:[#allocation10 + $0x48c] ss:$16 sps:$4 sm:$0xff]  }
 0x6db   :  { %15568 = vmatprep.subr.bf16.mxu1 %v18367_v42  ;;  %v18430_v42 = vld [vmem:[#allocation10 + $0x364] ss:$16 sps:$4 sm:$0xff]   ;;  %19066 = vtanh.f32 %v18030_v27  ;;  %v18488_v27 = vld [vmem:[#allocation10 + $0x4a0] ss:$16 sps:$4 sm:$0xff]  }
 0x6dc   :  { %15232 = vmatmul.mubr.bf16.vlgmr.msra.gmra.mrb[24].mxu0 %v12071_v44 }
 0x6dd   :  { %15560 = vmatmul.mubr.bf16.vlgmr.msra.gmra.mrb[24].mxu1 %v12071_v44  ;;  %15241 = vmatpush1.bf16.msra.mxu0 %v18362_v3  ;;  %v18433_v3 = vld [vmem:[#allocation10 + $0x36c] ss:$16 sps:$4 sm:$0xff]   ;;  %v18428_v44 = vld [vmem:[#allocation10 + $0x360] ss:$16 sps:$4 sm:$0xff]  }
 0x6de   :  { %15272 = vmatprep.mubr.bf16.mxu0 %v12074_v45  ;;  %15569 = vmatpush1.bf16.msra.mxu1 %v18365_v5  ;;  %v18431_v5 = vld [vmem:[#allocation10 + $0x368] ss:$16 sps:$4 sm:$0xff]  }
 0x6df   :  { %15600 = vmatprep.mubr.bf16.mxu1 %v12074_v45  ;;  %15242 = vmatprep.subr.bf16.mxu0 %v18370_v39  ;;  %v18436_v39 = vld [vmem:[#allocation10 + $0x384] ss:$16 sps:$4 sm:$0xff]   ;;  %v18439_v45 = vld [vmem:[#allocation10 + $0x38c] ss:$16 sps:$4 sm:$0xff]  }
 0x6e0   :  { %15570 = vmatprep.subr.bf16.mxu1 %v18373_v15  ;;  %v18434_v15 = vld [vmem:[#allocation10 + $0x380] ss:$16 sps:$4 sm:$0xff]  }
 0x6e1   :  { %15243 = vmatpush1.bf16.msra.mxu0 %v18368_v13  ;;  %v18437_v13 = vld [vmem:[#allocation10 + $0x388] ss:$16 sps:$4 sm:$0xff]  }
 0x6e2   :  { %15571 = vmatpush1.bf16.msra.mxu1 %v18371_v34  ;;  %15244 = vmatprep.subr.bf16.mxu0 %v18376_v47  ;;  %v18442_v34 = vld [vmem:[#allocation10 + $0x3a4] ss:$16 sps:$4 sm:$0xff]   ;;  %v18445_v47 = vld [vmem:[#allocation10 + $0x3ac] ss:$16 sps:$4 sm:$0xff]  }
 0x6e3   :  { %15572 = vmatprep.subr.bf16.mxu1 %v18379_v48  ;;  %v18440_v48 = vld [vmem:[#allocation10 + $0x3a0] ss:$16 sps:$4 sm:$0xff]  }
 0x6e5   :  { %15245 = vmatpush1.bf16.msra.mxu0 %v18374_v6  ;;  %v18443_v6 = vld [vmem:[#allocation10 + $0x3a8] ss:$16 sps:$4 sm:$0xff]  }
 0x6e6   :  { %15573 = vmatpush1.bf16.msra.mxu1 %v18377_v54  ;;  %15246 = vmatprep.subr.bf16.mxu0 %v18382_v56  ;;  %v18448_v54 = vld [vmem:[#allocation10 + $0x3c4] ss:$16 sps:$4 sm:$0xff]   ;;  %v18451_v56 = vld [vmem:[#allocation10 + $0x3cc] ss:$16 sps:$4 sm:$0xff]  }
 0x6e7   :  { %15574 = vmatprep.subr.bf16.mxu1 %v18385_v60  ;;  %v11854_v60 = vrot.slane %v11774_v55, %v19486_v57  ;;  %v18508_v55 = vld [vmem:[#allocation10 + $0x504] ss:$16 sps:$4 sm:$0xff]  }
 0x6e9   :  { %15247 = vmatpush1.bf16.msra.mxu0 %v18380_v36  ;;  %v11934_v36 = vrot.slane %v19092_v38, %v19522_v51  ;;  %v18473_v38 = vld [vmem:[#allocation10 + $0x448] ss:$16 sps:$4 sm:$0xff]  }
 0x6ea   :  { %15575 = vmatpush1.bf16.msra.mxu1 %v18383_v25  ;;  %15248 = vmatprep.subr.bf16.mxu0 %v18388_v62  ;;  %v19067_v25 = vpop.eup %19066  ;;  %v18446_v62 = vld [vmem:[#allocation10 + $0x3c0] ss:$16 sps:$4 sm:$0xff]  }
 0x6eb   :  { %15576 = vmatprep.subr.bf16.mxu1 %v18391_v49  ;;  %v18449_v49 = vld [vmem:[#allocation10 + $0x3c8] ss:$16 sps:$4 sm:$0xff]  }
 0x6ed   :  { %15249 = vmatpush1.bf16.msra.mxu0 %v18386_v35  ;;  %v18454_v35 = vld [vmem:[#allocation10 + $0x3e4] ss:$16 sps:$4 sm:$0xff]  }
 0x6ee   :  { %15577 = vmatpush1.bf16.msra.mxu1 %v18389_v0  ;;  %15250 = vmatprep.subr.bf16.mxu0 %v18394_v1  ;;  %v18457_v0 = vld [vmem:[#allocation10 + $0x3ec] ss:$16 sps:$4 sm:$0xff]   ;;  %v11900_v1 = vmul.f32 %v19067_v25, %v11854_v60 }
 0x6ef   :  { %15578 = vmatprep.subr.bf16.mxu1 %v18397_v43  ;;  %v12014_v43 = vrot.slane %v11934_v36, %v19491_v33  ;;  %v19093_v60 = vld [vmem:[#allocation8 + $0x18] sm:$0x77] }
 0x6f0   :  { %v5190_v36 = vrot.slane %v19093_v60, %v19500_v46  ;;  %v18517_v25 = vld [vmem:[#allocation10 + $0x52c] ss:$16 sps:$4 sm:$0xff]  }
 0x6f1   :  { %15251 = vmatpush1.bf16.msra.mxu0 %v18392_v7  ;;  %v18452_v7 = vld [vmem:[#allocation10 + $0x3e0] ss:$16 sps:$4 sm:$0xff]  }
 0x6f2   :  { %15579 = vmatpush1.bf16.msra.mxu1 %v18395_v8  ;;  %15252 = vmatprep.subr.bf16.mxu0 %v18400_v10  ;;  %v18455_v8 = vld [vmem:[#allocation10 + $0x3e8] ss:$16 sps:$4 sm:$0xff]   ;;  %v18460_v10 = vld [vmem:[#allocation10 + $0x404] ss:$16 sps:$4 sm:$0xff]  }
 0x6f3   :  { %15580 = vmatprep.subr.bf16.mxu1 %v18403_v61  ;;  %v18463_v61 = vld [vmem:[#allocation10 + $0x40c] ss:$16 sps:$4 sm:$0xff]  }
 0x6f5   :  { %15253 = vmatpush1.bf16.msra.mxu0 %v18398_v14  ;;  %v12060_v14 = vadd.f32 %v12014_v43, %v11900_v1  ;;  %v18523_v1 = vld [vmem:[#allocation10 + $0x54c] ss:$16 sps:$4 sm:$0xff]   ;;  %v18518_v43 = vld [vmem:[#allocation10 + $0x540] ss:$16 sps:$4 sm:$0xff]  }
 0x6f6   :  { %15581 = vmatpush1.bf16.msra.mxu1 %v18401_v52  ;;  %15254 = vmatprep.subr.bf16.mxu0 %v18406_v17  ;;  %v18458_v52 = vld [vmem:[#allocation10 + $0x400] ss:$16 sps:$4 sm:$0xff]   ;;  %v12073_v17 = vpack.c.bf16 %v19662_v9, %v19662_v9 }
 0x6f7   :  { %15582 = vmatprep.subr.bf16.mxu1 %v18409_v18  ;;  %v18461_v18 = vld [vmem:[#allocation10 + $0x408] ss:$16 sps:$4 sm:$0xff]   ;;  %v18470_v9 = vld [vmem:[#allocation10 + $0x440] ss:$16 sps:$4 sm:$0xff]  }
 0x6f9   :  { %15255 = vmatpush1.bf16.msra.mxu0 %v18404_v4  ;;  %v18466_v4 = vld [vmem:[#allocation10 + $0x424] ss:$16 sps:$4 sm:$0xff]  }
 0x6fa   :  { %15583 = vmatpush1.bf16.msra.mxu1 %v18407_v20  ;;  %15256 = vmatprep.subr.bf16.mxu0 %v18412_v26  ;;  %v12076_v20 = vpack.c.bf16 %v12060_v14, %v12060_v14  ;;  %v18469_v26 = vld [vmem:[#allocation10 + $0x42c] ss:$16 sps:$4 sm:$0xff]   ;;  %v18524_v14 = vld [vmem:[#allocation10 + $0x560] ss:$16 sps:$4 sm:$0xff]  }
 0x6fb   :  { %15584 = vmatprep.subr.bf16.mxu1 %v18415_v22  ;;  %v18464_v22 = vld [vmem:[#allocation10 + $0x420] ss:$16 sps:$4 sm:$0xff]  }
 0x6fd   :  { %15257 = vmatpush1.bf16.msra.mxu0 %v18410_v16  ;;  %v18467_v16 = vld [vmem:[#allocation10 + $0x428] ss:$16 sps:$4 sm:$0xff]  }
 0x6fe   :  { %15585 = vmatpush1.bf16.msra.mxu1 %v18413_v53  ;;  %15258 = vmatprep.subr.bf16.mxu0 %v18418_v12  ;;  %v18472_v53 = vld [vmem:[#allocation10 + $0x444] ss:$16 sps:$4 sm:$0xff]   ;;  %v18475_v12 = vld [vmem:[#allocation10 + $0x44c] ss:$16 sps:$4 sm:$0xff]  }
 0x6ff   :  { %15586 = vmatprep.subr.bf16.mxu1 %v18421_v30  ;;  %v18481_v30 = vld [vmem:[#allocation10 + $0x46c] ss:$16 sps:$4 sm:$0xff]  }
 0x701   :  { %15259 = vmatpush1.bf16.msra.mxu0 %v18416_v31  ;;  %v18476_v31 = vld [vmem:[#allocation10 + $0x460] ss:$16 sps:$4 sm:$0xff]  }
 0x702   :  { %15587 = vmatpush1.bf16.msra.mxu1 %v18419_v58  ;;  %15260 = vmatprep.subr.bf16.mxu0 %v18424_v32  ;;  %v18479_v58 = vld [vmem:[#allocation10 + $0x468] ss:$16 sps:$4 sm:$0xff]   ;;  %v18484_v32 = vld [vmem:[#allocation10 + $0x484] ss:$16 sps:$4 sm:$0xff]  }
 0x703   :  { %15588 = vmatprep.subr.bf16.mxu1 %v18427_v11  ;;  %v18482_v11 = vld [vmem:[#allocation10 + $0x480] ss:$16 sps:$4 sm:$0xff]  }
 0x705   :  { %15261 = vmatpush1.bf16.msra.mxu0 %v18422_v40  ;;  %v18485_v40 = vld [vmem:[#allocation10 + $0x488] ss:$16 sps:$4 sm:$0xff]  }
 0x706   :  { %15589 = vmatpush1.bf16.msra.mxu1 %v18425_v21  ;;  %15262 = vmatprep.subr.bf16.mxu0 %v18430_v42  ;;  %v18490_v21 = vld [vmem:[#allocation10 + $0x4a4] ss:$16 sps:$4 sm:$0xff]   ;;  %v18493_v42 = vld [vmem:[#allocation10 + $0x4ac] ss:$16 sps:$4 sm:$0xff]  }
 0x707   :  { %15590 = vmatprep.subr.bf16.mxu1 %v18433_v3  ;;  %v18491_v3 = vld [vmem:[#allocation10 + $0x4a8] ss:$16 sps:$4 sm:$0xff]  }
 0x709   :  { %15263 = vmatpush1.bf16.msra.mxu0 %v18428_v44  ;;  %v18496_v44 = vld [vmem:[#allocation10 + $0x4c4] ss:$16 sps:$4 sm:$0xff]  }
 0x70a   :  { %15591 = vmatpush1.bf16.msra.mxu1 %v18431_v5  ;;  %15264 = vmatprep.subr.bf16.mxu0 %v18436_v39  ;;  %v18499_v5 = vld [vmem:[#allocation10 + $0x4cc] ss:$16 sps:$4 sm:$0xff]   ;;  %v18494_v39 = vld [vmem:[#allocation10 + $0x4c0] ss:$16 sps:$4 sm:$0xff]  }
 0x70b   :  { %15592 = vmatprep.subr.bf16.mxu1 %v18439_v45  ;;  %v18497_v45 = vld [vmem:[#allocation10 + $0x4c8] ss:$16 sps:$4 sm:$0xff]  }
 0x70d   :  { %15265 = vmatpush1.bf16.msra.mxu0 %v18434_v15  ;;  %v18502_v15 = vld [vmem:[#allocation10 + $0x4e4] ss:$16 sps:$4 sm:$0xff]  }
 0x70e   :  { %15593 = vmatpush1.bf16.msra.mxu1 %v18437_v13  ;;  %15266 = vmatprep.subr.bf16.mxu0 %v18442_v34  ;;  %v18505_v13 = vld [vmem:[#allocation10 + $0x4ec] ss:$16 sps:$4 sm:$0xff]   ;;  %v18500_v34 = vld [vmem:[#allocation10 + $0x4e0] ss:$16 sps:$4 sm:$0xff]  }
 0x70f   :  { %15594 = vmatprep.subr.bf16.mxu1 %v18445_v47  ;;  %v18503_v47 = vld [vmem:[#allocation10 + $0x4e8] ss:$16 sps:$4 sm:$0xff]  }
 0x711   :  { %15267 = vmatpush1.bf16.msra.mxu0 %v18440_v48  ;;  %v18511_v48 = vld [vmem:[#allocation10 + $0x50c] ss:$16 sps:$4 sm:$0xff]  }
 0x712   :  { %15595 = vmatpush1.bf16.msra.mxu1 %v18443_v6  ;;  %15268 = vmatprep.subr.bf16.mxu0 %v18448_v54  ;;  %v18506_v6 = vld [vmem:[#allocation10 + $0x500] ss:$16 sps:$4 sm:$0xff]   ;;  %v18509_v54 = vld [vmem:[#allocation10 + $0x508] ss:$16 sps:$4 sm:$0xff]  }
 0x713   :  { %15596 = vmatprep.subr.bf16.mxu1 %v18451_v56  ;;  %v18514_v56 = vld [vmem:[#allocation10 + $0x524] ss:$16 sps:$4 sm:$0xff]  }
 0x715   :  { %15269 = vmatpush1.bf16.msra.mxu0 %v18446_v62  ;;  %v18512_v62 = vld [vmem:[#allocation10 + $0x520] ss:$16 sps:$4 sm:$0xff]  }
 0x716   :  { %15597 = vmatpush1.bf16.msra.mxu1 %v18449_v49  ;;  %15270 = vmatprep.subr.bf16.mxu0 %v18454_v35  ;;  %v18515_v49 = vld [vmem:[#allocation10 + $0x528] ss:$16 sps:$4 sm:$0xff]   ;;  %v18520_v35 = vld [vmem:[#allocation10 + $0x544] ss:$16 sps:$4 sm:$0xff]  }
 0x717   :  { %15598 = vmatprep.subr.bf16.mxu1 %v18457_v0  ;;  %v5270_v0 = vrot.slane %v5190_v36, %v19471_v50  ;;  %v18572_v36 = vld [vmem:[#allocation10 + $0x660] ss:$16 sps:$4 sm:$0xff]  }
 0x719   :  { %15271 = vmatpush1.bf16.msra.mxu0 %v18452_v7  ;;  %v18521_v7 = vld [vmem:[#allocation10 + $0x548] ss:$16 sps:$4 sm:$0xff]  }
 0x71a   :  { %15599 = vmatpush1.bf16.msra.mxu1 %v18455_v8  ;;  %15281 = vmatprep.subr.bf16.mxu0 %v18460_v10  ;;  %v18526_v8 = vld [vmem:[#allocation10 + $0x564] ss:$16 sps:$4 sm:$0xff]   ;;  %v18032_v10 = vadd.f32 %v19692_v59, %v5270_v0  ;;  %v11782_v59 = vrot.slane %v19093_v60, %v19517_v41  ;;  %v18583_v0 = vld [vmem:[#allocation10 + $0x68c] ss:$16 sps:$4 sm:$0xff]  }
 0x71b   :  { %15609 = vmatprep.subr.bf16.mxu1 %v18463_v61  ;;  %v18529_v61 = vld [vmem:[#allocation10 + $0x56c] ss:$16 sps:$4 sm:$0xff]  }
 0x71c   :  { %15273 = vmatmul.mubr.bf16.vlgmr.msra.gmra.mrb[24].mxu0 %v12073_v17  ;;  %19068 = vtanh.f32 %v18032_v10  ;;  %v18586_v10 = vld [vmem:[#allocation10 + $0x6a4] ss:$16 sps:$4 sm:$0xff]  }
 0x71d   :  { %15601 = vmatmul.mubr.bf16.vlgmr.msra.gmra.mrb[24].mxu1 %v12073_v17  ;;  %15282 = vmatpush1.bf16.msra.mxu0 %v18458_v52  ;;  %v18527_v52 = vld [vmem:[#allocation10 + $0x568] ss:$16 sps:$4 sm:$0xff]   ;;  %v18532_v17 = vld [vmem:[#allocation10 + $0x584] ss:$16 sps:$4 sm:$0xff]  }
 0x71e   :  { %15313 = vmatprep.mubr.bf16.mxu0 %v12076_v20  ;;  %15610 = vmatpush1.bf16.msra.mxu1 %v18461_v18  ;;  %v18535_v18 = vld [vmem:[#allocation10 + $0x58c] ss:$16 sps:$4 sm:$0xff]  }
 0x71f   :  { %15641 = vmatprep.mubr.bf16.mxu1 %v12076_v20  ;;  %15283 = vmatprep.subr.bf16.mxu0 %v18466_v4  ;;  %v18530_v4 = vld [vmem:[#allocation10 + $0x580] ss:$16 sps:$4 sm:$0xff]   ;;  %v18533_v20 = vld [vmem:[#allocation10 + $0x588] ss:$16 sps:$4 sm:$0xff]  }
 0x720   :  { %15611 = vmatprep.subr.bf16.mxu1 %v18469_v26  ;;  %v18538_v26 = vld [vmem:[#allocation10 + $0x5a4] ss:$16 sps:$4 sm:$0xff]  }
 0x721   :  { %15284 = vmatpush1.bf16.msra.mxu0 %v18464_v22  ;;  %v18541_v22 = vld [vmem:[#allocation10 + $0x5ac] ss:$16 sps:$4 sm:$0xff]  }
 0x722   :  { %15612 = vmatpush1.bf16.msra.mxu1 %v18467_v16  ;;  %15285 = vmatprep.subr.bf16.mxu0 %v18472_v53  ;;  %v18536_v16 = vld [vmem:[#allocation10 + $0x5a0] ss:$16 sps:$4 sm:$0xff]   ;;  %v18539_v53 = vld [vmem:[#allocation10 + $0x5a8] ss:$16 sps:$4 sm:$0xff]  }
 0x723   :  { %15613 = vmatprep.subr.bf16.mxu1 %v18475_v12  ;;  %v18544_v12 = vld [vmem:[#allocation10 + $0x5c4] ss:$16 sps:$4 sm:$0xff]  }
 0x725   :  { %15286 = vmatpush1.bf16.msra.mxu0 %v18470_v9  ;;  %v18547_v9 = vld [vmem:[#allocation10 + $0x5cc] ss:$16 sps:$4 sm:$0xff]  }
 0x726   :  { %15614 = vmatpush1.bf16.msra.mxu1 %v18473_v38  ;;  %15287 = vmatprep.subr.bf16.mxu0 %v18478_v28  ;;  %v11862_v38 = vrot.slane %v11782_v59, %v19486_v57  ;;  %v11942_v28 = vrot.slane %v19093_v60, %v19522_v51  ;;  %v18577_v60 = vld [vmem:[#allocation10 + $0x66c] ss:$16 sps:$4 sm:$0xff]  }
 0x727   :  { %15615 = vmatprep.subr.bf16.mxu1 %v18481_v30  ;;  %v19069_v30 = vpop.eup %19068 }
 0x729   :  { %15288 = vmatpush1.bf16.msra.mxu0 %v18476_v31  ;;  %v18542_v31 = vld [vmem:[#allocation10 + $0x5c0] ss:$16 sps:$4 sm:$0xff]  }
 0x72a   :  { %15616 = vmatpush1.bf16.msra.mxu1 %v18479_v58  ;;  %15289 = vmatprep.subr.bf16.mxu0 %v18484_v32  ;;  %v18545_v58 = vld [vmem:[#allocation10 + $0x5c8] ss:$16 sps:$4 sm:$0xff]   ;;  %v18550_v32 = vld [vmem:[#allocation10 + $0x5e4] ss:$16 sps:$4 sm:$0xff]  }
 0x72b   :  { %15617 = vmatprep.subr.bf16.mxu1 %v18487_v2  ;;  %v18553_v2 = vld [vmem:[#allocation10 + $0x5ec] ss:$16 sps:$4 sm:$0xff]  }
 0x72d   :  { %15290 = vmatpush1.bf16.msra.mxu0 %v18482_v11  ;;  %v11902_v11 = vmul.f32 %v19069_v30, %v11862_v38  ;;  %v18590_v38 = vld [vmem:[#allocation10 + $0x6c0] ss:$16 sps:$4 sm:$0xff]  }
 0x72e   :  { %15618 = vmatpush1.bf16.msra.mxu1 %v18485_v40  ;;  %15291 = vmatprep.subr.bf16.mxu0 %v18490_v21  ;;  %v12022_v40 = vrot.slane %v11942_v28, %v19491_v33  ;;  %v18548_v21 = vld [vmem:[#allocation10 + $0x5e0] ss:$16 sps:$4 sm:$0xff]  }
 0x72f   :  { %15619 = vmatprep.subr.bf16.mxu1 %v18493_v42  ;;  %v18551_v42 = vld [vmem:[#allocation10 + $0x5e8] ss:$16 sps:$4 sm:$0xff]  }
 0x731   :  { %15292 = vmatpush1.bf16.msra.mxu0 %v18488_v27  ;;  %v18556_v27 = vld [vmem:[#allocation10 + $0x604] ss:$16 sps:$4 sm:$0xff]  }
 0x732   :  { %15620 = vmatpush1.bf16.msra.mxu1 %v18491_v3  ;;  %15293 = vmatprep.subr.bf16.mxu0 %v18496_v44  ;;  %v18559_v3 = vld [vmem:[#allocation10 + $0x60c] ss:$16 sps:$4 sm:$0xff]   ;;  %v12062_v44 = vadd.f32 %v12022_v40, %v11902_v11  ;;  %v18596_v11 = vld [vmem:[#allocation10 + $0x6e0] ss:$16 sps:$4 sm:$0xff]  }
 0x733   :  { %15621 = vmatprep.subr.bf16.mxu1 %v18499_v5  ;;  %v18554_v5 = vld [vmem:[#allocation10 + $0x600] ss:$16 sps:$4 sm:$0xff]  }
 0x735   :  { %15294 = vmatpush1.bf16.msra.mxu0 %v18494_v39  ;;  %v12075_v39 = vpack.c.bf16 %v19706_v29, %v19706_v29  ;;  %v18566_v29 = vld [vmem:[#allocation10 + $0x640] ss:$16 sps:$4 sm:$0xff]  }
 0x736   :  { %15622 = vmatpush1.bf16.msra.mxu1 %v18497_v45  ;;  %15295 = vmatprep.subr.bf16.mxu0 %v18502_v15  ;;  %v18557_v45 = vld [vmem:[#allocation10 + $0x608] ss:$16 sps:$4 sm:$0xff]   ;;  %v18562_v15 = vld [vmem:[#allocation10 + $0x624] ss:$16 sps:$4 sm:$0xff]  }
 0x737   :  { %15623 = vmatprep.subr.bf16.mxu1 %v18505_v13  ;;  %v12078_v13 = vpack.c.bf16 %v12062_v44, %v12062_v44 }
 0x739   :  { %15296 = vmatpush1.bf16.msra.mxu0 %v18500_v34  ;;  %v18565_v34 = vld [vmem:[#allocation10 + $0x62c] ss:$16 sps:$4 sm:$0xff]  }
 0x73a   :  { %15624 = vmatpush1.bf16.msra.mxu1 %v18503_v47  ;;  %15297 = vmatprep.subr.bf16.mxu0 %v18508_v55  ;;  %v18560_v47 = vld [vmem:[#allocation10 + $0x620] ss:$16 sps:$4 sm:$0xff]   ;;  %v18563_v55 = vld [vmem:[#allocation10 + $0x628] ss:$16 sps:$4 sm:$0xff]  }
 0x73b   :  { %15625 = vmatprep.subr.bf16.mxu1 %v18511_v48  ;;  %v18568_v48 = vld [vmem:[#allocation10 + $0x644] ss:$16 sps:$4 sm:$0xff]  }
 0x73d   :  { %15298 = vmatpush1.bf16.msra.mxu0 %v18506_v6  ;;  %v18571_v6 = vld [vmem:[#allocation10 + $0x64c] ss:$16 sps:$4 sm:$0xff]  }
 0x73e   :  { %15626 = vmatpush1.bf16.msra.mxu1 %v18509_v54  ;;  %15299 = vmatprep.subr.bf16.mxu0 %v18514_v56  ;;  %v18569_v54 = vld [vmem:[#allocation10 + $0x648] ss:$16 sps:$4 sm:$0xff]   ;;  %v18574_v56 = vld [vmem:[#allocation10 + $0x664] ss:$16 sps:$4 sm:$0xff]  }
 0x73f   :  { %15627 = vmatprep.subr.bf16.mxu1 %v18517_v25  ;;  %v19797_v25 = vld [vmem:[#allocation8 + $0x30] sm:$0x77] }
 0x740   :  { %v11802_v40 = vrot.slane %v19797_v25, %v19486_v57  ;;  %v11962_v44 = vrot.slane %v19797_v25, %v19491_v33 }
 0x741   :  { %15300 = vmatpush1.bf16.msra.mxu0 %v18512_v62  ;;  %v18575_v62 = vld [vmem:[#allocation10 + $0x668] ss:$16 sps:$4 sm:$0xff]  }
 0x742   :  { %15628 = vmatpush1.bf16.msra.mxu1 %v18515_v49  ;;  %15301 = vmatprep.subr.bf16.mxu0 %v18520_v35  ;;  %v18580_v49 = vld [vmem:[#allocation10 + $0x684] ss:$16 sps:$4 sm:$0xff]   ;;  %v19799_v35 = vld [vmem:[#allocation8 + $0x38] sm:$0x77] }
 0x743   :  { %15629 = vmatprep.subr.bf16.mxu1 %v18523_v1  ;;  %v5210_v1 = vrot.slane %v19797_v25, %v19471_v50 }
 0x745   :  { %15302 = vmatpush1.bf16.msra.mxu0 %v18518_v43  ;;  %v18578_v43 = vld [vmem:[#allocation10 + $0x680] ss:$16 sps:$4 sm:$0xff]  }
 0x746   :  { %15630 = vmatpush1.bf16.msra.mxu1 %v18521_v7  ;;  %15303 = vmatprep.subr.bf16.mxu0 %v18526_v8  ;;  %v5218_v7 = vrot.slane %v19799_v35, %v19471_v50  ;;  %v18581_v8 = vld [vmem:[#allocation10 + $0x688] ss:$16 sps:$4 sm:$0xff]  }
 0x747   :  { %15631 = vmatprep.subr.bf16.mxu1 %v18529_v61  ;;  %v18589_v61 = vld [vmem:[#allocation10 + $0x6ac] ss:$16 sps:$4 sm:$0xff]  }
 0x749   :  { %15304 = vmatpush1.bf16.msra.mxu0 %v18524_v14  ;;  %v5290_v14 = vrot.slane %v5210_v1, %v19471_v50 }
 0x74a   :  { %15632 = vmatpush1.bf16.msra.mxu1 %v18527_v52  ;;  %15305 = vmatprep.subr.bf16.mxu0 %v18532_v17  ;;  %v5298_v52 = vrot.slane %v5218_v7, %v19471_v50  ;;  %v18584_v17 = vld [vmem:[#allocation10 + $0x6a0] ss:$16 sps:$4 sm:$0xff]  }
 0x74b   :  { %15633 = vmatprep.subr.bf16.mxu1 %v18535_v18  ;;  %v18587_v18 = vld [vmem:[#allocation10 + $0x6a8] ss:$16 sps:$4 sm:$0xff]  }
 0x74d   :  { %15306 = vmatpush1.bf16.msra.mxu0 %v18530_v4  ;;  %v18592_v4 = vld [vmem:[#allocation10 + $0x6c4] ss:$16 sps:$4 sm:$0xff]  }
 0x74e   :  { %15634 = vmatpush1.bf16.msra.mxu1 %v18533_v20  ;;  %15307 = vmatprep.subr.bf16.mxu0 %v18538_v26  ;;  %v18595_v26 = vld [vmem:[#allocation10 + $0x6cc] ss:$16 sps:$4 sm:$0xff]  }
 0x74f   :  { %15635 = vmatprep.subr.bf16.mxu1 %v18541_v22 }
 0x751   :  { %15308 = vmatpush1.bf16.msra.mxu0 %v18536_v16 }
 0x752   :  { %15636 = vmatpush1.bf16.msra.mxu1 %v18539_v53  ;;  %15309 = vmatprep.subr.bf16.mxu0 %v18544_v12 }
 0x753   :  { %15637 = vmatprep.subr.bf16.mxu1 %v18547_v9 }
 0x755   :  { %15310 = vmatpush1.bf16.msra.mxu0 %v18542_v31  ;;  %v18593_v31 = vld [vmem:[#allocation10 + $0x6c8] ss:$16 sps:$4 sm:$0xff]  }
 0x756   :  { %15638 = vmatpush1.bf16.msra.mxu1 %v18545_v58  ;;  %15311 = vmatprep.subr.bf16.mxu0 %v18550_v32  ;;  %v18598_v58 = vld [vmem:[#allocation10 + $0x6e4] ss:$16 sps:$4 sm:$0xff]  }
 0x757   :  { %15639 = vmatprep.subr.bf16.mxu1 %v18553_v2  ;;  %v18601_v2 = vld [vmem:[#allocation10 + $0x6ec] ss:$16 sps:$4 sm:$0xff]  }
 0x759   :  { %15312 = vmatpush1.bf16.msra.mxu0 %v18548_v21  ;;  %v18599_v21 = vld [vmem:[#allocation10 + $0x6e8] ss:$16 sps:$4 sm:$0xff]  }
 0x75a   :  { %15640 = vmatpush1.bf16.msra.mxu1 %v18551_v42  ;;  %15322 = vmatprep.subr.bf16.mxu0 %v18556_v27  ;;  %v18604_v42 = vld [vmem:[#allocation10 + $0x704] ss:$16 sps:$4 sm:$0xff]   ;;  %v11810_v27 = vrot.slane %v19799_v35, %v19486_v57 }
 0x75b   :  { %15650 = vmatprep.subr.bf16.mxu1 %v18559_v3  ;;  %v18607_v3 = vld [vmem:[#allocation10 + $0x70c] ss:$16 sps:$4 sm:$0xff]  }
 0x75c   :  { %15314 = vmatmul.mubr.bf16.vlgmr.msra.gmra.mrb[24].mxu0 %v12075_v39 }
 0x75d   :  { %15642 = vmatmul.mubr.bf16.vlgmr.msra.gmra.mrb[24].mxu1 %v12075_v39  ;;  %15323 = vmatpush1.bf16.msra.mxu0 %v18554_v5  ;;  %v11970_v5 = vrot.slane %v19799_v35, %v19491_v33  ;;  %v18602_v39 = vld [vmem:[#allocation10 + $0x700] ss:$16 sps:$4 sm:$0xff]  }
 0x75e   :  { %15354 = vmatprep.mubr.bf16.mxu0 %v12078_v13  ;;  %15651 = vmatpush1.bf16.msra.mxu1 %v18557_v45  ;;  %v11882_v45 = vrot.slane %v11802_v40, %v19486_v57  ;;  %v18641_v40 = vld [vmem:[#allocation10 + $0x7c8] ss:$16 sps:$4 sm:$0xff]  }
 0x75f   :  { %15682 = vmatprep.mubr.bf16.mxu1 %v12078_v13  ;;  %15324 = vmatprep.subr.bf16.mxu0 %v18562_v15  ;;  %v18605_v15 = vld [vmem:[#allocation10 + $0x708] ss:$16 sps:$4 sm:$0xff]   ;;  %v18610_v13 = vld [vmem:[#allocation10 + $0x724] ss:$16 sps:$4 sm:$0xff]  }
 0x760   :  { %15652 = vmatprep.subr.bf16.mxu1 %v18565_v34  ;;  %v11890_v34 = vrot.slane %v11810_v27, %v19486_v57 }
 0x761   :  { %15325 = vmatpush1.bf16.msra.mxu0 %v18560_v47  ;;  %v19821_v47 = vld [vmem:[#allocation8 + $0x20] sm:$0x77] }
 0x762   :  { %15653 = vmatpush1.bf16.msra.mxu1 %v18563_v55  ;;  %15326 = vmatprep.subr.bf16.mxu0 %v18568_v48  ;;  %v5198_v55 = vrot.slane %v19821_v47, %v19500_v46  ;;  %v18613_v48 = vld [vmem:[#allocation10 + $0x72c] ss:$16 sps:$4 sm:$0xff]  }
 0x763   :  { %15654 = vmatprep.subr.bf16.mxu1 %v18571_v6  ;;  %v12042_v6 = vrot.slane %v11962_v44, %v19491_v33  ;;  %v18644_v44 = vld [vmem:[#allocation10 + $0x7e0] ss:$16 sps:$4 sm:$0xff]  }
 0x764   :  { %v5278_v1 = vrot.slane %v5198_v55, %v19471_v50  ;;  %v18658_v55 = vld [vmem:[#allocation10 + $0x824] ss:$16 sps:$4 sm:$0xff]  }
 0x765   :  { %15327 = vmatpush1.bf16.msra.mxu0 %v18566_v29 }
 0x766   :  { %15655 = vmatpush1.bf16.msra.mxu1 %v18569_v54  ;;  %15328 = vmatprep.subr.bf16.mxu0 %v18574_v56  ;;  %v12050_v54 = vrot.slane %v11970_v5, %v19491_v33  ;;  %v18647_v5 = vld [vmem:[#allocation10 + $0x7e8] ss:$16 sps:$4 sm:$0xff]  }
 0x767   :  { %15656 = vmatprep.subr.bf16.mxu1 %v18577_v60  ;;  %v18608_v60 = vld [vmem:[#allocation10 + $0x720] ss:$16 sps:$4 sm:$0xff]  }
 0x769   :  { %15329 = vmatpush1.bf16.msra.mxu0 %v18572_v36 }
 0x76a   :  { %15657 = vmatpush1.bf16.msra.mxu1 %v18575_v62  ;;  %15330 = vmatprep.subr.bf16.mxu0 %v18580_v49  ;;  %v18611_v62 = vld [vmem:[#allocation10 + $0x728] ss:$16 sps:$4 sm:$0xff]   ;;  %v18616_v49 = vld [vmem:[#allocation10 + $0x744] ss:$16 sps:$4 sm:$0xff]  }
 0x76b   :  { %15658 = vmatprep.subr.bf16.mxu1 %v18583_v0 }
 0x76d   :  { %15331 = vmatpush1.bf16.msra.mxu0 %v18578_v43  ;;  %v18619_v43 = vld [vmem:[#allocation10 + $0x74c] ss:$16 sps:$4 sm:$0xff]  }
 0x76e   :  { %15659 = vmatpush1.bf16.msra.mxu1 %v18581_v8  ;;  %15332 = vmatprep.subr.bf16.mxu0 %v18586_v10  ;;  %v18614_v10 = vld [vmem:[#allocation10 + $0x740] ss:$16 sps:$4 sm:$0xff]  }
 0x76f   :  { %v11564_v20 = vpop.f32.mrb[20].mxu0  ;;  %15660 = vmatprep.subr.bf16.mxu1 %v18589_v61  ;;  %v18617_v61 = vld [vmem:[#allocation10 + $0x748] ss:$16 sps:$4 sm:$0xff]  }
 0x770   :  { %v18037_v22 = vadd.f32 %v11564_v20, %v5290_v14  ;;  %v11728_v59 = vpop.f32.mrb[20].mxu1  ;;  %v19807_v16 = vpop.f32.mrb[21].mxu0  ;;  %v18622_v14 = vld [vmem:[#allocation10 + $0x764] ss:$16 sps:$4 sm:$0xff]  }
 0x771   :  { %v18039_v53 = vadd.f32 %v11728_v59, %v5298_v52  ;;  %v19809_v12 = vpop.f32.mrb[21].mxu1  ;;  %v11568_v9 = vpop.f32.mrb[22].mxu0  ;;  %15333 = vmatpush1.bf16.msra.mxu0 %v18584_v17  ;;  %v18034_v52 = vadd.f32 %v19736_v24, %v5278_v1  ;;  %v18625_v17 = vld [vmem:[#allocation10 + $0x76c] ss:$16 sps:$4 sm:$0xff]   ;;  %v18628_v20 = vld [vmem:[#allocation10 + $0x784] ss:$16 sps:$4 sm:$0xff]   ;;  %v11790_v24 = vrot.slane %v19821_v47, %v19517_v41 }
 0x772   :  { %19070 = vtanh.f32 %v18037_v22  ;;  %v11732_v28 = vpop.f32.mrb[22].mxu1  ;;  %15661 = vmatpush1.bf16.msra.mxu1 %v18587_v18  ;;  %v11569_v30 = vpop.f32.mrb[23].mxu0  ;;  %15334 = vmatprep.subr.bf16.mxu0 %v18592_v4  ;;  %v18620_v18 = vld [vmem:[#allocation10 + $0x760] ss:$16 sps:$4 sm:$0xff]   ;;  %v18623_v4 = vld [vmem:[#allocation10 + $0x768] ss:$16 sps:$4 sm:$0xff]  }
 0x773   :  { %19072 = vtanh.f32 %v18039_v53  ;;  %v11733_v32 = vpop.f32.mrb[23].mxu1  ;;  %15662 = vmatprep.subr.bf16.mxu1 %v18595_v26  ;;  %v18631_v26 = vld [vmem:[#allocation10 + $0x78c] ss:$16 sps:$4 sm:$0xff]   ;;  %v18626_v22 = vld [vmem:[#allocation10 + $0x780] ss:$16 sps:$4 sm:$0xff]  }
 0x774   :  { %19074 = vtanh.f32 %v18034_v52  ;;  %v18629_v59 = vld [vmem:[#allocation10 + $0x788] ss:$16 sps:$4 sm:$0xff]   ;;  %v18634_v53 = vld [vmem:[#allocation10 + $0x7a4] ss:$16 sps:$4 sm:$0xff]   ;;  %v18637_v9 = vld [vmem:[#allocation10 + $0x7ac] ss:$16 sps:$4 sm:$0xff]   ;;  %v11950_v32 = vrot.slane %v19821_v47, %v19522_v51 }
 0x775   :  { %15335 = vmatpush1.bf16.msra.mxu0 %v18590_v38  ;;  %v18632_v38 = vld [vmem:[#allocation10 + $0x7a0] ss:$16 sps:$4 sm:$0xff]   ;;  %v18635_v28 = vld [vmem:[#allocation10 + $0x7a8] ss:$16 sps:$4 sm:$0xff]   ;;  %v18640_v30 = vld [vmem:[#allocation10 + $0x7c4] ss:$16 sps:$4 sm:$0xff]  }
 0x776   :  { %15663 = vmatpush1.bf16.msra.mxu1 %v18593_v31  ;;  %15336 = vmatprep.subr.bf16.mxu0 %v18598_v58  ;;  %v18643_v31 = vld [vmem:[#allocation10 + $0x7cc] ss:$16 sps:$4 sm:$0xff]   ;;  %v11870_v58 = vrot.slane %v11790_v24, %v19486_v57  ;;  %v18653_v47 = vld [vmem:[#allocation10 + $0x808] ss:$16 sps:$4 sm:$0xff]   ;;  %v18682_v52 = vld [vmem:[#allocation10 + $0x8a4] ss:$16 sps:$4 sm:$0xff]  }
 0x777   :  { %15664 = vmatprep.subr.bf16.mxu1 %v18601_v2  ;;  %v18671_v1 = vld [vmem:[#allocation10 + $0x868] ss:$16 sps:$4 sm:$0xff]   ;;  %v18692_v24 = vld [vmem:[#allocation10 + $0x8e0] ss:$16 sps:$4 sm:$0xff]  }
 0x779   :  { %15337 = vmatpush1.bf16.msra.mxu0 %v18596_v11  ;;  %v18638_v11 = vld [vmem:[#allocation10 + $0x7c0] ss:$16 sps:$4 sm:$0xff]  }
 0x77a   :  { %15665 = vmatpush1.bf16.msra.mxu1 %v18599_v21  ;;  %15338 = vmatprep.subr.bf16.mxu0 %v18604_v42  ;;  %v18646_v21 = vld [vmem:[#allocation10 + $0x7e4] ss:$16 sps:$4 sm:$0xff]   ;;  %v18649_v42 = vld [vmem:[#allocation10 + $0x7ec] ss:$16 sps:$4 sm:$0xff]  }
 0x77b   :  { %15666 = vmatprep.subr.bf16.mxu1 %v18607_v3  ;;  %v12030_v3 = vrot.slane %v11950_v32, %v19491_v33  ;;  %v18706_v32 = vld [vmem:[#allocation10 + $0x924] ss:$16 sps:$4 sm:$0xff]  }
 0x77c   :  { %v19071_v29 = vpop.eup %19070 }
 0x77d   :  { %v19073_v56 = vpop.eup %19072  ;;  %15339 = vmatpush1.bf16.msra.mxu0 %v18602_v39  ;;  %v11907_v36 = vmul.f32 %v19071_v29, %v11882_v45  ;;  %v18652_v39 = vld [vmem:[#allocation10 + $0x804] ss:$16 sps:$4 sm:$0xff]   ;;  %v18655_v45 = vld [vmem:[#allocation10 + $0x80c] ss:$16 sps:$4 sm:$0xff]   ;;  %v18656_v29 = vld [vmem:[#allocation10 + $0x820] ss:$16 sps:$4 sm:$0xff]  }
 0x77e   :  { %15667 = vmatpush1.bf16.msra.mxu1 %v18605_v15  ;;  %15340 = vmatprep.subr.bf16.mxu0 %v18610_v13  ;;  %v11909_v0 = vmul.f32 %v19073_v56, %v11890_v34  ;;  %v19075_v2 = vpop.eup %19074  ;;  %v18650_v13 = vld [vmem:[#allocation10 + $0x800] ss:$16 sps:$4 sm:$0xff]   ;;  %v12077_v34 = vpack.c.bf16 %v19708_v23, %v19708_v23  ;;  %v18664_v56 = vld [vmem:[#allocation10 + $0x844] ss:$16 sps:$4 sm:$0xff]  }
 0x77f   :  { %15668 = vmatprep.subr.bf16.mxu1 %v18613_v48  ;;  %v19828_v7 = vadd.f32 %v12042_v6, %v11907_v36  ;;  %v11904_v27 = vmul.f32 %v19075_v2, %v11870_v58  ;;  %v18661_v6 = vld [vmem:[#allocation10 + $0x82c] ss:$16 sps:$4 sm:$0xff]   ;;  %v18662_v23 = vld [vmem:[#allocation10 + $0x840] ss:$16 sps:$4 sm:$0xff]   ;;  %v18665_v36 = vld [vmem:[#allocation10 + $0x848] ss:$16 sps:$4 sm:$0xff]  }
 0x780   :  { %v19830_v8 = vadd.f32 %v12050_v54, %v11909_v0  ;;  %v18659_v54 = vld [vmem:[#allocation10 + $0x828] ss:$16 sps:$4 sm:$0xff]   ;;  %v18668_v0 = vld [vmem:[#allocation10 + $0x860] ss:$16 sps:$4 sm:$0xff]  }
 0x781   :  { %15341 = vmatpush1.bf16.msra.mxu0 %v18608_v60  ;;  %v12064_v15 = vadd.f32 %v12030_v3, %v11904_v27  ;;  %v18667_v60 = vld [vmem:[#allocation10 + $0x84c] ss:$16 sps:$4 sm:$0xff]   ;;  %v18701_v58 = vld [vmem:[#allocation10 + $0x908] ss:$16 sps:$4 sm:$0xff]   ;;  %v18712_v27 = vld [vmem:[#allocation10 + $0x944] ss:$16 sps:$4 sm:$0xff]  }
 0x782   :  { %15669 = vmatpush1.bf16.msra.mxu1 %v18611_v62  ;;  %15342 = vmatprep.subr.bf16.mxu0 %v18616_v49  ;;  %v18670_v62 = vld [vmem:[#allocation10 + $0x864] ss:$16 sps:$4 sm:$0xff]   ;;  %v18673_v49 = vld [vmem:[#allocation10 + $0x86c] ss:$16 sps:$4 sm:$0xff]  }
 0x783   :  { %15670 = vmatprep.subr.bf16.mxu1 %v18619_v43  ;;  %v12080_v48 = vpack.c.bf16 %v12064_v15, %v12064_v15  ;;  %v18676_v43 = vld [vmem:[#allocation10 + $0x884] ss:$16 sps:$4 sm:$0xff]   ;;  %v19095_v2 = vld [vmem:[#allocation8 + $0x28] sm:$0x77] }
 0x785   :  { %15343 = vmatpush1.bf16.msra.mxu0 %v18614_v10  ;;  %v18679_v10 = vld [vmem:[#allocation10 + $0x88c] ss:$16 sps:$4 sm:$0xff]  }
 0x786   :  { %15671 = vmatpush1.bf16.msra.mxu1 %v18617_v61  ;;  %15344 = vmatprep.subr.bf16.mxu0 %v18622_v14  ;;  %v18674_v61 = vld [vmem:[#allocation10 + $0x880] ss:$16 sps:$4 sm:$0xff]   ;;  %v18677_v14 = vld [vmem:[#allocation10 + $0x888] ss:$16 sps:$4 sm:$0xff]  }
 0x787   :  { %15672 = vmatprep.subr.bf16.mxu1 %v18625_v17  ;;  %v18685_v17 = vld [vmem:[#allocation10 + $0x8ac] ss:$16 sps:$4 sm:$0xff]  }
 0x789   :  { %15345 = vmatpush1.bf16.msra.mxu0 %v18620_v18  ;;  %v18680_v18 = vld [vmem:[#allocation10 + $0x8a0] ss:$16 sps:$4 sm:$0xff]  }
 0x78a   :  { %15673 = vmatpush1.bf16.msra.mxu1 %v18623_v4  ;;  %15346 = vmatprep.subr.bf16.mxu0 %v18628_v20  ;;  %v18683_v4 = vld [vmem:[#allocation10 + $0x8a8] ss:$16 sps:$4 sm:$0xff]   ;;  %v18688_v20 = vld [vmem:[#allocation10 + $0x8c4] ss:$16 sps:$4 sm:$0xff]  }
 0x78b   :  { %15674 = vmatprep.subr.bf16.mxu1 %v18631_v26  ;;  %v18691_v26 = vld [vmem:[#allocation10 + $0x8cc] ss:$16 sps:$4 sm:$0xff]  }
 0x78d   :  { %15347 = vmatpush1.bf16.msra.mxu0 %v18626_v22  ;;  %v18686_v22 = vld [vmem:[#allocation10 + $0x8c0] ss:$16 sps:$4 sm:$0xff]  }
 0x78e   :  { %15675 = vmatpush1.bf16.msra.mxu1 %v18629_v59  ;;  %15348 = vmatprep.subr.bf16.mxu0 %v18634_v53  ;;  %v18689_v59 = vld [vmem:[#allocation10 + $0x8c8] ss:$16 sps:$4 sm:$0xff]   ;;  %v18694_v53 = vld [vmem:[#allocation10 + $0x8e4] ss:$16 sps:$4 sm:$0xff]  }
 0x78f   :  { %15676 = vmatprep.subr.bf16.mxu1 %v18637_v9  ;;  %v18697_v9 = vld [vmem:[#allocation10 + $0x8ec] ss:$16 sps:$4 sm:$0xff]  }
 0x791   :  { %15349 = vmatpush1.bf16.msra.mxu0 %v18632_v38  ;;  %v18695_v38 = vld [vmem:[#allocation10 + $0x8e8] ss:$16 sps:$4 sm:$0xff]  }
 0x792   :  { %15677 = vmatpush1.bf16.msra.mxu1 %v18635_v28  ;;  %15350 = vmatprep.subr.bf16.mxu0 %v18640_v30  ;;  %v18700_v28 = vld [vmem:[#allocation10 + $0x904] ss:$16 sps:$4 sm:$0xff]   ;;  %v18703_v30 = vld [vmem:[#allocation10 + $0x90c] ss:$16 sps:$4 sm:$0xff]  }
 0x793   :  { %15678 = vmatprep.subr.bf16.mxu1 %v18643_v31  ;;  %v18698_v31 = vld [vmem:[#allocation10 + $0x900] ss:$16 sps:$4 sm:$0xff]  }
 0x795   :  { %15351 = vmatpush1.bf16.msra.mxu0 %v18638_v11  ;;  %v5206_v11 = vrot.slane %v19095_v2, %v19500_v46 }
 0x796   :  { %15679 = vmatpush1.bf16.msra.mxu1 %v18641_v40  ;;  %15352 = vmatprep.subr.bf16.mxu0 %v18646_v21  ;;  %v18709_v40 = vld [vmem:[#allocation10 + $0x92c] ss:$16 sps:$4 sm:$0xff]   ;;  %v18704_v21 = vld [vmem:[#allocation10 + $0x920] ss:$16 sps:$4 sm:$0xff]  }
 0x797   :  { %15680 = vmatprep.subr.bf16.mxu1 %v18649_v42  ;;  %v18707_v42 = vld [vmem:[#allocation10 + $0x928] ss:$16 sps:$4 sm:$0xff]   ;;  %v5286_v3 = vrot.slane %v5206_v11, %v19471_v50  ;;  %v18766_v11 = vld [vmem:[#allocation10 + $0xa64] ss:$16 sps:$4 sm:$0xff]  }
 0x799   :  { %15353 = vmatpush1.bf16.msra.mxu0 %v18644_v44  ;;  %v18715_v44 = vld [vmem:[#allocation10 + $0x94c] ss:$16 sps:$4 sm:$0xff]   ;;  %v18036_v15 = vadd.f32 %v19738_v37, %v5286_v3  ;;  %v11798_v37 = vrot.slane %v19095_v2, %v19517_v41 }
 0x79a   :  { %15681 = vmatpush1.bf16.msra.mxu1 %v18647_v5  ;;  %15363 = vmatprep.subr.bf16.mxu0 %v18652_v39  ;;  %v18710_v5 = vld [vmem:[#allocation10 + $0x940] ss:$16 sps:$4 sm:$0xff]   ;;  %v18713_v39 = vld [vmem:[#allocation10 + $0x948] ss:$16 sps:$4 sm:$0xff]   ;;  %v18775_v3 = vld [vmem:[#allocation10 + $0xa8c] ss:$16 sps:$4 sm:$0xff]  }
 0x79b   :  { %15691 = vmatprep.subr.bf16.mxu1 %v18655_v45  ;;  %v18718_v45 = vld [vmem:[#allocation10 + $0x964] ss:$16 sps:$4 sm:$0xff]   ;;  %19076 = vtanh.f32 %v18036_v15  ;;  %v18776_v15 = vld [vmem:[#allocation10 + $0xaa0] ss:$16 sps:$4 sm:$0xff]  }
 0x79c   :  { %15355 = vmatmul.mubr.bf16.vlgmr.msra.gmra.mrb[24].mxu0 %v12077_v34 }
 0x79d   :  { %15683 = vmatmul.mubr.bf16.vlgmr.msra.gmra.mrb[24].mxu1 %v12077_v34  ;;  %15364 = vmatpush1.bf16.msra.mxu0 %v18650_v13  ;;  %v18721_v13 = vld [vmem:[#allocation10 + $0x96c] ss:$16 sps:$4 sm:$0xff]   ;;  %v18716_v34 = vld [vmem:[#allocation10 + $0x960] ss:$16 sps:$4 sm:$0xff]  }
 0x79e   :  { %15395 = vmatprep.mubr.bf16.mxu0 %v12080_v48  ;;  %15692 = vmatpush1.bf16.msra.mxu1 %v18653_v47  ;;  %v18719_v47 = vld [vmem:[#allocation10 + $0x968] ss:$16 sps:$4 sm:$0xff]  }
 0x79f   :  { %15723 = vmatprep.mubr.bf16.mxu1 %v12080_v48  ;;  %15365 = vmatprep.subr.bf16.mxu0 %v18658_v55  ;;  %v18724_v55 = vld [vmem:[#allocation10 + $0x984] ss:$16 sps:$4 sm:$0xff]   ;;  %v18727_v48 = vld [vmem:[#allocation10 + $0x98c] ss:$16 sps:$4 sm:$0xff]  }
 0x7a0   :  { %15693 = vmatprep.subr.bf16.mxu1 %v18661_v6  ;;  %v18722_v6 = vld [vmem:[#allocation10 + $0x980] ss:$16 sps:$4 sm:$0xff]  }
 0x7a1   :  { %15366 = vmatpush1.bf16.msra.mxu0 %v18656_v29  ;;  %v18725_v29 = vld [vmem:[#allocation10 + $0x988] ss:$16 sps:$4 sm:$0xff]  }
 0x7a2   :  { %15694 = vmatpush1.bf16.msra.mxu1 %v18659_v54  ;;  %15367 = vmatprep.subr.bf16.mxu0 %v18664_v56  ;;  %v18730_v54 = vld [vmem:[#allocation10 + $0x9a4] ss:$16 sps:$4 sm:$0xff]   ;;  %v18733_v56 = vld [vmem:[#allocation10 + $0x9ac] ss:$16 sps:$4 sm:$0xff]  }
 0x7a3   :  { %15695 = vmatprep.subr.bf16.mxu1 %v18667_v60  ;;  %v18728_v60 = vld [vmem:[#allocation10 + $0x9a0] ss:$16 sps:$4 sm:$0xff]  }
 0x7a5   :  { %15368 = vmatpush1.bf16.msra.mxu0 %v18662_v23  ;;  %v18731_v23 = vld [vmem:[#allocation10 + $0x9a8] ss:$16 sps:$4 sm:$0xff]  }
 0x7a6   :  { %15696 = vmatpush1.bf16.msra.mxu1 %v18665_v36  ;;  %15369 = vmatprep.subr.bf16.mxu0 %v18670_v62  ;;  %v18736_v36 = vld [vmem:[#allocation10 + $0x9c4] ss:$16 sps:$4 sm:$0xff]   ;;  %v18739_v62 = vld [vmem:[#allocation10 + $0x9cc] ss:$16 sps:$4 sm:$0xff]  }
 0x7a7   :  { %15697 = vmatprep.subr.bf16.mxu1 %v18673_v49  ;;  %v11878_v49 = vrot.slane %v11798_v37, %v19486_v57  ;;  %v18796_v37 = vld [vmem:[#allocation10 + $0xb04] ss:$16 sps:$4 sm:$0xff]  }
 0x7a9   :  { %15370 = vmatpush1.bf16.msra.mxu0 %v18668_v0  ;;  %v11958_v0 = vrot.slane %v19095_v2, %v19522_v51  ;;  %v18761_v2 = vld [vmem:[#allocation10 + $0xa48] ss:$16 sps:$4 sm:$0xff]  }
 0x7aa   :  { %15698 = vmatpush1.bf16.msra.mxu1 %v18671_v1  ;;  %15371 = vmatprep.subr.bf16.mxu0 %v18676_v43  ;;  %v19077_v1 = vpop.eup %19076  ;;  %v18734_v43 = vld [vmem:[#allocation10 + $0x9c0] ss:$16 sps:$4 sm:$0xff]  }
 0x7ab   :  { %15699 = vmatprep.subr.bf16.mxu1 %v18679_v10  ;;  %v18737_v10 = vld [vmem:[#allocation10 + $0x9c8] ss:$16 sps:$4 sm:$0xff]  }
 0x7ad   :  { %15372 = vmatpush1.bf16.msra.mxu0 %v18674_v61  ;;  %v18742_v61 = vld [vmem:[#allocation10 + $0x9e4] ss:$16 sps:$4 sm:$0xff]  }
 0x7ae   :  { %15700 = vmatpush1.bf16.msra.mxu1 %v18677_v14  ;;  %15373 = vmatprep.subr.bf16.mxu0 %v18682_v52  ;;  %v18745_v14 = vld [vmem:[#allocation10 + $0x9ec] ss:$16 sps:$4 sm:$0xff]   ;;  %v11906_v52 = vmul.f32 %v19077_v1, %v11878_v49  ;;  %v5214_v49 = vrot.slane %v19797_v25, %v19500_v46  ;;  %v18800_v1 = vld [vmem:[#allocation10 + $0xb20] ss:$16 sps:$4 sm:$0xff]  }
 0x7af   :  { %15701 = vmatprep.subr.bf16.mxu1 %v18685_v17  ;;  %v12038_v17 = vrot.slane %v11958_v0, %v19491_v33  ;;  %v18805_v0 = vld [vmem:[#allocation10 + $0xb2c] ss:$16 sps:$4 sm:$0xff]  }
 0x7b1   :  { %15374 = vmatpush1.bf16.msra.mxu0 %v18680_v18  ;;  %v18740_v18 = vld [vmem:[#allocation10 + $0x9e0] ss:$16 sps:$4 sm:$0xff]  }
 0x7b2   :  { %15702 = vmatpush1.bf16.msra.mxu1 %v18683_v4  ;;  %15375 = vmatprep.subr.bf16.mxu0 %v18688_v20  ;;  %v18743_v4 = vld [vmem:[#allocation10 + $0x9e8] ss:$16 sps:$4 sm:$0xff]   ;;  %v18748_v20 = vld [vmem:[#allocation10 + $0xa04] ss:$16 sps:$4 sm:$0xff]  }
 0x7b3   :  { %15703 = vmatprep.subr.bf16.mxu1 %v18691_v26  ;;  %v18751_v26 = vld [vmem:[#allocation10 + $0xa0c] ss:$16 sps:$4 sm:$0xff]  }
 0x7b5   :  { %15376 = vmatpush1.bf16.msra.mxu0 %v18686_v22  ;;  %v12066_v22 = vadd.f32 %v12038_v17, %v11906_v52  ;;  %v18806_v52 = vld [vmem:[#allocation10 + $0xb40] ss:$16 sps:$4 sm:$0xff]   ;;  %v18809_v17 = vld [vmem:[#allocation10 + $0xb48] ss:$16 sps:$4 sm:$0xff]  }
 0x7b6   :  { %15704 = vmatpush1.bf16.msra.mxu1 %v18689_v59  ;;  %15377 = vmatprep.subr.bf16.mxu0 %v18694_v53  ;;  %v18746_v59 = vld [vmem:[#allocation10 + $0xa00] ss:$16 sps:$4 sm:$0xff]   ;;  %v12079_v53 = vpack.c.bf16 %v19757_v19, %v19757_v19 }
 0x7b7   :  { %15705 = vmatprep.subr.bf16.mxu1 %v18697_v9  ;;  %v18749_v9 = vld [vmem:[#allocation10 + $0xa08] ss:$16 sps:$4 sm:$0xff]   ;;  %v18758_v19 = vld [vmem:[#allocation10 + $0xa40] ss:$16 sps:$4 sm:$0xff]  }
 0x7b9   :  { %15378 = vmatpush1.bf16.msra.mxu0 %v18692_v24  ;;  %v18754_v24 = vld [vmem:[#allocation10 + $0xa24] ss:$16 sps:$4 sm:$0xff]  }
 0x7ba   :  { %15706 = vmatpush1.bf16.msra.mxu1 %v18695_v38  ;;  %15379 = vmatprep.subr.bf16.mxu0 %v18700_v28  ;;  %v12082_v38 = vpack.c.bf16 %v12066_v22, %v12066_v22  ;;  %v18757_v28 = vld [vmem:[#allocation10 + $0xa2c] ss:$16 sps:$4 sm:$0xff]   ;;  %v18815_v22 = vld [vmem:[#allocation10 + $0xb68] ss:$16 sps:$4 sm:$0xff]  }
 0x7bb   :  { %15707 = vmatprep.subr.bf16.mxu1 %v18703_v30  ;;  %v18752_v30 = vld [vmem:[#allocation10 + $0xa20] ss:$16 sps:$4 sm:$0xff]  }
 0x7bd   :  { %15380 = vmatpush1.bf16.msra.mxu0 %v18698_v31  ;;  %v18755_v31 = vld [vmem:[#allocation10 + $0xa28] ss:$16 sps:$4 sm:$0xff]  }
 0x7be   :  { %15708 = vmatpush1.bf16.msra.mxu1 %v18701_v58  ;;  %15381 = vmatprep.subr.bf16.mxu0 %v18706_v32  ;;  %v18760_v58 = vld [vmem:[#allocation10 + $0xa44] ss:$16 sps:$4 sm:$0xff]   ;;  %v18763_v32 = vld [vmem:[#allocation10 + $0xa4c] ss:$16 sps:$4 sm:$0xff]  }
 0x7bf   :  { %15709 = vmatprep.subr.bf16.mxu1 %v18709_v40  ;;  %v18769_v40 = vld [vmem:[#allocation10 + $0xa6c] ss:$16 sps:$4 sm:$0xff]  }
 0x7c1   :  { %15382 = vmatpush1.bf16.msra.mxu0 %v18704_v21  ;;  %v18764_v21 = vld [vmem:[#allocation10 + $0xa60] ss:$16 sps:$4 sm:$0xff]  }
 0x7c2   :  { %15710 = vmatpush1.bf16.msra.mxu1 %v18707_v42  ;;  %15383 = vmatprep.subr.bf16.mxu0 %v18712_v27  ;;  %v18767_v42 = vld [vmem:[#allocation10 + $0xa68] ss:$16 sps:$4 sm:$0xff]   ;;  %v18772_v27 = vld [vmem:[#allocation10 + $0xa84] ss:$16 sps:$4 sm:$0xff]  }
 0x7c3   :  { %15711 = vmatprep.subr.bf16.mxu1 %v18715_v44  ;;  %v18770_v44 = vld [vmem:[#allocation10 + $0xa80] ss:$16 sps:$4 sm:$0xff]  }
 0x7c5   :  { %15384 = vmatpush1.bf16.msra.mxu0 %v18710_v5  ;;  %v18773_v5 = vld [vmem:[#allocation10 + $0xa88] ss:$16 sps:$4 sm:$0xff]  }
 0x7c6   :  { %15712 = vmatpush1.bf16.msra.mxu1 %v18713_v39  ;;  %15385 = vmatprep.subr.bf16.mxu0 %v18718_v45  ;;  %v18778_v39 = vld [vmem:[#allocation10 + $0xaa4] ss:$16 sps:$4 sm:$0xff]   ;;  %v18781_v45 = vld [vmem:[#allocation10 + $0xaac] ss:$16 sps:$4 sm:$0xff]  }
 0x7c7   :  { %15713 = vmatprep.subr.bf16.mxu1 %v18721_v13  ;;  %v18779_v13 = vld [vmem:[#allocation10 + $0xaa8] ss:$16 sps:$4 sm:$0xff]  }
 0x7c9   :  { %15386 = vmatpush1.bf16.msra.mxu0 %v18716_v34  ;;  %v18784_v34 = vld [vmem:[#allocation10 + $0xac4] ss:$16 sps:$4 sm:$0xff]  }
 0x7ca   :  { %15714 = vmatpush1.bf16.msra.mxu1 %v18719_v47  ;;  %15387 = vmatprep.subr.bf16.mxu0 %v18724_v55  ;;  %v18787_v47 = vld [vmem:[#allocation10 + $0xacc] ss:$16 sps:$4 sm:$0xff]   ;;  %v18782_v55 = vld [vmem:[#allocation10 + $0xac0] ss:$16 sps:$4 sm:$0xff]  }
 0x7cb   :  { %15715 = vmatprep.subr.bf16.mxu1 %v18727_v48  ;;  %v18785_v48 = vld [vmem:[#allocation10 + $0xac8] ss:$16 sps:$4 sm:$0xff]  }
 0x7cd   :  { %15388 = vmatpush1.bf16.msra.mxu0 %v18722_v6  ;;  %v18790_v6 = vld [vmem:[#allocation10 + $0xae4] ss:$16 sps:$4 sm:$0xff]  }
 0x7ce   :  { %15716 = vmatpush1.bf16.msra.mxu1 %v18725_v29  ;;  %15389 = vmatprep.subr.bf16.mxu0 %v18730_v54  ;;  %v18793_v29 = vld [vmem:[#allocation10 + $0xaec] ss:$16 sps:$4 sm:$0xff]   ;;  %v18788_v54 = vld [vmem:[#allocation10 + $0xae0] ss:$16 sps:$4 sm:$0xff]  }
 0x7cf   :  { %15717 = vmatprep.subr.bf16.mxu1 %v18733_v56  ;;  %v18791_v56 = vld [vmem:[#allocation10 + $0xae8] ss:$16 sps:$4 sm:$0xff]  }
 0x7d1   :  { %15390 = vmatpush1.bf16.msra.mxu0 %v18728_v60  ;;  %v18799_v60 = vld [vmem:[#allocation10 + $0xb0c] ss:$16 sps:$4 sm:$0xff]  }
 0x7d2   :  { %15718 = vmatpush1.bf16.msra.mxu1 %v18731_v23  ;;  %15391 = vmatprep.subr.bf16.mxu0 %v18736_v36  ;;  %v18794_v23 = vld [vmem:[#allocation10 + $0xb00] ss:$16 sps:$4 sm:$0xff]   ;;  %v18797_v36 = vld [vmem:[#allocation10 + $0xb08] ss:$16 sps:$4 sm:$0xff]  }
 0x7d3   :  { %15719 = vmatprep.subr.bf16.mxu1 %v18739_v62  ;;  %v18802_v62 = vld [vmem:[#allocation10 + $0xb24] ss:$16 sps:$4 sm:$0xff]  }
 0x7d5   :  { %15392 = vmatpush1.bf16.msra.mxu0 %v18734_v43  ;;  %v18803_v43 = vld [vmem:[#allocation10 + $0xb28] ss:$16 sps:$4 sm:$0xff]  }
 0x7d6   :  { %15720 = vmatpush1.bf16.msra.mxu1 %v18737_v10  ;;  %15393 = vmatprep.subr.bf16.mxu0 %v18742_v61  ;;  %v18808_v10 = vld [vmem:[#allocation10 + $0xb44] ss:$16 sps:$4 sm:$0xff]   ;;  %v5294_v61 = vrot.slane %v5214_v49, %v19471_v50  ;;  %v18863_v49 = vld [vmem:[#allocation10 + $0xc68] ss:$16 sps:$4 sm:$0xff]  }
 0x7d7   :  { %15721 = vmatprep.subr.bf16.mxu1 %v18745_v14  ;;  %v18811_v14 = vld [vmem:[#allocation10 + $0xb4c] ss:$16 sps:$4 sm:$0xff]  }
 0x7d9   :  { %15394 = vmatpush1.bf16.msra.mxu0 %v18740_v18  ;;  %v18814_v18 = vld [vmem:[#allocation10 + $0xb64] ss:$16 sps:$4 sm:$0xff]  }
 0x7da   :  { %15722 = vmatpush1.bf16.msra.mxu1 %v18743_v4  ;;  %15404 = vmatprep.subr.bf16.mxu0 %v18748_v20  ;;  %v18038_v4 = vadd.f32 %v19807_v16, %v5294_v61  ;;  %v18817_v20 = vld [vmem:[#allocation10 + $0xb6c] ss:$16 sps:$4 sm:$0xff]   ;;  %v11806_v16 = vrot.slane %v19797_v25, %v19517_v41  ;;  %v18874_v61 = vld [vmem:[#allocation10 + $0xca4] ss:$16 sps:$4 sm:$0xff]  }
 0x7db   :  { %15732 = vmatprep.subr.bf16.mxu1 %v18751_v26  ;;  %v18812_v26 = vld [vmem:[#allocation10 + $0xb60] ss:$16 sps:$4 sm:$0xff]  }
 0x7dc   :  { %15396 = vmatmul.mubr.bf16.vlgmr.msra.gmra.mrb[24].mxu0 %v12079_v53  ;;  %19078 = vtanh.f32 %v18038_v4  ;;  %v18883_v4 = vld [vmem:[#allocation10 + $0xccc] ss:$16 sps:$4 sm:$0xff]  }
 0x7dd   :  { %15724 = vmatmul.mubr.bf16.vlgmr.msra.gmra.mrb[24].mxu1 %v12079_v53  ;;  %15405 = vmatpush1.bf16.msra.mxu0 %v18746_v59  ;;  %v18820_v59 = vld [vmem:[#allocation10 + $0xb84] ss:$16 sps:$4 sm:$0xff]   ;;  %v18823_v53 = vld [vmem:[#allocation10 + $0xb8c] ss:$16 sps:$4 sm:$0xff]  }
 0x7de   :  { %15436 = vmatprep.mubr.bf16.mxu0 %v12082_v38  ;;  %15733 = vmatpush1.bf16.msra.mxu1 %v18749_v9  ;;  %v18818_v9 = vld [vmem:[#allocation10 + $0xb80] ss:$16 sps:$4 sm:$0xff]  }
 0x7df   :  { %15764 = vmatprep.mubr.bf16.mxu1 %v12082_v38  ;;  %15406 = vmatprep.subr.bf16.mxu0 %v18754_v24  ;;  %v18821_v24 = vld [vmem:[#allocation10 + $0xb88] ss:$16 sps:$4 sm:$0xff]   ;;  %v18826_v38 = vld [vmem:[#allocation10 + $0xba4] ss:$16 sps:$4 sm:$0xff]  }
 0x7e0   :  { %15734 = vmatprep.subr.bf16.mxu1 %v18757_v28  ;;  %v18829_v28 = vld [vmem:[#allocation10 + $0xbac] ss:$16 sps:$4 sm:$0xff]  }
 0x7e1   :  { %15407 = vmatpush1.bf16.msra.mxu0 %v18752_v30  ;;  %v18824_v30 = vld [vmem:[#allocation10 + $0xba0] ss:$16 sps:$4 sm:$0xff]  }
 0x7e2   :  { %15735 = vmatpush1.bf16.msra.mxu1 %v18755_v31  ;;  %15408 = vmatprep.subr.bf16.mxu0 %v18760_v58  ;;  %v18827_v31 = vld [vmem:[#allocation10 + $0xba8] ss:$16 sps:$4 sm:$0xff]   ;;  %v18832_v58 = vld [vmem:[#allocation10 + $0xbc4] ss:$16 sps:$4 sm:$0xff]  }
 0x7e3   :  { %15736 = vmatprep.subr.bf16.mxu1 %v18763_v32  ;;  %v18835_v32 = vld [vmem:[#allocation10 + $0xbcc] ss:$16 sps:$4 sm:$0xff]  }
 0x7e5   :  { %15409 = vmatpush1.bf16.msra.mxu0 %v18758_v19  ;;  %v11886_v19 = vrot.slane %v11806_v16, %v19486_v57  ;;  %v18893_v16 = vld [vmem:[#allocation10 + $0xd08] ss:$16 sps:$4 sm:$0xff]  }
 0x7e6   :  { %15737 = vmatpush1.bf16.msra.mxu1 %v18761_v2  ;;  %15410 = vmatprep.subr.bf16.mxu0 %v18766_v11  ;;  %v11966_v2 = vrot.slane %v19797_v25, %v19522_v51  ;;  %v19079_v11 = vpop.eup %19078  ;;  %v18847_v25 = vld [vmem:[#allocation10 + $0xc0c] ss:$16 sps:$4 sm:$0xff]  }
 0x7e7   :  { %15738 = vmatprep.subr.bf16.mxu1 %v18769_v40  ;;  %v18830_v40 = vld [vmem:[#allocation10 + $0xbc0] ss:$16 sps:$4 sm:$0xff]  }
 0x7e9   :  { %15411 = vmatpush1.bf16.msra.mxu0 %v18764_v21  ;;  %v18833_v21 = vld [vmem:[#allocation10 + $0xbc8] ss:$16 sps:$4 sm:$0xff]  }
 0x7ea   :  { %15739 = vmatpush1.bf16.msra.mxu1 %v18767_v42  ;;  %15412 = vmatprep.subr.bf16.mxu0 %v18772_v27  ;;  %v18838_v42 = vld [vmem:[#allocation10 + $0xbe4] ss:$16 sps:$4 sm:$0xff]   ;;  %v18841_v27 = vld [vmem:[#allocation10 + $0xbec] ss:$16 sps:$4 sm:$0xff]  }
 0x7eb   :  { %15740 = vmatprep.subr.bf16.mxu1 %v18775_v3  ;;  %v11908_v3 = vmul.f32 %v19079_v11, %v11886_v19  ;;  %v18899_v19 = vld [vmem:[#allocation10 + $0xd28] ss:$16 sps:$4 sm:$0xff]  }
 0x7ed   :  { %15413 = vmatpush1.bf16.msra.mxu0 %v18770_v44  ;;  %v12046_v44 = vrot.slane %v11966_v2, %v19491_v33  ;;  %v18904_v2 = vld [vmem:[#allocation10 + $0xd44] ss:$16 sps:$4 sm:$0xff]  }
 0x7ee   :  { %15741 = vmatpush1.bf16.msra.mxu1 %v18773_v5  ;;  %15414 = vmatprep.subr.bf16.mxu0 %v18778_v39  ;;  %v18836_v5 = vld [vmem:[#allocation10 + $0xbe0] ss:$16 sps:$4 sm:$0xff]   ;;  %v18839_v39 = vld [vmem:[#allocation10 + $0xbe8] ss:$16 sps:$4 sm:$0xff]  }
 0x7ef   :  { %15742 = vmatprep.subr.bf16.mxu1 %v18781_v45  ;;  %v18844_v45 = vld [vmem:[#allocation10 + $0xc04] ss:$16 sps:$4 sm:$0xff]  }
 0x7f1   :  { %15415 = vmatpush1.bf16.msra.mxu0 %v18776_v15  ;;  %v12068_v15 = vadd.f32 %v12046_v44, %v11908_v3  ;;  %v18913_v3 = vld [vmem:[#allocation10 + $0xd6c] ss:$16 sps:$4 sm:$0xff]   ;;  %v18908_v44 = vld [vmem:[#allocation10 + $0xd60] ss:$16 sps:$4 sm:$0xff]  }
 0x7f2   :  { %15743 = vmatpush1.bf16.msra.mxu1 %v18779_v13  ;;  %15416 = vmatprep.subr.bf16.mxu0 %v18784_v34  ;;  %v18842_v13 = vld [vmem:[#allocation10 + $0xc00] ss:$16 sps:$4 sm:$0xff]   ;;  %v12081_v34 = vpack.c.bf16 %v19759_v63, %v19759_v63 }
 0x7f3   :  { %15744 = vmatprep.subr.bf16.mxu1 %v18787_v47  ;;  %v18845_v47 = vld [vmem:[#allocation10 + $0xc08] ss:$16 sps:$4 sm:$0xff]   ;;  %v18854_v63 = vld [vmem:[#allocation10 + $0xc40] ss:$16 sps:$4 sm:$0xff]  }
 0x7f5   :  { %15417 = vmatpush1.bf16.msra.mxu0 %v18782_v55  ;;  %v18850_v55 = vld [vmem:[#allocation10 + $0xc24] ss:$16 sps:$4 sm:$0xff]  }
 0x7f6   :  { %15745 = vmatpush1.bf16.msra.mxu1 %v18785_v48  ;;  %15418 = vmatprep.subr.bf16.mxu0 %v18790_v6  ;;  %v12084_v48 = vpack.c.bf16 %v12068_v15, %v12068_v15  ;;  %v18853_v6 = vld [vmem:[#allocation10 + $0xc2c] ss:$16 sps:$4 sm:$0xff]   ;;  %v18917_v15 = vld [vmem:[#allocation10 + $0xd88] ss:$16 sps:$4 sm:$0xff]  }
 0x7f7   :  { %15746 = vmatprep.subr.bf16.mxu1 %v18793_v29  ;;  %v18848_v29 = vld [vmem:[#allocation10 + $0xc20] ss:$16 sps:$4 sm:$0xff]  }
 0x7f9   :  { %15419 = vmatpush1.bf16.msra.mxu0 %v18788_v54  ;;  %v18851_v54 = vld [vmem:[#allocation10 + $0xc28] ss:$16 sps:$4 sm:$0xff]  }
 0x7fa   :  { %15747 = vmatpush1.bf16.msra.mxu1 %v18791_v56  ;;  %15420 = vmatprep.subr.bf16.mxu0 %v18796_v37  ;;  %v18856_v56 = vld [vmem:[#allocation10 + $0xc44] ss:$16 sps:$4 sm:$0xff]   ;;  %v18859_v37 = vld [vmem:[#allocation10 + $0xc4c] ss:$16 sps:$4 sm:$0xff]  }
 0x7fb   :  { %15748 = vmatprep.subr.bf16.mxu1 %v18799_v60  ;;  %v18857_v60 = vld [vmem:[#allocation10 + $0xc48] ss:$16 sps:$4 sm:$0xff]  }
 0x7fd   :  { %15421 = vmatpush1.bf16.msra.mxu0 %v18794_v23  ;;  %v18862_v23 = vld [vmem:[#allocation10 + $0xc64] ss:$16 sps:$4 sm:$0xff]  }
 0x7fe   :  { %15749 = vmatpush1.bf16.msra.mxu1 %v18797_v36  ;;  %15422 = vmatprep.subr.bf16.mxu0 %v18802_v62  ;;  %v18865_v36 = vld [vmem:[#allocation10 + $0xc6c] ss:$16 sps:$4 sm:$0xff]   ;;  %v18860_v62 = vld [vmem:[#allocation10 + $0xc60] ss:$16 sps:$4 sm:$0xff]  }
 0x7ff   :  { %15750 = vmatprep.subr.bf16.mxu1 %v18805_v0  ;;  %v18868_v0 = vld [vmem:[#allocation10 + $0xc84] ss:$16 sps:$4 sm:$0xff]  }
 0x801   :  { %15423 = vmatpush1.bf16.msra.mxu0 %v18800_v1  ;;  %v18871_v1 = vld [vmem:[#allocation10 + $0xc8c] ss:$16 sps:$4 sm:$0xff]  }
 0x802   :  { %15751 = vmatpush1.bf16.msra.mxu1 %v18803_v43  ;;  %15424 = vmatprep.subr.bf16.mxu0 %v18808_v10  ;;  %v18866_v43 = vld [vmem:[#allocation10 + $0xc80] ss:$16 sps:$4 sm:$0xff]   ;;  %v18869_v10 = vld [vmem:[#allocation10 + $0xc88] ss:$16 sps:$4 sm:$0xff]  }
 0x803   :  { %15752 = vmatprep.subr.bf16.mxu1 %v18811_v14  ;;  %v18877_v14 = vld [vmem:[#allocation10 + $0xcac] ss:$16 sps:$4 sm:$0xff]  }
 0x805   :  { %15425 = vmatpush1.bf16.msra.mxu0 %v18806_v52  ;;  %v18872_v52 = vld [vmem:[#allocation10 + $0xca0] ss:$16 sps:$4 sm:$0xff]  }
 0x806   :  { %15753 = vmatpush1.bf16.msra.mxu1 %v18809_v17  ;;  %15426 = vmatprep.subr.bf16.mxu0 %v18814_v18  ;;  %v18875_v17 = vld [vmem:[#allocation10 + $0xca8] ss:$16 sps:$4 sm:$0xff]   ;;  %v18880_v18 = vld [vmem:[#allocation10 + $0xcc4] ss:$16 sps:$4 sm:$0xff]  }
 0x807   :  { %15754 = vmatprep.subr.bf16.mxu1 %v18817_v20  ;;  %v18878_v20 = vld [vmem:[#allocation10 + $0xcc0] ss:$16 sps:$4 sm:$0xff]  }
 0x809   :  { %15427 = vmatpush1.bf16.msra.mxu0 %v18812_v26  ;;  %v18881_v26 = vld [vmem:[#allocation10 + $0xcc8] ss:$16 sps:$4 sm:$0xff]  }
 0x80a   :  { %15755 = vmatpush1.bf16.msra.mxu1 %v18815_v22  ;;  %15428 = vmatprep.subr.bf16.mxu0 %v18820_v59  ;;  %v18886_v22 = vld [vmem:[#allocation10 + $0xce4] ss:$16 sps:$4 sm:$0xff]   ;;  %v18889_v59 = vld [vmem:[#allocation10 + $0xcec] ss:$16 sps:$4 sm:$0xff]  }
 0x80b   :  { %15756 = vmatprep.subr.bf16.mxu1 %v18823_v53  ;;  %v18884_v53 = vld [vmem:[#allocation10 + $0xce0] ss:$16 sps:$4 sm:$0xff]  }
 0x80d   :  { %15429 = vmatpush1.bf16.msra.mxu0 %v18818_v9  ;;  %v18887_v9 = vld [vmem:[#allocation10 + $0xce8] ss:$16 sps:$4 sm:$0xff]  }
 0x80e   :  { %15757 = vmatpush1.bf16.msra.mxu1 %v18821_v24  ;;  %15430 = vmatprep.subr.bf16.mxu0 %v18826_v38  ;;  %v18892_v24 = vld [vmem:[#allocation10 + $0xd04] ss:$16 sps:$4 sm:$0xff]   ;;  %v18895_v38 = vld [vmem:[#allocation10 + $0xd0c] ss:$16 sps:$4 sm:$0xff]  }
 0x80f   :  { %15758 = vmatprep.subr.bf16.mxu1 %v18829_v28  ;;  %v18890_v28 = vld [vmem:[#allocation10 + $0xd00] ss:$16 sps:$4 sm:$0xff]  }
 0x811   :  { %15431 = vmatpush1.bf16.msra.mxu0 %v18824_v30  ;;  %v18898_v30 = vld [vmem:[#allocation10 + $0xd24] ss:$16 sps:$4 sm:$0xff]  }
 0x812   :  { %15759 = vmatpush1.bf16.msra.mxu1 %v18827_v31  ;;  %15432 = vmatprep.subr.bf16.mxu0 %v18832_v58  ;;  %v5222_v31 = vrot.slane %v19799_v35, %v19500_v46  ;;  %v18901_v58 = vld [vmem:[#allocation10 + $0xd2c] ss:$16 sps:$4 sm:$0xff]  }
 0x813   :  { %15760 = vmatprep.subr.bf16.mxu1 %v18835_v32  ;;  %v18896_v32 = vld [vmem:[#allocation10 + $0xd20] ss:$16 sps:$4 sm:$0xff]  }
 0x814   :  { %v5302_v11 = vrot.slane %v5222_v31, %v19471_v50  ;;  %v18967_v31 = vld [vmem:[#allocation10 + $0xe8c] ss:$16 sps:$4 sm:$0xff]  }
 0x815   :  { %15433 = vmatpush1.bf16.msra.mxu0 %v18830_v40  ;;  %v18907_v40 = vld [vmem:[#allocation10 + $0xd4c] ss:$16 sps:$4 sm:$0xff]  }
 0x816   :  { %15761 = vmatpush1.bf16.msra.mxu1 %v18833_v21  ;;  %15434 = vmatprep.subr.bf16.mxu0 %v18838_v42  ;;  %v18902_v21 = vld [vmem:[#allocation10 + $0xd40] ss:$16 sps:$4 sm:$0xff]   ;;  %v18905_v42 = vld [vmem:[#allocation10 + $0xd48] ss:$16 sps:$4 sm:$0xff]   ;;  %v18040_v35 = vadd.f32 %v19809_v12, %v5302_v11 }
 0x817   :  { %15762 = vmatprep.subr.bf16.mxu1 %v18841_v27  ;;  %v18910_v27 = vld [vmem:[#allocation10 + $0xd64] ss:$16 sps:$4 sm:$0xff]   ;;  %v19096_v12 = vld [vmem:[#allocation8 + $0x38] sm:$0x77]  ;;  %v18968_v11 = vld [vmem:[#allocation10 + $0xea0] ss:$16 sps:$4 sm:$0xff]  }
 0x818   :  { %19080 = vtanh.f32 %v18040_v35  ;;  %v18977_v35 = vld [vmem:[#allocation10 + $0xec8] ss:$16 sps:$4 sm:$0xff]  }
 0x819   :  { %15435 = vmatpush1.bf16.msra.mxu0 %v18836_v5  ;;  %v18911_v5 = vld [vmem:[#allocation10 + $0xd68] ss:$16 sps:$4 sm:$0xff]  }
 0x81a   :  { %15763 = vmatpush1.bf16.msra.mxu1 %v18839_v39  ;;  %15445 = vmatprep.subr.bf16.mxu0 %v18844_v45  ;;  %v18916_v39 = vld [vmem:[#allocation10 + $0xd84] ss:$16 sps:$4 sm:$0xff]   ;;  %v18919_v45 = vld [vmem:[#allocation10 + $0xd8c] ss:$16 sps:$4 sm:$0xff]  }
 0x81b   :  { %15773 = vmatprep.subr.bf16.mxu1 %v18847_v25  ;;  %v18914_v25 = vld [vmem:[#allocation10 + $0xd80] ss:$16 sps:$4 sm:$0xff]  }
 0x81c   :  { %15437 = vmatmul.mubr.bf16.vlgmr.msra.gmra.mrb[24].mxu0 %v12081_v34 }
 0x81d   :  { %15765 = vmatmul.mubr.bf16.vlgmr.msra.gmra.mrb[24].mxu1 %v12081_v34  ;;  %15446 = vmatpush1.bf16.msra.mxu0 %v18842_v13  ;;  %v18922_v13 = vld [vmem:[#allocation10 + $0xda4] ss:$16 sps:$4 sm:$0xff]   ;;  %v18925_v34 = vld [vmem:[#allocation10 + $0xdac] ss:$16 sps:$4 sm:$0xff]  }
 0x81e   :  { %15477 = vmatprep.mubr.bf16.mxu0 %v12084_v48  ;;  %15774 = vmatpush1.bf16.msra.mxu1 %v18845_v47  ;;  %v11814_v47 = vrot.slane %v19096_v12, %v19517_v41 }
 0x81f   :  { %15805 = vmatprep.mubr.bf16.mxu1 %v12084_v48  ;;  %15447 = vmatprep.subr.bf16.mxu0 %v18850_v55  ;;  %v18920_v55 = vld [vmem:[#allocation10 + $0xda0] ss:$16 sps:$4 sm:$0xff]   ;;  %v18923_v48 = vld [vmem:[#allocation10 + $0xda8] ss:$16 sps:$4 sm:$0xff]  }
 0x820   :  { %15775 = vmatprep.subr.bf16.mxu1 %v18853_v6  ;;  %v18928_v6 = vld [vmem:[#allocation10 + $0xdc4] ss:$16 sps:$4 sm:$0xff]  }
 0x821   :  { %15448 = vmatpush1.bf16.msra.mxu0 %v18848_v29  ;;  %v18931_v29 = vld [vmem:[#allocation10 + $0xdcc] ss:$16 sps:$4 sm:$0xff]  }
 0x822   :  { %15776 = vmatpush1.bf16.msra.mxu1 %v18851_v54  ;;  %15449 = vmatprep.subr.bf16.mxu0 %v18856_v56  ;;  %v11894_v54 = vrot.slane %v11814_v47, %v19486_v57  ;;  %v11974_v56 = vrot.slane %v19096_v12, %v19522_v51  ;;  %v18997_v12 = vld [vmem:[#allocation10 + $0xf2c] ss:$16 sps:$4 sm:$0xff]   ;;  %v18992_v47 = vld [vmem:[#allocation10 + $0xf20] ss:$16 sps:$4 sm:$0xff]  }
 0x823   :  { %15777 = vmatprep.subr.bf16.mxu1 %v18859_v37  ;;  %v19081_v37 = vpop.eup %19080 }
 0x825   :  { %15450 = vmatpush1.bf16.msra.mxu0 %v18854_v63  ;;  %v18926_v63 = vld [vmem:[#allocation10 + $0xdc0] ss:$16 sps:$4 sm:$0xff]  }
 0x826   :  { %15778 = vmatpush1.bf16.msra.mxu1 %v18857_v60  ;;  %15451 = vmatprep.subr.bf16.mxu0 %v18862_v23  ;;  %v18929_v60 = vld [vmem:[#allocation10 + $0xdc8] ss:$16 sps:$4 sm:$0xff]   ;;  %v18934_v23 = vld [vmem:[#allocation10 + $0xde4] ss:$16 sps:$4 sm:$0xff]  }
 0x827   :  { %15779 = vmatprep.subr.bf16.mxu1 %v18865_v36  ;;  %v18937_v36 = vld [vmem:[#allocation10 + $0xdec] ss:$16 sps:$4 sm:$0xff]  }
 0x829   :  { %15452 = vmatpush1.bf16.msra.mxu0 %v18860_v62  ;;  %v11910_v62 = vmul.f32 %v19081_v37, %v11894_v54  ;;  %v19001_v54 = vld [vmem:[#allocation10 + $0xf48] ss:$16 sps:$4 sm:$0xff]   ;;  %v19009_v37 = vld [vmem:[#allocation10 + $0xf6c] ss:$16 sps:$4 sm:$0xff]  }
 0x82a   :  { %15780 = vmatpush1.bf16.msra.mxu1 %v18863_v49  ;;  %15453 = vmatprep.subr.bf16.mxu0 %v18868_v0  ;;  %v12054_v49 = vrot.slane %v11974_v56, %v19491_v33  ;;  %v18932_v0 = vld [vmem:[#allocation10 + $0xde0] ss:$16 sps:$4 sm:$0xff]   ;;  %v19006_v56 = vld [vmem:[#allocation10 + $0xf64] ss:$16 sps:$4 sm:$0xff]  }
 0x82b   :  { %15781 = vmatprep.subr.bf16.mxu1 %v18871_v1  ;;  %v18935_v1 = vld [vmem:[#allocation10 + $0xde8] ss:$16 sps:$4 sm:$0xff]  }
 0x82d   :  { %15454 = vmatpush1.bf16.msra.mxu0 %v18866_v43  ;;  %v18940_v43 = vld [vmem:[#allocation10 + $0xe04] ss:$16 sps:$4 sm:$0xff]  }
 0x82e   :  { %15782 = vmatpush1.bf16.msra.mxu1 %v18869_v10  ;;  %15455 = vmatprep.subr.bf16.mxu0 %v18874_v61  ;;  %v18943_v10 = vld [vmem:[#allocation10 + $0xe0c] ss:$16 sps:$4 sm:$0xff]   ;;  %v12070_v61 = vadd.f32 %v12054_v49, %v11910_v62  ;;  %v19010_v62 = vld [vmem:[#allocation10 + $0xf80] ss:$16 sps:$4 sm:$0xff]   ;;  %v19013_v49 = vld [vmem:[#allocation10 + $0xf88] ss:$16 sps:$4 sm:$0xff]  }
 0x82f   :  { %15783 = vmatprep.subr.bf16.mxu1 %v18877_v14  ;;  %v18938_v14 = vld [vmem:[#allocation10 + $0xe00] ss:$16 sps:$4 sm:$0xff]  }
 0x831   :  { %15456 = vmatpush1.bf16.msra.mxu0 %v18872_v52  ;;  %v12083_v52 = vpack.c.bf16 %v19828_v7, %v19828_v7  ;;  %v18950_v7 = vld [vmem:[#allocation10 + $0xe40] ss:$16 sps:$4 sm:$0xff]  }
 0x832   :  { %15784 = vmatpush1.bf16.msra.mxu1 %v18875_v17  ;;  %15457 = vmatprep.subr.bf16.mxu0 %v18880_v18  ;;  %v18941_v17 = vld [vmem:[#allocation10 + $0xe08] ss:$16 sps:$4 sm:$0xff]   ;;  %v18946_v18 = vld [vmem:[#allocation10 + $0xe24] ss:$16 sps:$4 sm:$0xff]  }
 0x833   :  { %15785 = vmatprep.subr.bf16.mxu1 %v18883_v4  ;;  %v12086_v4 = vpack.c.bf16 %v12070_v61, %v12070_v61  ;;  %v19024_v61 = vld [vmem:[#allocation10 + $0xfc4] ss:$16 sps:$4 sm:$0xff]  }
 0x835   :  { %15458 = vmatpush1.bf16.msra.mxu0 %v18878_v20  ;;  %v18949_v20 = vld [vmem:[#allocation10 + $0xe2c] ss:$16 sps:$4 sm:$0xff]  }
 0x836   :  { %15786 = vmatpush1.bf16.msra.mxu1 %v18881_v26  ;;  %15459 = vmatprep.subr.bf16.mxu0 %v18886_v22  ;;  %v18944_v26 = vld [vmem:[#allocation10 + $0xe20] ss:$16 sps:$4 sm:$0xff]   ;;  %v18947_v22 = vld [vmem:[#allocation10 + $0xe28] ss:$16 sps:$4 sm:$0xff]  }
 0x837   :  { %15787 = vmatprep.subr.bf16.mxu1 %v18889_v59  ;;  %v18952_v59 = vld [vmem:[#allocation10 + $0xe44] ss:$16 sps:$4 sm:$0xff]  }
 0x839   :  { %15460 = vmatpush1.bf16.msra.mxu0 %v18884_v53  ;;  %v18955_v53 = vld [vmem:[#allocation10 + $0xe4c] ss:$16 sps:$4 sm:$0xff]  }
 0x83a   :  { %15788 = vmatpush1.bf16.msra.mxu1 %v18887_v9  ;;  %15461 = vmatprep.subr.bf16.mxu0 %v18892_v24  ;;  %v18953_v9 = vld [vmem:[#allocation10 + $0xe48] ss:$16 sps:$4 sm:$0xff]   ;;  %v18958_v24 = vld [vmem:[#allocation10 + $0xe64] ss:$16 sps:$4 sm:$0xff]  }
 0x83b   :  { %15789 = vmatprep.subr.bf16.mxu1 %v18895_v38  ;;  %v18961_v38 = vld [vmem:[#allocation10 + $0xe6c] ss:$16 sps:$4 sm:$0xff]  }
 0x83d   :  { %15462 = vmatpush1.bf16.msra.mxu0 %v18890_v28  ;;  %v18956_v28 = vld [vmem:[#allocation10 + $0xe60] ss:$16 sps:$4 sm:$0xff]  }
 0x83e   :  { %15790 = vmatpush1.bf16.msra.mxu1 %v18893_v16  ;;  %15463 = vmatprep.subr.bf16.mxu0 %v18898_v30  ;;  %v18959_v16 = vld [vmem:[#allocation10 + $0xe68] ss:$16 sps:$4 sm:$0xff]   ;;  %v18964_v30 = vld [vmem:[#allocation10 + $0xe84] ss:$16 sps:$4 sm:$0xff]  }
 0x83f   :  { %15791 = vmatprep.subr.bf16.mxu1 %v18901_v58  ;;  %v18962_v58 = vld [vmem:[#allocation10 + $0xe80] ss:$16 sps:$4 sm:$0xff]  }
 0x841   :  { %15464 = vmatpush1.bf16.msra.mxu0 %v18896_v32  ;;  %v18965_v32 = vld [vmem:[#allocation10 + $0xe88] ss:$16 sps:$4 sm:$0xff]  }
 0x842   :  { %15792 = vmatpush1.bf16.msra.mxu1 %v18899_v19  ;;  %15465 = vmatprep.subr.bf16.mxu0 %v18904_v2  ;;  %v18970_v19 = vld [vmem:[#allocation10 + $0xea4] ss:$16 sps:$4 sm:$0xff]   ;;  %v18973_v2 = vld [vmem:[#allocation10 + $0xeac] ss:$16 sps:$4 sm:$0xff]  }
 0x843   :  { %15793 = vmatprep.subr.bf16.mxu1 %v18907_v40  ;;  %v18971_v40 = vld [vmem:[#allocation10 + $0xea8] ss:$16 sps:$4 sm:$0xff]  }
 0x845   :  { %15466 = vmatpush1.bf16.msra.mxu0 %v18902_v21  ;;  %v18976_v21 = vld [vmem:[#allocation10 + $0xec4] ss:$16 sps:$4 sm:$0xff]  }
 0x846   :  { %15794 = vmatpush1.bf16.msra.mxu1 %v18905_v42  ;;  %15467 = vmatprep.subr.bf16.mxu0 %v18910_v27  ;;  %v18979_v42 = vld [vmem:[#allocation10 + $0xecc] ss:$16 sps:$4 sm:$0xff]   ;;  %v18974_v27 = vld [vmem:[#allocation10 + $0xec0] ss:$16 sps:$4 sm:$0xff]  }
 0x847   :  { %15795 = vmatprep.subr.bf16.mxu1 %v18913_v3  ;;  %v18982_v3 = vld [vmem:[#allocation10 + $0xee4] ss:$16 sps:$4 sm:$0xff]  }
 0x849   :  { %15468 = vmatpush1.bf16.msra.mxu0 %v18908_v44  ;;  %v18985_v44 = vld [vmem:[#allocation10 + $0xeec] ss:$16 sps:$4 sm:$0xff]  }
 0x84a   :  { %15796 = vmatpush1.bf16.msra.mxu1 %v18911_v5  ;;  %15469 = vmatprep.subr.bf16.mxu0 %v18916_v39  ;;  %v18980_v5 = vld [vmem:[#allocation10 + $0xee0] ss:$16 sps:$4 sm:$0xff]   ;;  %v18983_v39 = vld [vmem:[#allocation10 + $0xee8] ss:$16 sps:$4 sm:$0xff]  }
 0x84b   :  { %15797 = vmatprep.subr.bf16.mxu1 %v18919_v45  ;;  %v18988_v45 = vld [vmem:[#allocation10 + $0xf04] ss:$16 sps:$4 sm:$0xff]  }
 0x84d   :  { %15470 = vmatpush1.bf16.msra.mxu0 %v18914_v25  ;;  %v18991_v25 = vld [vmem:[#allocation10 + $0xf0c] ss:$16 sps:$4 sm:$0xff]  }
 0x84e   :  { %15798 = vmatpush1.bf16.msra.mxu1 %v18917_v15  ;;  %15471 = vmatprep.subr.bf16.mxu0 %v18922_v13  ;;  %v18986_v15 = vld [vmem:[#allocation10 + $0xf00] ss:$16 sps:$4 sm:$0xff]   ;;  %v18989_v13 = vld [vmem:[#allocation10 + $0xf08] ss:$16 sps:$4 sm:$0xff]  }
 0x84f   :  { %15799 = vmatprep.subr.bf16.mxu1 %v18925_v34  ;;  %v18994_v34 = vld [vmem:[#allocation10 + $0xf24] ss:$16 sps:$4 sm:$0xff]  }
 0x851   :  { %15472 = vmatpush1.bf16.msra.mxu0 %v18920_v55  ;;  %v18995_v55 = vld [vmem:[#allocation10 + $0xf28] ss:$16 sps:$4 sm:$0xff]  }
 0x852   :  { %15800 = vmatpush1.bf16.msra.mxu1 %v18923_v48  ;;  %15473 = vmatprep.subr.bf16.mxu0 %v18928_v6  ;;  %v19000_v48 = vld [vmem:[#allocation10 + $0xf44] ss:$16 sps:$4 sm:$0xff]   ;;  %v19003_v6 = vld [vmem:[#allocation10 + $0xf4c] ss:$16 sps:$4 sm:$0xff]  }
 0x853   :  { %15801 = vmatprep.subr.bf16.mxu1 %v18931_v29  ;;  %v18998_v29 = vld [vmem:[#allocation10 + $0xf40] ss:$16 sps:$4 sm:$0xff]  }
 0x855   :  { %15474 = vmatpush1.bf16.msra.mxu0 %v18926_v63  ;;  %v19004_v63 = vld [vmem:[#allocation10 + $0xf60] ss:$16 sps:$4 sm:$0xff]  }
 0x856   :  { %15802 = vmatpush1.bf16.msra.mxu1 %v18929_v60  ;;  %15475 = vmatprep.subr.bf16.mxu0 %v18934_v23  ;;  %v19007_v60 = vld [vmem:[#allocation10 + $0xf68] ss:$16 sps:$4 sm:$0xff]   ;;  %v19012_v23 = vld [vmem:[#allocation10 + $0xf84] ss:$16 sps:$4 sm:$0xff]  }
 0x857   :  { %15803 = vmatprep.subr.bf16.mxu1 %v18937_v36  ;;  %v19015_v36 = vld [vmem:[#allocation10 + $0xf8c] ss:$16 sps:$4 sm:$0xff]  }
 0x859   :  { %15476 = vmatpush1.bf16.msra.mxu0 %v18932_v0  ;;  %v19018_v0 = vld [vmem:[#allocation10 + $0xfa4] ss:$16 sps:$4 sm:$0xff]  }
 0x85a   :  { %15804 = vmatpush1.bf16.msra.mxu1 %v18935_v1  ;;  %15486 = vmatprep.subr.bf16.mxu0 %v18940_v43  ;;  %v19021_v1 = vld [vmem:[#allocation10 + $0xfac] ss:$16 sps:$4 sm:$0xff]   ;;  %v19016_v43 = vld [vmem:[#allocation10 + $0xfa0] ss:$16 sps:$4 sm:$0xff]  }
 0x85b   :  { %15814 = vmatprep.subr.bf16.mxu1 %v18943_v10  ;;  %v19019_v10 = vld [vmem:[#allocation10 + $0xfa8] ss:$16 sps:$4 sm:$0xff]  }
 0x85c   :  { %15478 = vmatmul.mubr.bf16.vlgmr.msra.gmra.mrb[24].mxu0 %v12083_v52 }
 0x85d   :  { %15806 = vmatmul.mubr.bf16.vlgmr.msra.gmra.mrb[24].mxu1 %v12083_v52  ;;  %15487 = vmatpush1.bf16.msra.mxu0 %v18938_v14  ;;  %v19027_v14 = vld [vmem:[#allocation10 + $0xfcc] ss:$16 sps:$4 sm:$0xff]   ;;  %v19022_v52 = vld [vmem:[#allocation10 + $0xfc0] ss:$16 sps:$4 sm:$0xff]  }
 0x85e   :  { %15518 = vmatprep.mubr.bf16.mxu0 %v12086_v4  ;;  %15815 = vmatpush1.bf16.msra.mxu1 %v18941_v17  ;;  %v19025_v17 = vld [vmem:[#allocation10 + $0xfc8] ss:$16 sps:$4 sm:$0xff]  }
 0x85f   :  { %15846 = vmatprep.mubr.bf16.mxu1 %v12086_v4  ;;  %15488 = vmatprep.subr.bf16.mxu0 %v18946_v18  ;;  %v19030_v18 = vld [vmem:[#allocation10 + $0xfe4] ss:$16 sps:$4 sm:$0xff]   ;;  %v19033_v4 = vld [vmem:[#allocation10 + $0xfec] ss:$16 sps:$4 sm:$0xff]  }
 0x860   :  { %15816 = vmatprep.subr.bf16.mxu1 %v18949_v20  ;;  %v19028_v20 = vld [vmem:[#allocation10 + $0xfe0] ss:$16 sps:$4 sm:$0xff]  }
 0x861   :  { %15489 = vmatpush1.bf16.msra.mxu0 %v18944_v26  ;;  %v19031_v26 = vld [vmem:[#allocation10 + $0xfe8] ss:$16 sps:$4 sm:$0xff]  }
 0x862   :  { %15817 = vmatpush1.bf16.msra.mxu1 %v18947_v22  ;;  %15490 = vmatprep.subr.bf16.mxu0 %v18952_v59  ;;  %v12085_v22 = vpack.c.bf16 %v19830_v8, %v19830_v8  ;;  %v12087_v59 = vld [vmem:[#allocation11] sm:$0x77] }
 0x863   :  { %15818 = vmatprep.subr.bf16.mxu1 %v18955_v53  ;;  %v12088_v53 = vld [vmem:[#allocation11 + $0x8] sm:$0x77] }
 0x865   :  { %15491 = vmatpush1.bf16.msra.mxu0 %v18950_v7  ;;  %v12606_v7 = vrot.slane %v12087_v59, %v19471_v50 }
 0x866   :  { %15819 = vmatpush1.bf16.msra.mxu1 %v18953_v9  ;;  %15492 = vmatprep.subr.bf16.mxu0 %v18958_v24  ;;  %v12614_v9 = vrot.slane %v12088_v53, %v19471_v50  ;;  %v12610_v24 = vrot.slane %v12087_v59, %v19500_v46 }
 0x867   :  { %15820 = vmatprep.subr.bf16.mxu1 %v18961_v38  ;;  %v12618_v38 = vrot.slane %v12088_v53, %v19500_v46 }
 0x869   :  { %15493 = vmatpush1.bf16.msra.mxu0 %v18956_v28  ;;  %v12626_v28 = vrot.slane %v12606_v7, %v19471_v50  ;;  %v12638_v8 = vrot.slane %v12618_v38, %v19471_v50 }
 0x86a   :  { %15821 = vmatpush1.bf16.msra.mxu1 %v18959_v16  ;;  %15494 = vmatprep.subr.bf16.mxu0 %v18964_v30  ;;  %v12634_v16 = vrot.slane %v12614_v9, %v19471_v50  ;;  %v12630_v30 = vrot.slane %v12610_v24, %v19471_v50  ;;  %v15870_v50 = vrot.slane %v12088_v53, %v19486_v57 }
 0x86b   :  { %15822 = vmatprep.subr.bf16.mxu1 %v18967_v31 }
 0x86d   :  { %15495 = vmatpush1.bf16.msra.mxu0 %v18962_v58 }
 0x86e   :  { %15823 = vmatpush1.bf16.msra.mxu1 %v18965_v32  ;;  %15496 = vmatprep.subr.bf16.mxu0 %v18970_v19 }
 0x86f   :  { %15824 = vmatprep.subr.bf16.mxu1 %v18973_v2 }
 0x871   :  { %15497 = vmatpush1.bf16.msra.mxu0 %v18968_v11 }
 0x872   :  { %15825 = vmatpush1.bf16.msra.mxu1 %v18971_v40  ;;  %15498 = vmatprep.subr.bf16.mxu0 %v18976_v21 }
 0x873   :  { %15826 = vmatprep.subr.bf16.mxu1 %v18979_v42 }
 0x875   :  { %15499 = vmatpush1.bf16.msra.mxu0 %v18974_v27 }
 0x876   :  { %15827 = vmatpush1.bf16.msra.mxu1 %v18977_v35  ;;  %15500 = vmatprep.subr.bf16.mxu0 %v18982_v3  ;;  %v15862_v3 = vrot.slane %v12087_v59, %v19486_v57 }
 0x877   :  { %15828 = vmatprep.subr.bf16.mxu1 %v18985_v44  ;;  %v15866_v44 = vrot.slane %v12087_v59, %v19517_v41 }
 0x879   :  { %15501 = vmatpush1.bf16.msra.mxu0 %v18980_v5  ;;  %v15902_v5 = vrot.slane %v12087_v59, %v19491_v33 }
 0x87a   :  { %15829 = vmatpush1.bf16.msra.mxu1 %v18983_v39  ;;  %15502 = vmatprep.subr.bf16.mxu0 %v18988_v45  ;;  %v15874_v39 = vrot.slane %v12088_v53, %v19517_v41  ;;  %v15910_v45 = vrot.slane %v12088_v53, %v19491_v33 }
 0x87b   :  { %15830 = vmatprep.subr.bf16.mxu1 %v18991_v25  ;;  %v15882_v25 = vrot.slane %v15862_v3, %v19486_v57 }
 0x87d   :  { %15503 = vmatpush1.bf16.msra.mxu0 %v18986_v15  ;;  %v15906_v15 = vrot.slane %v12087_v59, %v19522_v51 }
 0x87e   :  { %15831 = vmatpush1.bf16.msra.mxu1 %v18989_v13  ;;  %15504 = vmatprep.subr.bf16.mxu0 %v18994_v34  ;;  %v15890_v13 = vrot.slane %v15870_v50, %v19486_v57  ;;  %v15914_v34 = vrot.slane %v12088_v53, %v19522_v51 }
 0x87f   :  { %15832 = vmatprep.subr.bf16.mxu1 %v18997_v12  ;;  %v15886_v12 = vrot.slane %v15866_v44, %v19486_v57 }
 0x881   :  { %15505 = vmatpush1.bf16.msra.mxu0 %v18992_v47  ;;  %v15922_v47 = vrot.slane %v15902_v5, %v19491_v33 }
 0x882   :  { %15833 = vmatpush1.bf16.msra.mxu1 %v18995_v55  ;;  %15506 = vmatprep.subr.bf16.mxu0 %v19000_v48  ;;  %v15894_v48 = vrot.slane %v15874_v39, %v19486_v57 }
 0x883   :  { %15834 = vmatprep.subr.bf16.mxu1 %v19003_v6  ;;  %v15930_v6 = vrot.slane %v15910_v45, %v19491_v33 }
 0x885   :  { %15507 = vmatpush1.bf16.msra.mxu0 %v18998_v29 }
 0x886   :  { %15835 = vmatpush1.bf16.msra.mxu1 %v19001_v54  ;;  %15508 = vmatprep.subr.bf16.mxu0 %v19006_v56  ;;  %v15926_v54 = vrot.slane %v15906_v15, %v19491_v33 }
 0x887   :  { %15836 = vmatprep.subr.bf16.mxu1 %v19009_v37 }
 0x889   :  { %15509 = vmatpush1.bf16.msra.mxu0 %v19004_v63  ;;  %v15934_v63 = vrot.slane %v15914_v34, %v19491_v33 }
 0x88a   :  { %15837 = vmatpush1.bf16.msra.mxu1 %v19007_v60  ;;  %15510 = vmatprep.subr.bf16.mxu0 %v19012_v23 }
 0x88b   :  { %15838 = vmatprep.subr.bf16.mxu1 %v19015_v36 }
 0x88d   :  { %15511 = vmatpush1.bf16.msra.mxu0 %v19010_v62 }
 0x88e   :  { %15839 = vmatpush1.bf16.msra.mxu1 %v19013_v49  ;;  %15512 = vmatprep.subr.bf16.mxu0 %v19018_v0 }
 0x88f   :  { %15840 = vmatprep.subr.bf16.mxu1 %v19021_v1 }
 0x891   :  { %15513 = vmatpush1.bf16.msra.mxu0 %v19016_v43 }
 0x892   :  { %15841 = vmatpush1.bf16.msra.mxu1 %v19019_v10  ;;  %15514 = vmatprep.subr.bf16.mxu0 %v19024_v61 }
 0x893   :  { %15842 = vmatprep.subr.bf16.mxu1 %v19027_v14 }
 0x895   :  { %15515 = vmatpush1.bf16.msra.mxu0 %v19022_v52 }
 0x896   :  { %15843 = vmatpush1.bf16.msra.mxu1 %v19025_v17  ;;  %15516 = vmatprep.subr.bf16.mxu0 %v19030_v18 }
 0x897   :  { %15844 = vmatprep.subr.bf16.mxu1 %v19033_v4 }
 0x899   :  { %15517 = vmatpush1.bf16.msra.mxu0 %v19028_v20 }
 0x89a   :  { %15845 = vmatpush1.bf16.msra.mxu1 %v19031_v26 }
 0x89c   :  { %15519 = vmatmul.mubr.bf16.vlgmr.msra.gmra.mrb[24].mxu0 %v12085_v22 }
 0x89d   :  { %15847 = vmatmul.mubr.bf16.vlgmr.msra.gmra.mrb[24].mxu1 %v12085_v22 }
 0x96f   :  { %v15520_v31 = vpop.f32.mrb[24].mxu0 }
 0x970   :  { %v18041_v58 = vadd.f32 %v15520_v31, %v12626_v28  ;;  %v15848_v32 = vpop.f32.mrb[24].mxu1  ;;  %v15522_v19 = vpop.f32.mrb[25].mxu0 }
 0x971   :  { %v18043_v2 = vadd.f32 %v15848_v32, %v12634_v16  ;;  %v18042_v11 = vadd.f32 %v15522_v19, %v12630_v30  ;;  %v15850_v40 = vpop.f32.mrb[25].mxu1  ;;  %v15524_v21 = vpop.f32.mrb[26].mxu0 }
 0x972   :  { %19082 = vtanh.f32 %v18041_v58  ;;  %v18044_v42 = vadd.f32 %v15850_v40, %v12638_v8  ;;  %v15852_v27 = vpop.f32.mrb[26].mxu1  ;;  %v15525_v46 = vpop.f32.mrb[27].mxu0 }
 0x973   :  { %19084 = vtanh.f32 %v18043_v2  ;;  %v15853_v35 = vpop.f32.mrb[27].mxu1 }
 0x974   :  { %19086 = vtanh.f32 %v18042_v11 }
 0x975   :  { %19088 = vtanh.f32 %v18044_v42 }
 0x97c   :  { %v19083_v55 = vpop.eup %19082 }
 0x97d   :  { %v19085_v41 = vpop.eup %19084  ;;  %v15895_v29 = vmul.f32 %v19083_v55, %v15882_v25 }
 0x97e   :  { %v19087_v56 = vpop.eup %19086  ;;  %v15897_v37 = vmul.f32 %v19085_v41, %v15890_v13 }
 0x97f   :  { %v19089_v60 = vpop.eup %19088  ;;  %v15896_v23 = vmul.f32 %v19087_v56, %v15886_v12  ;;  %v15935_v51 = vadd.f32 %v15922_v47, %v15895_v29 }
 0x980   :  { %v15898_v36 = vmul.f32 %v19089_v60, %v15894_v48  ;;  %v15937_v62 = vadd.f32 %v15930_v6, %v15897_v37 }
 0x981   :  { %v15936_v49 = vadd.f32 %v15926_v54, %v15896_v23  ;;  %15939 = vst [vmem:[#allocation13] sm:$0xff] %v15935_v51 }
 0x982   :  { %v15938_v57 = vadd.f32 %v15934_v63, %v15898_v36  ;;  %15941 = vst [vmem:[#allocation13 + $0x10] sm:$0xff] %v15937_v62 }
 0x983   :  { %15940 = vst [vmem:[#allocation13 + $0x8] sm:$0xff] %v15936_v49 }
 0x984   :  { %15942 = vst [vmem:[#allocation13 + $0x18] sm:$0xff] %v15938_v57 }
 0x985   :  { %19240 = shalt.err (!%p19237_p10)
}
 0x986   :  { %s19241_s27 = scalar_lea.hbm %s19917_s7, 512 }
 0x987   :  { %p19242_p11 = scmp.ne.s32.totalorder %s19917_s7, %s19241_s27  ;;  %p19245_p12 = scmp.lt.u32.totalorder %s19241_s27, %s19917_s7 }
 0x989   :  { %p19247_p13 = pnand %p19245_p12, %p19242_p11 }
 0x98b   :  { %19250 = shalt.err (!%p19247_p13)
}
 0x98c   :  { %15952 = dma.vmem_to_hbm [thread:$0]  %s15950_s9, 512, %s19917_s7, [#allocation4]  }
 0x98d   :  { %19259 = dma.done.wait [#allocation4], 512  }
 0x98e   :  { %19260 = vsyncadd [#allocation4], 4294966784 }
 0x98f   :  { %15956 = vsyncpa [#allocation3], 1 }
 0x990   :  { %15957 = vsyncpa [#allocation6], 1 }
 0x991   :  { %15958 = vsyncpa [#allocation9], 1 }
 0x992   :  { %15959 = vsyncpa [#allocation12], 1 }
 0x993   :  { %15960 = vsyncpa [#allocation4], 1 }

</bundles_post_ra>
